<compile_context>
chip_gen: v7x
topology: tpu7x:2x2x1
jax: 0.10.0
libtpu: 0.0.40
codegen_flags: <defaults>
</compile_context>

<pallas_src>
import functools

import numpy as np

import jax
import jax.numpy as jnp
from jax.experimental import pallas as pl
from jax.experimental.pallas import tpu as pltpu


# ---------------------------------------------------------------------------
# LeNet geometry (fixed by the PyTorch module: 3x32x32 input).
# ---------------------------------------------------------------------------
C1_IN, C1_OUT, K = 3, 6, 5
H_IN = W_IN = 32
H1 = W1 = H_IN - K + 1            # 28  conv1 output spatial
P1 = H1 // 2                      # 14  pool1 output spatial
C2_OUT = 16
H2 = W2 = P1 - K + 1              # 10  conv2 output spatial
P2 = H2 // 2                      # 5   pool2 output spatial
FC1, FC2 = 120, 84
LANE = 128                        # lane width / padded FC width
N1 = LANE                         # conv1 output cols, padded 84 -> 128
N2 = LANE                         # conv2 output cols, padded 80 -> 128


# ---------------------------------------------------------------------------
# The fused kernel: one grid step == NB images.
# ---------------------------------------------------------------------------
def _lenet_kernel(x_ref, t1_ref, b1_ref, t2_ref, b2_ref,
                  w1_ref, fb1_ref, w2_ref, fb2_ref, w3_ref, fb3_ref,
                  out_ref, s1_ref, p1_ref, s2_ref, fcin_ref, *, nb):
    f32 = jnp.float32

    # ---- per-image conv stages ------------------------------------------
    for b in range(nb):
        # conv1: per-channel, per-kernel-row dots.  Weight slab columns are
        # [even-parity (128) | odd-parity (128)] so the width half of the
        # 2x2 pool becomes one lane-aligned max of the two halves.
        acc1 = jnp.zeros((H1, 2 * N1), f32)
        for ci in range(C1_IN):
            for dh in range(K):
                lhs = x_ref[b, ci, dh:dh + H1, :]            # (28, 32)
                acc1 = acc1 + jnp.dot(lhs, t1_ref[ci, dh],
                                      preferred_element_type=f32)
        # width-pool max, then bias + ReLU (all monotone -> order commutes).
        s1_ref[...] = jnp.maximum(
            jnp.maximum(acc1[:, :N1], acc1[:, N1:]) + b1_ref[...], 0.0)
        # height half of the pool: one max of two stride-2 sublane loads.
        p1_ref[...] = jnp.maximum(s1_ref[pl.ds(0, P1, stride=2), :],
                                  s1_ref[pl.ds(1, P1, stride=2), :])

        # conv2 (+ReLU) + fused 2x2 pool, same scheme (contraction dim is the
        # 128-lane-padded pool1 column layout).
        acc2 = jnp.zeros((H2, 2 * N2), f32)
        for dh in range(K):
            lhs = p1_ref[dh:dh + H2, :]                      # (10, 128)
            acc2 = acc2 + jnp.dot(lhs, t2_ref[dh],
                                  preferred_element_type=f32)
        s2_ref[...] = jnp.maximum(
            jnp.maximum(acc2[:, :N2], acc2[:, N2:]) + b2_ref[...], 0.0)
        p2 = jnp.maximum(s2_ref[pl.ds(0, P2, stride=2), :],
                         s2_ref[pl.ds(1, P2, stride=2), :])  # (5, 128)

        # pack this image's fc1 input row: pool2 row h -> lanes [h*128, ...)
        # (lane-tile-aligned stores; fc1 weights are packed to match).
        for h in range(P2):
            fcin_ref[b:b + 1, h * LANE:(h + 1) * LANE] = p2[h:h + 1, :]

    # ---- batched FC stack: (NB,640)@(640,128) -> (NB,128)@(128,128) x2 ---
    y = jnp.maximum(jnp.dot(fcin_ref[...], w1_ref[...],
                            preferred_element_type=f32) + fb1_ref[...], 0.0)
    y = jnp.maximum(jnp.dot(y, w2_ref[...],
                            preferred_element_type=f32) + fb2_ref[...], 0.0)
    out_ref[0] = (jnp.dot(y, w3_ref[...], preferred_element_type=f32)
                  + fb3_ref[...])


def lenet_forward(packed, x, *, num_classes, nb=4):
    """Fused LeNet forward.  x: (B, 3, 32, 32) NCHW float32."""
    B = x.shape[0]
    g = -(-B // nb)                       # grid steps
    B_pad = g * nb
    if B_pad != B:                        # pad batch to a multiple of nb
        x = jnp.pad(x, ((0, B_pad - B), (0, 0), (0, 0), (0, 0)))

    def full(shape):
        zeros = (0,) * len(shape)
        return pl.BlockSpec(shape, lambda i, _z=zeros: _z)

    out = pl.pallas_call(
        functools.partial(_lenet_kernel, nb=nb),
        out_shape=jax.ShapeDtypeStruct((g, nb, LANE), jnp.float32),
        grid=(g,),
        in_specs=[
            pl.BlockSpec((nb, C1_IN, H_IN, W_IN),
                         lambda i: (i, 0, 0, 0)),            # x (NCHW, no
                                                             #  wrapper xpose)
            full((C1_IN, K, W_IN, 2 * N1)),   # conv1 slab (even|odd parity)
            full((1, N1)),                    # conv1 bias (column layout)
            full((K, N1, 2 * N2)),            # conv2 slab (even|odd parity)
            full((1, N2)),                    # conv2 bias (column layout)
            full((P2 * LANE, LANE)),          # fc1 weights (640, 128)
            full((1, LANE)),                  # fc1 bias
            full((LANE, LANE)),               # fc2 weights
            full((1, LANE)),                  # fc2 bias
            full((LANE, LANE)),               # fc3 weights
            full((1, LANE)),                  # fc3 bias
        ],
        out_specs=pl.BlockSpec((1, nb, LANE), lambda i: (i, 0, 0)),
        scratch_shapes=[
            pltpu.VMEM((H1, N1), jnp.float32),        # conv1 width-pooled
            pltpu.VMEM((P1, N1), jnp.float32),        # pool1 output
            pltpu.VMEM((H2, N2), jnp.float32),        # conv2 width-pooled
            pltpu.VMEM((nb, P2 * LANE), jnp.float32),  # fc1 input rows
        ],
        compiler_params=pltpu.CompilerParams(
            dimension_semantics=("parallel",)),
    )(x, packed["t1"], packed["b1c"], packed["t2"], packed["b2c"],
      packed["fc1_w"], packed["fc1_b"], packed["fc2_w"], packed["fc2_b"],
      packed["fc3_w"], packed["fc3_b"])
    return out.reshape(B_pad, LANE)[:B, :num_classes]


# ---------------------------------------------------------------------------
# Init-time weight packing (runs once, outside the jitted forward).
# ---------------------------------------------------------------------------
def pack_params(raw):
    w1 = np.asarray(raw["conv1_w"], np.float32)     # (6, 3, 5, 5)
    b1 = np.asarray(raw["conv1_b"], np.float32)
    w2 = np.asarray(raw["conv2_w"], np.float32)     # (16, 6, 5, 5)
    b2 = np.asarray(raw["conv2_b"], np.float32)

    # conv1 "Toeplitz" slab, per input channel and kernel row.  Column
    # par*128 + co*P1 + woh (wo = 2*woh + par) holds w1[co, ci, dh, dw] at
    # contraction row wi = wo + dw.
    t1 = np.zeros((C1_IN, K, W_IN, 2 * N1), np.float32)
    for co in range(C1_OUT):
        for ci in range(C1_IN):
            for dh in range(K):
                for woh in range(P1):
                    for par in range(2):
                        wo = 2 * woh + par
                        col = par * N1 + co * P1 + woh
                        for dw in range(K):
                            t1[ci, dh, wo + dw, col] = w1[co, ci, dh, dw]
    b1c = np.zeros((1, N1), np.float32)
    for co in range(C1_OUT):
        b1c[0, co * P1:(co + 1) * P1] = b1[co]

    # conv2 slab: contraction dim is the (128-padded) pool1 column layout
    # ci*P1 + wi; output column par*128 + co*P2 + woh.
    t2 = np.zeros((K, N1, 2 * N2), np.float32)
    for co in range(C2_OUT):
        for ci in range(C1_OUT):
            for dh in range(K):
                for woh in range(P2):
                    for par in range(2):
                        wo = 2 * woh + par
                        col = par * N2 + co * P2 + woh
                        for dw in range(K):
                            t2[dh, ci * P1 + wo + dw, col] = w2[co, ci, dh, dw]
    b2c = np.zeros((1, N2), np.float32)
    for co in range(C2_OUT):
        b2c[0, co * P2:(co + 1) * P2] = b2[co]

    # fc1: kernel packs pool2 row h into lanes [h*128, h*128+80) with
    # in-block index co*P2 + wo; PyTorch flatten order is co*25 + h*5 + wo.
    fw1 = np.asarray(raw["fc1_w"], np.float32)      # (120, 400)
    w1r = (fw1.reshape(FC1, C2_OUT, P2, P2)
              .transpose(2, 1, 3, 0)
              .reshape(P2, C2_OUT * P2, FC1))       # (5, 80, 120)
    fc1_w = np.zeros((P2, LANE, LANE), np.float32)
    fc1_w[:, :C2_OUT * P2, :FC1] = w1r
    fc1_w = fc1_w.reshape(P2 * LANE, LANE)          # (640, 128)
    fc1_b = np.zeros((1, LANE), np.float32)
    fc1_b[0, :FC1] = np.asarray(raw["fc1_b"], np.float32)

    fc2_w = np.zeros((LANE, LANE), np.float32)
    fc2_w[:FC1, :FC2] = np.asarray(raw["fc2_w"], np.float32).T
    fc2_b = np.zeros((1, LANE), np.float32)
    fc2_b[0, :FC2] = np.asarray(raw["fc2_b"], np.float32)

    n_cls = int(raw["fc3_w"].shape[0])
    assert n_cls <= LANE
    fc3_w = np.zeros((LANE, LANE), np.float32)
    fc3_w[:FC2, :n_cls] = np.asarray(raw["fc3_w"], np.float32).T
    fc3_b = np.zeros((1, LANE), np.float32)
    fc3_b[0, :n_cls] = np.asarray(raw["fc3_b"], np.float32)

    # Padded lanes/rows must be exactly zero (the final [:, :classes] slice
    # and the padded-lane matmuls rely on it).
    assert not fc1_w[:, FC1:].any() and not fc1_b[0, FC1:].any()
    assert not fc2_w[FC1:, :].any() and not fc2_w[:, FC2:].any()
    assert not fc2_b[0, FC2:].any()
    assert not fc3_w[FC2:, :].any() and not fc3_w[:, n_cls:].any()
    assert not fc3_b[0, n_cls:].any()

    return {
        "t1": jnp.asarray(t1), "b1c": jnp.asarray(b1c),
        "t2": jnp.asarray(t2), "b2c": jnp.asarray(b2c),
        "fc1_w": jnp.asarray(fc1_w), "fc1_b": jnp.asarray(fc1_b),
        "fc2_w": jnp.asarray(fc2_w), "fc2_b": jnp.asarray(fc2_b),
        "fc3_w": jnp.asarray(fc3_w), "fc3_b": jnp.asarray(fc3_b),
    }


# ---------------------------------------------------------------------------
# Raw (PyTorch-style) parameters + pure-JAX reference for verification.
# ---------------------------------------------------------------------------
def init_lenet_params(key, classes):
    ks = jax.random.split(key, 10)

    def conv_w(k, cout, cin, ksz):
        fan_in, fan_out = cin * ksz * ksz, cout * ksz * ksz
        std = (2.0 / (fan_in + fan_out)) ** 0.5          # xavier normal
        return std * jax.random.normal(k, (cout, cin, ksz, ksz), jnp.float32)

    def fc_w(k, cout, cin):
        std = (2.0 / cin) ** 0.5                         # kaiming normal
        return std * jax.random.normal(k, (cout, cin), jnp.float32)

    def bias(k, n, fan_in):                              # small non-zero bias
        bound = 1.0 / (fan_in ** 0.5)                    # exercises bias path
        return jax.random.uniform(k, (n,), jnp.float32, -bound, bound)

    return {
        "conv1_w": conv_w(ks[0], 6, 3, 5),  "conv1_b": bias(ks[1], 6, 75),
        "conv2_w": conv_w(ks[2], 16, 6, 5), "conv2_b": bias(ks[3], 16, 150),
        "fc1_w": fc_w(ks[4], 120, 400),     "fc1_b": bias(ks[5], 120, 400),
        "fc2_w": fc_w(ks[6], 84, 120),      "fc2_b": bias(ks[7], 84, 120),
        "fc3_w": fc_w(ks[8], classes, 84),  "fc3_b": bias(ks[9], classes, 84),
    }


def lenet_reference(raw, x):
    """Plain-JAX replica of the PyTorch LeNet forward (verification only)."""
    hp = jax.lax.Precision.HIGHEST

    def conv(v, w, b):
        y = jax.lax.conv_general_dilated(
            v, w, window_strides=(1, 1), padding="VALID",
            dimension_numbers=("NCHW", "OIHW", "NCHW"), precision=hp)
        return y + b.reshape(1, -1, 1, 1)

    def pool2(v):
        return jnp.maximum(
            jnp.maximum(v[:, :, 0::2, 0::2], v[:, :, 0::2, 1::2]),
            jnp.maximum(v[:, :, 1::2, 0::2], v[:, :, 1::2, 1::2]))

    out = pool2(jax.nn.relu(conv(x, raw["conv1_w"], raw["conv1_b"])))
    out = pool2(jax.nn.relu(conv(out, raw["conv2_w"], raw["conv2_b"])))
    out = out.reshape(out.shape[0], -1)
    out = jax.nn.relu(jnp.dot(out, raw["fc1_w"].T, precision=hp)
                      + raw["fc1_b"])
    out = jax.nn.relu(jnp.dot(out, raw["fc2_w"].T, precision=hp)
                      + raw["fc2_b"])
    return jnp.dot(out, raw["fc3_w"].T, precision=hp) + raw["fc3_b"]


if __name__ == "__main__":
    classes = 4
    key = jax.random.PRNGKey(0)
    k_params, k_x = jax.random.split(key)

    raw = init_lenet_params(k_params, classes)
    packed = pack_params(raw)                 # one-time, init-side packing

    # LeNet's fc1 (16*5*5) forces a 3x32x32 input.  B=8 with NB=4 gives a
    # 2-step grid (both v7x TensorCores get work).
    x = jax.random.normal(k_x, (8, 3, 32, 32), jnp.float32)

    fwd = jax.jit(functools.partial(lenet_forward, num_classes=classes, nb=4))
    logits = fwd(packed, x)
    jax.block_until_ready(logits)
    assert logits.shape == (8, classes)

    # Cross-check the fused kernel against a plain-JAX high-precision forward.
    ref = jax.jit(lenet_reference)(raw, x)
    max_err = float(np.max(np.abs(np.asarray(logits) - np.asarray(ref))))
    assert np.allclose(np.asarray(logits), np.asarray(ref),
                       rtol=1e-3, atol=1e-3), max_err

    print("KERNEL_OK")
</pallas_src>

<mosaic_0001>
module attributes {stable_mosaic.version = 11 : i64} {
  func.func @_lenet_kernel(%arg0: i32, %arg1: memref<4x3x32x32xf32, #tpu.memory_space<vmem>>, %arg2: memref<3x5x32x256xf32, #tpu.memory_space<vmem>>, %arg3: memref<1x128xf32, #tpu.memory_space<vmem>>, %arg4: memref<5x128x256xf32, #tpu.memory_space<vmem>>, %arg5: memref<1x128xf32, #tpu.memory_space<vmem>>, %arg6: memref<640x128xf32, #tpu.memory_space<vmem>>, %arg7: memref<1x128xf32, #tpu.memory_space<vmem>>, %arg8: memref<128x128xf32, #tpu.memory_space<vmem>>, %arg9: memref<1x128xf32, #tpu.memory_space<vmem>>, %arg10: memref<128x128xf32, #tpu.memory_space<vmem>>, %arg11: memref<1x128xf32, #tpu.memory_space<vmem>>, %arg12: memref<1x4x128xf32, #tpu.memory_space<vmem>>, %arg13: memref<28x128xf32, #tpu.memory_space<vmem>>, %arg14: memref<14x128xf32, #tpu.memory_space<vmem>>, %arg15: memref<10x128xf32, #tpu.memory_space<vmem>>, %arg16: memref<4x640xf32, #tpu.memory_space<vmem>>) attributes {dimension_semantics = [#tpu.dimension_semantics<parallel>], iteration_bounds = array<i64: 2>, scalar_prefetch = 0 : i64, scratch_operands = 4 : i64, tpu.core_type = #tpu.core_type<tc>, window_params = [{transform_indices = @transform_0, window_bounds = array<i64: 4, 3, 32, 32>}, {pipeline_mode = #tpu.pipeline_mode<synchronous>, transform_indices = @transform_1, window_bounds = array<i64: 3, 5, 32, 256>}, {pipeline_mode = #tpu.pipeline_mode<synchronous>, transform_indices = @transform_2, window_bounds = array<i64: 1, 128>}, {pipeline_mode = #tpu.pipeline_mode<synchronous>, transform_indices = @transform_3, window_bounds = array<i64: 5, 128, 256>}, {pipeline_mode = #tpu.pipeline_mode<synchronous>, transform_indices = @transform_4, window_bounds = array<i64: 1, 128>}, {pipeline_mode = #tpu.pipeline_mode<synchronous>, transform_indices = @transform_5, window_bounds = array<i64: 640, 128>}, {pipeline_mode = #tpu.pipeline_mode<synchronous>, transform_indices = @transform_6, window_bounds = array<i64: 1, 128>}, {pipeline_mode = #tpu.pipeline_mode<synchronous>, transform_indices = @transform_7, window_bounds = array<i64: 128, 128>}, {pipeline_mode = #tpu.pipeline_mode<synchronous>, transform_indices = @transform_8, window_bounds = array<i64: 1, 128>}, {pipeline_mode = #tpu.pipeline_mode<synchronous>, transform_indices = @transform_9, window_bounds = array<i64: 128, 128>}, {pipeline_mode = #tpu.pipeline_mode<synchronous>, transform_indices = @transform_10, window_bounds = array<i64: 1, 128>}, {transform_indices = @transform_11, window_bounds = array<i64: 1, 4, 128>}]} {
    %cst = arith.constant 0.000000e+00 : f32
    %0 = vector.broadcast %cst : f32 to vector<28x256xf32>
    %c0 = arith.constant 0 : index
    %c0_0 = arith.constant 0 : index
    %c0_1 = arith.constant 0 : index
    %c0_2 = arith.constant 0 : index
    %1 = vector.load %arg1[%c0, %c0_0, %c0_1, %c0_2] : memref<4x3x32x32xf32, #tpu.memory_space<vmem>>, vector<1x1x28x32xf32>
    %2 = vector.shape_cast %1 : vector<1x1x28x32xf32> to vector<28x32xf32>
    %c0_3 = arith.constant 0 : index
    %c0_4 = arith.constant 0 : index
    %c0_5 = arith.constant 0 : index
    %c0_6 = arith.constant 0 : index
    %3 = vector.load %arg2[%c0_3, %c0_4, %c0_5, %c0_6] : memref<3x5x32x256xf32, #tpu.memory_space<vmem>>, vector<1x1x32x256xf32>
    %4 = vector.shape_cast %3 : vector<1x1x32x256xf32> to vector<32x256xf32>
    %cst_7 = arith.constant dense<0.000000e+00> : vector<28x256xf32>
    %5 = tpu.matmul %2, %4, %cst_7 {dimension_numbers = #tpu.dot_dimension_numbers<[1], [0], [0], [1], [0, 0, 1, 1], [], []>} : vector<28x32xf32>, vector<32x256xf32>, vector<28x256xf32> -> vector<28x256xf32>
    %6 = arith.addf %0, %5 : vector<28x256xf32>
    %c0_8 = arith.constant 0 : index
    %c0_9 = arith.constant 0 : index
    %c1 = arith.constant 1 : index
    %c0_10 = arith.constant 0 : index
    %7 = vector.load %arg1[%c0_8, %c0_9, %c1, %c0_10] : memref<4x3x32x32xf32, #tpu.memory_space<vmem>>, vector<1x1x28x32xf32>
    %8 = vector.shape_cast %7 : vector<1x1x28x32xf32> to vector<28x32xf32>
    %c0_11 = arith.constant 0 : index
    %c1_12 = arith.constant 1 : index
    %c0_13 = arith.constant 0 : index
    %c0_14 = arith.constant 0 : index
    %9 = vector.load %arg2[%c0_11, %c1_12, %c0_13, %c0_14] : memref<3x5x32x256xf32, #tpu.memory_space<vmem>>, vector<1x1x32x256xf32>
    %10 = vector.shape_cast %9 : vector<1x1x32x256xf32> to vector<32x256xf32>
    %cst_15 = arith.constant dense<0.000000e+00> : vector<28x256xf32>
    %11 = tpu.matmul %8, %10, %cst_15 {dimension_numbers = #tpu.dot_dimension_numbers<[1], [0], [0], [1], [0, 0, 1, 1], [], []>} : vector<28x32xf32>, vector<32x256xf32>, vector<28x256xf32> -> vector<28x256xf32>
    %12 = arith.addf %6, %11 : vector<28x256xf32>
    %c0_16 = arith.constant 0 : index
    %c0_17 = arith.constant 0 : index
    %c2 = arith.constant 2 : index
    %c0_18 = arith.constant 0 : index
    %13 = vector.load %arg1[%c0_16, %c0_17, %c2, %c0_18] : memref<4x3x32x32xf32, #tpu.memory_space<vmem>>, vector<1x1x28x32xf32>
    %14 = vector.shape_cast %13 : vector<1x1x28x32xf32> to vector<28x32xf32>
    %c0_19 = arith.constant 0 : index
    %c2_20 = arith.constant 2 : index
    %c0_21 = arith.constant 0 : index
    %c0_22 = arith.constant 0 : index
    %15 = vector.load %arg2[%c0_19, %c2_20, %c0_21, %c0_22] : memref<3x5x32x256xf32, #tpu.memory_space<vmem>>, vector<1x1x32x256xf32>
    %16 = vector.shape_cast %15 : vector<1x1x32x256xf32> to vector<32x256xf32>
    %cst_23 = arith.constant dense<0.000000e+00> : vector<28x256xf32>
    %17 = tpu.matmul %14, %16, %cst_23 {dimension_numbers = #tpu.dot_dimension_numbers<[1], [0], [0], [1], [0, 0, 1, 1], [], []>} : vector<28x32xf32>, vector<32x256xf32>, vector<28x256xf32> -> vector<28x256xf32>
    %18 = arith.addf %12, %17 : vector<28x256xf32>
    %c0_24 = arith.constant 0 : index
    %c0_25 = arith.constant 0 : index
    %c3 = arith.constant 3 : index
    %c0_26 = arith.constant 0 : index
    %19 = vector.load %arg1[%c0_24, %c0_25, %c3, %c0_26] : memref<4x3x32x32xf32, #tpu.memory_space<vmem>>, vector<1x1x28x32xf32>
    %20 = vector.shape_cast %19 : vector<1x1x28x32xf32> to vector<28x32xf32>
    %c0_27 = arith.constant 0 : index
    %c3_28 = arith.constant 3 : index
    %c0_29 = arith.constant 0 : index
    %c0_30 = arith.constant 0 : index
    %21 = vector.load %arg2[%c0_27, %c3_28, %c0_29, %c0_30] : memref<3x5x32x256xf32, #tpu.memory_space<vmem>>, vector<1x1x32x256xf32>
    %22 = vector.shape_cast %21 : vector<1x1x32x256xf32> to vector<32x256xf32>
    %cst_31 = arith.constant dense<0.000000e+00> : vector<28x256xf32>
    %23 = tpu.matmul %20, %22, %cst_31 {dimension_numbers = #tpu.dot_dimension_numbers<[1], [0], [0], [1], [0, 0, 1, 1], [], []>} : vector<28x32xf32>, vector<32x256xf32>, vector<28x256xf32> -> vector<28x256xf32>
    %24 = arith.addf %18, %23 : vector<28x256xf32>
    %c0_32 = arith.constant 0 : index
    %c0_33 = arith.constant 0 : index
    %c4 = arith.constant 4 : index
    %c0_34 = arith.constant 0 : index
    %25 = vector.load %arg1[%c0_32, %c0_33, %c4, %c0_34] : memref<4x3x32x32xf32, #tpu.memory_space<vmem>>, vector<1x1x28x32xf32>
    %26 = vector.shape_cast %25 : vector<1x1x28x32xf32> to vector<28x32xf32>
    %c0_35 = arith.constant 0 : index
    %c4_36 = arith.constant 4 : index
    %c0_37 = arith.constant 0 : index
    %c0_38 = arith.constant 0 : index
    %27 = vector.load %arg2[%c0_35, %c4_36, %c0_37, %c0_38] : memref<3x5x32x256xf32, #tpu.memory_space<vmem>>, vector<1x1x32x256xf32>
    %28 = vector.shape_cast %27 : vector<1x1x32x256xf32> to vector<32x256xf32>
    %cst_39 = arith.constant dense<0.000000e+00> : vector<28x256xf32>
    %29 = tpu.matmul %26, %28, %cst_39 {dimension_numbers = #tpu.dot_dimension_numbers<[1], [0], [0], [1], [0, 0, 1, 1], [], []>} : vector<28x32xf32>, vector<32x256xf32>, vector<28x256xf32> -> vector<28x256xf32>
    %30 = arith.addf %24, %29 : vector<28x256xf32>
    %c0_40 = arith.constant 0 : index
    %c1_41 = arith.constant 1 : index
    %c0_42 = arith.constant 0 : index
    %c0_43 = arith.constant 0 : index
    %31 = vector.load %arg1[%c0_40, %c1_41, %c0_42, %c0_43] : memref<4x3x32x32xf32, #tpu.memory_space<vmem>>, vector<1x1x28x32xf32>
    %32 = vector.shape_cast %31 : vector<1x1x28x32xf32> to vector<28x32xf32>
    %c1_44 = arith.constant 1 : index
    %c0_45 = arith.constant 0 : index
    %c0_46 = arith.constant 0 : index
    %c0_47 = arith.constant 0 : index
    %33 = vector.load %arg2[%c1_44, %c0_45, %c0_46, %c0_47] : memref<3x5x32x256xf32, #tpu.memory_space<vmem>>, vector<1x1x32x256xf32>
    %34 = vector.shape_cast %33 : vector<1x1x32x256xf32> to vector<32x256xf32>
    %cst_48 = arith.constant dense<0.000000e+00> : vector<28x256xf32>
    %35 = tpu.matmul %32, %34, %cst_48 {dimension_numbers = #tpu.dot_dimension_numbers<[1], [0], [0], [1], [0, 0, 1, 1], [], []>} : vector<28x32xf32>, vector<32x256xf32>, vector<28x256xf32> -> vector<28x256xf32>
    %36 = arith.addf %30, %35 : vector<28x256xf32>
    %c0_49 = arith.constant 0 : index
    %c1_50 = arith.constant 1 : index
    %c1_51 = arith.constant 1 : index
    %c0_52 = arith.constant 0 : index
    %37 = vector.load %arg1[%c0_49, %c1_50, %c1_51, %c0_52] : memref<4x3x32x32xf32, #tpu.memory_space<vmem>>, vector<1x1x28x32xf32>
    %38 = vector.shape_cast %37 : vector<1x1x28x32xf32> to vector<28x32xf32>
    %c1_53 = arith.constant 1 : index
    %c1_54 = arith.constant 1 : index
    %c0_55 = arith.constant 0 : index
    %c0_56 = arith.constant 0 : index
    %39 = vector.load %arg2[%c1_53, %c1_54, %c0_55, %c0_56] : memref<3x5x32x256xf32, #tpu.memory_space<vmem>>, vector<1x1x32x256xf32>
    %40 = vector.shape_cast %39 : vector<1x1x32x256xf32> to vector<32x256xf32>
    %cst_57 = arith.constant dense<0.000000e+00> : vector<28x256xf32>
    %41 = tpu.matmul %38, %40, %cst_57 {dimension_numbers = #tpu.dot_dimension_numbers<[1], [0], [0], [1], [0, 0, 1, 1], [], []>} : vector<28x32xf32>, vector<32x256xf32>, vector<28x256xf32> -> vector<28x256xf32>
    %42 = arith.addf %36, %41 : vector<28x256xf32>
    %c0_58 = arith.constant 0 : index
    %c1_59 = arith.constant 1 : index
    %c2_60 = arith.constant 2 : index
    %c0_61 = arith.constant 0 : index
    %43 = vector.load %arg1[%c0_58, %c1_59, %c2_60, %c0_61] : memref<4x3x32x32xf32, #tpu.memory_space<vmem>>, vector<1x1x28x32xf32>
    %44 = vector.shape_cast %43 : vector<1x1x28x32xf32> to vector<28x32xf32>
    %c1_62 = arith.constant 1 : index
    %c2_63 = arith.constant 2 : index
    %c0_64 = arith.constant 0 : index
    %c0_65 = arith.constant 0 : index
    %45 = vector.load %arg2[%c1_62, %c2_63, %c0_64, %c0_65] : memref<3x5x32x256xf32, #tpu.memory_space<vmem>>, vector<1x1x32x256xf32>
    %46 = vector.shape_cast %45 : vector<1x1x32x256xf32> to vector<32x256xf32>
    %cst_66 = arith.constant dense<0.000000e+00> : vector<28x256xf32>
    %47 = tpu.matmul %44, %46, %cst_66 {dimension_numbers = #tpu.dot_dimension_numbers<[1], [0], [0], [1], [0, 0, 1, 1], [], []>} : vector<28x32xf32>, vector<32x256xf32>, vector<28x256xf32> -> vector<28x256xf32>
    %48 = arith.addf %42, %47 : vector<28x256xf32>
    %c0_67 = arith.constant 0 : index
    %c1_68 = arith.constant 1 : index
    %c3_69 = arith.constant 3 : index
    %c0_70 = arith.constant 0 : index
    %49 = vector.load %arg1[%c0_67, %c1_68, %c3_69, %c0_70] : memref<4x3x32x32xf32, #tpu.memory_space<vmem>>, vector<1x1x28x32xf32>
    %50 = vector.shape_cast %49 : vector<1x1x28x32xf32> to vector<28x32xf32>
    %c1_71 = arith.constant 1 : index
    %c3_72 = arith.constant 3 : index
    %c0_73 = arith.constant 0 : index
    %c0_74 = arith.constant 0 : index
    %51 = vector.load %arg2[%c1_71, %c3_72, %c0_73, %c0_74] : memref<3x5x32x256xf32, #tpu.memory_space<vmem>>, vector<1x1x32x256xf32>
    %52 = vector.shape_cast %51 : vector<1x1x32x256xf32> to vector<32x256xf32>
    %cst_75 = arith.constant dense<0.000000e+00> : vector<28x256xf32>
    %53 = tpu.matmul %50, %52, %cst_75 {dimension_numbers = #tpu.dot_dimension_numbers<[1], [0], [0], [1], [0, 0, 1, 1], [], []>} : vector<28x32xf32>, vector<32x256xf32>, vector<28x256xf32> -> vector<28x256xf32>
    %54 = arith.addf %48, %53 : vector<28x256xf32>
    %c0_76 = arith.constant 0 : index
    %c1_77 = arith.constant 1 : index
    %c4_78 = arith.constant 4 : index
    %c0_79 = arith.constant 0 : index
    %55 = vector.load %arg1[%c0_76, %c1_77, %c4_78, %c0_79] : memref<4x3x32x32xf32, #tpu.memory_space<vmem>>, vector<1x1x28x32xf32>
    %56 = vector.shape_cast %55 : vector<1x1x28x32xf32> to vector<28x32xf32>
    %c1_80 = arith.constant 1 : index
    %c4_81 = arith.constant 4 : index
    %c0_82 = arith.constant 0 : index
    %c0_83 = arith.constant 0 : index
    %57 = vector.load %arg2[%c1_80, %c4_81, %c0_82, %c0_83] : memref<3x5x32x256xf32, #tpu.memory_space<vmem>>, vector<1x1x32x256xf32>
    %58 = vector.shape_cast %57 : vector<1x1x32x256xf32> to vector<32x256xf32>
    %cst_84 = arith.constant dense<0.000000e+00> : vector<28x256xf32>
    %59 = tpu.matmul %56, %58, %cst_84 {dimension_numbers = #tpu.dot_dimension_numbers<[1], [0], [0], [1], [0, 0, 1, 1], [], []>} : vector<28x32xf32>, vector<32x256xf32>, vector<28x256xf32> -> vector<28x256xf32>
    %60 = arith.addf %54, %59 : vector<28x256xf32>
    %c0_85 = arith.constant 0 : index
    %c2_86 = arith.constant 2 : index
    %c0_87 = arith.constant 0 : index
    %c0_88 = arith.constant 0 : index
    %61 = vector.load %arg1[%c0_85, %c2_86, %c0_87, %c0_88] : memref<4x3x32x32xf32, #tpu.memory_space<vmem>>, vector<1x1x28x32xf32>
    %62 = vector.shape_cast %61 : vector<1x1x28x32xf32> to vector<28x32xf32>
    %c2_89 = arith.constant 2 : index
    %c0_90 = arith.constant 0 : index
    %c0_91 = arith.constant 0 : index
    %c0_92 = arith.constant 0 : index
    %63 = vector.load %arg2[%c2_89, %c0_90, %c0_91, %c0_92] : memref<3x5x32x256xf32, #tpu.memory_space<vmem>>, vector<1x1x32x256xf32>
    %64 = vector.shape_cast %63 : vector<1x1x32x256xf32> to vector<32x256xf32>
    %cst_93 = arith.constant dense<0.000000e+00> : vector<28x256xf32>
    %65 = tpu.matmul %62, %64, %cst_93 {dimension_numbers = #tpu.dot_dimension_numbers<[1], [0], [0], [1], [0, 0, 1, 1], [], []>} : vector<28x32xf32>, vector<32x256xf32>, vector<28x256xf32> -> vector<28x256xf32>
    %66 = arith.addf %60, %65 : vector<28x256xf32>
    %c0_94 = arith.constant 0 : index
    %c2_95 = arith.constant 2 : index
    %c1_96 = arith.constant 1 : index
    %c0_97 = arith.constant 0 : index
    %67 = vector.load %arg1[%c0_94, %c2_95, %c1_96, %c0_97] : memref<4x3x32x32xf32, #tpu.memory_space<vmem>>, vector<1x1x28x32xf32>
    %68 = vector.shape_cast %67 : vector<1x1x28x32xf32> to vector<28x32xf32>
    %c2_98 = arith.constant 2 : index
    %c1_99 = arith.constant 1 : index
    %c0_100 = arith.constant 0 : index
    %c0_101 = arith.constant 0 : index
    %69 = vector.load %arg2[%c2_98, %c1_99, %c0_100, %c0_101] : memref<3x5x32x256xf32, #tpu.memory_space<vmem>>, vector<1x1x32x256xf32>
    %70 = vector.shape_cast %69 : vector<1x1x32x256xf32> to vector<32x256xf32>
    %cst_102 = arith.constant dense<0.000000e+00> : vector<28x256xf32>
    %71 = tpu.matmul %68, %70, %cst_102 {dimension_numbers = #tpu.dot_dimension_numbers<[1], [0], [0], [1], [0, 0, 1, 1], [], []>} : vector<28x32xf32>, vector<32x256xf32>, vector<28x256xf32> -> vector<28x256xf32>
    %72 = arith.addf %66, %71 : vector<28x256xf32>
    %c0_103 = arith.constant 0 : index
    %c2_104 = arith.constant 2 : index
    %c2_105 = arith.constant 2 : index
    %c0_106 = arith.constant 0 : index
    %73 = vector.load %arg1[%c0_103, %c2_104, %c2_105, %c0_106] : memref<4x3x32x32xf32, #tpu.memory_space<vmem>>, vector<1x1x28x32xf32>
    %74 = vector.shape_cast %73 : vector<1x1x28x32xf32> to vector<28x32xf32>
    %c2_107 = arith.constant 2 : index
    %c2_108 = arith.constant 2 : index
    %c0_109 = arith.constant 0 : index
    %c0_110 = arith.constant 0 : index
    %75 = vector.load %arg2[%c2_107, %c2_108, %c0_109, %c0_110] : memref<3x5x32x256xf32, #tpu.memory_space<vmem>>, vector<1x1x32x256xf32>
    %76 = vector.shape_cast %75 : vector<1x1x32x256xf32> to vector<32x256xf32>
    %cst_111 = arith.constant dense<0.000000e+00> : vector<28x256xf32>
    %77 = tpu.matmul %74, %76, %cst_111 {dimension_numbers = #tpu.dot_dimension_numbers<[1], [0], [0], [1], [0, 0, 1, 1], [], []>} : vector<28x32xf32>, vector<32x256xf32>, vector<28x256xf32> -> vector<28x256xf32>
    %78 = arith.addf %72, %77 : vector<28x256xf32>
    %c0_112 = arith.constant 0 : index
    %c2_113 = arith.constant 2 : index
    %c3_114 = arith.constant 3 : index
    %c0_115 = arith.constant 0 : index
    %79 = vector.load %arg1[%c0_112, %c2_113, %c3_114, %c0_115] : memref<4x3x32x32xf32, #tpu.memory_space<vmem>>, vector<1x1x28x32xf32>
    %80 = vector.shape_cast %79 : vector<1x1x28x32xf32> to vector<28x32xf32>
    %c2_116 = arith.constant 2 : index
    %c3_117 = arith.constant 3 : index
    %c0_118 = arith.constant 0 : index
    %c0_119 = arith.constant 0 : index
    %81 = vector.load %arg2[%c2_116, %c3_117, %c0_118, %c0_119] : memref<3x5x32x256xf32, #tpu.memory_space<vmem>>, vector<1x1x32x256xf32>
    %82 = vector.shape_cast %81 : vector<1x1x32x256xf32> to vector<32x256xf32>
    %cst_120 = arith.constant dense<0.000000e+00> : vector<28x256xf32>
    %83 = tpu.matmul %80, %82, %cst_120 {dimension_numbers = #tpu.dot_dimension_numbers<[1], [0], [0], [1], [0, 0, 1, 1], [], []>} : vector<28x32xf32>, vector<32x256xf32>, vector<28x256xf32> -> vector<28x256xf32>
    %84 = arith.addf %78, %83 : vector<28x256xf32>
    %c0_121 = arith.constant 0 : index
    %c2_122 = arith.constant 2 : index
    %c4_123 = arith.constant 4 : index
    %c0_124 = arith.constant 0 : index
    %85 = vector.load %arg1[%c0_121, %c2_122, %c4_123, %c0_124] : memref<4x3x32x32xf32, #tpu.memory_space<vmem>>, vector<1x1x28x32xf32>
    %86 = vector.shape_cast %85 : vector<1x1x28x32xf32> to vector<28x32xf32>
    %c2_125 = arith.constant 2 : index
    %c4_126 = arith.constant 4 : index
    %c0_127 = arith.constant 0 : index
    %c0_128 = arith.constant 0 : index
    %87 = vector.load %arg2[%c2_125, %c4_126, %c0_127, %c0_128] : memref<3x5x32x256xf32, #tpu.memory_space<vmem>>, vector<1x1x32x256xf32>
    %88 = vector.shape_cast %87 : vector<1x1x32x256xf32> to vector<32x256xf32>
    %cst_129 = arith.constant dense<0.000000e+00> : vector<28x256xf32>
    %89 = tpu.matmul %86, %88, %cst_129 {dimension_numbers = #tpu.dot_dimension_numbers<[1], [0], [0], [1], [0, 0, 1, 1], [], []>} : vector<28x32xf32>, vector<32x256xf32>, vector<28x256xf32> -> vector<28x256xf32>
    %90 = arith.addf %84, %89 : vector<28x256xf32>
    %91 = vector.extract_strided_slice %90 {offsets = [0, 0], sizes = [28, 128], strides = [1, 1]} : vector<28x256xf32> to vector<28x128xf32>
    %92 = vector.extract_strided_slice %90 {offsets = [0, 128], sizes = [28, 128], strides = [1, 1]} : vector<28x256xf32> to vector<28x128xf32>
    %93 = arith.maximumf %91, %92 : vector<28x128xf32>
    %c0_130 = arith.constant 0 : index
    %c0_131 = arith.constant 0 : index
    %94 = vector.load %arg3[%c0_130, %c0_131] : memref<1x128xf32, #tpu.memory_space<vmem>>, vector<1x128xf32>
    %95 = vector.broadcast %94 : vector<1x128xf32> to vector<28x128xf32>
    %96 = arith.addf %93, %95 : vector<28x128xf32>
    %cst_132 = arith.constant 0.000000e+00 : f32
    %97 = vector.broadcast %cst_132 : f32 to vector<28x128xf32>
    %98 = arith.maximumf %96, %97 : vector<28x128xf32>
    %c0_133 = arith.constant 0 : index
    %c0_134 = arith.constant 0 : index
    %99 = vector.load %arg13[%c0_133, %c0_134] : memref<28x128xf32, #tpu.memory_space<vmem>>, vector<28x128xf32>
    tpu.vector_store %arg13[%c0_133, %c0_134], %98 {strides = array<i32>} : memref<28x128xf32, #tpu.memory_space<vmem>>, vector<28x128xf32>,
    %c0_135 = arith.constant 0 : index
    %c0_136 = arith.constant 0 : index
    %100 = tpu.strided_load %arg13[%c0_135, %c0_136] {strides = array<i32: 2, 1>} : memref<28x128xf32, #tpu.memory_space<vmem>>, vector<14x128xf32>
    %c1_137 = arith.constant 1 : index
    %c0_138 = arith.constant 0 : index
    %101 = tpu.strided_load %arg13[%c1_137, %c0_138] {strides = array<i32: 2, 1>} : memref<28x128xf32, #tpu.memory_space<vmem>>, vector<14x128xf32>
    %102 = arith.maximumf %100, %101 : vector<14x128xf32>
    %c0_139 = arith.constant 0 : index
    %c0_140 = arith.constant 0 : index
    %103 = vector.load %arg14[%c0_139, %c0_140] : memref<14x128xf32, #tpu.memory_space<vmem>>, vector<14x128xf32>
    tpu.vector_store %arg14[%c0_139, %c0_140], %102 {strides = array<i32>} : memref<14x128xf32, #tpu.memory_space<vmem>>, vector<14x128xf32>,
    %cst_141 = arith.constant 0.000000e+00 : f32
    %104 = vector.broadcast %cst_141 : f32 to vector<10x256xf32>
    %c0_142 = arith.constant 0 : index
    %c0_143 = arith.constant 0 : index
    %105 = vector.load %arg14[%c0_142, %c0_143] : memref<14x128xf32, #tpu.memory_space<vmem>>, vector<10x128xf32>
    %c0_144 = arith.constant 0 : index
    %c0_145 = arith.constant 0 : index
    %c0_146 = arith.constant 0 : index
    %106 = vector.load %arg4[%c0_144, %c0_145, %c0_146] : memref<5x128x256xf32, #tpu.memory_space<vmem>>, vector<1x128x256xf32>
    %107 = vector.shape_cast %106 : vector<1x128x256xf32> to vector<128x256xf32>
    %cst_147 = arith.constant dense<0.000000e+00> : vector<10x256xf32>
    %108 = tpu.matmul %105, %107, %cst_147 {dimension_numbers = #tpu.dot_dimension_numbers<[1], [0], [0], [1], [0, 0, 1, 1], [], []>} : vector<10x128xf32>, vector<128x256xf32>, vector<10x256xf32> -> vector<10x256xf32>
    %109 = arith.addf %104, %108 : vector<10x256xf32>
    %c1_148 = arith.constant 1 : index
    %c0_149 = arith.constant 0 : index
    %110 = vector.load %arg14[%c1_148, %c0_149] : memref<14x128xf32, #tpu.memory_space<vmem>>, vector<10x128xf32>
    %c1_150 = arith.constant 1 : index
    %c0_151 = arith.constant 0 : index
    %c0_152 = arith.constant 0 : index
    %111 = vector.load %arg4[%c1_150, %c0_151, %c0_152] : memref<5x128x256xf32, #tpu.memory_space<vmem>>, vector<1x128x256xf32>
    %112 = vector.shape_cast %111 : vector<1x128x256xf32> to vector<128x256xf32>
    %cst_153 = arith.constant dense<0.000000e+00> : vector<10x256xf32>
    %113 = tpu.matmul %110, %112, %cst_153 {dimension_numbers = #tpu.dot_dimension_numbers<[1], [0], [0], [1], [0, 0, 1, 1], [], []>} : vector<10x128xf32>, vector<128x256xf32>, vector<10x256xf32> -> vector<10x256xf32>
    %114 = arith.addf %109, %113 : vector<10x256xf32>
    %c2_154 = arith.constant 2 : index
    %c0_155 = arith.constant 0 : index
    %115 = vector.load %arg14[%c2_154, %c0_155] : memref<14x128xf32, #tpu.memory_space<vmem>>, vector<10x128xf32>
    %c2_156 = arith.constant 2 : index
    %c0_157 = arith.constant 0 : index
    %c0_158 = arith.constant 0 : index
    %116 = vector.load %arg4[%c2_156, %c0_157, %c0_158] : memref<5x128x256xf32, #tpu.memory_space<vmem>>, vector<1x128x256xf32>
    %117 = vector.shape_cast %116 : vector<1x128x256xf32> to vector<128x256xf32>
    %cst_159 = arith.constant dense<0.000000e+00> : vector<10x256xf32>
    %118 = tpu.matmul %115, %117, %cst_159 {dimension_numbers = #tpu.dot_dimension_numbers<[1], [0], [0], [1], [0, 0, 1, 1], [], []>} : vector<10x128xf32>, vector<128x256xf32>, vector<10x256xf32> -> vector<10x256xf32>
    %119 = arith.addf %114, %118 : vector<10x256xf32>
    %c3_160 = arith.constant 3 : index
    %c0_161 = arith.constant 0 : index
    %120 = vector.load %arg14[%c3_160, %c0_161] : memref<14x128xf32, #tpu.memory_space<vmem>>, vector<10x128xf32>
    %c3_162 = arith.constant 3 : index
    %c0_163 = arith.constant 0 : index
    %c0_164 = arith.constant 0 : index
    %121 = vector.load %arg4[%c3_162, %c0_163, %c0_164] : memref<5x128x256xf32, #tpu.memory_space<vmem>>, vector<1x128x256xf32>
    %122 = vector.shape_cast %121 : vector<1x128x256xf32> to vector<128x256xf32>
    %cst_165 = arith.constant dense<0.000000e+00> : vector<10x256xf32>
    %123 = tpu.matmul %120, %122, %cst_165 {dimension_numbers = #tpu.dot_dimension_numbers<[1], [0], [0], [1], [0, 0, 1, 1], [], []>} : vector<10x128xf32>, vector<128x256xf32>, vector<10x256xf32> -> vector<10x256xf32>
    %124 = arith.addf %119, %123 : vector<10x256xf32>
    %c4_166 = arith.constant 4 : index
    %c0_167 = arith.constant 0 : index
    %125 = vector.load %arg14[%c4_166, %c0_167] : memref<14x128xf32, #tpu.memory_space<vmem>>, vector<10x128xf32>
    %c4_168 = arith.constant 4 : index
    %c0_169 = arith.constant 0 : index
    %c0_170 = arith.constant 0 : index
    %126 = vector.load %arg4[%c4_168, %c0_169, %c0_170] : memref<5x128x256xf32, #tpu.memory_space<vmem>>, vector<1x128x256xf32>
    %127 = vector.shape_cast %126 : vector<1x128x256xf32> to vector<128x256xf32>
    %cst_171 = arith.constant dense<0.000000e+00> : vector<10x256xf32>
    %128 = tpu.matmul %125, %127, %cst_171 {dimension_numbers = #tpu.dot_dimension_numbers<[1], [0], [0], [1], [0, 0, 1, 1], [], []>} : vector<10x128xf32>, vector<128x256xf32>, vector<10x256xf32> -> vector<10x256xf32>
    %129 = arith.addf %124, %128 : vector<10x256xf32>
    %130 = vector.extract_strided_slice %129 {offsets = [0, 0], sizes = [10, 128], strides = [1, 1]} : vector<10x256xf32> to vector<10x128xf32>
    %131 = vector.extract_strided_slice %129 {offsets = [0, 128], sizes = [10, 128], strides = [1, 1]} : vector<10x256xf32> to vector<10x128xf32>
    %132 = arith.maximumf %130, %131 : vector<10x128xf32>
    %c0_172 = arith.constant 0 : index
    %c0_173 = arith.constant 0 : index
    %133 = vector.load %arg5[%c0_172, %c0_173] : memref<1x128xf32, #tpu.memory_space<vmem>>, vector<1x128xf32>
    %134 = vector.broadcast %133 : vector<1x128xf32> to vector<10x128xf32>
    %135 = arith.addf %132, %134 : vector<10x128xf32>
    %cst_174 = arith.constant 0.000000e+00 : f32
    %136 = vector.broadcast %cst_174 : f32 to vector<10x128xf32>
    %137 = arith.maximumf %135, %136 : vector<10x128xf32>
    %c0_175 = arith.constant 0 : index
    %c0_176 = arith.constant 0 : index
    %138 = vector.load %arg15[%c0_175, %c0_176] : memref<10x128xf32, #tpu.memory_space<vmem>>, vector<10x128xf32>
    tpu.vector_store %arg15[%c0_175, %c0_176], %137 {strides = array<i32>} : memref<10x128xf32, #tpu.memory_space<vmem>>, vector<10x128xf32>,
    %c0_177 = arith.constant 0 : index
    %c0_178 = arith.constant 0 : index
    %139 = tpu.strided_load %arg15[%c0_177, %c0_178] {strides = array<i32: 2, 1>} : memref<10x128xf32, #tpu.memory_space<vmem>>, vector<5x128xf32>
    %c1_179 = arith.constant 1 : index
    %c0_180 = arith.constant 0 : index
    %140 = tpu.strided_load %arg15[%c1_179, %c0_180] {strides = array<i32: 2, 1>} : memref<10x128xf32, #tpu.memory_space<vmem>>, vector<5x128xf32>
    %141 = arith.maximumf %139, %140 : vector<5x128xf32>
    %142 = vector.extract_strided_slice %141 {offsets = [0, 0], sizes = [1, 128], strides = [1, 1]} : vector<5x128xf32> to vector<1x128xf32>
    %c0_181 = arith.constant 0 : index
    %c0_182 = arith.constant 0 : index
    %143 = vector.load %arg16[%c0_181, %c0_182] : memref<4x640xf32, #tpu.memory_space<vmem>>, vector<1x128xf32>
    tpu.vector_store %arg16[%c0_181, %c0_182], %142 {strides = array<i32>} : memref<4x640xf32, #tpu.memory_space<vmem>>, vector<1x128xf32>,
    %144 = vector.extract_strided_slice %141 {offsets = [1, 0], sizes = [1, 128], strides = [1, 1]} : vector<5x128xf32> to vector<1x128xf32>
    %c0_183 = arith.constant 0 : index
    %c128 = arith.constant 128 : index
    %145 = vector.load %arg16[%c0_183, %c128] : memref<4x640xf32, #tpu.memory_space<vmem>>, vector<1x128xf32>
    tpu.vector_store %arg16[%c0_183, %c128], %144 {strides = array<i32>} : memref<4x640xf32, #tpu.memory_space<vmem>>, vector<1x128xf32>,
    %146 = vector.extract_strided_slice %141 {offsets = [2, 0], sizes = [1, 128], strides = [1, 1]} : vector<5x128xf32> to vector<1x128xf32>
    %c0_184 = arith.constant 0 : index
    %c256 = arith.constant 256 : index
    %147 = vector.load %arg16[%c0_184, %c256] : memref<4x640xf32, #tpu.memory_space<vmem>>, vector<1x128xf32>
    tpu.vector_store %arg16[%c0_184, %c256], %146 {strides = array<i32>} : memref<4x640xf32, #tpu.memory_space<vmem>>, vector<1x128xf32>,
    %148 = vector.extract_strided_slice %141 {offsets = [3, 0], sizes = [1, 128], strides = [1, 1]} : vector<5x128xf32> to vector<1x128xf32>
    %c0_185 = arith.constant 0 : index
    %c384 = arith.constant 384 : index
    %149 = vector.load %arg16[%c0_185, %c384] : memref<4x640xf32, #tpu.memory_space<vmem>>, vector<1x128xf32>
    tpu.vector_store %arg16[%c0_185, %c384], %148 {strides = array<i32>} : memref<4x640xf32, #tpu.memory_space<vmem>>, vector<1x128xf32>,
    %150 = vector.extract_strided_slice %141 {offsets = [4, 0], sizes = [1, 128], strides = [1, 1]} : vector<5x128xf32> to vector<1x128xf32>
    %c0_186 = arith.constant 0 : index
    %c512 = arith.constant 512 : index
    %151 = vector.load %arg16[%c0_186, %c512] : memref<4x640xf32, #tpu.memory_space<vmem>>, vector<1x128xf32>
    tpu.vector_store %arg16[%c0_186, %c512], %150 {strides = array<i32>} : memref<4x640xf32, #tpu.memory_space<vmem>>, vector<1x128xf32>,
    %cst_187 = arith.constant 0.000000e+00 : f32
    %152 = vector.broadcast %cst_187 : f32 to vector<28x256xf32>
    %c1_188 = arith.constant 1 : index
    %c0_189 = arith.constant 0 : index
    %c0_190 = arith.constant 0 : index
    %c0_191 = arith.constant 0 : index
    %153 = vector.load %arg1[%c1_188, %c0_189, %c0_190, %c0_191] : memref<4x3x32x32xf32, #tpu.memory_space<vmem>>, vector<1x1x28x32xf32>
    %154 = vector.shape_cast %153 : vector<1x1x28x32xf32> to vector<28x32xf32>
    %c0_192 = arith.constant 0 : index
    %c0_193 = arith.constant 0 : index
    %c0_194 = arith.constant 0 : index
    %c0_195 = arith.constant 0 : index
    %155 = vector.load %arg2[%c0_192, %c0_193, %c0_194, %c0_195] : memref<3x5x32x256xf32, #tpu.memory_space<vmem>>, vector<1x1x32x256xf32>
    %156 = vector.shape_cast %155 : vector<1x1x32x256xf32> to vector<32x256xf32>
    %cst_196 = arith.constant dense<0.000000e+00> : vector<28x256xf32>
    %157 = tpu.matmul %154, %156, %cst_196 {dimension_numbers = #tpu.dot_dimension_numbers<[1], [0], [0], [1], [0, 0, 1, 1], [], []>} : vector<28x32xf32>, vector<32x256xf32>, vector<28x256xf32> -> vector<28x256xf32>
    %158 = arith.addf %152, %157 : vector<28x256xf32>
    %c1_197 = arith.constant 1 : index
    %c0_198 = arith.constant 0 : index
    %c1_199 = arith.constant 1 : index
    %c0_200 = arith.constant 0 : index
    %159 = vector.load %arg1[%c1_197, %c0_198, %c1_199, %c0_200] : memref<4x3x32x32xf32, #tpu.memory_space<vmem>>, vector<1x1x28x32xf32>
    %160 = vector.shape_cast %159 : vector<1x1x28x32xf32> to vector<28x32xf32>
    %c0_201 = arith.constant 0 : index
    %c1_202 = arith.constant 1 : index
    %c0_203 = arith.constant 0 : index
    %c0_204 = arith.constant 0 : index
    %161 = vector.load %arg2[%c0_201, %c1_202, %c0_203, %c0_204] : memref<3x5x32x256xf32, #tpu.memory_space<vmem>>, vector<1x1x32x256xf32>
    %162 = vector.shape_cast %161 : vector<1x1x32x256xf32> to vector<32x256xf32>
    %cst_205 = arith.constant dense<0.000000e+00> : vector<28x256xf32>
    %163 = tpu.matmul %160, %162, %cst_205 {dimension_numbers = #tpu.dot_dimension_numbers<[1], [0], [0], [1], [0, 0, 1, 1], [], []>} : vector<28x32xf32>, vector<32x256xf32>, vector<28x256xf32> -> vector<28x256xf32>
    %164 = arith.addf %158, %163 : vector<28x256xf32>
    %c1_206 = arith.constant 1 : index
    %c0_207 = arith.constant 0 : index
    %c2_208 = arith.constant 2 : index
    %c0_209 = arith.constant 0 : index
    %165 = vector.load %arg1[%c1_206, %c0_207, %c2_208, %c0_209] : memref<4x3x32x32xf32, #tpu.memory_space<vmem>>, vector<1x1x28x32xf32>
    %166 = vector.shape_cast %165 : vector<1x1x28x32xf32> to vector<28x32xf32>
    %c0_210 = arith.constant 0 : index
    %c2_211 = arith.constant 2 : index
    %c0_212 = arith.constant 0 : index
    %c0_213 = arith.constant 0 : index
    %167 = vector.load %arg2[%c0_210, %c2_211, %c0_212, %c0_213] : memref<3x5x32x256xf32, #tpu.memory_space<vmem>>, vector<1x1x32x256xf32>
    %168 = vector.shape_cast %167 : vector<1x1x32x256xf32> to vector<32x256xf32>
    %cst_214 = arith.constant dense<0.000000e+00> : vector<28x256xf32>
    %169 = tpu.matmul %166, %168, %cst_214 {dimension_numbers = #tpu.dot_dimension_numbers<[1], [0], [0], [1], [0, 0, 1, 1], [], []>} : vector<28x32xf32>, vector<32x256xf32>, vector<28x256xf32> -> vector<28x256xf32>
    %170 = arith.addf %164, %169 : vector<28x256xf32>
    %c1_215 = arith.constant 1 : index
    %c0_216 = arith.constant 0 : index
    %c3_217 = arith.constant 3 : index
    %c0_218 = arith.constant 0 : index
    %171 = vector.load %arg1[%c1_215, %c0_216, %c3_217, %c0_218] : memref<4x3x32x32xf32, #tpu.memory_space<vmem>>, vector<1x1x28x32xf32>
    %172 = vector.shape_cast %171 : vector<1x1x28x32xf32> to vector<28x32xf32>
    %c0_219 = arith.constant 0 : index
    %c3_220 = arith.constant 3 : index
    %c0_221 = arith.constant 0 : index
    %c0_222 = arith.constant 0 : index
    %173 = vector.load %arg2[%c0_219, %c3_220, %c0_221, %c0_222] : memref<3x5x32x256xf32, #tpu.memory_space<vmem>>, vector<1x1x32x256xf32>
    %174 = vector.shape_cast %173 : vector<1x1x32x256xf32> to vector<32x256xf32>
    %cst_223 = arith.constant dense<0.000000e+00> : vector<28x256xf32>
    %175 = tpu.matmul %172, %174, %cst_223 {dimension_numbers = #tpu.dot_dimension_numbers<[1], [0], [0], [1], [0, 0, 1, 1], [], []>} : vector<28x32xf32>, vector<32x256xf32>, vector<28x256xf32> -> vector<28x256xf32>
    %176 = arith.addf %170, %175 : vector<28x256xf32>
    %c1_224 = arith.constant 1 : index
    %c0_225 = arith.constant 0 : index
    %c4_226 = arith.constant 4 : index
    %c0_227 = arith.constant 0 : index
    %177 = vector.load %arg1[%c1_224, %c0_225, %c4_226, %c0_227] : memref<4x3x32x32xf32, #tpu.memory_space<vmem>>, vector<1x1x28x32xf32>
    %178 = vector.shape_cast %177 : vector<1x1x28x32xf32> to vector<28x32xf32>
    %c0_228 = arith.constant 0 : index
    %c4_229 = arith.constant 4 : index
    %c0_230 = arith.constant 0 : index
    %c0_231 = arith.constant 0 : index
    %179 = vector.load %arg2[%c0_228, %c4_229, %c0_230, %c0_231] : memref<3x5x32x256xf32, #tpu.memory_space<vmem>>, vector<1x1x32x256xf32>
    %180 = vector.shape_cast %179 : vector<1x1x32x256xf32> to vector<32x256xf32>
    %cst_232 = arith.constant dense<0.000000e+00> : vector<28x256xf32>
    %181 = tpu.matmul %178, %180, %cst_232 {dimension_numbers = #tpu.dot_dimension_numbers<[1], [0], [0], [1], [0, 0, 1, 1], [], []>} : vector<28x32xf32>, vector<32x256xf32>, vector<28x256xf32> -> vector<28x256xf32>
    %182 = arith.addf %176, %181 : vector<28x256xf32>
    %c1_233 = arith.constant 1 : index
    %c1_234 = arith.constant 1 : index
    %c0_235 = arith.constant 0 : index
    %c0_236 = arith.constant 0 : index
    %183 = vector.load %arg1[%c1_233, %c1_234, %c0_235, %c0_236] : memref<4x3x32x32xf32, #tpu.memory_space<vmem>>, vector<1x1x28x32xf32>
    %184 = vector.shape_cast %183 : vector<1x1x28x32xf32> to vector<28x32xf32>
    %c1_237 = arith.constant 1 : index
    %c0_238 = arith.constant 0 : index
    %c0_239 = arith.constant 0 : index
    %c0_240 = arith.constant 0 : index
    %185 = vector.load %arg2[%c1_237, %c0_238, %c0_239, %c0_240] : memref<3x5x32x256xf32, #tpu.memory_space<vmem>>, vector<1x1x32x256xf32>
    %186 = vector.shape_cast %185 : vector<1x1x32x256xf32> to vector<32x256xf32>
    %cst_241 = arith.constant dense<0.000000e+00> : vector<28x256xf32>
    %187 = tpu.matmul %184, %186, %cst_241 {dimension_numbers = #tpu.dot_dimension_numbers<[1], [0], [0], [1], [0, 0, 1, 1], [], []>} : vector<28x32xf32>, vector<32x256xf32>, vector<28x256xf32> -> vector<28x256xf32>
    %188 = arith.addf %182, %187 : vector<28x256xf32>
    %c1_242 = arith.constant 1 : index
    %c1_243 = arith.constant 1 : index
    %c1_244 = arith.constant 1 : index
    %c0_245 = arith.constant 0 : index
    %189 = vector.load %arg1[%c1_242, %c1_243, %c1_244, %c0_245] : memref<4x3x32x32xf32, #tpu.memory_space<vmem>>, vector<1x1x28x32xf32>
    %190 = vector.shape_cast %189 : vector<1x1x28x32xf32> to vector<28x32xf32>
    %c1_246 = arith.constant 1 : index
    %c1_247 = arith.constant 1 : index
    %c0_248 = arith.constant 0 : index
    %c0_249 = arith.constant 0 : index
    %191 = vector.load %arg2[%c1_246, %c1_247, %c0_248, %c0_249] : memref<3x5x32x256xf32, #tpu.memory_space<vmem>>, vector<1x1x32x256xf32>
    %192 = vector.shape_cast %191 : vector<1x1x32x256xf32> to vector<32x256xf32>
    %cst_250 = arith.constant dense<0.000000e+00> : vector<28x256xf32>
    %193 = tpu.matmul %190, %192, %cst_250 {dimension_numbers = #tpu.dot_dimension_numbers<[1], [0], [0], [1], [0, 0, 1, 1], [], []>} : vector<28x32xf32>, vector<32x256xf32>, vector<28x256xf32> -> vector<28x256xf32>
    %194 = arith.addf %188, %193 : vector<28x256xf32>
    %c1_251 = arith.constant 1 : index
    %c1_252 = arith.constant 1 : index
    %c2_253 = arith.constant 2 : index
    %c0_254 = arith.constant 0 : index
    %195 = vector.load %arg1[%c1_251, %c1_252, %c2_253, %c0_254] : memref<4x3x32x32xf32, #tpu.memory_space<vmem>>, vector<1x1x28x32xf32>
    %196 = vector.shape_cast %195 : vector<1x1x28x32xf32> to vector<28x32xf32>
    %c1_255 = arith.constant 1 : index
    %c2_256 = arith.constant 2 : index
    %c0_257 = arith.constant 0 : index
    %c0_258 = arith.constant 0 : index
    %197 = vector.load %arg2[%c1_255, %c2_256, %c0_257, %c0_258] : memref<3x5x32x256xf32, #tpu.memory_space<vmem>>, vector<1x1x32x256xf32>
    %198 = vector.shape_cast %197 : vector<1x1x32x256xf32> to vector<32x256xf32>
    %cst_259 = arith.constant dense<0.000000e+00> : vector<28x256xf32>
    %199 = tpu.matmul %196, %198, %cst_259 {dimension_numbers = #tpu.dot_dimension_numbers<[1], [0], [0], [1], [0, 0, 1, 1], [], []>} : vector<28x32xf32>, vector<32x256xf32>, vector<28x256xf32> -> vector<28x256xf32>
    %200 = arith.addf %194, %199 : vector<28x256xf32>
    %c1_260 = arith.constant 1 : index
    %c1_261 = arith.constant 1 : index
    %c3_262 = arith.constant 3 : index
    %c0_263 = arith.constant 0 : index
    %201 = vector.load %arg1[%c1_260, %c1_261, %c3_262, %c0_263] : memref<4x3x32x32xf32, #tpu.memory_space<vmem>>, vector<1x1x28x32xf32>
    %202 = vector.shape_cast %201 : vector<1x1x28x32xf32> to vector<28x32xf32>
    %c1_264 = arith.constant 1 : index
    %c3_265 = arith.constant 3 : index
    %c0_266 = arith.constant 0 : index
    %c0_267 = arith.constant 0 : index
    %203 = vector.load %arg2[%c1_264, %c3_265, %c0_266, %c0_267] : memref<3x5x32x256xf32, #tpu.memory_space<vmem>>, vector<1x1x32x256xf32>
    %204 = vector.shape_cast %203 : vector<1x1x32x256xf32> to vector<32x256xf32>
    %cst_268 = arith.constant dense<0.000000e+00> : vector<28x256xf32>
    %205 = tpu.matmul %202, %204, %cst_268 {dimension_numbers = #tpu.dot_dimension_numbers<[1], [0], [0], [1], [0, 0, 1, 1], [], []>} : vector<28x32xf32>, vector<32x256xf32>, vector<28x256xf32> -> vector<28x256xf32>
    %206 = arith.addf %200, %205 : vector<28x256xf32>
    %c1_269 = arith.constant 1 : index
    %c1_270 = arith.constant 1 : index
    %c4_271 = arith.constant 4 : index
    %c0_272 = arith.constant 0 : index
    %207 = vector.load %arg1[%c1_269, %c1_270, %c4_271, %c0_272] : memref<4x3x32x32xf32, #tpu.memory_space<vmem>>, vector<1x1x28x32xf32>
    %208 = vector.shape_cast %207 : vector<1x1x28x32xf32> to vector<28x32xf32>
    %c1_273 = arith.constant 1 : index
    %c4_274 = arith.constant 4 : index
    %c0_275 = arith.constant 0 : index
    %c0_276 = arith.constant 0 : index
    %209 = vector.load %arg2[%c1_273, %c4_274, %c0_275, %c0_276] : memref<3x5x32x256xf32, #tpu.memory_space<vmem>>, vector<1x1x32x256xf32>
    %210 = vector.shape_cast %209 : vector<1x1x32x256xf32> to vector<32x256xf32>
    %cst_277 = arith.constant dense<0.000000e+00> : vector<28x256xf32>
    %211 = tpu.matmul %208, %210, %cst_277 {dimension_numbers = #tpu.dot_dimension_numbers<[1], [0], [0], [1], [0, 0, 1, 1], [], []>} : vector<28x32xf32>, vector<32x256xf32>, vector<28x256xf32> -> vector<28x256xf32>
    %212 = arith.addf %206, %211 : vector<28x256xf32>
    %c1_278 = arith.constant 1 : index
    %c2_279 = arith.constant 2 : index
    %c0_280 = arith.constant 0 : index
    %c0_281 = arith.constant 0 : index
    %213 = vector.load %arg1[%c1_278, %c2_279, %c0_280, %c0_281] : memref<4x3x32x32xf32, #tpu.memory_space<vmem>>, vector<1x1x28x32xf32>
    %214 = vector.shape_cast %213 : vector<1x1x28x32xf32> to vector<28x32xf32>
    %c2_282 = arith.constant 2 : index
    %c0_283 = arith.constant 0 : index
    %c0_284 = arith.constant 0 : index
    %c0_285 = arith.constant 0 : index
    %215 = vector.load %arg2[%c2_282, %c0_283, %c0_284, %c0_285] : memref<3x5x32x256xf32, #tpu.memory_space<vmem>>, vector<1x1x32x256xf32>
    %216 = vector.shape_cast %215 : vector<1x1x32x256xf32> to vector<32x256xf32>
    %cst_286 = arith.constant dense<0.000000e+00> : vector<28x256xf32>
    %217 = tpu.matmul %214, %216, %cst_286 {dimension_numbers = #tpu.dot_dimension_numbers<[1], [0], [0], [1], [0, 0, 1, 1], [], []>} : vector<28x32xf32>, vector<32x256xf32>, vector<28x256xf32> -> vector<28x256xf32>
    %218 = arith.addf %212, %217 : vector<28x256xf32>
    %c1_287 = arith.constant 1 : index
    %c2_288 = arith.constant 2 : index
    %c1_289 = arith.constant 1 : index
    %c0_290 = arith.constant 0 : index
    %219 = vector.load %arg1[%c1_287, %c2_288, %c1_289, %c0_290] : memref<4x3x32x32xf32, #tpu.memory_space<vmem>>, vector<1x1x28x32xf32>
    %220 = vector.shape_cast %219 : vector<1x1x28x32xf32> to vector<28x32xf32>
    %c2_291 = arith.constant 2 : index
    %c1_292 = arith.constant 1 : index
    %c0_293 = arith.constant 0 : index
    %c0_294 = arith.constant 0 : index
    %221 = vector.load %arg2[%c2_291, %c1_292, %c0_293, %c0_294] : memref<3x5x32x256xf32, #tpu.memory_space<vmem>>, vector<1x1x32x256xf32>
    %222 = vector.shape_cast %221 : vector<1x1x32x256xf32> to vector<32x256xf32>
    %cst_295 = arith.constant dense<0.000000e+00> : vector<28x256xf32>
    %223 = tpu.matmul %220, %222, %cst_295 {dimension_numbers = #tpu.dot_dimension_numbers<[1], [0], [0], [1], [0, 0, 1, 1], [], []>} : vector<28x32xf32>, vector<32x256xf32>, vector<28x256xf32> -> vector<28x256xf32>
    %224 = arith.addf %218, %223 : vector<28x256xf32>
    %c1_296 = arith.constant 1 : index
    %c2_297 = arith.constant 2 : index
    %c2_298 = arith.constant 2 : index
    %c0_299 = arith.constant 0 : index
    %225 = vector.load %arg1[%c1_296, %c2_297, %c2_298, %c0_299] : memref<4x3x32x32xf32, #tpu.memory_space<vmem>>, vector<1x1x28x32xf32>
    %226 = vector.shape_cast %225 : vector<1x1x28x32xf32> to vector<28x32xf32>
    %c2_300 = arith.constant 2 : index
    %c2_301 = arith.constant 2 : index
    %c0_302 = arith.constant 0 : index
    %c0_303 = arith.constant 0 : index
    %227 = vector.load %arg2[%c2_300, %c2_301, %c0_302, %c0_303] : memref<3x5x32x256xf32, #tpu.memory_space<vmem>>, vector<1x1x32x256xf32>
    %228 = vector.shape_cast %227 : vector<1x1x32x256xf32> to vector<32x256xf32>
    %cst_304 = arith.constant dense<0.000000e+00> : vector<28x256xf32>
    %229 = tpu.matmul %226, %228, %cst_304 {dimension_numbers = #tpu.dot_dimension_numbers<[1], [0], [0], [1], [0, 0, 1, 1], [], []>} : vector<28x32xf32>, vector<32x256xf32>, vector<28x256xf32> -> vector<28x256xf32>
    %230 = arith.addf %224, %229 : vector<28x256xf32>
    %c1_305 = arith.constant 1 : index
    %c2_306 = arith.constant 2 : index
    %c3_307 = arith.constant 3 : index
    %c0_308 = arith.constant 0 : index
    %231 = vector.load %arg1[%c1_305, %c2_306, %c3_307, %c0_308] : memref<4x3x32x32xf32, #tpu.memory_space<vmem>>, vector<1x1x28x32xf32>
    %232 = vector.shape_cast %231 : vector<1x1x28x32xf32> to vector<28x32xf32>
    %c2_309 = arith.constant 2 : index
    %c3_310 = arith.constant 3 : index
    %c0_311 = arith.constant 0 : index
    %c0_312 = arith.constant 0 : index
    %233 = vector.load %arg2[%c2_309, %c3_310, %c0_311, %c0_312] : memref<3x5x32x256xf32, #tpu.memory_space<vmem>>, vector<1x1x32x256xf32>
    %234 = vector.shape_cast %233 : vector<1x1x32x256xf32> to vector<32x256xf32>
    %cst_313 = arith.constant dense<0.000000e+00> : vector<28x256xf32>
    %235 = tpu.matmul %232, %234, %cst_313 {dimension_numbers = #tpu.dot_dimension_numbers<[1], [0], [0], [1], [0, 0, 1, 1], [], []>} : vector<28x32xf32>, vector<32x256xf32>, vector<28x256xf32> -> vector<28x256xf32>
    %236 = arith.addf %230, %235 : vector<28x256xf32>
    %c1_314 = arith.constant 1 : index
    %c2_315 = arith.constant 2 : index
    %c4_316 = arith.constant 4 : index
    %c0_317 = arith.constant 0 : index
    %237 = vector.load %arg1[%c1_314, %c2_315, %c4_316, %c0_317] : memref<4x3x32x32xf32, #tpu.memory_space<vmem>>, vector<1x1x28x32xf32>
    %238 = vector.shape_cast %237 : vector<1x1x28x32xf32> to vector<28x32xf32>
    %c2_318 = arith.constant 2 : index
    %c4_319 = arith.constant 4 : index
    %c0_320 = arith.constant 0 : index
    %c0_321 = arith.constant 0 : index
    %239 = vector.load %arg2[%c2_318, %c4_319, %c0_320, %c0_321] : memref<3x5x32x256xf32, #tpu.memory_space<vmem>>, vector<1x1x32x256xf32>
    %240 = vector.shape_cast %239 : vector<1x1x32x256xf32> to vector<32x256xf32>
    %cst_322 = arith.constant dense<0.000000e+00> : vector<28x256xf32>
    %241 = tpu.matmul %238, %240, %cst_322 {dimension_numbers = #tpu.dot_dimension_numbers<[1], [0], [0], [1], [0, 0, 1, 1], [], []>} : vector<28x32xf32>, vector<32x256xf32>, vector<28x256xf32> -> vector<28x256xf32>
    %242 = arith.addf %236, %241 : vector<28x256xf32>
    %243 = vector.extract_strided_slice %242 {offsets = [0, 0], sizes = [28, 128], strides = [1, 1]} : vector<28x256xf32> to vector<28x128xf32>
    %244 = vector.extract_strided_slice %242 {offsets = [0, 128], sizes = [28, 128], strides = [1, 1]} : vector<28x256xf32> to vector<28x128xf32>
    %245 = arith.maximumf %243, %244 : vector<28x128xf32>
    %c0_323 = arith.constant 0 : index
    %c0_324 = arith.constant 0 : index
    %246 = vector.load %arg3[%c0_323, %c0_324] : memref<1x128xf32, #tpu.memory_space<vmem>>, vector<1x128xf32>
    %247 = vector.broadcast %246 : vector<1x128xf32> to vector<28x128xf32>
    %248 = arith.addf %245, %247 : vector<28x128xf32>
    %cst_325 = arith.constant 0.000000e+00 : f32
    %249 = vector.broadcast %cst_325 : f32 to vector<28x128xf32>
    %250 = arith.maximumf %248, %249 : vector<28x128xf32>
    %c0_326 = arith.constant 0 : index
    %c0_327 = arith.constant 0 : index
    %251 = vector.load %arg13[%c0_326, %c0_327] : memref<28x128xf32, #tpu.memory_space<vmem>>, vector<28x128xf32>
    tpu.vector_store %arg13[%c0_326, %c0_327], %250 {strides = array<i32>} : memref<28x128xf32, #tpu.memory_space<vmem>>, vector<28x128xf32>,
    %c0_328 = arith.constant 0 : index
    %c0_329 = arith.constant 0 : index
    %252 = tpu.strided_load %arg13[%c0_328, %c0_329] {strides = array<i32: 2, 1>} : memref<28x128xf32, #tpu.memory_space<vmem>>, vector<14x128xf32>
    %c1_330 = arith.constant 1 : index
    %c0_331 = arith.constant 0 : index
    %253 = tpu.strided_load %arg13[%c1_330, %c0_331] {strides = array<i32: 2, 1>} : memref<28x128xf32, #tpu.memory_space<vmem>>, vector<14x128xf32>
    %254 = arith.maximumf %252, %253 : vector<14x128xf32>
    %c0_332 = arith.constant 0 : index
    %c0_333 = arith.constant 0 : index
    %255 = vector.load %arg14[%c0_332, %c0_333] : memref<14x128xf32, #tpu.memory_space<vmem>>, vector<14x128xf32>
    tpu.vector_store %arg14[%c0_332, %c0_333], %254 {strides = array<i32>} : memref<14x128xf32, #tpu.memory_space<vmem>>, vector<14x128xf32>,
    %cst_334 = arith.constant 0.000000e+00 : f32
    %256 = vector.broadcast %cst_334 : f32 to vector<10x256xf32>
    %c0_335 = arith.constant 0 : index
    %c0_336 = arith.constant 0 : index
    %257 = vector.load %arg14[%c0_335, %c0_336] : memref<14x128xf32, #tpu.memory_space<vmem>>, vector<10x128xf32>
    %c0_337 = arith.constant 0 : index
    %c0_338 = arith.constant 0 : index
    %c0_339 = arith.constant 0 : index
    %258 = vector.load %arg4[%c0_337, %c0_338, %c0_339] : memref<5x128x256xf32, #tpu.memory_space<vmem>>, vector<1x128x256xf32>
    %259 = vector.shape_cast %258 : vector<1x128x256xf32> to vector<128x256xf32>
    %cst_340 = arith.constant dense<0.000000e+00> : vector<10x256xf32>
    %260 = tpu.matmul %257, %259, %cst_340 {dimension_numbers = #tpu.dot_dimension_numbers<[1], [0], [0], [1], [0, 0, 1, 1], [], []>} : vector<10x128xf32>, vector<128x256xf32>, vector<10x256xf32> -> vector<10x256xf32>
    %261 = arith.addf %256, %260 : vector<10x256xf32>
    %c1_341 = arith.constant 1 : index
    %c0_342 = arith.constant 0 : index
    %262 = vector.load %arg14[%c1_341, %c0_342] : memref<14x128xf32, #tpu.memory_space<vmem>>, vector<10x128xf32>
    %c1_343 = arith.constant 1 : index
    %c0_344 = arith.constant 0 : index
    %c0_345 = arith.constant 0 : index
    %263 = vector.load %arg4[%c1_343, %c0_344, %c0_345] : memref<5x128x256xf32, #tpu.memory_space<vmem>>, vector<1x128x256xf32>
    %264 = vector.shape_cast %263 : vector<1x128x256xf32> to vector<128x256xf32>
    %cst_346 = arith.constant dense<0.000000e+00> : vector<10x256xf32>
    %265 = tpu.matmul %262, %264, %cst_346 {dimension_numbers = #tpu.dot_dimension_numbers<[1], [0], [0], [1], [0, 0, 1, 1], [], []>} : vector<10x128xf32>, vector<128x256xf32>, vector<10x256xf32> -> vector<10x256xf32>
    %266 = arith.addf %261, %265 : vector<10x256xf32>
    %c2_347 = arith.constant 2 : index
    %c0_348 = arith.constant 0 : index
    %267 = vector.load %arg14[%c2_347, %c0_348] : memref<14x128xf32, #tpu.memory_space<vmem>>, vector<10x128xf32>
    %c2_349 = arith.constant 2 : index
    %c0_350 = arith.constant 0 : index
    %c0_351 = arith.constant 0 : index
    %268 = vector.load %arg4[%c2_349, %c0_350, %c0_351] : memref<5x128x256xf32, #tpu.memory_space<vmem>>, vector<1x128x256xf32>
    %269 = vector.shape_cast %268 : vector<1x128x256xf32> to vector<128x256xf32>
    %cst_352 = arith.constant dense<0.000000e+00> : vector<10x256xf32>
    %270 = tpu.matmul %267, %269, %cst_352 {dimension_numbers = #tpu.dot_dimension_numbers<[1], [0], [0], [1], [0, 0, 1, 1], [], []>} : vector<10x128xf32>, vector<128x256xf32>, vector<10x256xf32> -> vector<10x256xf32>
    %271 = arith.addf %266, %270 : vector<10x256xf32>
    %c3_353 = arith.constant 3 : index
    %c0_354 = arith.constant 0 : index
    %272 = vector.load %arg14[%c3_353, %c0_354] : memref<14x128xf32, #tpu.memory_space<vmem>>, vector<10x128xf32>
    %c3_355 = arith.constant 3 : index
    %c0_356 = arith.constant 0 : index
    %c0_357 = arith.constant 0 : index
    %273 = vector.load %arg4[%c3_355, %c0_356, %c0_357] : memref<5x128x256xf32, #tpu.memory_space<vmem>>, vector<1x128x256xf32>
    %274 = vector.shape_cast %273 : vector<1x128x256xf32> to vector<128x256xf32>
    %cst_358 = arith.constant dense<0.000000e+00> : vector<10x256xf32>
    %275 = tpu.matmul %272, %274, %cst_358 {dimension_numbers = #tpu.dot_dimension_numbers<[1], [0], [0], [1], [0, 0, 1, 1], [], []>} : vector<10x128xf32>, vector<128x256xf32>, vector<10x256xf32> -> vector<10x256xf32>
    %276 = arith.addf %271, %275 : vector<10x256xf32>
    %c4_359 = arith.constant 4 : index
    %c0_360 = arith.constant 0 : index
    %277 = vector.load %arg14[%c4_359, %c0_360] : memref<14x128xf32, #tpu.memory_space<vmem>>, vector<10x128xf32>
    %c4_361 = arith.constant 4 : index
    %c0_362 = arith.constant 0 : index
    %c0_363 = arith.constant 0 : index
    %278 = vector.load %arg4[%c4_361, %c0_362, %c0_363] : memref<5x128x256xf32, #tpu.memory_space<vmem>>, vector<1x128x256xf32>
    %279 = vector.shape_cast %278 : vector<1x128x256xf32> to vector<128x256xf32>
    %cst_364 = arith.constant dense<0.000000e+00> : vector<10x256xf32>
    %280 = tpu.matmul %277, %279, %cst_364 {dimension_numbers = #tpu.dot_dimension_numbers<[1], [0], [0], [1], [0, 0, 1, 1], [], []>} : vector<10x128xf32>, vector<128x256xf32>, vector<10x256xf32> -> vector<10x256xf32>
    %281 = arith.addf %276, %280 : vector<10x256xf32>
    %282 = vector.extract_strided_slice %281 {offsets = [0, 0], sizes = [10, 128], strides = [1, 1]} : vector<10x256xf32> to vector<10x128xf32>
    %283 = vector.extract_strided_slice %281 {offsets = [0, 128], sizes = [10, 128], strides = [1, 1]} : vector<10x256xf32> to vector<10x128xf32>
    %284 = arith.maximumf %282, %283 : vector<10x128xf32>
    %c0_365 = arith.constant 0 : index
    %c0_366 = arith.constant 0 : index
    %285 = vector.load %arg5[%c0_365, %c0_366] : memref<1x128xf32, #tpu.memory_space<vmem>>, vector<1x128xf32>
    %286 = vector.broadcast %285 : vector<1x128xf32> to vector<10x128xf32>
    %287 = arith.addf %284, %286 : vector<10x128xf32>
    %cst_367 = arith.constant 0.000000e+00 : f32
    %288 = vector.broadcast %cst_367 : f32 to vector<10x128xf32>
    %289 = arith.maximumf %287, %288 : vector<10x128xf32>
    %c0_368 = arith.constant 0 : index
    %c0_369 = arith.constant 0 : index
    %290 = vector.load %arg15[%c0_368, %c0_369] : memref<10x128xf32, #tpu.memory_space<vmem>>, vector<10x128xf32>
    tpu.vector_store %arg15[%c0_368, %c0_369], %289 {strides = array<i32>} : memref<10x128xf32, #tpu.memory_space<vmem>>, vector<10x128xf32>,
    %c0_370 = arith.constant 0 : index
    %c0_371 = arith.constant 0 : index
    %291 = tpu.strided_load %arg15[%c0_370, %c0_371] {strides = array<i32: 2, 1>} : memref<10x128xf32, #tpu.memory_space<vmem>>, vector<5x128xf32>
    %c1_372 = arith.constant 1 : index
    %c0_373 = arith.constant 0 : index
    %292 = tpu.strided_load %arg15[%c1_372, %c0_373] {strides = array<i32: 2, 1>} : memref<10x128xf32, #tpu.memory_space<vmem>>, vector<5x128xf32>
    %293 = arith.maximumf %291, %292 : vector<5x128xf32>
    %294 = vector.extract_strided_slice %293 {offsets = [0, 0], sizes = [1, 128], strides = [1, 1]} : vector<5x128xf32> to vector<1x128xf32>
    %c1_374 = arith.constant 1 : index
    %c0_375 = arith.constant 0 : index
    %295 = vector.load %arg16[%c1_374, %c0_375] : memref<4x640xf32, #tpu.memory_space<vmem>>, vector<1x128xf32>
    tpu.vector_store %arg16[%c1_374, %c0_375], %294 {strides = array<i32>} : memref<4x640xf32, #tpu.memory_space<vmem>>, vector<1x128xf32>,
    %296 = vector.extract_strided_slice %293 {offsets = [1, 0], sizes = [1, 128], strides = [1, 1]} : vector<5x128xf32> to vector<1x128xf32>
    %c1_376 = arith.constant 1 : index
    %c128_377 = arith.constant 128 : index
    %297 = vector.load %arg16[%c1_376, %c128_377] : memref<4x640xf32, #tpu.memory_space<vmem>>, vector<1x128xf32>
    tpu.vector_store %arg16[%c1_376, %c128_377], %296 {strides = array<i32>} : memref<4x640xf32, #tpu.memory_space<vmem>>, vector<1x128xf32>,
    %298 = vector.extract_strided_slice %293 {offsets = [2, 0], sizes = [1, 128], strides = [1, 1]} : vector<5x128xf32> to vector<1x128xf32>
    %c1_378 = arith.constant 1 : index
    %c256_379 = arith.constant 256 : index
    %299 = vector.load %arg16[%c1_378, %c256_379] : memref<4x640xf32, #tpu.memory_space<vmem>>, vector<1x128xf32>
    tpu.vector_store %arg16[%c1_378, %c256_379], %298 {strides = array<i32>} : memref<4x640xf32, #tpu.memory_space<vmem>>, vector<1x128xf32>,
    %300 = vector.extract_strided_slice %293 {offsets = [3, 0], sizes = [1, 128], strides = [1, 1]} : vector<5x128xf32> to vector<1x128xf32>
    %c1_380 = arith.constant 1 : index
    %c384_381 = arith.constant 384 : index
    %301 = vector.load %arg16[%c1_380, %c384_381] : memref<4x640xf32, #tpu.memory_space<vmem>>, vector<1x128xf32>
    tpu.vector_store %arg16[%c1_380, %c384_381], %300 {strides = array<i32>} : memref<4x640xf32, #tpu.memory_space<vmem>>, vector<1x128xf32>,
    %302 = vector.extract_strided_slice %293 {offsets = [4, 0], sizes = [1, 128], strides = [1, 1]} : vector<5x128xf32> to vector<1x128xf32>
    %c1_382 = arith.constant 1 : index
    %c512_383 = arith.constant 512 : index
    %303 = vector.load %arg16[%c1_382, %c512_383] : memref<4x640xf32, #tpu.memory_space<vmem>>, vector<1x128xf32>
    tpu.vector_store %arg16[%c1_382, %c512_383], %302 {strides = array<i32>} : memref<4x640xf32, #tpu.memory_space<vmem>>, vector<1x128xf32>,
    %cst_384 = arith.constant 0.000000e+00 : f32
    %304 = vector.broadcast %cst_384 : f32 to vector<28x256xf32>
    %c2_385 = arith.constant 2 : index
    %c0_386 = arith.constant 0 : index
    %c0_387 = arith.constant 0 : index
    %c0_388 = arith.constant 0 : index
    %305 = vector.load %arg1[%c2_385, %c0_386, %c0_387, %c0_388] : memref<4x3x32x32xf32, #tpu.memory_space<vmem>>, vector<1x1x28x32xf32>
    %306 = vector.shape_cast %305 : vector<1x1x28x32xf32> to vector<28x32xf32>
    %c0_389 = arith.constant 0 : index
    %c0_390 = arith.constant 0 : index
    %c0_391 = arith.constant 0 : index
    %c0_392 = arith.constant 0 : index
    %307 = vector.load %arg2[%c0_389, %c0_390, %c0_391, %c0_392] : memref<3x5x32x256xf32, #tpu.memory_space<vmem>>, vector<1x1x32x256xf32>
    %308 = vector.shape_cast %307 : vector<1x1x32x256xf32> to vector<32x256xf32>
    %cst_393 = arith.constant dense<0.000000e+00> : vector<28x256xf32>
    %309 = tpu.matmul %306, %308, %cst_393 {dimension_numbers = #tpu.dot_dimension_numbers<[1], [0], [0], [1], [0, 0, 1, 1], [], []>} : vector<28x32xf32>, vector<32x256xf32>, vector<28x256xf32> -> vector<28x256xf32>
    %310 = arith.addf %304, %309 : vector<28x256xf32>
    %c2_394 = arith.constant 2 : index
    %c0_395 = arith.constant 0 : index
    %c1_396 = arith.constant 1 : index
    %c0_397 = arith.constant 0 : index
    %311 = vector.load %arg1[%c2_394, %c0_395, %c1_396, %c0_397] : memref<4x3x32x32xf32, #tpu.memory_space<vmem>>, vector<1x1x28x32xf32>
    %312 = vector.shape_cast %311 : vector<1x1x28x32xf32> to vector<28x32xf32>
    %c0_398 = arith.constant 0 : index
    %c1_399 = arith.constant 1 : index
    %c0_400 = arith.constant 0 : index
    %c0_401 = arith.constant 0 : index
    %313 = vector.load %arg2[%c0_398, %c1_399, %c0_400, %c0_401] : memref<3x5x32x256xf32, #tpu.memory_space<vmem>>, vector<1x1x32x256xf32>
    %314 = vector.shape_cast %313 : vector<1x1x32x256xf32> to vector<32x256xf32>
    %cst_402 = arith.constant dense<0.000000e+00> : vector<28x256xf32>
    %315 = tpu.matmul %312, %314, %cst_402 {dimension_numbers = #tpu.dot_dimension_numbers<[1], [0], [0], [1], [0, 0, 1, 1], [], []>} : vector<28x32xf32>, vector<32x256xf32>, vector<28x256xf32> -> vector<28x256xf32>
    %316 = arith.addf %310, %315 : vector<28x256xf32>
    %c2_403 = arith.constant 2 : index
    %c0_404 = arith.constant 0 : index
    %c2_405 = arith.constant 2 : index
    %c0_406 = arith.constant 0 : index
    %317 = vector.load %arg1[%c2_403, %c0_404, %c2_405, %c0_406] : memref<4x3x32x32xf32, #tpu.memory_space<vmem>>, vector<1x1x28x32xf32>
    %318 = vector.shape_cast %317 : vector<1x1x28x32xf32> to vector<28x32xf32>
    %c0_407 = arith.constant 0 : index
    %c2_408 = arith.constant 2 : index
    %c0_409 = arith.constant 0 : index
    %c0_410 = arith.constant 0 : index
    %319 = vector.load %arg2[%c0_407, %c2_408, %c0_409, %c0_410] : memref<3x5x32x256xf32, #tpu.memory_space<vmem>>, vector<1x1x32x256xf32>
    %320 = vector.shape_cast %319 : vector<1x1x32x256xf32> to vector<32x256xf32>
    %cst_411 = arith.constant dense<0.000000e+00> : vector<28x256xf32>
    %321 = tpu.matmul %318, %320, %cst_411 {dimension_numbers = #tpu.dot_dimension_numbers<[1], [0], [0], [1], [0, 0, 1, 1], [], []>} : vector<28x32xf32>, vector<32x256xf32>, vector<28x256xf32> -> vector<28x256xf32>
    %322 = arith.addf %316, %321 : vector<28x256xf32>
    %c2_412 = arith.constant 2 : index
    %c0_413 = arith.constant 0 : index
    %c3_414 = arith.constant 3 : index
    %c0_415 = arith.constant 0 : index
    %323 = vector.load %arg1[%c2_412, %c0_413, %c3_414, %c0_415] : memref<4x3x32x32xf32, #tpu.memory_space<vmem>>, vector<1x1x28x32xf32>
    %324 = vector.shape_cast %323 : vector<1x1x28x32xf32> to vector<28x32xf32>
    %c0_416 = arith.constant 0 : index
    %c3_417 = arith.constant 3 : index
    %c0_418 = arith.constant 0 : index
    %c0_419 = arith.constant 0 : index
    %325 = vector.load %arg2[%c0_416, %c3_417, %c0_418, %c0_419] : memref<3x5x32x256xf32, #tpu.memory_space<vmem>>, vector<1x1x32x256xf32>
    %326 = vector.shape_cast %325 : vector<1x1x32x256xf32> to vector<32x256xf32>
    %cst_420 = arith.constant dense<0.000000e+00> : vector<28x256xf32>
    %327 = tpu.matmul %324, %326, %cst_420 {dimension_numbers = #tpu.dot_dimension_numbers<[1], [0], [0], [1], [0, 0, 1, 1], [], []>} : vector<28x32xf32>, vector<32x256xf32>, vector<28x256xf32> -> vector<28x256xf32>
    %328 = arith.addf %322, %327 : vector<28x256xf32>
    %c2_421 = arith.constant 2 : index
    %c0_422 = arith.constant 0 : index
    %c4_423 = arith.constant 4 : index
    %c0_424 = arith.constant 0 : index
    %329 = vector.load %arg1[%c2_421, %c0_422, %c4_423, %c0_424] : memref<4x3x32x32xf32, #tpu.memory_space<vmem>>, vector<1x1x28x32xf32>
    %330 = vector.shape_cast %329 : vector<1x1x28x32xf32> to vector<28x32xf32>
    %c0_425 = arith.constant 0 : index
    %c4_426 = arith.constant 4 : index
    %c0_427 = arith.constant 0 : index
    %c0_428 = arith.constant 0 : index
    %331 = vector.load %arg2[%c0_425, %c4_426, %c0_427, %c0_428] : memref<3x5x32x256xf32, #tpu.memory_space<vmem>>, vector<1x1x32x256xf32>
    %332 = vector.shape_cast %331 : vector<1x1x32x256xf32> to vector<32x256xf32>
    %cst_429 = arith.constant dense<0.000000e+00> : vector<28x256xf32>
    %333 = tpu.matmul %330, %332, %cst_429 {dimension_numbers = #tpu.dot_dimension_numbers<[1], [0], [0], [1], [0, 0, 1, 1], [], []>} : vector<28x32xf32>, vector<32x256xf32>, vector<28x256xf32> -> vector<28x256xf32>
    %334 = arith.addf %328, %333 : vector<28x256xf32>
    %c2_430 = arith.constant 2 : index
    %c1_431 = arith.constant 1 : index
    %c0_432 = arith.constant 0 : index
    %c0_433 = arith.constant 0 : index
    %335 = vector.load %arg1[%c2_430, %c1_431, %c0_432, %c0_433] : memref<4x3x32x32xf32, #tpu.memory_space<vmem>>, vector<1x1x28x32xf32>
    %336 = vector.shape_cast %335 : vector<1x1x28x32xf32> to vector<28x32xf32>
    %c1_434 = arith.constant 1 : index
    %c0_435 = arith.constant 0 : index
    %c0_436 = arith.constant 0 : index
    %c0_437 = arith.constant 0 : index
    %337 = vector.load %arg2[%c1_434, %c0_435, %c0_436, %c0_437] : memref<3x5x32x256xf32, #tpu.memory_space<vmem>>, vector<1x1x32x256xf32>
    %338 = vector.shape_cast %337 : vector<1x1x32x256xf32> to vector<32x256xf32>
    %cst_438 = arith.constant dense<0.000000e+00> : vector<28x256xf32>
    %339 = tpu.matmul %336, %338, %cst_438 {dimension_numbers = #tpu.dot_dimension_numbers<[1], [0], [0], [1], [0, 0, 1, 1], [], []>} : vector<28x32xf32>, vector<32x256xf32>, vector<28x256xf32> -> vector<28x256xf32>
    %340 = arith.addf %334, %339 : vector<28x256xf32>
    %c2_439 = arith.constant 2 : index
    %c1_440 = arith.constant 1 : index
    %c1_441 = arith.constant 1 : index
    %c0_442 = arith.constant 0 : index
    %341 = vector.load %arg1[%c2_439, %c1_440, %c1_441, %c0_442] : memref<4x3x32x32xf32, #tpu.memory_space<vmem>>, vector<1x1x28x32xf32>
    %342 = vector.shape_cast %341 : vector<1x1x28x32xf32> to vector<28x32xf32>
    %c1_443 = arith.constant 1 : index
    %c1_444 = arith.constant 1 : index
    %c0_445 = arith.constant 0 : index
    %c0_446 = arith.constant 0 : index
    %343 = vector.load %arg2[%c1_443, %c1_444, %c0_445, %c0_446] : memref<3x5x32x256xf32, #tpu.memory_space<vmem>>, vector<1x1x32x256xf32>
    %344 = vector.shape_cast %343 : vector<1x1x32x256xf32> to vector<32x256xf32>
    %cst_447 = arith.constant dense<0.000000e+00> : vector<28x256xf32>
    %345 = tpu.matmul %342, %344, %cst_447 {dimension_numbers = #tpu.dot_dimension_numbers<[1], [0], [0], [1], [0, 0, 1, 1], [], []>} : vector<28x32xf32>, vector<32x256xf32>, vector<28x256xf32> -> vector<28x256xf32>
    %346 = arith.addf %340, %345 : vector<28x256xf32>
    %c2_448 = arith.constant 2 : index
    %c1_449 = arith.constant 1 : index
    %c2_450 = arith.constant 2 : index
    %c0_451 = arith.constant 0 : index
    %347 = vector.load %arg1[%c2_448, %c1_449, %c2_450, %c0_451] : memref<4x3x32x32xf32, #tpu.memory_space<vmem>>, vector<1x1x28x32xf32>
    %348 = vector.shape_cast %347 : vector<1x1x28x32xf32> to vector<28x32xf32>
    %c1_452 = arith.constant 1 : index
    %c2_453 = arith.constant 2 : index
    %c0_454 = arith.constant 0 : index
    %c0_455 = arith.constant 0 : index
    %349 = vector.load %arg2[%c1_452, %c2_453, %c0_454, %c0_455] : memref<3x5x32x256xf32, #tpu.memory_space<vmem>>, vector<1x1x32x256xf32>
    %350 = vector.shape_cast %349 : vector<1x1x32x256xf32> to vector<32x256xf32>
    %cst_456 = arith.constant dense<0.000000e+00> : vector<28x256xf32>
    %351 = tpu.matmul %348, %350, %cst_456 {dimension_numbers = #tpu.dot_dimension_numbers<[1], [0], [0], [1], [0, 0, 1, 1], [], []>} : vector<28x32xf32>, vector<32x256xf32>, vector<28x256xf32> -> vector<28x256xf32>
    %352 = arith.addf %346, %351 : vector<28x256xf32>
    %c2_457 = arith.constant 2 : index
    %c1_458 = arith.constant 1 : index
    %c3_459 = arith.constant 3 : index
    %c0_460 = arith.constant 0 : index
    %353 = vector.load %arg1[%c2_457, %c1_458, %c3_459, %c0_460] : memref<4x3x32x32xf32, #tpu.memory_space<vmem>>, vector<1x1x28x32xf32>
    %354 = vector.shape_cast %353 : vector<1x1x28x32xf32> to vector<28x32xf32>
    %c1_461 = arith.constant 1 : index
    %c3_462 = arith.constant 3 : index
    %c0_463 = arith.constant 0 : index
    %c0_464 = arith.constant 0 : index
    %355 = vector.load %arg2[%c1_461, %c3_462, %c0_463, %c0_464] : memref<3x5x32x256xf32, #tpu.memory_space<vmem>>, vector<1x1x32x256xf32>
    %356 = vector.shape_cast %355 : vector<1x1x32x256xf32> to vector<32x256xf32>
    %cst_465 = arith.constant dense<0.000000e+00> : vector<28x256xf32>
    %357 = tpu.matmul %354, %356, %cst_465 {dimension_numbers = #tpu.dot_dimension_numbers<[1], [0], [0], [1], [0, 0, 1, 1], [], []>} : vector<28x32xf32>, vector<32x256xf32>, vector<28x256xf32> -> vector<28x256xf32>
    %358 = arith.addf %352, %357 : vector<28x256xf32>
    %c2_466 = arith.constant 2 : index
    %c1_467 = arith.constant 1 : index
    %c4_468 = arith.constant 4 : index
    %c0_469 = arith.constant 0 : index
    %359 = vector.load %arg1[%c2_466, %c1_467, %c4_468, %c0_469] : memref<4x3x32x32xf32, #tpu.memory_space<vmem>>, vector<1x1x28x32xf32>
    %360 = vector.shape_cast %359 : vector<1x1x28x32xf32> to vector<28x32xf32>
    %c1_470 = arith.constant 1 : index
    %c4_471 = arith.constant 4 : index
    %c0_472 = arith.constant 0 : index
    %c0_473 = arith.constant 0 : index
    %361 = vector.load %arg2[%c1_470, %c4_471, %c0_472, %c0_473] : memref<3x5x32x256xf32, #tpu.memory_space<vmem>>, vector<1x1x32x256xf32>
    %362 = vector.shape_cast %361 : vector<1x1x32x256xf32> to vector<32x256xf32>
    %cst_474 = arith.constant dense<0.000000e+00> : vector<28x256xf32>
    %363 = tpu.matmul %360, %362, %cst_474 {dimension_numbers = #tpu.dot_dimension_numbers<[1], [0], [0], [1], [0, 0, 1, 1], [], []>} : vector<28x32xf32>, vector<32x256xf32>, vector<28x256xf32> -> vector<28x256xf32>
    %364 = arith.addf %358, %363 : vector<28x256xf32>
    %c2_475 = arith.constant 2 : index
    %c2_476 = arith.constant 2 : index
    %c0_477 = arith.constant 0 : index
    %c0_478 = arith.constant 0 : index
    %365 = vector.load %arg1[%c2_475, %c2_476, %c0_477, %c0_478] : memref<4x3x32x32xf32, #tpu.memory_space<vmem>>, vector<1x1x28x32xf32>
    %366 = vector.shape_cast %365 : vector<1x1x28x32xf32> to vector<28x32xf32>
    %c2_479 = arith.constant 2 : index
    %c0_480 = arith.constant 0 : index
    %c0_481 = arith.constant 0 : index
    %c0_482 = arith.constant 0 : index
    %367 = vector.load %arg2[%c2_479, %c0_480, %c0_481, %c0_482] : memref<3x5x32x256xf32, #tpu.memory_space<vmem>>, vector<1x1x32x256xf32>
    %368 = vector.shape_cast %367 : vector<1x1x32x256xf32> to vector<32x256xf32>
    %cst_483 = arith.constant dense<0.000000e+00> : vector<28x256xf32>
    %369 = tpu.matmul %366, %368, %cst_483 {dimension_numbers = #tpu.dot_dimension_numbers<[1], [0], [0], [1], [0, 0, 1, 1], [], []>} : vector<28x32xf32>, vector<32x256xf32>, vector<28x256xf32> -> vector<28x256xf32>
    %370 = arith.addf %364, %369 : vector<28x256xf32>
    %c2_484 = arith.constant 2 : index
    %c2_485 = arith.constant 2 : index
    %c1_486 = arith.constant 1 : index
    %c0_487 = arith.constant 0 : index
    %371 = vector.load %arg1[%c2_484, %c2_485, %c1_486, %c0_487] : memref<4x3x32x32xf32, #tpu.memory_space<vmem>>, vector<1x1x28x32xf32>
    %372 = vector.shape_cast %371 : vector<1x1x28x32xf32> to vector<28x32xf32>
    %c2_488 = arith.constant 2 : index
    %c1_489 = arith.constant 1 : index
    %c0_490 = arith.constant 0 : index
    %c0_491 = arith.constant 0 : index
    %373 = vector.load %arg2[%c2_488, %c1_489, %c0_490, %c0_491] : memref<3x5x32x256xf32, #tpu.memory_space<vmem>>, vector<1x1x32x256xf32>
    %374 = vector.shape_cast %373 : vector<1x1x32x256xf32> to vector<32x256xf32>
    %cst_492 = arith.constant dense<0.000000e+00> : vector<28x256xf32>
    %375 = tpu.matmul %372, %374, %cst_492 {dimension_numbers = #tpu.dot_dimension_numbers<[1], [0], [0], [1], [0, 0, 1, 1], [], []>} : vector<28x32xf32>, vector<32x256xf32>, vector<28x256xf32> -> vector<28x256xf32>
    %376 = arith.addf %370, %375 : vector<28x256xf32>
    %c2_493 = arith.constant 2 : index
    %c2_494 = arith.constant 2 : index
    %c2_495 = arith.constant 2 : index
    %c0_496 = arith.constant 0 : index
    %377 = vector.load %arg1[%c2_493, %c2_494, %c2_495, %c0_496] : memref<4x3x32x32xf32, #tpu.memory_space<vmem>>, vector<1x1x28x32xf32>
    %378 = vector.shape_cast %377 : vector<1x1x28x32xf32> to vector<28x32xf32>
    %c2_497 = arith.constant 2 : index
    %c2_498 = arith.constant 2 : index
    %c0_499 = arith.constant 0 : index
    %c0_500 = arith.constant 0 : index
    %379 = vector.load %arg2[%c2_497, %c2_498, %c0_499, %c0_500] : memref<3x5x32x256xf32, #tpu.memory_space<vmem>>, vector<1x1x32x256xf32>
    %380 = vector.shape_cast %379 : vector<1x1x32x256xf32> to vector<32x256xf32>
    %cst_501 = arith.constant dense<0.000000e+00> : vector<28x256xf32>
    %381 = tpu.matmul %378, %380, %cst_501 {dimension_numbers = #tpu.dot_dimension_numbers<[1], [0], [0], [1], [0, 0, 1, 1], [], []>} : vector<28x32xf32>, vector<32x256xf32>, vector<28x256xf32> -> vector<28x256xf32>
    %382 = arith.addf %376, %381 : vector<28x256xf32>
    %c2_502 = arith.constant 2 : index
    %c2_503 = arith.constant 2 : index
    %c3_504 = arith.constant 3 : index
    %c0_505 = arith.constant 0 : index
    %383 = vector.load %arg1[%c2_502, %c2_503, %c3_504, %c0_505] : memref<4x3x32x32xf32, #tpu.memory_space<vmem>>, vector<1x1x28x32xf32>
    %384 = vector.shape_cast %383 : vector<1x1x28x32xf32> to vector<28x32xf32>
    %c2_506 = arith.constant 2 : index
    %c3_507 = arith.constant 3 : index
    %c0_508 = arith.constant 0 : index
    %c0_509 = arith.constant 0 : index
    %385 = vector.load %arg2[%c2_506, %c3_507, %c0_508, %c0_509] : memref<3x5x32x256xf32, #tpu.memory_space<vmem>>, vector<1x1x32x256xf32>
    %386 = vector.shape_cast %385 : vector<1x1x32x256xf32> to vector<32x256xf32>
    %cst_510 = arith.constant dense<0.000000e+00> : vector<28x256xf32>
    %387 = tpu.matmul %384, %386, %cst_510 {dimension_numbers = #tpu.dot_dimension_numbers<[1], [0], [0], [1], [0, 0, 1, 1], [], []>} : vector<28x32xf32>, vector<32x256xf32>, vector<28x256xf32> -> vector<28x256xf32>
    %388 = arith.addf %382, %387 : vector<28x256xf32>
    %c2_511 = arith.constant 2 : index
    %c2_512 = arith.constant 2 : index
    %c4_513 = arith.constant 4 : index
    %c0_514 = arith.constant 0 : index
    %389 = vector.load %arg1[%c2_511, %c2_512, %c4_513, %c0_514] : memref<4x3x32x32xf32, #tpu.memory_space<vmem>>, vector<1x1x28x32xf32>
    %390 = vector.shape_cast %389 : vector<1x1x28x32xf32> to vector<28x32xf32>
    %c2_515 = arith.constant 2 : index
    %c4_516 = arith.constant 4 : index
    %c0_517 = arith.constant 0 : index
    %c0_518 = arith.constant 0 : index
    %391 = vector.load %arg2[%c2_515, %c4_516, %c0_517, %c0_518] : memref<3x5x32x256xf32, #tpu.memory_space<vmem>>, vector<1x1x32x256xf32>
    %392 = vector.shape_cast %391 : vector<1x1x32x256xf32> to vector<32x256xf32>
    %cst_519 = arith.constant dense<0.000000e+00> : vector<28x256xf32>
    %393 = tpu.matmul %390, %392, %cst_519 {dimension_numbers = #tpu.dot_dimension_numbers<[1], [0], [0], [1], [0, 0, 1, 1], [], []>} : vector<28x32xf32>, vector<32x256xf32>, vector<28x256xf32> -> vector<28x256xf32>
    %394 = arith.addf %388, %393 : vector<28x256xf32>
    %395 = vector.extract_strided_slice %394 {offsets = [0, 0], sizes = [28, 128], strides = [1, 1]} : vector<28x256xf32> to vector<28x128xf32>
    %396 = vector.extract_strided_slice %394 {offsets = [0, 128], sizes = [28, 128], strides = [1, 1]} : vector<28x256xf32> to vector<28x128xf32>
    %397 = arith.maximumf %395, %396 : vector<28x128xf32>
    %c0_520 = arith.constant 0 : index
    %c0_521 = arith.constant 0 : index
    %398 = vector.load %arg3[%c0_520, %c0_521] : memref<1x128xf32, #tpu.memory_space<vmem>>, vector<1x128xf32>
    %399 = vector.broadcast %398 : vector<1x128xf32> to vector<28x128xf32>
    %400 = arith.addf %397, %399 : vector<28x128xf32>
    %cst_522 = arith.constant 0.000000e+00 : f32
    %401 = vector.broadcast %cst_522 : f32 to vector<28x128xf32>
    %402 = arith.maximumf %400, %401 : vector<28x128xf32>
    %c0_523 = arith.constant 0 : index
    %c0_524 = arith.constant 0 : index
    %403 = vector.load %arg13[%c0_523, %c0_524] : memref<28x128xf32, #tpu.memory_space<vmem>>, vector<28x128xf32>
    tpu.vector_store %arg13[%c0_523, %c0_524], %402 {strides = array<i32>} : memref<28x128xf32, #tpu.memory_space<vmem>>, vector<28x128xf32>,
    %c0_525 = arith.constant 0 : index
    %c0_526 = arith.constant 0 : index
    %404 = tpu.strided_load %arg13[%c0_525, %c0_526] {strides = array<i32: 2, 1>} : memref<28x128xf32, #tpu.memory_space<vmem>>, vector<14x128xf32>
    %c1_527 = arith.constant 1 : index
    %c0_528 = arith.constant 0 : index
    %405 = tpu.strided_load %arg13[%c1_527, %c0_528] {strides = array<i32: 2, 1>} : memref<28x128xf32, #tpu.memory_space<vmem>>, vector<14x128xf32>
    %406 = arith.maximumf %404, %405 : vector<14x128xf32>
    %c0_529 = arith.constant 0 : index
    %c0_530 = arith.constant 0 : index
    %407 = vector.load %arg14[%c0_529, %c0_530] : memref<14x128xf32, #tpu.memory_space<vmem>>, vector<14x128xf32>
    tpu.vector_store %arg14[%c0_529, %c0_530], %406 {strides = array<i32>} : memref<14x128xf32, #tpu.memory_space<vmem>>, vector<14x128xf32>,
    %cst_531 = arith.constant 0.000000e+00 : f32
    %408 = vector.broadcast %cst_531 : f32 to vector<10x256xf32>
    %c0_532 = arith.constant 0 : index
    %c0_533 = arith.constant 0 : index
    %409 = vector.load %arg14[%c0_532, %c0_533] : memref<14x128xf32, #tpu.memory_space<vmem>>, vector<10x128xf32>
    %c0_534 = arith.constant 0 : index
    %c0_535 = arith.constant 0 : index
    %c0_536 = arith.constant 0 : index
    %410 = vector.load %arg4[%c0_534, %c0_535, %c0_536] : memref<5x128x256xf32, #tpu.memory_space<vmem>>, vector<1x128x256xf32>
    %411 = vector.shape_cast %410 : vector<1x128x256xf32> to vector<128x256xf32>
    %cst_537 = arith.constant dense<0.000000e+00> : vector<10x256xf32>
    %412 = tpu.matmul %409, %411, %cst_537 {dimension_numbers = #tpu.dot_dimension_numbers<[1], [0], [0], [1], [0, 0, 1, 1], [], []>} : vector<10x128xf32>, vector<128x256xf32>, vector<10x256xf32> -> vector<10x256xf32>
    %413 = arith.addf %408, %412 : vector<10x256xf32>
    %c1_538 = arith.constant 1 : index
    %c0_539 = arith.constant 0 : index
    %414 = vector.load %arg14[%c1_538, %c0_539] : memref<14x128xf32, #tpu.memory_space<vmem>>, vector<10x128xf32>
    %c1_540 = arith.constant 1 : index
    %c0_541 = arith.constant 0 : index
    %c0_542 = arith.constant 0 : index
    %415 = vector.load %arg4[%c1_540, %c0_541, %c0_542] : memref<5x128x256xf32, #tpu.memory_space<vmem>>, vector<1x128x256xf32>
    %416 = vector.shape_cast %415 : vector<1x128x256xf32> to vector<128x256xf32>
    %cst_543 = arith.constant dense<0.000000e+00> : vector<10x256xf32>
    %417 = tpu.matmul %414, %416, %cst_543 {dimension_numbers = #tpu.dot_dimension_numbers<[1], [0], [0], [1], [0, 0, 1, 1], [], []>} : vector<10x128xf32>, vector<128x256xf32>, vector<10x256xf32> -> vector<10x256xf32>
    %418 = arith.addf %413, %417 : vector<10x256xf32>
    %c2_544 = arith.constant 2 : index
    %c0_545 = arith.constant 0 : index
    %419 = vector.load %arg14[%c2_544, %c0_545] : memref<14x128xf32, #tpu.memory_space<vmem>>, vector<10x128xf32>
    %c2_546 = arith.constant 2 : index
    %c0_547 = arith.constant 0 : index
    %c0_548 = arith.constant 0 : index
    %420 = vector.load %arg4[%c2_546, %c0_547, %c0_548] : memref<5x128x256xf32, #tpu.memory_space<vmem>>, vector<1x128x256xf32>
    %421 = vector.shape_cast %420 : vector<1x128x256xf32> to vector<128x256xf32>
    %cst_549 = arith.constant dense<0.000000e+00> : vector<10x256xf32>
    %422 = tpu.matmul %419, %421, %cst_549 {dimension_numbers = #tpu.dot_dimension_numbers<[1], [0], [0], [1], [0, 0, 1, 1], [], []>} : vector<10x128xf32>, vector<128x256xf32>, vector<10x256xf32> -> vector<10x256xf32>
    %423 = arith.addf %418, %422 : vector<10x256xf32>
    %c3_550 = arith.constant 3 : index
    %c0_551 = arith.constant 0 : index
    %424 = vector.load %arg14[%c3_550, %c0_551] : memref<14x128xf32, #tpu.memory_space<vmem>>, vector<10x128xf32>
    %c3_552 = arith.constant 3 : index
    %c0_553 = arith.constant 0 : index
    %c0_554 = arith.constant 0 : index
    %425 = vector.load %arg4[%c3_552, %c0_553, %c0_554] : memref<5x128x256xf32, #tpu.memory_space<vmem>>, vector<1x128x256xf32>
    %426 = vector.shape_cast %425 : vector<1x128x256xf32> to vector<128x256xf32>
    %cst_555 = arith.constant dense<0.000000e+00> : vector<10x256xf32>
    %427 = tpu.matmul %424, %426, %cst_555 {dimension_numbers = #tpu.dot_dimension_numbers<[1], [0], [0], [1], [0, 0, 1, 1], [], []>} : vector<10x128xf32>, vector<128x256xf32>, vector<10x256xf32> -> vector<10x256xf32>
    %428 = arith.addf %423, %427 : vector<10x256xf32>
    %c4_556 = arith.constant 4 : index
    %c0_557 = arith.constant 0 : index
    %429 = vector.load %arg14[%c4_556, %c0_557] : memref<14x128xf32, #tpu.memory_space<vmem>>, vector<10x128xf32>
    %c4_558 = arith.constant 4 : index
    %c0_559 = arith.constant 0 : index
    %c0_560 = arith.constant 0 : index
    %430 = vector.load %arg4[%c4_558, %c0_559, %c0_560] : memref<5x128x256xf32, #tpu.memory_space<vmem>>, vector<1x128x256xf32>
    %431 = vector.shape_cast %430 : vector<1x128x256xf32> to vector<128x256xf32>
    %cst_561 = arith.constant dense<0.000000e+00> : vector<10x256xf32>
    %432 = tpu.matmul %429, %431, %cst_561 {dimension_numbers = #tpu.dot_dimension_numbers<[1], [0], [0], [1], [0, 0, 1, 1], [], []>} : vector<10x128xf32>, vector<128x256xf32>, vector<10x256xf32> -> vector<10x256xf32>
    %433 = arith.addf %428, %432 : vector<10x256xf32>
    %434 = vector.extract_strided_slice %433 {offsets = [0, 0], sizes = [10, 128], strides = [1, 1]} : vector<10x256xf32> to vector<10x128xf32>
    %435 = vector.extract_strided_slice %433 {offsets = [0, 128], sizes = [10, 128], strides = [1, 1]} : vector<10x256xf32> to vector<10x128xf32>
    %436 = arith.maximumf %434, %435 : vector<10x128xf32>
    %c0_562 = arith.constant 0 : index
    %c0_563 = arith.constant 0 : index
    %437 = vector.load %arg5[%c0_562, %c0_563] : memref<1x128xf32, #tpu.memory_space<vmem>>, vector<1x128xf32>
    %438 = vector.broadcast %437 : vector<1x128xf32> to vector<10x128xf32>
    %439 = arith.addf %436, %438 : vector<10x128xf32>
    %cst_564 = arith.constant 0.000000e+00 : f32
    %440 = vector.broadcast %cst_564 : f32 to vector<10x128xf32>
    %441 = arith.maximumf %439, %440 : vector<10x128xf32>
    %c0_565 = arith.constant 0 : index
    %c0_566 = arith.constant 0 : index
    %442 = vector.load %arg15[%c0_565, %c0_566] : memref<10x128xf32, #tpu.memory_space<vmem>>, vector<10x128xf32>
    tpu.vector_store %arg15[%c0_565, %c0_566], %441 {strides = array<i32>} : memref<10x128xf32, #tpu.memory_space<vmem>>, vector<10x128xf32>,
    %c0_567 = arith.constant 0 : index
    %c0_568 = arith.constant 0 : index
    %443 = tpu.strided_load %arg15[%c0_567, %c0_568] {strides = array<i32: 2, 1>} : memref<10x128xf32, #tpu.memory_space<vmem>>, vector<5x128xf32>
    %c1_569 = arith.constant 1 : index
    %c0_570 = arith.constant 0 : index
    %444 = tpu.strided_load %arg15[%c1_569, %c0_570] {strides = array<i32: 2, 1>} : memref<10x128xf32, #tpu.memory_space<vmem>>, vector<5x128xf32>
    %445 = arith.maximumf %443, %444 : vector<5x128xf32>
    %446 = vector.extract_strided_slice %445 {offsets = [0, 0], sizes = [1, 128], strides = [1, 1]} : vector<5x128xf32> to vector<1x128xf32>
    %c2_571 = arith.constant 2 : index
    %c0_572 = arith.constant 0 : index
    %447 = vector.load %arg16[%c2_571, %c0_572] : memref<4x640xf32, #tpu.memory_space<vmem>>, vector<1x128xf32>
    tpu.vector_store %arg16[%c2_571, %c0_572], %446 {strides = array<i32>} : memref<4x640xf32, #tpu.memory_space<vmem>>, vector<1x128xf32>,
    %448 = vector.extract_strided_slice %445 {offsets = [1, 0], sizes = [1, 128], strides = [1, 1]} : vector<5x128xf32> to vector<1x128xf32>
    %c2_573 = arith.constant 2 : index
    %c128_574 = arith.constant 128 : index
    %449 = vector.load %arg16[%c2_573, %c128_574] : memref<4x640xf32, #tpu.memory_space<vmem>>, vector<1x128xf32>
    tpu.vector_store %arg16[%c2_573, %c128_574], %448 {strides = array<i32>} : memref<4x640xf32, #tpu.memory_space<vmem>>, vector<1x128xf32>,
    %450 = vector.extract_strided_slice %445 {offsets = [2, 0], sizes = [1, 128], strides = [1, 1]} : vector<5x128xf32> to vector<1x128xf32>
    %c2_575 = arith.constant 2 : index
    %c256_576 = arith.constant 256 : index
    %451 = vector.load %arg16[%c2_575, %c256_576] : memref<4x640xf32, #tpu.memory_space<vmem>>, vector<1x128xf32>
    tpu.vector_store %arg16[%c2_575, %c256_576], %450 {strides = array<i32>} : memref<4x640xf32, #tpu.memory_space<vmem>>, vector<1x128xf32>,
    %452 = vector.extract_strided_slice %445 {offsets = [3, 0], sizes = [1, 128], strides = [1, 1]} : vector<5x128xf32> to vector<1x128xf32>
    %c2_577 = arith.constant 2 : index
    %c384_578 = arith.constant 384 : index
    %453 = vector.load %arg16[%c2_577, %c384_578] : memref<4x640xf32, #tpu.memory_space<vmem>>, vector<1x128xf32>
    tpu.vector_store %arg16[%c2_577, %c384_578], %452 {strides = array<i32>} : memref<4x640xf32, #tpu.memory_space<vmem>>, vector<1x128xf32>,
    %454 = vector.extract_strided_slice %445 {offsets = [4, 0], sizes = [1, 128], strides = [1, 1]} : vector<5x128xf32> to vector<1x128xf32>
    %c2_579 = arith.constant 2 : index
    %c512_580 = arith.constant 512 : index
    %455 = vector.load %arg16[%c2_579, %c512_580] : memref<4x640xf32, #tpu.memory_space<vmem>>, vector<1x128xf32>
    tpu.vector_store %arg16[%c2_579, %c512_580], %454 {strides = array<i32>} : memref<4x640xf32, #tpu.memory_space<vmem>>, vector<1x128xf32>,
    %cst_581 = arith.constant 0.000000e+00 : f32
    %456 = vector.broadcast %cst_581 : f32 to vector<28x256xf32>
    %c3_582 = arith.constant 3 : index
    %c0_583 = arith.constant 0 : index
    %c0_584 = arith.constant 0 : index
    %c0_585 = arith.constant 0 : index
    %457 = vector.load %arg1[%c3_582, %c0_583, %c0_584, %c0_585] : memref<4x3x32x32xf32, #tpu.memory_space<vmem>>, vector<1x1x28x32xf32>
    %458 = vector.shape_cast %457 : vector<1x1x28x32xf32> to vector<28x32xf32>
    %c0_586 = arith.constant 0 : index
    %c0_587 = arith.constant 0 : index
    %c0_588 = arith.constant 0 : index
    %c0_589 = arith.constant 0 : index
    %459 = vector.load %arg2[%c0_586, %c0_587, %c0_588, %c0_589] : memref<3x5x32x256xf32, #tpu.memory_space<vmem>>, vector<1x1x32x256xf32>
    %460 = vector.shape_cast %459 : vector<1x1x32x256xf32> to vector<32x256xf32>
    %cst_590 = arith.constant dense<0.000000e+00> : vector<28x256xf32>
    %461 = tpu.matmul %458, %460, %cst_590 {dimension_numbers = #tpu.dot_dimension_numbers<[1], [0], [0], [1], [0, 0, 1, 1], [], []>} : vector<28x32xf32>, vector<32x256xf32>, vector<28x256xf32> -> vector<28x256xf32>
    %462 = arith.addf %456, %461 : vector<28x256xf32>
    %c3_591 = arith.constant 3 : index
    %c0_592 = arith.constant 0 : index
    %c1_593 = arith.constant 1 : index
    %c0_594 = arith.constant 0 : index
    %463 = vector.load %arg1[%c3_591, %c0_592, %c1_593, %c0_594] : memref<4x3x32x32xf32, #tpu.memory_space<vmem>>, vector<1x1x28x32xf32>
    %464 = vector.shape_cast %463 : vector<1x1x28x32xf32> to vector<28x32xf32>
    %c0_595 = arith.constant 0 : index
    %c1_596 = arith.constant 1 : index
    %c0_597 = arith.constant 0 : index
    %c0_598 = arith.constant 0 : index
    %465 = vector.load %arg2[%c0_595, %c1_596, %c0_597, %c0_598] : memref<3x5x32x256xf32, #tpu.memory_space<vmem>>, vector<1x1x32x256xf32>
    %466 = vector.shape_cast %465 : vector<1x1x32x256xf32> to vector<32x256xf32>
    %cst_599 = arith.constant dense<0.000000e+00> : vector<28x256xf32>
    %467 = tpu.matmul %464, %466, %cst_599 {dimension_numbers = #tpu.dot_dimension_numbers<[1], [0], [0], [1], [0, 0, 1, 1], [], []>} : vector<28x32xf32>, vector<32x256xf32>, vector<28x256xf32> -> vector<28x256xf32>
    %468 = arith.addf %462, %467 : vector<28x256xf32>
    %c3_600 = arith.constant 3 : index
    %c0_601 = arith.constant 0 : index
    %c2_602 = arith.constant 2 : index
    %c0_603 = arith.constant 0 : index
    %469 = vector.load %arg1[%c3_600, %c0_601, %c2_602, %c0_603] : memref<4x3x32x32xf32, #tpu.memory_space<vmem>>, vector<1x1x28x32xf32>
    %470 = vector.shape_cast %469 : vector<1x1x28x32xf32> to vector<28x32xf32>
    %c0_604 = arith.constant 0 : index
    %c2_605 = arith.constant 2 : index
    %c0_606 = arith.constant 0 : index
    %c0_607 = arith.constant 0 : index
    %471 = vector.load %arg2[%c0_604, %c2_605, %c0_606, %c0_607] : memref<3x5x32x256xf32, #tpu.memory_space<vmem>>, vector<1x1x32x256xf32>
    %472 = vector.shape_cast %471 : vector<1x1x32x256xf32> to vector<32x256xf32>
    %cst_608 = arith.constant dense<0.000000e+00> : vector<28x256xf32>
    %473 = tpu.matmul %470, %472, %cst_608 {dimension_numbers = #tpu.dot_dimension_numbers<[1], [0], [0], [1], [0, 0, 1, 1], [], []>} : vector<28x32xf32>, vector<32x256xf32>, vector<28x256xf32> -> vector<28x256xf32>
    %474 = arith.addf %468, %473 : vector<28x256xf32>
    %c3_609 = arith.constant 3 : index
    %c0_610 = arith.constant 0 : index
    %c3_611 = arith.constant 3 : index
    %c0_612 = arith.constant 0 : index
    %475 = vector.load %arg1[%c3_609, %c0_610, %c3_611, %c0_612] : memref<4x3x32x32xf32, #tpu.memory_space<vmem>>, vector<1x1x28x32xf32>
    %476 = vector.shape_cast %475 : vector<1x1x28x32xf32> to vector<28x32xf32>
    %c0_613 = arith.constant 0 : index
    %c3_614 = arith.constant 3 : index
    %c0_615 = arith.constant 0 : index
    %c0_616 = arith.constant 0 : index
    %477 = vector.load %arg2[%c0_613, %c3_614, %c0_615, %c0_616] : memref<3x5x32x256xf32, #tpu.memory_space<vmem>>, vector<1x1x32x256xf32>
    %478 = vector.shape_cast %477 : vector<1x1x32x256xf32> to vector<32x256xf32>
    %cst_617 = arith.constant dense<0.000000e+00> : vector<28x256xf32>
    %479 = tpu.matmul %476, %478, %cst_617 {dimension_numbers = #tpu.dot_dimension_numbers<[1], [0], [0], [1], [0, 0, 1, 1], [], []>} : vector<28x32xf32>, vector<32x256xf32>, vector<28x256xf32> -> vector<28x256xf32>
    %480 = arith.addf %474, %479 : vector<28x256xf32>
    %c3_618 = arith.constant 3 : index
    %c0_619 = arith.constant 0 : index
    %c4_620 = arith.constant 4 : index
    %c0_621 = arith.constant 0 : index
    %481 = vector.load %arg1[%c3_618, %c0_619, %c4_620, %c0_621] : memref<4x3x32x32xf32, #tpu.memory_space<vmem>>, vector<1x1x28x32xf32>
    %482 = vector.shape_cast %481 : vector<1x1x28x32xf32> to vector<28x32xf32>
    %c0_622 = arith.constant 0 : index
    %c4_623 = arith.constant 4 : index
    %c0_624 = arith.constant 0 : index
    %c0_625 = arith.constant 0 : index
    %483 = vector.load %arg2[%c0_622, %c4_623, %c0_624, %c0_625] : memref<3x5x32x256xf32, #tpu.memory_space<vmem>>, vector<1x1x32x256xf32>
    %484 = vector.shape_cast %483 : vector<1x1x32x256xf32> to vector<32x256xf32>
    %cst_626 = arith.constant dense<0.000000e+00> : vector<28x256xf32>
    %485 = tpu.matmul %482, %484, %cst_626 {dimension_numbers = #tpu.dot_dimension_numbers<[1], [0], [0], [1], [0, 0, 1, 1], [], []>} : vector<28x32xf32>, vector<32x256xf32>, vector<28x256xf32> -> vector<28x256xf32>
    %486 = arith.addf %480, %485 : vector<28x256xf32>
    %c3_627 = arith.constant 3 : index
    %c1_628 = arith.constant 1 : index
    %c0_629 = arith.constant 0 : index
    %c0_630 = arith.constant 0 : index
    %487 = vector.load %arg1[%c3_627, %c1_628, %c0_629, %c0_630] : memref<4x3x32x32xf32, #tpu.memory_space<vmem>>, vector<1x1x28x32xf32>
    %488 = vector.shape_cast %487 : vector<1x1x28x32xf32> to vector<28x32xf32>
    %c1_631 = arith.constant 1 : index
    %c0_632 = arith.constant 0 : index
    %c0_633 = arith.constant 0 : index
    %c0_634 = arith.constant 0 : index
    %489 = vector.load %arg2[%c1_631, %c0_632, %c0_633, %c0_634] : memref<3x5x32x256xf32, #tpu.memory_space<vmem>>, vector<1x1x32x256xf32>
    %490 = vector.shape_cast %489 : vector<1x1x32x256xf32> to vector<32x256xf32>
    %cst_635 = arith.constant dense<0.000000e+00> : vector<28x256xf32>
    %491 = tpu.matmul %488, %490, %cst_635 {dimension_numbers = #tpu.dot_dimension_numbers<[1], [0], [0], [1], [0, 0, 1, 1], [], []>} : vector<28x32xf32>, vector<32x256xf32>, vector<28x256xf32> -> vector<28x256xf32>
    %492 = arith.addf %486, %491 : vector<28x256xf32>
    %c3_636 = arith.constant 3 : index
    %c1_637 = arith.constant 1 : index
    %c1_638 = arith.constant 1 : index
    %c0_639 = arith.constant 0 : index
    %493 = vector.load %arg1[%c3_636, %c1_637, %c1_638, %c0_639] : memref<4x3x32x32xf32, #tpu.memory_space<vmem>>, vector<1x1x28x32xf32>
    %494 = vector.shape_cast %493 : vector<1x1x28x32xf32> to vector<28x32xf32>
    %c1_640 = arith.constant 1 : index
    %c1_641 = arith.constant 1 : index
    %c0_642 = arith.constant 0 : index
    %c0_643 = arith.constant 0 : index
    %495 = vector.load %arg2[%c1_640, %c1_641, %c0_642, %c0_643] : memref<3x5x32x256xf32, #tpu.memory_space<vmem>>, vector<1x1x32x256xf32>
    %496 = vector.shape_cast %495 : vector<1x1x32x256xf32> to vector<32x256xf32>
    %cst_644 = arith.constant dense<0.000000e+00> : vector<28x256xf32>
    %497 = tpu.matmul %494, %496, %cst_644 {dimension_numbers = #tpu.dot_dimension_numbers<[1], [0], [0], [1], [0, 0, 1, 1], [], []>} : vector<28x32xf32>, vector<32x256xf32>, vector<28x256xf32> -> vector<28x256xf32>
    %498 = arith.addf %492, %497 : vector<28x256xf32>
    %c3_645 = arith.constant 3 : index
    %c1_646 = arith.constant 1 : index
    %c2_647 = arith.constant 2 : index
    %c0_648 = arith.constant 0 : index
    %499 = vector.load %arg1[%c3_645, %c1_646, %c2_647, %c0_648] : memref<4x3x32x32xf32, #tpu.memory_space<vmem>>, vector<1x1x28x32xf32>
    %500 = vector.shape_cast %499 : vector<1x1x28x32xf32> to vector<28x32xf32>
    %c1_649 = arith.constant 1 : index
    %c2_650 = arith.constant 2 : index
    %c0_651 = arith.constant 0 : index
    %c0_652 = arith.constant 0 : index
    %501 = vector.load %arg2[%c1_649, %c2_650, %c0_651, %c0_652] : memref<3x5x32x256xf32, #tpu.memory_space<vmem>>, vector<1x1x32x256xf32>
    %502 = vector.shape_cast %501 : vector<1x1x32x256xf32> to vector<32x256xf32>
    %cst_653 = arith.constant dense<0.000000e+00> : vector<28x256xf32>
    %503 = tpu.matmul %500, %502, %cst_653 {dimension_numbers = #tpu.dot_dimension_numbers<[1], [0], [0], [1], [0, 0, 1, 1], [], []>} : vector<28x32xf32>, vector<32x256xf32>, vector<28x256xf32> -> vector<28x256xf32>
    %504 = arith.addf %498, %503 : vector<28x256xf32>
    %c3_654 = arith.constant 3 : index
    %c1_655 = arith.constant 1 : index
    %c3_656 = arith.constant 3 : index
    %c0_657 = arith.constant 0 : index
    %505 = vector.load %arg1[%c3_654, %c1_655, %c3_656, %c0_657] : memref<4x3x32x32xf32, #tpu.memory_space<vmem>>, vector<1x1x28x32xf32>
    %506 = vector.shape_cast %505 : vector<1x1x28x32xf32> to vector<28x32xf32>
    %c1_658 = arith.constant 1 : index
    %c3_659 = arith.constant 3 : index
    %c0_660 = arith.constant 0 : index
    %c0_661 = arith.constant 0 : index
    %507 = vector.load %arg2[%c1_658, %c3_659, %c0_660, %c0_661] : memref<3x5x32x256xf32, #tpu.memory_space<vmem>>, vector<1x1x32x256xf32>
    %508 = vector.shape_cast %507 : vector<1x1x32x256xf32> to vector<32x256xf32>
    %cst_662 = arith.constant dense<0.000000e+00> : vector<28x256xf32>
    %509 = tpu.matmul %506, %508, %cst_662 {dimension_numbers = #tpu.dot_dimension_numbers<[1], [0], [0], [1], [0, 0, 1, 1], [], []>} : vector<28x32xf32>, vector<32x256xf32>, vector<28x256xf32> -> vector<28x256xf32>
    %510 = arith.addf %504, %509 : vector<28x256xf32>
    %c3_663 = arith.constant 3 : index
    %c1_664 = arith.constant 1 : index
    %c4_665 = arith.constant 4 : index
    %c0_666 = arith.constant 0 : index
    %511 = vector.load %arg1[%c3_663, %c1_664, %c4_665, %c0_666] : memref<4x3x32x32xf32, #tpu.memory_space<vmem>>, vector<1x1x28x32xf32>
    %512 = vector.shape_cast %511 : vector<1x1x28x32xf32> to vector<28x32xf32>
    %c1_667 = arith.constant 1 : index
    %c4_668 = arith.constant 4 : index
    %c0_669 = arith.constant 0 : index
    %c0_670 = arith.constant 0 : index
    %513 = vector.load %arg2[%c1_667, %c4_668, %c0_669, %c0_670] : memref<3x5x32x256xf32, #tpu.memory_space<vmem>>, vector<1x1x32x256xf32>
    %514 = vector.shape_cast %513 : vector<1x1x32x256xf32> to vector<32x256xf32>
    %cst_671 = arith.constant dense<0.000000e+00> : vector<28x256xf32>
    %515 = tpu.matmul %512, %514, %cst_671 {dimension_numbers = #tpu.dot_dimension_numbers<[1], [0], [0], [1], [0, 0, 1, 1], [], []>} : vector<28x32xf32>, vector<32x256xf32>, vector<28x256xf32> -> vector<28x256xf32>
    %516 = arith.addf %510, %515 : vector<28x256xf32>
    %c3_672 = arith.constant 3 : index
    %c2_673 = arith.constant 2 : index
    %c0_674 = arith.constant 0 : index
    %c0_675 = arith.constant 0 : index
    %517 = vector.load %arg1[%c3_672, %c2_673, %c0_674, %c0_675] : memref<4x3x32x32xf32, #tpu.memory_space<vmem>>, vector<1x1x28x32xf32>
    %518 = vector.shape_cast %517 : vector<1x1x28x32xf32> to vector<28x32xf32>
    %c2_676 = arith.constant 2 : index
    %c0_677 = arith.constant 0 : index
    %c0_678 = arith.constant 0 : index
    %c0_679 = arith.constant 0 : index
    %519 = vector.load %arg2[%c2_676, %c0_677, %c0_678, %c0_679] : memref<3x5x32x256xf32, #tpu.memory_space<vmem>>, vector<1x1x32x256xf32>
    %520 = vector.shape_cast %519 : vector<1x1x32x256xf32> to vector<32x256xf32>
    %cst_680 = arith.constant dense<0.000000e+00> : vector<28x256xf32>
    %521 = tpu.matmul %518, %520, %cst_680 {dimension_numbers = #tpu.dot_dimension_numbers<[1], [0], [0], [1], [0, 0, 1, 1], [], []>} : vector<28x32xf32>, vector<32x256xf32>, vector<28x256xf32> -> vector<28x256xf32>
    %522 = arith.addf %516, %521 : vector<28x256xf32>
    %c3_681 = arith.constant 3 : index
    %c2_682 = arith.constant 2 : index
    %c1_683 = arith.constant 1 : index
    %c0_684 = arith.constant 0 : index
    %523 = vector.load %arg1[%c3_681, %c2_682, %c1_683, %c0_684] : memref<4x3x32x32xf32, #tpu.memory_space<vmem>>, vector<1x1x28x32xf32>
    %524 = vector.shape_cast %523 : vector<1x1x28x32xf32> to vector<28x32xf32>
    %c2_685 = arith.constant 2 : index
    %c1_686 = arith.constant 1 : index
    %c0_687 = arith.constant 0 : index
    %c0_688 = arith.constant 0 : index
    %525 = vector.load %arg2[%c2_685, %c1_686, %c0_687, %c0_688] : memref<3x5x32x256xf32, #tpu.memory_space<vmem>>, vector<1x1x32x256xf32>
    %526 = vector.shape_cast %525 : vector<1x1x32x256xf32> to vector<32x256xf32>
    %cst_689 = arith.constant dense<0.000000e+00> : vector<28x256xf32>
    %527 = tpu.matmul %524, %526, %cst_689 {dimension_numbers = #tpu.dot_dimension_numbers<[1], [0], [0], [1], [0, 0, 1, 1], [], []>} : vector<28x32xf32>, vector<32x256xf32>, vector<28x256xf32> -> vector<28x256xf32>
    %528 = arith.addf %522, %527 : vector<28x256xf32>
    %c3_690 = arith.constant 3 : index
    %c2_691 = arith.constant 2 : index
    %c2_692 = arith.constant 2 : index
    %c0_693 = arith.constant 0 : index
    %529 = vector.load %arg1[%c3_690, %c2_691, %c2_692, %c0_693] : memref<4x3x32x32xf32, #tpu.memory_space<vmem>>, vector<1x1x28x32xf32>
    %530 = vector.shape_cast %529 : vector<1x1x28x32xf32> to vector<28x32xf32>
    %c2_694 = arith.constant 2 : index
    %c2_695 = arith.constant 2 : index
    %c0_696 = arith.constant 0 : index
    %c0_697 = arith.constant 0 : index
    %531 = vector.load %arg2[%c2_694, %c2_695, %c0_696, %c0_697] : memref<3x5x32x256xf32, #tpu.memory_space<vmem>>, vector<1x1x32x256xf32>
    %532 = vector.shape_cast %531 : vector<1x1x32x256xf32> to vector<32x256xf32>
    %cst_698 = arith.constant dense<0.000000e+00> : vector<28x256xf32>
    %533 = tpu.matmul %530, %532, %cst_698 {dimension_numbers = #tpu.dot_dimension_numbers<[1], [0], [0], [1], [0, 0, 1, 1], [], []>} : vector<28x32xf32>, vector<32x256xf32>, vector<28x256xf32> -> vector<28x256xf32>
    %534 = arith.addf %528, %533 : vector<28x256xf32>
    %c3_699 = arith.constant 3 : index
    %c2_700 = arith.constant 2 : index
    %c3_701 = arith.constant 3 : index
    %c0_702 = arith.constant 0 : index
    %535 = vector.load %arg1[%c3_699, %c2_700, %c3_701, %c0_702] : memref<4x3x32x32xf32, #tpu.memory_space<vmem>>, vector<1x1x28x32xf32>
    %536 = vector.shape_cast %535 : vector<1x1x28x32xf32> to vector<28x32xf32>
    %c2_703 = arith.constant 2 : index
    %c3_704 = arith.constant 3 : index
    %c0_705 = arith.constant 0 : index
    %c0_706 = arith.constant 0 : index
    %537 = vector.load %arg2[%c2_703, %c3_704, %c0_705, %c0_706] : memref<3x5x32x256xf32, #tpu.memory_space<vmem>>, vector<1x1x32x256xf32>
    %538 = vector.shape_cast %537 : vector<1x1x32x256xf32> to vector<32x256xf32>
    %cst_707 = arith.constant dense<0.000000e+00> : vector<28x256xf32>
    %539 = tpu.matmul %536, %538, %cst_707 {dimension_numbers = #tpu.dot_dimension_numbers<[1], [0], [0], [1], [0, 0, 1, 1], [], []>} : vector<28x32xf32>, vector<32x256xf32>, vector<28x256xf32> -> vector<28x256xf32>
    %540 = arith.addf %534, %539 : vector<28x256xf32>
    %c3_708 = arith.constant 3 : index
    %c2_709 = arith.constant 2 : index
    %c4_710 = arith.constant 4 : index
    %c0_711 = arith.constant 0 : index
    %541 = vector.load %arg1[%c3_708, %c2_709, %c4_710, %c0_711] : memref<4x3x32x32xf32, #tpu.memory_space<vmem>>, vector<1x1x28x32xf32>
    %542 = vector.shape_cast %541 : vector<1x1x28x32xf32> to vector<28x32xf32>
    %c2_712 = arith.constant 2 : index
    %c4_713 = arith.constant 4 : index
    %c0_714 = arith.constant 0 : index
    %c0_715 = arith.constant 0 : index
    %543 = vector.load %arg2[%c2_712, %c4_713, %c0_714, %c0_715] : memref<3x5x32x256xf32, #tpu.memory_space<vmem>>, vector<1x1x32x256xf32>
    %544 = vector.shape_cast %543 : vector<1x1x32x256xf32> to vector<32x256xf32>
    %cst_716 = arith.constant dense<0.000000e+00> : vector<28x256xf32>
    %545 = tpu.matmul %542, %544, %cst_716 {dimension_numbers = #tpu.dot_dimension_numbers<[1], [0], [0], [1], [0, 0, 1, 1], [], []>} : vector<28x32xf32>, vector<32x256xf32>, vector<28x256xf32> -> vector<28x256xf32>
    %546 = arith.addf %540, %545 : vector<28x256xf32>
    %547 = vector.extract_strided_slice %546 {offsets = [0, 0], sizes = [28, 128], strides = [1, 1]} : vector<28x256xf32> to vector<28x128xf32>
    %548 = vector.extract_strided_slice %546 {offsets = [0, 128], sizes = [28, 128], strides = [1, 1]} : vector<28x256xf32> to vector<28x128xf32>
    %549 = arith.maximumf %547, %548 : vector<28x128xf32>
    %c0_717 = arith.constant 0 : index
    %c0_718 = arith.constant 0 : index
    %550 = vector.load %arg3[%c0_717, %c0_718] : memref<1x128xf32, #tpu.memory_space<vmem>>, vector<1x128xf32>
    %551 = vector.broadcast %550 : vector<1x128xf32> to vector<28x128xf32>
    %552 = arith.addf %549, %551 : vector<28x128xf32>
    %cst_719 = arith.constant 0.000000e+00 : f32
    %553 = vector.broadcast %cst_719 : f32 to vector<28x128xf32>
    %554 = arith.maximumf %552, %553 : vector<28x128xf32>
    %c0_720 = arith.constant 0 : index
    %c0_721 = arith.constant 0 : index
    %555 = vector.load %arg13[%c0_720, %c0_721] : memref<28x128xf32, #tpu.memory_space<vmem>>, vector<28x128xf32>
    tpu.vector_store %arg13[%c0_720, %c0_721], %554 {strides = array<i32>} : memref<28x128xf32, #tpu.memory_space<vmem>>, vector<28x128xf32>,
    %c0_722 = arith.constant 0 : index
    %c0_723 = arith.constant 0 : index
    %556 = tpu.strided_load %arg13[%c0_722, %c0_723] {strides = array<i32: 2, 1>} : memref<28x128xf32, #tpu.memory_space<vmem>>, vector<14x128xf32>
    %c1_724 = arith.constant 1 : index
    %c0_725 = arith.constant 0 : index
    %557 = tpu.strided_load %arg13[%c1_724, %c0_725] {strides = array<i32: 2, 1>} : memref<28x128xf32, #tpu.memory_space<vmem>>, vector<14x128xf32>
    %558 = arith.maximumf %556, %557 : vector<14x128xf32>
    %c0_726 = arith.constant 0 : index
    %c0_727 = arith.constant 0 : index
    %559 = vector.load %arg14[%c0_726, %c0_727] : memref<14x128xf32, #tpu.memory_space<vmem>>, vector<14x128xf32>
    tpu.vector_store %arg14[%c0_726, %c0_727], %558 {strides = array<i32>} : memref<14x128xf32, #tpu.memory_space<vmem>>, vector<14x128xf32>,
    %cst_728 = arith.constant 0.000000e+00 : f32
    %560 = vector.broadcast %cst_728 : f32 to vector<10x256xf32>
    %c0_729 = arith.constant 0 : index
    %c0_730 = arith.constant 0 : index
    %561 = vector.load %arg14[%c0_729, %c0_730] : memref<14x128xf32, #tpu.memory_space<vmem>>, vector<10x128xf32>
    %c0_731 = arith.constant 0 : index
    %c0_732 = arith.constant 0 : index
    %c0_733 = arith.constant 0 : index
    %562 = vector.load %arg4[%c0_731, %c0_732, %c0_733] : memref<5x128x256xf32, #tpu.memory_space<vmem>>, vector<1x128x256xf32>
    %563 = vector.shape_cast %562 : vector<1x128x256xf32> to vector<128x256xf32>
    %cst_734 = arith.constant dense<0.000000e+00> : vector<10x256xf32>
    %564 = tpu.matmul %561, %563, %cst_734 {dimension_numbers = #tpu.dot_dimension_numbers<[1], [0], [0], [1], [0, 0, 1, 1], [], []>} : vector<10x128xf32>, vector<128x256xf32>, vector<10x256xf32> -> vector<10x256xf32>
    %565 = arith.addf %560, %564 : vector<10x256xf32>
    %c1_735 = arith.constant 1 : index
    %c0_736 = arith.constant 0 : index
    %566 = vector.load %arg14[%c1_735, %c0_736] : memref<14x128xf32, #tpu.memory_space<vmem>>, vector<10x128xf32>
    %c1_737 = arith.constant 1 : index
    %c0_738 = arith.constant 0 : index
    %c0_739 = arith.constant 0 : index
    %567 = vector.load %arg4[%c1_737, %c0_738, %c0_739] : memref<5x128x256xf32, #tpu.memory_space<vmem>>, vector<1x128x256xf32>
    %568 = vector.shape_cast %567 : vector<1x128x256xf32> to vector<128x256xf32>
    %cst_740 = arith.constant dense<0.000000e+00> : vector<10x256xf32>
    %569 = tpu.matmul %566, %568, %cst_740 {dimension_numbers = #tpu.dot_dimension_numbers<[1], [0], [0], [1], [0, 0, 1, 1], [], []>} : vector<10x128xf32>, vector<128x256xf32>, vector<10x256xf32> -> vector<10x256xf32>
    %570 = arith.addf %565, %569 : vector<10x256xf32>
    %c2_741 = arith.constant 2 : index
    %c0_742 = arith.constant 0 : index
    %571 = vector.load %arg14[%c2_741, %c0_742] : memref<14x128xf32, #tpu.memory_space<vmem>>, vector<10x128xf32>
    %c2_743 = arith.constant 2 : index
    %c0_744 = arith.constant 0 : index
    %c0_745 = arith.constant 0 : index
    %572 = vector.load %arg4[%c2_743, %c0_744, %c0_745] : memref<5x128x256xf32, #tpu.memory_space<vmem>>, vector<1x128x256xf32>
    %573 = vector.shape_cast %572 : vector<1x128x256xf32> to vector<128x256xf32>
    %cst_746 = arith.constant dense<0.000000e+00> : vector<10x256xf32>
    %574 = tpu.matmul %571, %573, %cst_746 {dimension_numbers = #tpu.dot_dimension_numbers<[1], [0], [0], [1], [0, 0, 1, 1], [], []>} : vector<10x128xf32>, vector<128x256xf32>, vector<10x256xf32> -> vector<10x256xf32>
    %575 = arith.addf %570, %574 : vector<10x256xf32>
    %c3_747 = arith.constant 3 : index
    %c0_748 = arith.constant 0 : index
    %576 = vector.load %arg14[%c3_747, %c0_748] : memref<14x128xf32, #tpu.memory_space<vmem>>, vector<10x128xf32>
    %c3_749 = arith.constant 3 : index
    %c0_750 = arith.constant 0 : index
    %c0_751 = arith.constant 0 : index
    %577 = vector.load %arg4[%c3_749, %c0_750, %c0_751] : memref<5x128x256xf32, #tpu.memory_space<vmem>>, vector<1x128x256xf32>
    %578 = vector.shape_cast %577 : vector<1x128x256xf32> to vector<128x256xf32>
    %cst_752 = arith.constant dense<0.000000e+00> : vector<10x256xf32>
    %579 = tpu.matmul %576, %578, %cst_752 {dimension_numbers = #tpu.dot_dimension_numbers<[1], [0], [0], [1], [0, 0, 1, 1], [], []>} : vector<10x128xf32>, vector<128x256xf32>, vector<10x256xf32> -> vector<10x256xf32>
    %580 = arith.addf %575, %579 : vector<10x256xf32>
    %c4_753 = arith.constant 4 : index
    %c0_754 = arith.constant 0 : index
    %581 = vector.load %arg14[%c4_753, %c0_754] : memref<14x128xf32, #tpu.memory_space<vmem>>, vector<10x128xf32>
    %c4_755 = arith.constant 4 : index
    %c0_756 = arith.constant 0 : index
    %c0_757 = arith.constant 0 : index
    %582 = vector.load %arg4[%c4_755, %c0_756, %c0_757] : memref<5x128x256xf32, #tpu.memory_space<vmem>>, vector<1x128x256xf32>
    %583 = vector.shape_cast %582 : vector<1x128x256xf32> to vector<128x256xf32>
    %cst_758 = arith.constant dense<0.000000e+00> : vector<10x256xf32>
    %584 = tpu.matmul %581, %583, %cst_758 {dimension_numbers = #tpu.dot_dimension_numbers<[1], [0], [0], [1], [0, 0, 1, 1], [], []>} : vector<10x128xf32>, vector<128x256xf32>, vector<10x256xf32> -> vector<10x256xf32>
    %585 = arith.addf %580, %584 : vector<10x256xf32>
    %586 = vector.extract_strided_slice %585 {offsets = [0, 0], sizes = [10, 128], strides = [1, 1]} : vector<10x256xf32> to vector<10x128xf32>
    %587 = vector.extract_strided_slice %585 {offsets = [0, 128], sizes = [10, 128], strides = [1, 1]} : vector<10x256xf32> to vector<10x128xf32>
    %588 = arith.maximumf %586, %587 : vector<10x128xf32>
    %c0_759 = arith.constant 0 : index
    %c0_760 = arith.constant 0 : index
    %589 = vector.load %arg5[%c0_759, %c0_760] : memref<1x128xf32, #tpu.memory_space<vmem>>, vector<1x128xf32>
    %590 = vector.broadcast %589 : vector<1x128xf32> to vector<10x128xf32>
    %591 = arith.addf %588, %590 : vector<10x128xf32>
    %cst_761 = arith.constant 0.000000e+00 : f32
    %592 = vector.broadcast %cst_761 : f32 to vector<10x128xf32>
    %593 = arith.maximumf %591, %592 : vector<10x128xf32>
    %c0_762 = arith.constant 0 : index
    %c0_763 = arith.constant 0 : index
    %594 = vector.load %arg15[%c0_762, %c0_763] : memref<10x128xf32, #tpu.memory_space<vmem>>, vector<10x128xf32>
    tpu.vector_store %arg15[%c0_762, %c0_763], %593 {strides = array<i32>} : memref<10x128xf32, #tpu.memory_space<vmem>>, vector<10x128xf32>,
    %c0_764 = arith.constant 0 : index
    %c0_765 = arith.constant 0 : index
    %595 = tpu.strided_load %arg15[%c0_764, %c0_765] {strides = array<i32: 2, 1>} : memref<10x128xf32, #tpu.memory_space<vmem>>, vector<5x128xf32>
    %c1_766 = arith.constant 1 : index
    %c0_767 = arith.constant 0 : index
    %596 = tpu.strided_load %arg15[%c1_766, %c0_767] {strides = array<i32: 2, 1>} : memref<10x128xf32, #tpu.memory_space<vmem>>, vector<5x128xf32>
    %597 = arith.maximumf %595, %596 : vector<5x128xf32>
    %598 = vector.extract_strided_slice %597 {offsets = [0, 0], sizes = [1, 128], strides = [1, 1]} : vector<5x128xf32> to vector<1x128xf32>
    %c3_768 = arith.constant 3 : index
    %c0_769 = arith.constant 0 : index
    %599 = vector.load %arg16[%c3_768, %c0_769] : memref<4x640xf32, #tpu.memory_space<vmem>>, vector<1x128xf32>
    tpu.vector_store %arg16[%c3_768, %c0_769], %598 {strides = array<i32>} : memref<4x640xf32, #tpu.memory_space<vmem>>, vector<1x128xf32>,
    %600 = vector.extract_strided_slice %597 {offsets = [1, 0], sizes = [1, 128], strides = [1, 1]} : vector<5x128xf32> to vector<1x128xf32>
    %c3_770 = arith.constant 3 : index
    %c128_771 = arith.constant 128 : index
    %601 = vector.load %arg16[%c3_770, %c128_771] : memref<4x640xf32, #tpu.memory_space<vmem>>, vector<1x128xf32>
    tpu.vector_store %arg16[%c3_770, %c128_771], %600 {strides = array<i32>} : memref<4x640xf32, #tpu.memory_space<vmem>>, vector<1x128xf32>,
    %602 = vector.extract_strided_slice %597 {offsets = [2, 0], sizes = [1, 128], strides = [1, 1]} : vector<5x128xf32> to vector<1x128xf32>
    %c3_772 = arith.constant 3 : index
    %c256_773 = arith.constant 256 : index
    %603 = vector.load %arg16[%c3_772, %c256_773] : memref<4x640xf32, #tpu.memory_space<vmem>>, vector<1x128xf32>
    tpu.vector_store %arg16[%c3_772, %c256_773], %602 {strides = array<i32>} : memref<4x640xf32, #tpu.memory_space<vmem>>, vector<1x128xf32>,
    %604 = vector.extract_strided_slice %597 {offsets = [3, 0], sizes = [1, 128], strides = [1, 1]} : vector<5x128xf32> to vector<1x128xf32>
    %c3_774 = arith.constant 3 : index
    %c384_775 = arith.constant 384 : index
    %605 = vector.load %arg16[%c3_774, %c384_775] : memref<4x640xf32, #tpu.memory_space<vmem>>, vector<1x128xf32>
    tpu.vector_store %arg16[%c3_774, %c384_775], %604 {strides = array<i32>} : memref<4x640xf32, #tpu.memory_space<vmem>>, vector<1x128xf32>,
    %606 = vector.extract_strided_slice %597 {offsets = [4, 0], sizes = [1, 128], strides = [1, 1]} : vector<5x128xf32> to vector<1x128xf32>
    %c3_776 = arith.constant 3 : index
    %c512_777 = arith.constant 512 : index
    %607 = vector.load %arg16[%c3_776, %c512_777] : memref<4x640xf32, #tpu.memory_space<vmem>>, vector<1x128xf32>
    tpu.vector_store %arg16[%c3_776, %c512_777], %606 {strides = array<i32>} : memref<4x640xf32, #tpu.memory_space<vmem>>, vector<1x128xf32>,
    %c0_778 = arith.constant 0 : index
    %c0_779 = arith.constant 0 : index
    %608 = vector.load %arg16[%c0_778, %c0_779] : memref<4x640xf32, #tpu.memory_space<vmem>>, vector<4x640xf32>
    %c0_780 = arith.constant 0 : index
    %c0_781 = arith.constant 0 : index
    %609 = vector.load %arg6[%c0_780, %c0_781] : memref<640x128xf32, #tpu.memory_space<vmem>>, vector<640x128xf32>
    %cst_782 = arith.constant dense<0.000000e+00> : vector<4x128xf32>
    %610 = tpu.matmul %608, %609, %cst_782 {dimension_numbers = #tpu.dot_dimension_numbers<[1], [0], [0], [1], [0, 0, 1, 1], [], []>} : vector<4x640xf32>, vector<640x128xf32>, vector<4x128xf32> -> vector<4x128xf32>
    %c0_783 = arith.constant 0 : index
    %c0_784 = arith.constant 0 : index
    %611 = vector.load %arg7[%c0_783, %c0_784] : memref<1x128xf32, #tpu.memory_space<vmem>>, vector<1x128xf32>
    %612 = vector.broadcast %611 : vector<1x128xf32> to vector<4x128xf32>
    %613 = arith.addf %610, %612 : vector<4x128xf32>
    %cst_785 = arith.constant 0.000000e+00 : f32
    %614 = vector.broadcast %cst_785 : f32 to vector<4x128xf32>
    %615 = arith.maximumf %613, %614 : vector<4x128xf32>
    %c0_786 = arith.constant 0 : index
    %c0_787 = arith.constant 0 : index
    %616 = vector.load %arg8[%c0_786, %c0_787] : memref<128x128xf32, #tpu.memory_space<vmem>>, vector<128x128xf32>
    %cst_788 = arith.constant dense<0.000000e+00> : vector<4x128xf32>
    %617 = tpu.matmul %615, %616, %cst_788 {dimension_numbers = #tpu.dot_dimension_numbers<[1], [0], [0], [1], [0, 0, 1, 1], [], []>} : vector<4x128xf32>, vector<128x128xf32>, vector<4x128xf32> -> vector<4x128xf32>
    %c0_789 = arith.constant 0 : index
    %c0_790 = arith.constant 0 : index
    %618 = vector.load %arg9[%c0_789, %c0_790] : memref<1x128xf32, #tpu.memory_space<vmem>>, vector<1x128xf32>
    %619 = vector.broadcast %618 : vector<1x128xf32> to vector<4x128xf32>
    %620 = arith.addf %617, %619 : vector<4x128xf32>
    %cst_791 = arith.constant 0.000000e+00 : f32
    %621 = vector.broadcast %cst_791 : f32 to vector<4x128xf32>
    %622 = arith.maximumf %620, %621 : vector<4x128xf32>
    %c0_792 = arith.constant 0 : index
    %c0_793 = arith.constant 0 : index
    %623 = vector.load %arg10[%c0_792, %c0_793] : memref<128x128xf32, #tpu.memory_space<vmem>>, vector<128x128xf32>
    %cst_794 = arith.constant dense<0.000000e+00> : vector<4x128xf32>
    %624 = tpu.matmul %622, %623, %cst_794 {dimension_numbers = #tpu.dot_dimension_numbers<[1], [0], [0], [1], [0, 0, 1, 1], [], []>} : vector<4x128xf32>, vector<128x128xf32>, vector<4x128xf32> -> vector<4x128xf32>
    %c0_795 = arith.constant 0 : index
    %c0_796 = arith.constant 0 : index
    %625 = vector.load %arg11[%c0_795, %c0_796] : memref<1x128xf32, #tpu.memory_space<vmem>>, vector<1x128xf32>
    %626 = vector.broadcast %625 : vector<1x128xf32> to vector<4x128xf32>
    %627 = arith.addf %624, %626 : vector<4x128xf32>
    %c0_797 = arith.constant 0 : index
    %c0_798 = arith.constant 0 : index
    %c0_799 = arith.constant 0 : index
    %628 = vector.load %arg12[%c0_797, %c0_798, %c0_799] : memref<1x4x128xf32, #tpu.memory_space<vmem>>, vector<1x4x128xf32>
    %629 = vector.shape_cast %628 : vector<1x4x128xf32> to vector<4x128xf32>
    %630 = vector.shape_cast %627 : vector<4x128xf32> to vector<1x4x128xf32>
    tpu.vector_store %arg12[%c0_797, %c0_798, %c0_799], %630 {strides = array<i32>} : memref<1x4x128xf32, #tpu.memory_space<vmem>>, vector<1x4x128xf32>,
    return
  }
  func.func @transform_0(%arg0: i32) -> (i32, i32, i32, i32) {
    %c0_i32 = arith.constant 0 : i32
    %c0_i32_0 = arith.constant 0 : i32
    %c0_i32_1 = arith.constant 0 : i32
    %c0_i32_2 = arith.constant 0 : i32
    return %arg0, %c0_i32, %c0_i32_0, %c0_i32_1 : i32, i32, i32, i32
  }
  func.func @transform_1(%arg0: i32) -> (i32, i32, i32, i32) {
    %c0_i32 = arith.constant 0 : i32
    %c0_i32_0 = arith.constant 0 : i32
    %c0_i32_1 = arith.constant 0 : i32
    %c0_i32_2 = arith.constant 0 : i32
    %c0_i32_3 = arith.constant 0 : i32
    return %c0_i32, %c0_i32_0, %c0_i32_1, %c0_i32_2 : i32, i32, i32, i32
  }
  func.func @transform_2(%arg0: i32) -> (i32, i32) {
    %c0_i32 = arith.constant 0 : i32
    %c0_i32_0 = arith.constant 0 : i32
    %c0_i32_1 = arith.constant 0 : i32
    return %c0_i32, %c0_i32_0 : i32, i32
  }
  func.func @transform_3(%arg0: i32) -> (i32, i32, i32) {
    %c0_i32 = arith.constant 0 : i32
    %c0_i32_0 = arith.constant 0 : i32
    %c0_i32_1 = arith.constant 0 : i32
    %c0_i32_2 = arith.constant 0 : i32
    return %c0_i32, %c0_i32_0, %c0_i32_1 : i32, i32, i32
  }
  func.func @transform_4(%arg0: i32) -> (i32, i32) {
    %c0_i32 = arith.constant 0 : i32
    %c0_i32_0 = arith.constant 0 : i32
    %c0_i32_1 = arith.constant 0 : i32
    return %c0_i32, %c0_i32_0 : i32, i32
  }
  func.func @transform_5(%arg0: i32) -> (i32, i32) {
    %c0_i32 = arith.constant 0 : i32
    %c0_i32_0 = arith.constant 0 : i32
    %c0_i32_1 = arith.constant 0 : i32
    return %c0_i32, %c0_i32_0 : i32, i32
  }
  func.func @transform_6(%arg0: i32) -> (i32, i32) {
    %c0_i32 = arith.constant 0 : i32
    %c0_i32_0 = arith.constant 0 : i32
    %c0_i32_1 = arith.constant 0 : i32
    return %c0_i32, %c0_i32_0 : i32, i32
  }
  func.func @transform_7(%arg0: i32) -> (i32, i32) {
    %c0_i32 = arith.constant 0 : i32
    %c0_i32_0 = arith.constant 0 : i32
    %c0_i32_1 = arith.constant 0 : i32
    return %c0_i32, %c0_i32_0 : i32, i32
  }
  func.func @transform_8(%arg0: i32) -> (i32, i32) {
    %c0_i32 = arith.constant 0 : i32
    %c0_i32_0 = arith.constant 0 : i32
    %c0_i32_1 = arith.constant 0 : i32
    return %c0_i32, %c0_i32_0 : i32, i32
  }
  func.func @transform_9(%arg0: i32) -> (i32, i32) {
    %c0_i32 = arith.constant 0 : i32
    %c0_i32_0 = arith.constant 0 : i32
    %c0_i32_1 = arith.constant 0 : i32
    return %c0_i32, %c0_i32_0 : i32, i32
  }
  func.func @transform_10(%arg0: i32) -> (i32, i32) {
    %c0_i32 = arith.constant 0 : i32
    %c0_i32_0 = arith.constant 0 : i32
    %c0_i32_1 = arith.constant 0 : i32
    return %c0_i32, %c0_i32_0 : i32, i32
  }
  func.func @transform_11(%arg0: i32) -> (i32, i32, i32) {
    %c0_i32 = arith.constant 0 : i32
    %c0_i32_0 = arith.constant 0 : i32
    %c0_i32_1 = arith.constant 0 : i32
    return %arg0, %c0_i32, %c0_i32_0 : i32, i32, i32
  }
}

</mosaic_0001>

<bundles_post_ra>
// kernel: lenet_forward.1
= control target key start
LH: loop header
LB: loop body
LE: loop exit
PB: predicated region body
PF: predicated region fallthrough
CT: control target
= control target key end

     0   :  { %s14952_s0 = inlined_call_operand.hbm [shape: f32[8,3,32,32], index: 0, kind: input, shape index: {}]   ;;  %s14953_s1 = inlined_call_operand.hbm [shape: f32[3,5,32,256], index: 1, kind: input, shape index: {}]   ;;  %s14954_s2 = inlined_call_operand.hbm [shape: f32[1,128], index: 2, kind: input, shape index: {}]   ;;  %s14955_s3 = inlined_call_operand.hbm [shape: f32[5,128,256], index: 3, kind: input, shape index: {}]   ;;  %s14956_s4 = inlined_call_operand.vmem [shape: f32[1,128], index: 4, kind: input, shape index: {}]   ;;  %s14957_s5 = inlined_call_operand.hbm [shape: f32[640,128], index: 5, kind: input, shape index: {}]   ;;  %s14958_s6 = inlined_call_operand.vmem [shape: f32[1,128], index: 6, kind: input, shape index: {}]   ;;  %s14959_s7 = inlined_call_operand.hbm [shape: f32[128,128], index: 7, kind: input, shape index: {}]   ;;  %s14960_s8 = inlined_call_operand.vmem [shape: f32[1,128], index: 8, kind: input, shape index: {}]   ;;  %s14961_s9 = inlined_call_operand.hbm [shape: f32[128,128], index: 9, kind: input, shape index: {}]   ;;  %s14962_s10 = inlined_call_operand.vmem [shape: f32[1,128], index: 10, kind: input, shape index: {}]   ;;  %s14963_s11 = inlined_call_operand.vmem [shape: f32[2,4,128], index: 11, kind: output, shape index: {}]  }
   0x1   :  { %14966 = sst [smem:[#allocation21_spill]] %s14953_s1 }
   0x2   :  { %14967 = sst [smem:[#allocation22_spill]] %s14955_s3 }
   0x3   :  { %14968 = sst [smem:[#allocation23_spill]] %s14960_s8 }
   0x4   :  { %14969 = sst [smem:[#allocation24_spill]] %s14962_s10 }
   0x5   :  { %14970 = sst [smem:[#allocation25_spill]] %s14963_s11 }
   0x6   :  { %16 = vsyncpa [#allocation7], 0 }
   0x7   :  { %18 = vsyncpa [#allocation7 + $0x1], 0 }
   0x8   :  { %19 = vsyncpa [#allocation9], 0 }
   0x9   :  { %20 = vsyncpa [#allocation12], 0 }
   0xa   :  { %21 = vsyncpa [#allocation15], 0  ;;  %s13803_s17 = smov 0   ;;  %s13805_s18 = smov 0  }
   0xb   :  { %s13807_s19 = smov 0   ;;  %s13809_s20 = smov 0  }
   0xc LB: > { %s13729_s21 = smov [#allocation8]   ;;  %s13824_s23 = sadd.s32 4294967295, %s13727_s20   ;;  %s13727_s20 = sphi %s13809_s20, %s14992_s20   ;;  %s13723_s19 = sphi %s13807_s19, %s14991_s19   ;;  %s13719_s18 = sphi %s13805_s18, %s14990_s18   ;;  %s13715_s17 = sphi %s13803_s17, %s14989_s17  }
   0xd   : > { %s306_s22 = sshll.u32 %s13729_s21, 4  ;;  %p10872_p0 = scmp.ge.s32.totalorder %s13727_s20, 1  ;;  %s13829_s22 = int_to_ptr.vmem [resolvable:$true] %s306_s22 }
   0xe   : > { %p14964_p1 = scmp.eq.s32.totalorder %s13824_s23, 0  ;;  %p294_p2 = scmp.lt.s32.totalorder %s13727_s20, 3 }
   0xf   : > { %s13730_s25 = smov [#allocation11]   ;;  %s13731_s28 = smov [#allocation14]  }
  0x10   : > { %p13831_p3 = pnand %p10872_p0, %p294_p2  ;;  %s330_s26 = sshll.u32 %s13730_s25, 4  ;;  %s13843_s26 = int_to_ptr.vmem [resolvable:$true] %s330_s26 }
  0x11   : > { %s13845_s29 = sshll.u32 %s13731_s28, 4  ;;  %s14973_s1 = sld [smem:[#allocation21_spill]]  ;;  %s363_s29 = int_to_ptr.vmem [resolvable:$true] %s13845_s29 }
  0x12   : > { %s14971_s24 = scalar_select %p13831_p3, 1, 0 }
  0x13   : > { %p13399_p4 = pneg %p13831_p3 }
  0x15   : > { %p13839_p5 = pnand %p13399_p4, %p14964_p1 }
  0x17   : > { %s13483_s13 = scalar_lea.hbm %s14973_s1, 15360  ;;  %p13855_p7 = pneg %p13839_p5 }
  0x18   : > { %p13484_p6 = scmp.ne.s32.totalorder %s14973_s1, %s13483_s13  ;;  %p13490_p10 = scmp.lt.u32.totalorder %s13483_s13, %s14973_s1 }
  0x1a   : > { %p13486_p8 = pnand %p13855_p7, %p13484_p6 }
  0x1c   : > { %p13487_p9 = pneg %p13486_p8 }
  0x1e   : > { %p13492_p11 = pnand %p13490_p10, %p13487_p9 }
  0x20   : > { %13495 = shalt.err (!%p13492_p11)
}
  0x21   : > { %s13496_s28 = scalar_lea.vmem %s13829_s22, 15360  ;;  %p13504_p2 = scmp.lt.s32.totalorder %s13829_s22, %s13829_s22 }
  0x22   : > { %p13497_p12 = scmp.ne.s32.totalorder %s13829_s22, %s13496_s28  ;;  %p13505_p4 = scmp.lt.s32.totalorder %s13496_s28, %s13496_s28 }
  0x24   : > { %p13499_p13 = pnand %p13497_p12, %p13855_p7  ;;  %p13506_p6 = por %p13505_p4, %p13504_p2 }
  0x26   : > { %p13500_p0 = pneg %p13499_p13 }
  0x28   : > { %p13507_p8 = pnand %p13506_p6, %p13500_p0 }
  0x2a   : > { %13510 = shalt.err (!%p13507_p8)
}
  0x2b   : > { %s13732_s30 = smov 256   ;;  %s13733_s12 = smov 16  }
  0x2c   : > { %13402 = dma.hbm_to_vmem [thread:$0]  (!%p13839_p5), %s14973_s1, 15360, %s13829_s22, [#allocation9], %s13732_s30, %s13732_s30, %s13733_s12  }
  0x2d   : > { %s14975_s3 = sld [smem:[#allocation22_spill]] }
  0x33   : > { %s13511_s25 = scalar_lea.hbm %s14975_s3, 20480 }
  0x34   : > { %p13512_p9 = scmp.ne.s32.totalorder %s14975_s3, %s13511_s25  ;;  %p13518_p12 = scmp.lt.u32.totalorder %s13511_s25, %s14975_s3 }
  0x36   : > { %p13514_p10 = pnand %p13512_p9, %p13855_p7 }
  0x38   : > { %p13515_p11 = pneg %p13514_p10 }
  0x3a   : > { %p13520_p13 = pnand %p13518_p12, %p13515_p11 }
  0x3c   : > { %13523 = shalt.err (!%p13520_p13)
}
  0x3d   : > { %s13524_s22 = scalar_lea.vmem %s13843_s26, 20480  ;;  %p13532_p6 = scmp.lt.s32.totalorder %s13843_s26, %s13843_s26 }
  0x3e   : > { %p13525_p0 = scmp.ne.s32.totalorder %s13843_s26, %s13524_s22  ;;  %p13533_p8 = scmp.lt.s32.totalorder %s13524_s22, %s13524_s22 }
  0x40   : > { %p13527_p2 = pnand %p13525_p0, %p13855_p7  ;;  %p13534_p9 = por %p13533_p8, %p13532_p6 }
  0x42   : > { %p13528_p4 = pneg %p13527_p2 }
  0x44   : > { %p13535_p10 = pnand %p13534_p9, %p13528_p4 }
  0x46   : > { %13538 = shalt.err (!%p13535_p10)
}
  0x47   : > { %13408 = dma.hbm_to_vmem [thread:$0]  (!%p13839_p5), %s14975_s3, 20480, %s13843_s26, [#allocation12], %s13732_s30, %s13732_s30, %s13733_s12  }
  0x48   : > { %s13539_s14 = scalar_lea.hbm %s14959_s7, 2048 }
  0x49   : > { %p13540_p11 = scmp.ne.s32.totalorder %s14959_s7, %s13539_s14  ;;  %p13546_p0 = scmp.lt.u32.totalorder %s13539_s14, %s14959_s7 }
  0x4b   : > { %p13542_p12 = pnand %p13540_p11, %p13855_p7 }
  0x4d   : > { %p13543_p13 = pneg %p13542_p12 }
  0x4f   : > { %p13548_p2 = pnand %p13546_p0, %p13543_p13 }
  0x51   : > { %13551 = shalt.err (!%p13548_p2)
}
  0x52   : > { %s13552_s22 = scalar_lea.vmem %s363_s29, 2048  ;;  %p13560_p9 = scmp.lt.s32.totalorder %s363_s29, %s363_s29 }
  0x53   : > { %p13553_p4 = scmp.ne.s32.totalorder %s363_s29, %s13552_s22  ;;  %p13561_p10 = scmp.lt.s32.totalorder %s13552_s22, %s13552_s22 }
  0x55   : > { %p13555_p6 = pnand %p13553_p4, %p13855_p7  ;;  %p13562_p1 = por %p13561_p10, %p13560_p9 }
  0x57   : > { %p13556_p8 = pneg %p13555_p6 }
  0x59   : > { %p13563_p3 = pnand %p13562_p1, %p13556_p8 }
  0x5b   : > { %13566 = shalt.err (!%p13563_p3)
}
  0x5c   : > { %s13734_s26 = smov 128   ;;  %s13735_s30 = smov 8  }
  0x5d   : > { %13414 = dma.hbm_to_vmem [thread:$0]  (!%p13839_p5), %s14959_s7, 2048, %s363_s29, [#allocation15], %s13734_s26, %s13734_s26, %s13735_s30  }
  0x5e   : > { %s13736_s10 = smov [#allocation10]   ;;  %s13737_s13 = smov [#allocation13]  }
  0x5f   : > { %s320_s11 = sshll.u32 %s13736_s10, 4  ;;  %s346_s14 = sshll.u32 %s13737_s13, 4  ;;  %s321_s11 = int_to_ptr.vmem [resolvable:$true] %s320_s11  ;;  %s347_s14 = int_to_ptr.vmem [resolvable:$true] %s346_s14 }
  0x60   : > { %s13567_s25 = scalar_lea.hbm %s14954_s2, 16 }
  0x61   : > { %p13568_p1 = scmp.ne.s32.totalorder %s14954_s2, %s13567_s25  ;;  %p13574_p12 = scmp.lt.u32.totalorder %s13567_s25, %s14954_s2 }
  0x63   : > { %p13570_p3 = pnand %p13568_p1, %p13855_p7 }
  0x65   : > { %p13571_p11 = pneg %p13570_p3 }
  0x67   : > { %p13576_p13 = pnand %p13574_p12, %p13571_p11 }
  0x69   : > { %13579 = shalt.err (!%p13576_p13)
}
  0x6a   : > { %s13580_s29 = scalar_lea.vmem %s321_s11, 16  ;;  %s13587_s12 = scalar_lea.vmem %s321_s11, 32 }
  0x6b   : > { %p13581_p0 = scmp.ne.s32.totalorder %s321_s11, %s13580_s29  ;;  %p13588_p6 = scmp.lt.s32.totalorder %s321_s11, %s321_s11 }
  0x6c   : > { %p13589_p8 = scmp.lt.s32.totalorder %s13587_s12, %s13580_s29 }
  0x6d   : > { %p13583_p2 = pnand %p13581_p0, %p13855_p7 }
  0x6e   : > { %p13590_p9 = por %p13589_p8, %p13588_p6 }
  0x6f   : > { %p13584_p4 = pneg %p13583_p2 }
  0x71   : > { %p13591_p10 = pnand %p13590_p9, %p13584_p4 }
  0x73   : > { %13594 = shalt.err (!%p13591_p10)
}
  0x74   : > { %13405 = dma.hbm_to_vmem [thread:$0]  (!%p13839_p5), %s14954_s2, 16, %s321_s11, [#allocation9]  }
  0x75   : > { %s13595_s13 = scalar_lea.hbm %s14957_s5, 10240 }
  0x76   : > { %p13596_p1 = scmp.ne.s32.totalorder %s14957_s5, %s13595_s13  ;;  %p13602_p12 = scmp.lt.u32.totalorder %s13595_s13, %s14957_s5 }
  0x78   : > { %p13598_p3 = pnand %p13596_p1, %p13855_p7 }
  0x7a   : > { %p13599_p11 = pneg %p13598_p3 }
  0x7c   : > { %p13604_p13 = pnand %p13602_p12, %p13599_p11 }
  0x7e   : > { %13607 = shalt.err (!%p13604_p13)
}
  0x7f   : > { %s13608_s22 = scalar_lea.vmem %s347_s14, 10240  ;;  %p13616_p6 = scmp.lt.s32.totalorder %s347_s14, %s347_s14 }
  0x80   : > { %p13609_p0 = scmp.ne.s32.totalorder %s347_s14, %s13608_s22  ;;  %p13617_p8 = scmp.lt.s32.totalorder %s13608_s22, %s13608_s22 }
  0x82   : > { %p13611_p2 = pnand %p13609_p0, %p13855_p7  ;;  %p13618_p9 = por %p13617_p8, %p13616_p6 }
  0x84   : > { %p13612_p4 = pneg %p13611_p2 }
  0x86   : > { %p13619_p10 = pnand %p13618_p9, %p13612_p4 }
  0x88   : > { %13622 = shalt.err (!%p13619_p10)
}
  0x89   : > { %13411 = dma.hbm_to_vmem [thread:$0]  (!%p13839_p5), %s14957_s5, 10240, %s347_s14, [#allocation12], %s13734_s26, %s13734_s26, %s13735_s30  }
  0x8a   : > { %s13738_s12 = smov [#allocation16]   ;;  %s13623_s3 = scalar_lea.hbm %s14961_s9, 2048 }
  0x8b   : > { %s378_s8 = sshll.u32 %s13738_s12, 4  ;;  %p13624_p1 = scmp.ne.s32.totalorder %s14961_s9, %s13623_s3  ;;  %s379_s8 = int_to_ptr.vmem [resolvable:$true] %s378_s8 }
  0x8c   : > { %p13630_p12 = scmp.lt.u32.totalorder %s13623_s3, %s14961_s9 }
  0x8d   : > { %p13626_p3 = pnand %p13624_p1, %p13855_p7 }
  0x8f   : > { %p13627_p11 = pneg %p13626_p3 }
  0x91   : > { %p13632_p13 = pnand %p13630_p12, %p13627_p11 }
  0x93   : > { %13635 = shalt.err (!%p13632_p13)
}
  0x94   : > { %s13636_s14 = scalar_lea.vmem %s379_s8, 2048  ;;  %p13644_p6 = scmp.lt.s32.totalorder %s379_s8, %s379_s8 }
  0x95   : > { %p13637_p0 = scmp.ne.s32.totalorder %s379_s8, %s13636_s14  ;;  %p13645_p8 = scmp.lt.s32.totalorder %s13636_s14, %s13636_s14 }
  0x97   : > { %p13639_p2 = pnand %p13637_p0, %p13855_p7  ;;  %p13646_p9 = por %p13645_p8, %p13644_p6 }
  0x99   : > { %p13640_p4 = pneg %p13639_p2 }
  0x9b   : > { %p13647_p10 = pnand %p13646_p9, %p13640_p4 }
  0x9d   : > { %13650 = shalt.err (!%p13647_p10)
}
  0x9e   : > { %13417 = dma.hbm_to_vmem [thread:$0]  (!%p13839_p5), %s14961_s9, 2048, %s379_s8, [#allocation15], %s13734_s26, %s13734_s26, %s13735_s30  }
  0x9f   : > { %s13982_s27 = sadd.s32 1, %s13727_s20   ;;  %s34_s16 = sadd.s32 1, %s13723_s19 }
  0xa0   : > { %s31_s11 = ssub.s32 %s13727_s20, %s13982_s27  ;;  %p41_p7 = scmp.ne.s32.totalorder %s13723_s19, %s13719_s18 }
  0xa1   : > { %p32_p1 = scmp.eq.s32.totalorder %s31_s11, 0  ;;  %p42_p3 = scmp.eq.s32.totalorder %s13727_s20, 0 }
  0xa2   : > { %p47_p11 = scmp.ne.s32.totalorder %s13719_s18, %s13715_s17  ;;  %p13428_p12 = scmp.lt.s32.totalorder %s13727_s20, 2 }
  0xa3   : > { %s13994_s29 = scalar_select %p32_p1, %s13723_s19, %s34_s16  }
  0xa4   : > { %p43_p13 = por %p42_p3, %p41_p7  ;;  %p14976_p0 = scmp.eq.s32.totalorder %s13824_s23, 0 }
  0xa5   : > { %s395_s10 = sand.u32 1, %s13723_s19   ;;  %s13371_s8 = smul.u32 6144, %s13727_s20 }
  0xa6   : > { %p13998_p2 = por %p14976_p0, %p47_p11  ;;  %s13370_s1 = smul.u32 384, %s395_s10 }
  0xa7   : > { %p14004_p5 = pnand %p13428_p12, %p43_p13  ;;  %s14011_s17 = scalar_lea.hbm %s14952_s0, %s13371_s8 }
  0xa8   : > { %s399_s21 = scalar_lea.vmem [#allocation6], %s13370_s1  ;;  %s14015_s20 = scalar_lea.sflag [#allocation7], %s395_s10 }
  0xa9   : > { %s407_s25 = sshll.u32 %s399_s21, 4  ;;  %s13651_s14 = scalar_lea.hbm %s14011_s17, 6144  ;;  %s14013_s25 = int_to_ptr.vmem [resolvable:$true] %s407_s25 }
  0xaa   : > { %p13652_p4 = scmp.ne.s32.totalorder %s14011_s17, %s13651_s14  ;;  %p13653_p6 = pneg %p14004_p5 }
  0xab   : > { %s13656_s16 = scalar_lea.hbm %s14952_s0, 12288  ;;  %p13657_p10 = scmp.lt.u32.totalorder %s14011_s17, %s14952_s0 }
  0xac   : > { %p13654_p8 = pnand %p13653_p6, %p13652_p4  ;;  %p13658_p7 = scmp.lt.u32.totalorder %s13656_s16, %s13651_s14 }
  0xad   : > { %p13660_p3 = scmp.lt.u32.totalorder %s13651_s14, %s14011_s17 }
  0xae   : > { %p13655_p9 = pneg %p13654_p8  ;;  %p13659_p1 = por %p13658_p7, %p13657_p10 }
  0xb0   : > { %p13661_p11 = por %p13660_p3, %p13659_p1 }
  0xb2   : > { %p13662_p12 = pnand %p13661_p11, %p13655_p9 }
  0xb4   : > { %13665 = shalt.err (!%p13662_p12)
}
  0xb5   : > { %s13666_s10 = scalar_lea.vmem %s14013_s25, 6144  ;;  %s13739_s1 = smov [#allocation6]  }
  0xb6   : > { %p13667_p13 = scmp.ne.s32.totalorder %s14013_s25, %s13666_s10  ;;  %s13671_s13 = sshll.u32 %s13739_s1, 4  ;;  %s13672_s13 = int_to_ptr.vmem [resolvable:$false] %s13671_s13 }
  0xb7   : > { %s13673_s15 = scalar_lea.vmem %s13672_s13, 12288  ;;  %p13674_p8 = scmp.lt.s32.totalorder %s14013_s25, %s13672_s13 }
  0xb8   : > { %p13669_p0 = pnand %p13667_p13, %p13653_p6  ;;  %p13675_p10 = scmp.lt.s32.totalorder %s13673_s15, %s13666_s10 }
  0xba   : > { %p13670_p4 = pneg %p13669_p0  ;;  %p13676_p7 = por %p13675_p10, %p13674_p8 }
  0xbc   : > { %p13677_p1 = pnand %p13676_p7, %p13670_p4 }
  0xbe   : > { %13680 = shalt.err (!%p13677_p1)
}
  0xbf   : > { %13421 = dma.hbm_to_vmem [thread:$0]  (!%p14004_p5), %s14011_s17, 6144, %s14013_s25, %s14015_s20, %s13734_s26, %s13734_s26, %s13735_s30  }
  0xc0   : > { %p14979_p6 = scmp.ne.s32.totalorder %s14971_s24, 0 }
  0xc1   : > { %s421_s21 = sand.u32 (!%p14979_p6), 1, %s13719_s18  }
  0xc2   : > { %419 = sbr.rel (%p14979_p6) target bundleno = 3562 (0xdea), region = 64  ;;  %s422_s28 = scalar_lea.sflag (!%p14979_p6), [#allocation7], %s421_s21 }
  0xc3   : > { %s13372_s14 = smul.u32 (!%p14979_p6), 384, %s421_s21 }
  0xc5   : > { %s14049_s22 = scalar_lea.vmem (!%p14979_p6), [#allocation6], %s13372_s14 }
  0xc9   : > { %13698 = dma.done.wait (%p13998_p2), %s422_s28, 6144  }
  0xca   : > { %13700 = vsyncadd (%p13998_p2), %s422_s28, 4294961152  ;;  %p14980_p9 = scmp.eq.s32.totalorder %s13824_s23, 0 }
  0xcc   : > { %13702 = dma.done.wait (%p14980_p9), [#allocation9], 15376   ;;  %p14981_p5 = pmov %p14980_p9 }
  0xce   : > { %13704 = vsyncadd (%p14981_p5), [#allocation9], 4294951920  ;;  %p14982_p3 = pmov %p14981_p5 }
  0xd0   : > { %13706 = dma.done.wait (%p14982_p3), [#allocation12], 30720   ;;  %p14983_p11 = pmov %p14982_p3 }
  0xd1   : > { %p14984_p12 = pmov %p14982_p3 }
  0xd2   : > { %13708 = vsyncadd (%p14983_p11), [#allocation12], 4294936576 }
  0xd3   : > { %13710 = dma.done.wait (%p14984_p12), [#allocation15], 4096   ;;  %p14985_p13 = pmov %p14982_p3 }
  0xd4   : > { %v13740_v0 = vmov 0.0   ;;  %v497_v1 = vld [vmem:[#allocation8 + $0x8] sm:$0xff]  ;;  %v499_v2 = vld [vmem:[#allocation8 + $0x18] sm:$0xff]  ;;  %v496_v3 = vld [vmem:[#allocation8] sm:$0xff]  ;;  %vm517_vm0 = vcmask 261120   ;;  %vm13742_vm1 = vmmov 0  }
  0xd5   : > { %13712 = vsyncadd (%p14985_p13), [#allocation15], 4294963200  ;;  %695 = vmatprep.mubr.f32.mxu0 %v13740_v0  ;;  %594 = vmatprep.mubr.f32.mxu1 %v13740_v0  ;;  %v11610_v4 = vpack.c.bf16 %v499_v2, %v497_v1  ;;  %v498_v5 = vld [vmem:[#allocation8 + $0x10] sm:$0xff]  ;;  %v501_v6 = vld [vmem:[#allocation8 + $0x28] sm:$0xff]  ;;  %s14986_s1 = sld [smem:[#allocation23_spill]]  ;;  %p488_p2 = scmp.lt.s32.totalorder %s13824_s23, 1 }
  0xd6   : > { %v503_v7 = vld [vmem:[#allocation8 + $0x38] sm:$0xff]  ;;  %v11612_v8 = vpack.c.bf16 %v498_v5, %v496_v3  ;;  %v500_v10 = vld [vmem:[#allocation8 + $0x20] sm:$0xff]  ;;  %v502_v11 = vld [vmem:[#allocation8 + $0x30] sm:$0xff]  ;;  %s14987_s14 = sld [smem:[#allocation24_spill]]  ;;  %s14988_s24 = sld [smem:[#allocation25_spill]] }
  0xd7   : > { %v11614_v9 = vpack.c.bf16 %v503_v7, %v501_v6  ;;  %11611 = vmatprep.subr.bf16.mxu0 %v11610_v4  ;;  %v726_v12 = vld [vmem:[#allocation8 + $0x88] sm:$0xff]  ;;  %v728_v13 = vld [vmem:[#allocation8 + $0x98] sm:$0xff]  ;;  %v11616_v14 = vpack.c.bf16 %v502_v11, %v500_v10  ;;  %v725_v16 = vld [vmem:[#allocation8 + $0x80] sm:$0xff]  ;;  %s14994_s23 = smov (!%p488_p2, %s13824_s23), 1 }
  0xd8   : > { %11613 = vmatpush1.bf16.msra.mxu0 %v11612_v8  ;;  %v11618_v15 = vpack.c.bf16 %v728_v13, %v726_v12  ;;  %v727_v17 = vld [vmem:[#allocation8 + $0x90] sm:$0xff]  ;;  %v730_v18 = vld [vmem:[#allocation8 + $0xa8] sm:$0xff]  ;;  %v732_v19 = vld [vmem:[#allocation8 + $0xb8] sm:$0xff]  ;;  %s10890_s13 = sshll.u32 %s14994_s23, 2 }
  0xd9   : > { %11615 = vmatprep.subr.bf16.mxu0 %v11614_v9  ;;  %v492_v20 = vld [vmem:[%s14049_s22] sm:$0xff]  ;;  %v11620_v21 = vpack.c.bf16 %v727_v17, %v725_v16  ;;  %v11622_v22 = vpack.c.bf16 %v732_v19, %v730_v18  ;;  %v731_v24 = vld [vmem:[#allocation8 + $0xb0] sm:$0xff]  ;;  %v848_v25 = vld [vmem:[#allocation8 + $0xc8] sm:$0xff] }
  0xda   : > { %v729_v23 = vld [vmem:[#allocation8 + $0xa0] sm:$0xff]  ;;  %v850_v26 = vld [vmem:[#allocation8 + $0xd8] sm:$0xff]  ;;  %v493_v27 = vld [vmem:[%s14049_s22 + $0x8] sm:$0xff] }
  0xdb   : > { %v11624_v28 = vpack.c.bf16 %v731_v24, %v729_v23  ;;  %v11626_v29 = vpack.c.bf16 %v850_v26, %v848_v25  ;;  %v494_v30 = vld [vmem:[%s14049_s22 + $0x10] sm:$0xff]  ;;  %v495_v31 = vld [vmem:[%s14049_s22 + $0x18] sm:$0xf]  ;;  %v847_v32 = vld [vmem:[#allocation8 + $0xc0] sm:$0xff] }
  0xdc   : > { %11617 = vmatpush1.bf16.msra.mxu0 %v11616_v14  ;;  %v849_v33 = vld [vmem:[#allocation8 + $0xd0] sm:$0xff]  ;;  %v852_v34 = vld [vmem:[#allocation8 + $0xe8] sm:$0xff]  ;;  %v854_v35 = vld [vmem:[#allocation8 + $0xf8] sm:$0xff]  ;;  %s491_s26 = scalar_lea.vmem %s14988_s24, %s10890_s13 }
  0xdd   : > { %11619 = vmatprep.subr.bf16.mxu0 %v11618_v15  ;;  %v720_v36 = vld [vmem:[%s14049_s22 + $0x2] sm:$0xff]  ;;  %v11628_v37 = vpack.c.bf16 %v849_v33, %v847_v32  ;;  %v11630_v38 = vpack.c.bf16 %v854_v35, %v852_v34  ;;  %v853_v40 = vld [vmem:[#allocation8 + $0xf0] sm:$0xff]  ;;  %v972_v42 = vld [vmem:[#allocation8 + $0x118] sm:$0xff] }
  0xde   : > { %v851_v39 = vld [vmem:[#allocation8 + $0xe0] sm:$0xff]  ;;  %v970_v41 = vld [vmem:[#allocation8 + $0x108] sm:$0xff]  ;;  %v722_v46 = vld [vmem:[%s14049_s22 + $0x12] sm:$0xff] }
  0xdf   : > { %10895 = vmatmul.mubr.msk.f32.vlgmr.msra.gmra.mrb[0].mxu0 %vm517_vm0, %v492_v20  ;;  %v721_v43 = vld [vmem:[%s14049_s22 + $0xa] sm:$0xff]  ;;  %v11632_v44 = vpack.c.bf16 %v853_v40, %v851_v39  ;;  %v11634_v45 = vpack.c.bf16 %v972_v42, %v970_v41  ;;  %v723_v47 = vld [vmem:[%s14049_s22 + $0x1a] sm:$0xf]  ;;  %v969_v48 = vld [vmem:[#allocation8 + $0x100] sm:$0xff] }
  0xe0   : > { %11621 = vmatpush1.bf16.msra.mxu0 %v11620_v21  ;;  %701 = vmatprep.mubr.f32.mxu0 %v13740_v0  ;;  %v971_v49 = vld [vmem:[#allocation8 + $0x110] sm:$0xff]  ;;  %v974_v50 = vld [vmem:[#allocation8 + $0x128] sm:$0xff]  ;;  %v976_v51 = vld [vmem:[#allocation8 + $0x138] sm:$0xff] }
  0xe1   : > { %11623 = vmatprep.subr.bf16.mxu0 %v11622_v22  ;;  %v842_v52 = vld [vmem:[%s14049_s22 + $0x3] sm:$0xff]  ;;  %v11636_v53 = vpack.c.bf16 %v971_v49, %v969_v48  ;;  %v11638_v54 = vpack.c.bf16 %v976_v51, %v974_v50  ;;  %v975_v56 = vld [vmem:[#allocation8 + $0x130] sm:$0xff]  ;;  %v1095_v58 = vld [vmem:[#allocation8 + $0x158] sm:$0xff] }
  0xe2   : > { %v973_v55 = vld [vmem:[#allocation8 + $0x120] sm:$0xff]  ;;  %v1093_v57 = vld [vmem:[#allocation8 + $0x148] sm:$0xff]  ;;  %v844_v62 = vld [vmem:[%s14049_s22 + $0x13] sm:$0xff] }
  0xe3   : > { %10896 = vmatmul.mubr.msk.f32.gmra.mrb[2].mxu0 %vm517_vm0, %v493_v27  ;;  %v843_v59 = vld [vmem:[%s14049_s22 + $0xb] sm:$0xff]  ;;  %v11640_v60 = vpack.c.bf16 %v975_v56, %v973_v55  ;;  %v11642_v61 = vpack.c.bf16 %v1095_v58, %v1093_v57  ;;  %v845_v63 = vld [vmem:[%s14049_s22 + $0x1b] sm:$0xf]  ;;  %v1092_v1 = vld [vmem:[#allocation8 + $0x140] sm:$0xff] }
  0xe4   : > { %707 = vmatprep.mubr.f32.mxu0 %v13740_v0  ;;  %11625 = vmatpush1.bf16.msra.mxu0 %v11624_v28  ;;  %v1094_v2 = vld [vmem:[#allocation8 + $0x150] sm:$0xff]  ;;  %v1097_v3 = vld [vmem:[#allocation8 + $0x168] sm:$0xff]  ;;  %v1099_v4 = vld [vmem:[#allocation8 + $0x178] sm:$0xff] }
  0xe5   : > { %11627 = vmatprep.subr.bf16.mxu0 %v11626_v29  ;;  %v964_v5 = vld [vmem:[%s14049_s22 + $0x4] sm:$0xff]  ;;  %v11644_v6 = vpack.c.bf16 %v1094_v2, %v1092_v1  ;;  %v11646_v7 = vpack.c.bf16 %v1099_v4, %v1097_v3  ;;  %v1098_v9 = vld [vmem:[#allocation8 + $0x170] sm:$0xff]  ;;  %v1217_v11 = vld [vmem:[#allocation8 + $0x198] sm:$0xff] }
  0xe6   : > { %v1096_v8 = vld [vmem:[#allocation8 + $0x160] sm:$0xff]  ;;  %v1215_v10 = vld [vmem:[#allocation8 + $0x188] sm:$0xff]  ;;  %v966_v15 = vld [vmem:[%s14049_s22 + $0x14] sm:$0xff] }
  0xe7   : > { %10897 = vmatmul.mubr.msk.f32.gmra.mrb[4].mxu0 %vm517_vm0, %v494_v30  ;;  %v965_v12 = vld [vmem:[%s14049_s22 + $0xc] sm:$0xff]  ;;  %v11648_v13 = vpack.c.bf16 %v1098_v9, %v1096_v8  ;;  %v11650_v14 = vpack.c.bf16 %v1217_v11, %v1215_v10  ;;  %v967_v16 = vld [vmem:[%s14049_s22 + $0x1c] sm:$0xf]  ;;  %v1214_v17 = vld [vmem:[#allocation8 + $0x180] sm:$0xff] }
  0xe8   : > { %713 = vmatprep.mubr.f32.mxu0 %v13740_v0  ;;  %v1216_v18 = vld [vmem:[#allocation8 + $0x190] sm:$0xff]  ;;  %v1219_v19 = vld [vmem:[#allocation8 + $0x1a8] sm:$0xff]  ;;  %v1221_v20 = vld [vmem:[#allocation8 + $0x1b8] sm:$0xff] }
  0xe9   : > { %v10911_v21 = vld [vmem:[%s14049_s22 + $0x20] sm:$0xff]  ;;  %v11652_v22 = vpack.c.bf16 %v1216_v18, %v1214_v17  ;;  %v11654_v23 = vpack.c.bf16 %v1221_v20, %v1219_v19  ;;  %v1220_v25 = vld [vmem:[#allocation8 + $0x1b0] sm:$0xff]  ;;  %v1337_v26 = vld [vmem:[#allocation8 + $0x1c8] sm:$0xff] }
  0xea   : > { %v1218_v24 = vld [vmem:[#allocation8 + $0x1a0] sm:$0xff]  ;;  %v1339_v27 = vld [vmem:[#allocation8 + $0x1d8] sm:$0xff]  ;;  %v10912_v28 = vld [vmem:[%s14049_s22 + $0x28] sm:$0xff] }
  0xeb   : > { %10898 = vmatmul.mubr.msk.f32.gmra.mrb[6].mxu0 %vm517_vm0, %v495_v31  ;;  %v11656_v29 = vpack.c.bf16 %v1220_v25, %v1218_v24  ;;  %v11658_v30 = vpack.c.bf16 %v1339_v27, %v1337_v26  ;;  %v510_v31 = vld [vmem:[#allocation8 + $0x48] sm:$0xff]  ;;  %v512_v32 = vld [vmem:[#allocation8 + $0x58] sm:$0xff]  ;;  %v10913_v33 = vld [vmem:[%s14049_s22 + $0x30] sm:$0xff] }
  0xec   : > { %809 = vmatprep.mubr.f32.mxu0 %v13740_v0  ;;  %v14124_v34 = vpack.c.bf16 %v512_v32, %v510_v31  ;;  %v509_v35 = vld [vmem:[#allocation8 + $0x40] sm:$0xff]  ;;  %v514_v40 = vld [vmem:[#allocation8 + $0x68] sm:$0xff]  ;;  %v516_v41 = vld [vmem:[#allocation8 + $0x78] sm:$0xff] }
  0xed   : > { %v1336_v39 = vld [vmem:[#allocation8 + $0x1c0] sm:$0xff]  ;;  %v1338_v42 = vld [vmem:[#allocation8 + $0x1d0] sm:$0xff]  ;;  %v1459_v55 = vld [vmem:[#allocation8 + $0x208] sm:$0xff] }
  0xee   : > { %11603 = vmatprep.subr.bf16.mxu1 %v14124_v34  ;;  %v10919_v49 = vld [vmem:[%s14049_s22 + $0x21] sm:$0xff]  ;;  %v11660_v50 = vpack.c.bf16 %v1338_v42, %v1336_v39  ;;  %v1461_v56 = vld [vmem:[#allocation8 + $0x218] sm:$0xff]  ;;  %v10920_v57 = vld [vmem:[%s14049_s22 + $0x29] sm:$0xff] }
  0xef   : > { %10899 = vmatmul.mubr.msk.f32.vlgmr.msra.gmra.mrb[0].mxu0 %vm517_vm0, %v720_v36  ;;  %v511_v36 = vld [vmem:[#allocation8 + $0x50] sm:$0xff]  ;;  %v504_v51 = vld [vmem:[%s14049_s22 + $0x1] sm:$0xff]  ;;  %v507_v1 = vld [vmem:[%s14049_s22 + $0x19] sm:$0xf] }
  0xf0   : > { %11629 = vmatpush1.bf16.msra.mxu0 %v11628_v37  ;;  %815 = vmatprep.mubr.f32.mxu0 %v13740_v0  ;;  %v14126_v37 = vpack.c.bf16 %v511_v36, %v509_v35  ;;  %v1458_v2 = vld [vmem:[#allocation8 + $0x200] sm:$0xff]  ;;  %v1460_v3 = vld [vmem:[#allocation8 + $0x210] sm:$0xff]  ;;  %v1463_v4 = vld [vmem:[#allocation8 + $0x228] sm:$0xff] }
  0xf1   : > { %11631 = vmatprep.subr.bf16.mxu0 %v11630_v38  ;;  %v10914_v38 = vld [vmem:[%s14049_s22 + $0x38] sm:$0xf]  ;;  %v1462_v9 = vld [vmem:[#allocation8 + $0x220] sm:$0xff]  ;;  %v1464_v10 = vld [vmem:[#allocation8 + $0x230] sm:$0xff] }
  0xf2   : > { %11605 = vmatpush1.bf16.msra.mxu1 %v14126_v37  ;;  %v1581_v11 = vld [vmem:[#allocation8 + $0x248] sm:$0xff]  ;;  %v10930_v17 = vld [vmem:[%s14049_s22 + $0x3a] sm:$0xf]  ;;  %v1580_v18 = vld [vmem:[#allocation8 + $0x240] sm:$0xff] }
  0xf3   : > { %10900 = vmatmul.mubr.msk.f32.gmra.mrb[2].mxu0 %vm517_vm0, %v721_v43  ;;  %v14133_v43 = vpack.c.bf16 %v516_v41, %v514_v40  ;;  %v1582_v19 = vld [vmem:[#allocation8 + $0x250] sm:$0xff]  ;;  %v1585_v20 = vld [vmem:[#allocation8 + $0x268] sm:$0xff]  ;;  %v1584_v25 = vld [vmem:[#allocation8 + $0x260] sm:$0xff] }
  0xf4   : > { %821 = vmatprep.mubr.f32.mxu0 %v13740_v0  ;;  %11633 = vmatpush1.bf16.msra.mxu0 %v11632_v44  ;;  %v513_v44 = vld [vmem:[#allocation8 + $0x60] sm:$0xff]  ;;  %v1586_v26 = vld [vmem:[#allocation8 + $0x270] sm:$0xff]  ;;  %v1704_v27 = vld [vmem:[#allocation8 + $0x288] sm:$0xff] }
  0xf5   : > { %11635 = vmatprep.subr.bf16.mxu0 %v11634_v45  ;;  %v515_v45 = vld [vmem:[#allocation8 + $0x70] sm:$0xff]  ;;  %11607 = vmatprep.subr.bf16.mxu1 %v14133_v43  ;;  %v1703_v35 = vld [vmem:[#allocation8 + $0x280] sm:$0xff]  ;;  %v1710_v39 = vld [vmem:[#allocation8 + $0x2b8] sm:$0xff] }
  0xf6   : > { %v14135_v48 = vpack.c.bf16 %v515_v45, %v513_v44  ;;  %v10937_v32 = vld [vmem:[%s14049_s22 + $0x33] sm:$0xff]  ;;  %v10943_v40 = vld [vmem:[%s14049_s22 + $0x24] sm:$0xff] }
  0xf7   : > { %10901 = vmatmul.mubr.msk.f32.gmra.mrb[4].mxu0 %vm517_vm0, %v722_v46  ;;  %v1341_v46 = vld [vmem:[#allocation8 + $0x1e8] sm:$0xff]  ;;  %v1705_v36 = vld [vmem:[#allocation8 + $0x290] sm:$0xff]  ;;  %v1707_v44 = vld [vmem:[#allocation8 + $0x2a0] sm:$0xff] }
  0xf8   : > { %827 = vmatprep.mubr.f32.mxu0 %v13740_v0  ;;  %11609 = vmatpush1.bf16.msra.mxu1 %v14135_v48  ;;  %v11684_v41 = vpack.c.bf16 %v1705_v36, %v1703_v35  ;;  %v1709_v45 = vld [vmem:[#allocation8 + $0x2b0] sm:$0xff] }
  0xf9   : > { %v10968_v35 = vld [vmem:[%s14049_s22 + $0x4a] sm:$0xff] }
  0xfb   : > { %10902 = vmatmul.mubr.msk.f32.gmra.mrb[6].mxu0 %vm517_vm0, %v723_v47  ;;  %v1343_v47 = vld [vmem:[#allocation8 + $0x1f8] sm:$0xff]  ;;  %10891 = vmatmul.mubr.msk.f32.vlgmr.msra.gmra.mrb[0].mxu1 %vm517_vm0, %v504_v51 }
  0xfc   : > { %931 = vmatprep.mubr.f32.mxu0 %v13740_v0  ;;  %600 = vmatprep.mubr.f32.mxu1 %v13740_v0 }
  0xff   : > { %10903 = vmatmul.mubr.msk.f32.vlgmr.msra.gmra.mrb[0].mxu0 %vm517_vm0, %v842_v52  ;;  %v11662_v52 = vpack.c.bf16 %v1343_v47, %v1341_v46  ;;  %v1826_v46 = vld [vmem:[#allocation8 + $0x2c8] sm:$0xff]  ;;  %v1828_v47 = vld [vmem:[#allocation8 + $0x2d8] sm:$0xff] }
 0x100   : > { %11637 = vmatpush1.bf16.msra.mxu0 %v11636_v53  ;;  %937 = vmatprep.mubr.f32.mxu0 %v13740_v0  ;;  %v1340_v53 = vld [vmem:[#allocation8 + $0x1e0] sm:$0xff]  ;;  %v11690_v51 = vpack.c.bf16 %v1828_v47, %v1826_v46 }
 0x101   : > { %11639 = vmatprep.subr.bf16.mxu0 %v11638_v54  ;;  %v1342_v54 = vld [vmem:[#allocation8 + $0x1f0] sm:$0xff]  ;;  %v10975_v46 = vld [vmem:[%s14049_s22 + $0x43] sm:$0xff] }
 0x102   : > { %v11664_v58 = vpack.c.bf16 %v1342_v54, %v1340_v53  ;;  %v10946_v53 = vld [vmem:[%s14049_s22 + $0x3c] sm:$0xf]  ;;  %v1825_v54 = vld [vmem:[#allocation8 + $0x2c0] sm:$0xff] }
 0x103   : > { %10904 = vmatmul.mubr.msk.f32.gmra.mrb[2].mxu0 %vm517_vm0, %v843_v59  ;;  %v505_v59 = vld [vmem:[%s14049_s22 + $0x9] sm:$0xff] }
 0x104   : > { %943 = vmatprep.mubr.f32.mxu0 %v13740_v0  ;;  %11641 = vmatpush1.bf16.msra.mxu0 %v11640_v60  ;;  %v11666_v60 = vpack.c.bf16 %v1461_v56, %v1459_v55  ;;  %v1827_v55 = vld [vmem:[#allocation8 + $0x2d0] sm:$0xff]  ;;  %v1830_v56 = vld [vmem:[#allocation8 + $0x2e8] sm:$0xff] }
 0x105   : > { %11643 = vmatprep.subr.bf16.mxu0 %v11642_v61  ;;  %10892 = vmatmul.mubr.msk.f32.gmra.mrb[2].mxu1 %vm517_vm0, %v505_v59  ;;  %v10921_v61 = vld [vmem:[%s14049_s22 + $0x31] sm:$0xff]  ;;  %v11692_v59 = vpack.c.bf16 %v1827_v55, %v1825_v54  ;;  %v10978_v55 = vld [vmem:[%s14049_s22 + $0x5b] sm:$0xf] }
 0x106   : > { %606 = vmatprep.mubr.f32.mxu1 %v13740_v0  ;;  %v10977_v54 = vld [vmem:[%s14049_s22 + $0x53] sm:$0xff] }
 0x107   : > { %10905 = vmatmul.mubr.msk.f32.gmra.mrb[4].mxu0 %vm517_vm0, %v844_v62  ;;  %v506_v62 = vld [vmem:[%s14049_s22 + $0x11] sm:$0xff] }
 0x108   : > { %949 = vmatprep.mubr.f32.mxu0 %v13740_v0 }
 0x109   : > { %10893 = vmatmul.mubr.msk.f32.gmra.mrb[4].mxu1 %vm517_vm0, %v506_v62  ;;  %v1831_v62 = vld [vmem:[#allocation8 + $0x2f0] sm:$0xff] }
 0x10a   : > { %612 = vmatprep.mubr.f32.mxu1 %v13740_v0 }
 0x10b   : > { %10906 = vmatmul.mubr.msk.f32.gmra.mrb[6].mxu0 %vm517_vm0, %v845_v63  ;;  %v10922_v63 = vld [vmem:[%s14049_s22 + $0x39] sm:$0xf] }
 0x10c   : > { %1053 = vmatprep.mubr.f32.mxu0 %v13740_v0 }
 0x10d   : > { %10894 = vmatmul.mubr.msk.f32.gmra.mrb[6].mxu1 %vm517_vm0, %v507_v1  ;;  %v1950_v1 = vld [vmem:[#allocation8 + $0x318] sm:$0xff] }
 0x10e   : > { %2475 = vmatprep.mubr.f32.mxu1 %v13740_v0 }
 0x10f   : > { %10907 = vmatmul.mubr.msk.f32.vlgmr.msra.gmra.mrb[0].mxu0 %vm517_vm0, %v964_v5  ;;  %v1465_v5 = vld [vmem:[#allocation8 + $0x238] sm:$0xff] }
 0x110   : > { %11645 = vmatpush1.bf16.msra.mxu0 %v11644_v6  ;;  %1059 = vmatprep.mubr.f32.mxu0 %v13740_v0  ;;  %v10927_v6 = vld [vmem:[%s14049_s22 + $0x22] sm:$0xff]  ;;  %v11670_v8 = vpack.c.bf16 %v1465_v5, %v1463_v4  ;;  %v10953_v5 = vld [vmem:[%s14049_s22 + $0x50] sm:$0xff] }
 0x111   : > { %11647 = vmatprep.subr.bf16.mxu0 %v11646_v7  ;;  %v11668_v7 = vpack.c.bf16 %v1460_v3, %v1458_v2  ;;  %v10952_v2 = vld [vmem:[%s14049_s22 + $0x48] sm:$0xff] }
 0x113   : > { %10908 = vmatmul.mubr.msk.f32.gmra.mrb[2].mxu0 %vm517_vm0, %v965_v12  ;;  %v1583_v12 = vld [vmem:[#allocation8 + $0x258] sm:$0xff] }
 0x114   : > { %1065 = vmatprep.mubr.f32.mxu0 %v13740_v0  ;;  %11649 = vmatpush1.bf16.msra.mxu0 %v11648_v13  ;;  %v10928_v13 = vld [vmem:[%s14049_s22 + $0x2a] sm:$0xff] }
 0x115   : > { %11651 = vmatprep.subr.bf16.mxu0 %v11650_v14  ;;  %v11672_v14 = vpack.c.bf16 %v1464_v10, %v1462_v9  ;;  %v1952_v9 = vld [vmem:[#allocation8 + $0x328] sm:$0xff]  ;;  %v1954_v10 = vld [vmem:[#allocation8 + $0x338] sm:$0xff] }
 0x117   : > { %10909 = vmatmul.mubr.msk.f32.gmra.mrb[4].mxu0 %vm517_vm0, %v966_v15  ;;  %v11674_v15 = vpack.c.bf16 %v1583_v12, %v1581_v11  ;;  %v10959_v11 = vld [vmem:[%s14049_s22 + $0x41] sm:$0xff] }
 0x118   : > { %1071 = vmatprep.mubr.f32.mxu0 %v13740_v0 }
 0x11b   : > { %10910 = vmatmul.mubr.msk.f32.gmra.mrb[6].mxu0 %vm517_vm0, %v967_v16  ;;  %v10929_v16 = vld [vmem:[%s14049_s22 + $0x32] sm:$0xff] }
 0x11c   : > { %1176 = vmatprep.mubr.f32.mxu0 %v13740_v0 }
 0x11f   : > { %10915 = vmatmul.mubr.msk.f32.vlgmr.msra.gmra.mrb[0].mxu0 %vm517_vm0, %v10911_v21  ;;  %v1587_v21 = vld [vmem:[#allocation8 + $0x278] sm:$0xff] }
 0x120   : > { %11653 = vmatpush1.bf16.msra.mxu0 %v11652_v22  ;;  %1182 = vmatprep.mubr.f32.mxu0 %v13740_v0  ;;  %v10935_v22 = vld [vmem:[%s14049_s22 + $0x23] sm:$0xff]  ;;  %v11678_v24 = vpack.c.bf16 %v1587_v21, %v1585_v20  ;;  %v10961_v21 = vld [vmem:[%s14049_s22 + $0x51] sm:$0xff] }
 0x121   : > { %11655 = vmatprep.subr.bf16.mxu0 %v11654_v23  ;;  %v11676_v23 = vpack.c.bf16 %v1582_v19, %v1580_v18  ;;  %v10960_v18 = vld [vmem:[%s14049_s22 + $0x49] sm:$0xff] }
 0x123   : > { %10916 = vmatmul.mubr.msk.f32.gmra.mrb[2].mxu0 %vm517_vm0, %v10912_v28  ;;  %v1706_v28 = vld [vmem:[#allocation8 + $0x298] sm:$0xff] }
 0x124   : > { %1188 = vmatprep.mubr.f32.mxu0 %v13740_v0  ;;  %11657 = vmatpush1.bf16.msra.mxu0 %v11656_v29  ;;  %v10936_v29 = vld [vmem:[%s14049_s22 + $0x2b] sm:$0xff]  ;;  %v11682_v31 = vpack.c.bf16 %v1706_v28, %v1704_v27  ;;  %v10967_v27 = vld [vmem:[%s14049_s22 + $0x42] sm:$0xff] }
 0x125   : > { %11659 = vmatprep.subr.bf16.mxu0 %v11658_v30  ;;  %v11680_v30 = vpack.c.bf16 %v1586_v26, %v1584_v25  ;;  %v2074_v25 = vld [vmem:[#allocation8 + $0x368] sm:$0xff]  ;;  %v2076_v26 = vld [vmem:[#allocation8 + $0x378] sm:$0xff] }
 0x127   : > { %10917 = vmatmul.mubr.msk.f32.gmra.mrb[4].mxu0 %vm517_vm0, %v10913_v33  ;;  %v10938_v33 = vld [vmem:[%s14049_s22 + $0x3b] sm:$0xf] }
 0x128   : > { %1194 = vmatprep.mubr.f32.mxu0 %v13740_v0 }
 0x12b   : > { %10918 = vmatmul.mubr.msk.f32.gmra.mrb[6].mxu0 %vm517_vm0, %v10914_v38  ;;  %v1708_v38 = vld [vmem:[#allocation8 + $0x2a8] sm:$0xff] }
 0x12c   : > { %1298 = vmatprep.mubr.f32.mxu0 %v13740_v0  ;;  %v11686_v42 = vpack.c.bf16 %v1710_v39, %v1708_v38  ;;  %v10969_v39 = vld [vmem:[%s14049_s22 + $0x52] sm:$0xff] }
 0x12f   : > { %10923 = vmatmul.mubr.msk.f32.vlgmr.msra.gmra.mrb[0].mxu0 %vm517_vm0, %v10919_v49  ;;  %v10944_v49 = vld [vmem:[%s14049_s22 + $0x2c] sm:$0xff] }
 0x130   : > { %11661 = vmatpush1.bf16.msra.mxu0 %v11660_v50  ;;  %1304 = vmatprep.mubr.f32.mxu0 %v13740_v0  ;;  %v11688_v50 = vpack.c.bf16 %v1709_v45, %v1707_v44  ;;  %v2196_v44 = vld [vmem:[#allocation8 + $0x3a8] sm:$0xff]  ;;  %v2198_v45 = vld [vmem:[#allocation8 + $0x3b8] sm:$0xff] }
 0x131   : > { %11663 = vmatprep.subr.bf16.mxu0 %v11662_v52  ;;  %v10945_v52 = vld [vmem:[%s14049_s22 + $0x34] sm:$0xff] }
 0x133   : > { %10924 = vmatmul.mubr.msk.f32.gmra.mrb[2].mxu0 %vm517_vm0, %v10920_v57  ;;  %v1832_v57 = vld [vmem:[#allocation8 + $0x2f8] sm:$0xff] }
 0x134   : > { %1310 = vmatprep.mubr.f32.mxu0 %v13740_v0  ;;  %11665 = vmatpush1.bf16.msra.mxu0 %v11664_v58  ;;  %v10951_v58 = vld [vmem:[%s14049_s22 + $0x40] sm:$0xff] }
 0x135   : > { %11667 = vmatprep.subr.bf16.mxu0 %v11666_v60  ;;  %v11694_v60 = vpack.c.bf16 %v1832_v57, %v1830_v56  ;;  %v10983_v56 = vld [vmem:[%s14049_s22 + $0x44] sm:$0xff]  ;;  %v10984_v57 = vld [vmem:[%s14049_s22 + $0x4c] sm:$0xff] }
 0x137   : > { %10925 = vmatmul.mubr.msk.f32.gmra.mrb[4].mxu0 %vm517_vm0, %v10921_v61  ;;  %v1829_v61 = vld [vmem:[#allocation8 + $0x2e0] sm:$0xff] }
 0x138   : > { %1316 = vmatprep.mubr.f32.mxu0 %v13740_v0  ;;  %v11696_v3 = vpack.c.bf16 %v1831_v62, %v1829_v61 }
 0x13b   : > { %10926 = vmatmul.mubr.msk.f32.gmra.mrb[6].mxu0 %vm517_vm0, %v10922_v63  ;;  %v1948_v63 = vld [vmem:[#allocation8 + $0x308] sm:$0xff] }
 0x13c   : > { %1420 = vmatprep.mubr.f32.mxu0 %v13740_v0  ;;  %v11698_v4 = vpack.c.bf16 %v1950_v1, %v1948_v63  ;;  %v2380_v63 = vld [vmem:[#allocation11 + $0x108] sm:$0xff]  ;;  %v2382_v1 = vld [vmem:[#allocation11 + $0x118] sm:$0xff] }
 0x13f   : > { %10931 = vmatmul.mubr.msk.f32.vlgmr.msra.gmra.mrb[0].mxu0 %vm517_vm0, %v10927_v6  ;;  %v10954_v6 = vld [vmem:[%s14049_s22 + $0x58] sm:$0xf] }
 0x140   : > { %11669 = vmatpush1.bf16.msra.mxu0 %v11668_v7  ;;  %1426 = vmatprep.mubr.f32.mxu0 %v13740_v0  ;;  %v1947_v7 = vld [vmem:[#allocation8 + $0x300] sm:$0xff] }
 0x141   : > { %11671 = vmatprep.subr.bf16.mxu0 %v11670_v8  ;;  %v1949_v8 = vld [vmem:[#allocation8 + $0x310] sm:$0xff] }
 0x142   : > { %v11700_v12 = vpack.c.bf16 %v1949_v8, %v1947_v7  ;;  %v2384_v8 = vld [vmem:[#allocation11 + $0x128] sm:$0xff] }
 0x143   : > { %10932 = vmatmul.mubr.msk.f32.gmra.mrb[2].mxu0 %vm517_vm0, %v10928_v13  ;;  %v11702_v13 = vpack.c.bf16 %v1954_v10, %v1952_v9  ;;  %v2386_v9 = vld [vmem:[#allocation11 + $0x138] sm:$0xff] }
 0x144   : > { %1432 = vmatprep.mubr.f32.mxu0 %v13740_v0  ;;  %11673 = vmatpush1.bf16.msra.mxu0 %v11672_v14  ;;  %v1951_v14 = vld [vmem:[#allocation8 + $0x320] sm:$0xff] }
 0x145   : > { %11675 = vmatprep.subr.bf16.mxu0 %v11674_v15  ;;  %v1953_v15 = vld [vmem:[#allocation8 + $0x330] sm:$0xff] }
 0x146   : > { %v11704_v19 = vpack.c.bf16 %v1953_v15, %v1951_v14 }
 0x147   : > { %10933 = vmatmul.mubr.msk.f32.gmra.mrb[4].mxu0 %vm517_vm0, %v10929_v16  ;;  %v2070_v16 = vld [vmem:[#allocation8 + $0x348] sm:$0xff] }
 0x148   : > { %1438 = vmatprep.mubr.f32.mxu0 %v13740_v0 }
 0x14b   : > { %10934 = vmatmul.mubr.msk.f32.gmra.mrb[6].mxu0 %vm517_vm0, %v10930_v17  ;;  %v2072_v17 = vld [vmem:[#allocation8 + $0x358] sm:$0xff] }
 0x14c   : > { %1542 = vmatprep.mubr.f32.mxu0 %v13740_v0  ;;  %v11706_v20 = vpack.c.bf16 %v2072_v17, %v2070_v16  ;;  %v2388_v16 = vld [vmem:[#allocation11 + $0x148] sm:$0xff]  ;;  %v2390_v17 = vld [vmem:[#allocation11 + $0x158] sm:$0xff] }
 0x14f   : > { %10939 = vmatmul.mubr.msk.f32.vlgmr.msra.gmra.mrb[0].mxu0 %vm517_vm0, %v10935_v22  ;;  %v10962_v22 = vld [vmem:[%s14049_s22 + $0x59] sm:$0xf] }
 0x150   : > { %11677 = vmatpush1.bf16.msra.mxu0 %v11676_v23  ;;  %1548 = vmatprep.mubr.f32.mxu0 %v13740_v0  ;;  %v2069_v23 = vld [vmem:[#allocation8 + $0x340] sm:$0xff] }
 0x151   : > { %11679 = vmatprep.subr.bf16.mxu0 %v11678_v24  ;;  %v2071_v24 = vld [vmem:[#allocation8 + $0x350] sm:$0xff] }
 0x152   : > { %v11708_v28 = vpack.c.bf16 %v2071_v24, %v2069_v23  ;;  %v2392_v23 = vld [vmem:[#allocation11 + $0x168] sm:$0xff]  ;;  %v2394_v24 = vld [vmem:[#allocation11 + $0x178] sm:$0xff] }
 0x153   : > { %10940 = vmatmul.mubr.msk.f32.gmra.mrb[2].mxu0 %vm517_vm0, %v10936_v29  ;;  %v11710_v29 = vpack.c.bf16 %v2076_v26, %v2074_v25  ;;  %v11734_v25 = vpack.c.bf16 %v2394_v24, %v2392_v23  ;;  %v2391_v26 = vld [vmem:[#allocation11 + $0x160] sm:$0xff] }
 0x154   : > { %1554 = vmatprep.mubr.f32.mxu0 %v13740_v0  ;;  %11681 = vmatpush1.bf16.msra.mxu0 %v11680_v30  ;;  %v2073_v30 = vld [vmem:[#allocation8 + $0x360] sm:$0xff] }
 0x155   : > { %11683 = vmatprep.subr.bf16.mxu0 %v11682_v31  ;;  %v2075_v31 = vld [vmem:[#allocation8 + $0x370] sm:$0xff] }
 0x156   : > { %v11712_v36 = vpack.c.bf16 %v2075_v31, %v2073_v30  ;;  %v2398_v30 = vld [vmem:[#allocation11 + $0x198] sm:$0xff] }
 0x157   : > { %10941 = vmatmul.mubr.msk.f32.gmra.mrb[4].mxu0 %vm517_vm0, %v10937_v32  ;;  %v2192_v32 = vld [vmem:[#allocation8 + $0x388] sm:$0xff] }
 0x158   : > { %1560 = vmatprep.mubr.f32.mxu0 %v13740_v0 }
 0x15b   : > { %10942 = vmatmul.mubr.msk.f32.gmra.mrb[6].mxu0 %vm517_vm0, %v10938_v33  ;;  %v2194_v33 = vld [vmem:[#allocation8 + $0x398] sm:$0xff] }
 0x15c   : > { %1664 = vmatprep.mubr.f32.mxu0 %v13740_v0  ;;  %v11714_v38 = vpack.c.bf16 %v2194_v33, %v2192_v32  ;;  %v2395_v32 = vld [vmem:[#allocation11 + $0x180] sm:$0xff]  ;;  %v2397_v33 = vld [vmem:[#allocation11 + $0x190] sm:$0xff] }
 0x15f   : > { %10947 = vmatmul.mubr.msk.f32.vlgmr.msra.gmra.mrb[0].mxu0 %vm517_vm0, %v10943_v40  ;;  %v10970_v40 = vld [vmem:[%s14049_s22 + $0x5a] sm:$0xf] }
 0x160   : > { %11685 = vmatpush1.bf16.msra.mxu0 %v11684_v41  ;;  %1670 = vmatprep.mubr.f32.mxu0 %v13740_v0  ;;  %v2191_v41 = vld [vmem:[#allocation8 + $0x380] sm:$0xff] }
 0x161   : > { %11687 = vmatprep.subr.bf16.mxu0 %v11686_v42  ;;  %v2193_v42 = vld [vmem:[#allocation8 + $0x390] sm:$0xff] }
 0x162   : > { %v11716_v47 = vpack.c.bf16 %v2193_v42, %v2191_v41  ;;  %v2401_v41 = vld [vmem:[#allocation11 + $0x1b0] sm:$0xff] }
 0x163   : > { %10948 = vmatmul.mubr.msk.f32.gmra.mrb[2].mxu0 %vm517_vm0, %v10944_v49  ;;  %v11718_v49 = vpack.c.bf16 %v2198_v45, %v2196_v44  ;;  %v2404_v44 = vld [vmem:[#allocation11 + $0x1c8] sm:$0xff]  ;;  %v2406_v45 = vld [vmem:[#allocation11 + $0x1d8] sm:$0xff] }
 0x164   : > { %1676 = vmatprep.mubr.f32.mxu0 %v13740_v0  ;;  %11689 = vmatpush1.bf16.msra.mxu0 %v11688_v50  ;;  %v2195_v50 = vld [vmem:[#allocation8 + $0x3a0] sm:$0xff] }
 0x165   : > { %11691 = vmatprep.subr.bf16.mxu0 %v11690_v51  ;;  %v2197_v51 = vld [vmem:[#allocation8 + $0x3b0] sm:$0xff] }
 0x167   : > { %10949 = vmatmul.mubr.msk.f32.gmra.mrb[4].mxu0 %vm517_vm0, %v10945_v52  ;;  %v10976_v52 = vld [vmem:[%s14049_s22 + $0x4b] sm:$0xff] }
 0x168   : > { %1682 = vmatprep.mubr.f32.mxu0 %v13740_v0 }
 0x16b   : > { %10950 = vmatmul.mubr.msk.f32.gmra.mrb[6].mxu0 %vm517_vm0, %v10946_v53  ;;  %v11720_v53 = vpack.c.bf16 %v2197_v51, %v2195_v50  ;;  %v2408_v50 = vld [vmem:[#allocation11 + $0x1e8] sm:$0xff] }
 0x16c   : > { %1787 = vmatprep.mubr.f32.mxu0 %v13740_v0 }
 0x16f   : > { %10955 = vmatmul.mubr.msk.f32.vlgmr.msra.gmra.mrb[0].mxu0 %vm517_vm0, %v10951_v58  ;;  %v10985_v58 = vld [vmem:[%s14049_s22 + $0x54] sm:$0xff] }
 0x170   : > { %11693 = vmatpush1.bf16.msra.mxu0 %v11692_v59  ;;  %1793 = vmatprep.mubr.f32.mxu0 %v13740_v0  ;;  %v10986_v59 = vld [vmem:[%s14049_s22 + $0x5c] sm:$0xf] }
 0x171   : > { %11695 = vmatprep.subr.bf16.mxu0 %v11694_v60 }
 0x173   : > { %10956 = vmatmul.mubr.msk.f32.gmra.mrb[2].mxu0 %vm517_vm0, %v10952_v2 }
 0x174   : > { %1799 = vmatprep.mubr.f32.mxu0 %v13740_v0  ;;  %11697 = vmatpush1.bf16.msra.mxu0 %v11696_v3  ;;  %v11722_v3 = vpack.c.bf16 %v2382_v1, %v2380_v63 }
 0x175   : > { %11699 = vmatprep.subr.bf16.mxu0 %v11698_v4  ;;  %v2379_v4 = vld [vmem:[#allocation11 + $0x100] sm:$0xff] }
 0x176   : > { %11723 = vmatprep.subr.bf16.mxu1 %v11722_v3 }
 0x177   : > { %10957 = vmatmul.mubr.msk.f32.gmra.mrb[4].mxu0 %vm517_vm0, %v10953_v5  ;;  %v2381_v5 = vld [vmem:[#allocation11 + $0x110] sm:$0xff] }
 0x178   : > { %1805 = vmatprep.mubr.f32.mxu0 %v13740_v0 }
 0x17b   : > { %10958 = vmatmul.mubr.msk.f32.gmra.mrb[6].mxu0 %vm517_vm0, %v10954_v6  ;;  %v11724_v6 = vpack.c.bf16 %v2381_v5, %v2379_v4  ;;  %v10991_v5 = vld [vmem:[#allocation10] ss:$0 sm:$0xff] }
 0x17c   : > { %1909 = vmatprep.mubr.f32.mxu0 %v13740_v0 }
 0x17d   : > { %11725 = vmatpush1.bf16.msra.mxu1 %v11724_v6 }
 0x17f   : > { %10963 = vmatmul.mubr.msk.f32.vlgmr.msra.gmra.mrb[0].mxu0 %vm517_vm0, %v10959_v11  ;;  %v11726_v11 = vpack.c.bf16 %v2386_v9, %v2384_v8 }
 0x180   : > { %11701 = vmatpush1.bf16.msra.mxu0 %v11700_v12  ;;  %1915 = vmatprep.mubr.f32.mxu0 %v13740_v0  ;;  %v2383_v12 = vld [vmem:[#allocation11 + $0x120] sm:$0xff] }
 0x181   : > { %11703 = vmatprep.subr.bf16.mxu0 %v11702_v13  ;;  %v2385_v13 = vld [vmem:[#allocation11 + $0x130] sm:$0xff]  ;;  %11727 = vmatprep.subr.bf16.mxu1 %v11726_v11 }
 0x182   : > { %v11728_v14 = vpack.c.bf16 %v2385_v13, %v2383_v12 }
 0x183   : > { %10964 = vmatmul.mubr.msk.f32.gmra.mrb[2].mxu0 %vm517_vm0, %v10960_v18 }
 0x184   : > { %1921 = vmatprep.mubr.f32.mxu0 %v13740_v0  ;;  %11705 = vmatpush1.bf16.msra.mxu0 %v11704_v19  ;;  %v11730_v19 = vpack.c.bf16 %v2390_v17, %v2388_v16 }
 0x185   : > { %11707 = vmatprep.subr.bf16.mxu0 %v11706_v20  ;;  %11729 = vmatpush1.bf16.msra.mxu1 %v11728_v14  ;;  %v2387_v20 = vld [vmem:[#allocation11 + $0x140] sm:$0xff] }
 0x186   : > { %11731 = vmatprep.subr.bf16.mxu1 %v11730_v19 }
 0x187   : > { %10965 = vmatmul.mubr.msk.f32.gmra.mrb[4].mxu0 %vm517_vm0, %v10961_v21  ;;  %v2389_v21 = vld [vmem:[#allocation11 + $0x150] sm:$0xff] }
 0x188   : > { %1927 = vmatprep.mubr.f32.mxu0 %v13740_v0 }
 0x18b   : > { %10966 = vmatmul.mubr.msk.f32.gmra.mrb[6].mxu0 %vm517_vm0, %v10962_v22  ;;  %v11732_v22 = vpack.c.bf16 %v2389_v21, %v2387_v20 }
 0x18c   : > { %2031 = vmatprep.mubr.f32.mxu0 %v13740_v0 }
 0x18d   : > { %11733 = vmatpush1.bf16.msra.mxu1 %v11732_v22 }
 0x18e   : > { %11735 = vmatprep.subr.bf16.mxu1 %v11734_v25 }
 0x18f   : > { %10971 = vmatmul.mubr.msk.f32.vlgmr.msra.gmra.mrb[0].mxu0 %vm517_vm0, %v10967_v27  ;;  %v2393_v27 = vld [vmem:[#allocation11 + $0x170] sm:$0xff] }
 0x190   : > { %11709 = vmatpush1.bf16.msra.mxu0 %v11708_v28  ;;  %2037 = vmatprep.mubr.f32.mxu0 %v13740_v0  ;;  %v11736_v28 = vpack.c.bf16 %v2393_v27, %v2391_v26 }
 0x191   : > { %11711 = vmatprep.subr.bf16.mxu0 %v11710_v29  ;;  %v2396_v29 = vld [vmem:[#allocation11 + $0x188] sm:$0xff] }
 0x192   : > { %11737 = vmatpush1.bf16.msra.mxu1 %v11736_v28  ;;  %v11738_v31 = vpack.c.bf16 %v2398_v30, %v2396_v29 }
 0x193   : > { %10972 = vmatmul.mubr.msk.f32.gmra.mrb[2].mxu0 %vm517_vm0, %v10968_v35  ;;  %v11740_v35 = vpack.c.bf16 %v2397_v33, %v2395_v32  ;;  %v2344_v33 = vld [vmem:[#allocation11] sm:$0xff] }
 0x194   : > { %2043 = vmatprep.mubr.f32.mxu0 %v13740_v0  ;;  %11713 = vmatpush1.bf16.msra.mxu0 %v11712_v36  ;;  %v2400_v36 = vld [vmem:[#allocation11 + $0x1a8] sm:$0xff] }
 0x195   : > { %11715 = vmatprep.subr.bf16.mxu0 %v11714_v38  ;;  %11739 = vmatprep.subr.bf16.mxu1 %v11738_v31  ;;  %v2402_v38 = vld [vmem:[#allocation11 + $0x1b8] sm:$0xff] }
 0x196   : > { %11741 = vmatpush1.bf16.msra.mxu1 %v11740_v35  ;;  %v2346_v35 = vld [vmem:[#allocation11 + $0x10] sm:$0xff] }
 0x197   : > { %10973 = vmatmul.mubr.msk.f32.gmra.mrb[4].mxu0 %vm517_vm0, %v10969_v39  ;;  %v11742_v39 = vpack.c.bf16 %v2402_v38, %v2400_v36  ;;  %v2349_v36 = vld [vmem:[#allocation11 + $0x28] sm:$0xff]  ;;  %v11756_v38 = vpack.c.bf16 %v2346_v35, %v2344_v33  ;;  %v2579_v35 = vld [vmem:[#allocation11 + $0x258] sm:$0xff] }
 0x198   : > { %2049 = vmatprep.mubr.f32.mxu0 %v13740_v0  ;;  %v2577_v33 = vld [vmem:[#allocation11 + $0x248] sm:$0xff] }
 0x199   : > { %11743 = vmatprep.subr.bf16.mxu1 %v11742_v39 }
 0x19b   : > { %10974 = vmatmul.mubr.msk.f32.gmra.mrb[6].mxu0 %vm517_vm0, %v10970_v40  ;;  %v2399_v40 = vld [vmem:[#allocation11 + $0x1a0] sm:$0xff] }
 0x19c   : > { %2153 = vmatprep.mubr.f32.mxu0 %v13740_v0  ;;  %v11744_v42 = vpack.c.bf16 %v2401_v41, %v2399_v40  ;;  %v2348_v40 = vld [vmem:[#allocation11 + $0x20] sm:$0xff]  ;;  %v2350_v41 = vld [vmem:[#allocation11 + $0x30] sm:$0xff] }
 0x19e   : > { %11745 = vmatpush1.bf16.msra.mxu1 %v11744_v42 }
 0x19f   : > { %10979 = vmatmul.mubr.msk.f32.vlgmr.msra.gmra.mrb[0].mxu0 %vm517_vm0, %v10975_v46  ;;  %v11746_v46 = vpack.c.bf16 %v2406_v45, %v2404_v44  ;;  %v2353_v44 = vld [vmem:[#allocation11 + $0x48] sm:$0xff]  ;;  %v2355_v45 = vld [vmem:[#allocation11 + $0x58] sm:$0xff] }
 0x1a0   : > { %11717 = vmatpush1.bf16.msra.mxu0 %v11716_v47  ;;  %2159 = vmatprep.mubr.f32.mxu0 %v13740_v0  ;;  %v2403_v47 = vld [vmem:[#allocation11 + $0x1c0] sm:$0xff] }
 0x1a1   : > { %11719 = vmatprep.subr.bf16.mxu0 %v11718_v49  ;;  %v2405_v49 = vld [vmem:[#allocation11 + $0x1d0] sm:$0xff]  ;;  %11747 = vmatprep.subr.bf16.mxu1 %v11746_v46  ;;  %v11760_v46 = vpack.c.bf16 %v2350_v41, %v2348_v40  ;;  %v2581_v41 = vld [vmem:[#allocation11 + $0x268] sm:$0xff] }
 0x1a2   : > { %v11748_v51 = vpack.c.bf16 %v2405_v49, %v2403_v47  ;;  %v11762_v47 = vpack.c.bf16 %v2355_v45, %v2353_v44  ;;  %v2352_v49 = vld [vmem:[#allocation11 + $0x40] sm:$0xff] }
 0x1a3   : > { %10980 = vmatmul.mubr.msk.f32.gmra.mrb[2].mxu0 %vm517_vm0, %v10976_v52  ;;  %v2410_v52 = vld [vmem:[#allocation11 + $0x1f8] sm:$0xff] }
 0x1a4   : > { %2165 = vmatprep.mubr.f32.mxu0 %v13740_v0  ;;  %11721 = vmatpush1.bf16.msra.mxu0 %v11720_v53  ;;  %v2407_v53 = vld [vmem:[#allocation11 + $0x1e0] sm:$0xff] }
 0x1a5   : > { %11749 = vmatpush1.bf16.msra.mxu1 %v11748_v51 }
 0x1a7   : > { %10981 = vmatmul.mubr.msk.f32.gmra.mrb[4].mxu0 %vm517_vm0, %v10977_v54  ;;  %v2409_v54 = vld [vmem:[#allocation11 + $0x1f0] sm:$0xff] }
 0x1a8   : > { %2171 = vmatprep.mubr.f32.mxu0 %v13740_v0 }
 0x1ab   : > { %10982 = vmatmul.mubr.msk.f32.gmra.mrb[6].mxu0 %vm517_vm0, %v10978_v55  ;;  %v11750_v55 = vpack.c.bf16 %v2410_v52, %v2408_v50  ;;  %v2354_v50 = vld [vmem:[#allocation11 + $0x50] sm:$0xff]  ;;  %v2357_v52 = vld [vmem:[#allocation11 + $0x68] sm:$0xff] }
 0x1ac   : > { %2275 = vmatprep.mubr.f32.mxu0 %v13740_v0 }
 0x1ad   : > { %11751 = vmatprep.subr.bf16.mxu1 %v11750_v55 }
 0x1af   : > { %10987 = vmatmul.mubr.msk.f32.vlgmr.msra.gmra.mrb[0].mxu0 %vm517_vm0, %v10983_v56  ;;  %v2345_v56 = vld [vmem:[#allocation11 + $0x8] sm:$0xff] }
 0x1b0   : > { %2281 = vmatprep.mubr.f32.mxu0 %v13740_v0 }
 0x1b3   : > { %10988 = vmatmul.mubr.msk.f32.gmra.mrb[2].mxu0 %vm517_vm0, %v10984_v57  ;;  %v2347_v57 = vld [vmem:[#allocation11 + $0x18] sm:$0xff] }
 0x1b4   : > { %2287 = vmatprep.mubr.f32.mxu0 %v13740_v0 }
 0x1b7   : > { %10989 = vmatmul.mubr.msk.f32.gmra.mrb[4].mxu0 %vm517_vm0, %v10985_v58  ;;  %v11752_v58 = vpack.c.bf16 %v2409_v54, %v2407_v53  ;;  %v2359_v53 = vld [vmem:[#allocation11 + $0x78] sm:$0xff]  ;;  %v11764_v54 = vpack.c.bf16 %v2354_v50, %v2352_v49 }
 0x1b8   : > { %2293 = vmatprep.mubr.f32.mxu0 %v13740_v0  ;;  %v11766_v55 = vpack.c.bf16 %v2359_v53, %v2357_v52  ;;  %v2587_v49 = vld [vmem:[#allocation11 + $0x298] sm:$0xff]  ;;  %v2584_v52 = vld [vmem:[#allocation11 + $0x280] sm:$0xff]  ;;  %v2586_v53 = vld [vmem:[#allocation11 + $0x290] sm:$0xff] }
 0x1b9   : > { %11753 = vmatpush1.bf16.msra.mxu1 %v11752_v58  ;;  %v2361_v58 = vld [vmem:[#allocation11 + $0x88] sm:$0xff] }
 0x1bb   : > { %10990 = vmatmul.mubr.msk.f32.gmra.mrb[6].mxu0 %vm517_vm0, %v10986_v59  ;;  %v11754_v59 = vpack.c.bf16 %v2347_v57, %v2345_v56  ;;  %v2356_v56 = vld [vmem:[#allocation11 + $0x60] sm:$0xff]  ;;  %v2358_v57 = vld [vmem:[#allocation11 + $0x70] sm:$0xff] }
 0x1bc   : > { %4914 = vmatprep.mubr.f32.mxu0 %v13740_v0 }
 0x1bd   : > { %11755 = vmatprep.subr.bf16.mxu1 %v11754_v59  ;;  %v2363_v59 = vld [vmem:[#allocation11 + $0x98] sm:$0xff] }
 0x1ce   : > { %v14261_v60 = vpop.f32.mrb[0].mxu1 }
 0x1cf   : > { %v14263_v61 = vpop.f32.mrb[1].mxu1 }
 0x1d8   : > { %v14265_v62 = vpop.f32.mrb[2].mxu1 }
 0x1d9   : > { %v14267_v2 = vpop.f32.mrb[3].mxu1 }
 0x1dc   : > { %v14269_v7 = vpop.f32.mrb[4].mxu1 }
 0x1dd   : > { %v14271_v10 = vpop.f32.mrb[5].mxu1 }
 0x1e0   : > { %v14273_v15 = vpop.f32.mrb[6].mxu1 }
 0x1e1   : > { %v14275_v18 = vpop.f32.mrb[7].mxu1 }
 0x282   : > { %v2277_v63 = vpop.f32.mrb[0].mxu0 }
 0x283   : > { %v12858_v1 = vadd.f32 %v2277_v63, %v14261_v60  ;;  %v2279_v3 = vpop.f32.mrb[1].mxu0  ;;  %v11768_v63 = vpack.c.bf16 %v2358_v57, %v2356_v56  ;;  %v11804_v56 = vpack.c.bf16 %v2586_v53, %v2584_v52  ;;  %v2711_v52 = vld [vmem:[#allocation11 + $0x3d8] sm:$0xff] }
 0x284   : > { %v12859_v4 = vadd.f32 %v2279_v3, %v14263_v61  ;;  %v2360_v3 = vld [vmem:[#allocation11 + $0x80] sm:$0xff] }
 0x286   : > { %v2308_v6 = vmax.f32 %v12858_v1, %v12859_v4  ;;  %v2283_v8 = vpop.f32.mrb[2].mxu0  ;;  %v11770_v1 = vpack.c.bf16 %v2363_v59, %v2361_v58  ;;  %v2362_v4 = vld [vmem:[#allocation11 + $0x90] sm:$0xff]  ;;  %v2588_v58 = vld [vmem:[#allocation11 + $0x2a0] sm:$0xff] }
 0x287   : > { %v12860_v9 = vadd.f32 %v2283_v8, %v14265_v62  ;;  %v2285_v11 = vpop.f32.mrb[3].mxu0  ;;  %v11772_v8 = vpack.c.bf16 %v2362_v4, %v2360_v3  ;;  %v2590_v59 = vld [vmem:[#allocation11 + $0x2b0] sm:$0xff] }
 0x288   : > { %v2319_v12 = vadd.f32 %v10991_v5, %v2308_v6  ;;  %v12861_v13 = vadd.f32 %v2285_v11, %v14267_v2  ;;  %v2367_v6 = vld [vmem:[#allocation11 + $0xb8] sm:$0xff]  ;;  %v2364_v11 = vld [vmem:[#allocation11 + $0xa0] sm:$0xff]  ;;  %v11808_v3 = vpack.c.bf16 %v2590_v59, %v2588_v58 }
 0x289   : > { %v2715_v58 = vld [vmem:[#allocation11 + $0x3f8] sm:$0xff] }
 0x28a   : > { %v2323_v14 = vmax.f32 %v2319_v12, 0.0  ;;  %v2309_v16 = vmax.f32 %v12860_v9, %v12861_v13  ;;  %v2289_v17 = vpop.f32.mrb[4].mxu0  ;;  %v2366_v12 = vld [vmem:[#allocation11 + $0xb0] sm:$0xff]  ;;  %v2369_v13 = vld [vmem:[#allocation11 + $0xc8] sm:$0xff] }
 0x28b   : > { %v12862_v19 = vadd.f32 %v2289_v17, %v14269_v7  ;;  %v2291_v20 = vpop.f32.mrb[5].mxu0 }
 0x28c   : > { %2327 = vst [vmem:[#allocation2] sm:$0xff] %v2323_v14  ;;  %v2320_v60 = vadd.f32 %v10991_v5, %v2309_v16  ;;  %v12863_v21 = vadd.f32 %v2291_v20, %v14271_v10  ;;  %v2371_v14 = vld [vmem:[#allocation11 + $0xd8] sm:$0xff]  ;;  %v11776_v16 = vpack.c.bf16 %v2366_v12, %v2364_v11  ;;  %v2370_v20 = vld [vmem:[#allocation11 + $0xd0] sm:$0xff] }
 0x28d   : > { %v11778_v17 = vpack.c.bf16 %v2371_v14, %v2369_v13  ;;  %v2596_v13 = vld [vmem:[#allocation11 + $0x2e0] sm:$0xff]  ;;  %v2598_v14 = vld [vmem:[#allocation11 + $0x2f0] sm:$0xff] }
 0x28e   : > { %v2324_v61 = vmax.f32 %v2320_v60, 0.0  ;;  %v2310_v22 = vmax.f32 %v12862_v19, %v12863_v21  ;;  %v2295_v23 = vpop.f32.mrb[6].mxu0  ;;  %v2368_v19 = vld [vmem:[#allocation11 + $0xc0] sm:$0xff]  ;;  %v2373_v60 = vld [vmem:[#allocation11 + $0xe8] sm:$0xff]  ;;  %v2375_v21 = vld [vmem:[#allocation11 + $0xf8] sm:$0xff] }
 0x28f   : > { %v12864_v24 = vadd.f32 %v2295_v23, %v14273_v15  ;;  %v2297_v62 = vpop.f32.mrb[7].mxu0  ;;  %v2372_v23 = vld [vmem:[#allocation11 + $0xe0] sm:$0xff] }
 0x290   : > { %2328 = vst [vmem:[#allocation2 + $0x8] sm:$0xff] %v2324_v61  ;;  %v2321_v25 = vadd.f32 %v10991_v5, %v2310_v22  ;;  %v12865_v2 = vadd.f32 %v2297_v62, %v14275_v18  ;;  %v2351_v18 = vld [vmem:[#allocation11 + $0x38] sm:$0xff]  ;;  %v11780_v61 = vpack.c.bf16 %v2370_v20, %v2368_v19  ;;  %v11782_v22 = vpack.c.bf16 %v2375_v21, %v2373_v60  ;;  %v2569_v62 = vld [vmem:[#allocation11 + $0x208] sm:$0xff]  ;;  %v2684_v60 = vld [vmem:[#allocation11 + $0x300] sm:$0xff] }
 0x291   : > { %v11758_v39 = vpack.c.bf16 %v2351_v18, %v2349_v36  ;;  %v11794_v18 = vpack.c.bf16 %v2579_v35, %v2577_v33  ;;  %v11816_v19 = vpack.c.bf16 %v2598_v14, %v2596_v13  ;;  %v2686_v21 = vld [vmem:[#allocation11 + $0x310] sm:$0xff]  ;;  %v2807_v13 = vld [vmem:[#allocation11 + $0x438] sm:$0xff] }
 0x292   : > { %v2325_v26 = vmax.f32 %v2321_v25, 0.0  ;;  %v2311_v27 = vmax.f32 %v12864_v24, %v12865_v2  ;;  %v2374_v24 = vld [vmem:[#allocation11 + $0xf0] sm:$0xff]  ;;  %v2571_v25 = vld [vmem:[#allocation11 + $0x218] sm:$0xff] }
 0x293   : > { %v11784_v2 = vpack.c.bf16 %v2374_v24, %v2372_v23  ;;  %v11820_v23 = vpack.c.bf16 %v2686_v21, %v2684_v60  ;;  %v2809_v60 = vld [vmem:[#allocation11 + $0x448] sm:$0xff]  ;;  %v2811_v21 = vld [vmem:[#allocation11 + $0x458] sm:$0xff] }
 0x294   : > { %2329 = vst [vmem:[#allocation2 + $0x10] sm:$0xff] %v2325_v26  ;;  %v2322_v28 = vadd.f32 %v10991_v5, %v2311_v27  ;;  %v2365_v5 = vld [vmem:[#allocation11 + $0xa8] sm:$0xff]  ;;  %v11786_v26 = vpack.c.bf16 %v2571_v25, %v2569_v62  ;;  %v2568_v27 = vld [vmem:[#allocation11 + $0x200] sm:$0xff]  ;;  %v2690_v25 = vld [vmem:[#allocation11 + $0x330] sm:$0xff] }
 0x295   : > { %v11774_v9 = vpack.c.bf16 %v2367_v6, %v2365_v5  ;;  %v2592_v5 = vld [vmem:[#allocation11 + $0x2c0] sm:$0xff]  ;;  %v2594_v6 = vld [vmem:[#allocation11 + $0x2d0] sm:$0xff] }
 0x296   : > { %v2326_v7 = vmax.f32 %v2322_v28, 0.0  ;;  %v2570_v28 = vld [vmem:[#allocation11 + $0x210] sm:$0xff]  ;;  %v11812_v11 = vpack.c.bf16 %v2594_v6, %v2592_v5  ;;  %v2688_v62 = vld [vmem:[#allocation11 + $0x320] sm:$0xff]  ;;  %v2803_v5 = vld [vmem:[#allocation11 + $0x418] sm:$0xff] }
 0x297   : > { %v2331_v29 = vld [vmem:[#allocation2] ss:$2 sm:$0xff]  ;;  %v2335_v30 = vld [vmem:[#allocation2 + $0x1] ss:$2 sm:$0xff] }
 0x298   : > { %2330 = vst [vmem:[#allocation2 + $0x18] sm:$0xf] %v2326_v7  ;;  %v14285_v31 = vmax.f32 %v2331_v29, %v2335_v30  ;;  %v2573_v7 = vld [vmem:[#allocation11 + $0x228] sm:$0xff]  ;;  %v2575_v29 = vld [vmem:[#allocation11 + $0x238] sm:$0xff]  ;;  %v11788_v30 = vpack.c.bf16 %v2570_v28, %v2568_v27  ;;  %v11824_v28 = vpack.c.bf16 %v2690_v25, %v2688_v62 }
 0x299   : > { %v2695_v27 = vld [vmem:[#allocation11 + $0x358] sm:$0xff]  ;;  %v2813_v25 = vld [vmem:[#allocation11 + $0x468] sm:$0xff] }
 0x29a   : > { %2340 = vst [vmem:[#allocation3] sm:$0xff] %v14285_v31 }
 0x29f   : > { %v2333_v10 = vld [vmem:[#allocation2 + $0x10] ss:$2 sm:$0x3f]  ;;  %v2337_v32 = vld [vmem:[#allocation2 + $0x11] ss:$2 sm:$0x3f] }
 0x2a0   : > { %v2339_v15 = vmax.f32 %v2333_v10, %v2337_v32  ;;  %v11790_v10 = vpack.c.bf16 %v2575_v29, %v2573_v7  ;;  %v2572_v32 = vld [vmem:[#allocation11 + $0x220] sm:$0xff] }
 0x2a1   : > { %v2692_v29 = vld [vmem:[#allocation11 + $0x340] sm:$0xff] }
 0x2a2   : > { %2341 = vst [vmem:[#allocation3 + $0x8] sm:$0x3f] %v2339_v15  ;;  %v2574_v15 = vld [vmem:[#allocation11 + $0x230] sm:$0xff] }
 0x2a3   : > { %v11792_v36 = vpack.c.bf16 %v2574_v15, %v2572_v32  ;;  %v2697_v32 = vld [vmem:[#allocation11 + $0x368] sm:$0xff]  ;;  %v2699_v15 = vld [vmem:[#allocation11 + $0x378] sm:$0xff] }
 0x2a4   : > { %v11830_v35 = vpack.c.bf16 %v2699_v15, %v2697_v32  ;;  %v2816_v15 = vld [vmem:[#allocation11 + $0x480] sm:$0xff] }
 0x2a9   : > { %v2376_v42 = vld [vmem:[#allocation3 + $0x1] sm:$0xff]  ;;  %v2377_v51 = vld [vmem:[#allocation3 + $0x9] sm:$0x3]  ;;  %v2682_v62 = vld [vmem:[#allocation3 + $0xb] sm:$0x3] }
 0x2aa   : > { %2476 = vmatmul.mubr.f32.vlgmr.msra.gmra.mrb[8].mxu1 %v2376_v42  ;;  %v2343_v40 = vld [vmem:[#allocation3 + $0x8] sm:$0x3]  ;;  %v2583_v42 = vld [vmem:[#allocation11 + $0x278] sm:$0xff] }
 0x2ab   : > { %11757 = vmatpush1.bf16.msra.mxu1 %v11756_v38  ;;  %2481 = vmatprep.mubr.f32.mxu1 %v13740_v0  ;;  %v2576_v38 = vld [vmem:[#allocation11 + $0x240] sm:$0xff]  ;;  %v11798_v45 = vpack.c.bf16 %v2583_v42, %v2581_v41 }
 0x2ac   : > { %11759 = vmatprep.subr.bf16.mxu1 %v11758_v39  ;;  %v2578_v39 = vld [vmem:[#allocation11 + $0x250] sm:$0xff]  ;;  %v2700_v42 = vld [vmem:[#allocation11 + $0x380] sm:$0xff] }
 0x2ad   : > { %v11796_v44 = vpack.c.bf16 %v2578_v39, %v2576_v38  ;;  %v2701_v38 = vld [vmem:[#allocation11 + $0x388] sm:$0xff]  ;;  %v2703_v39 = vld [vmem:[#allocation11 + $0x398] sm:$0xff] }
 0x2ae   : > { %2482 = vmatmul.mubr.f32.gmra.mrb[10].mxu1 %v2377_v51  ;;  %v11834_v41 = vpack.c.bf16 %v2703_v39, %v2701_v38  ;;  %v2820_v39 = vld [vmem:[#allocation11 + $0x4a0] sm:$0xff] }
 0x2af   : > { %11761 = vmatpush1.bf16.msra.mxu1 %v11760_v46  ;;  %2552 = vmatprep.mubr.f32.mxu1 %v13740_v0  ;;  %v2580_v46 = vld [vmem:[#allocation11 + $0x260] sm:$0xff] }
 0x2b0   : > { %11763 = vmatprep.subr.bf16.mxu1 %v11762_v47  ;;  %v2585_v47 = vld [vmem:[#allocation11 + $0x288] sm:$0xff] }
 0x2b1   : > { %v11802_v51 = vpack.c.bf16 %v2587_v49, %v2585_v47  ;;  %v2704_v49 = vld [vmem:[#allocation11 + $0x3a0] sm:$0xff] }
 0x2b3   : > { %11765 = vmatpush1.bf16.msra.mxu1 %v11764_v54  ;;  %v2589_v54 = vld [vmem:[#allocation11 + $0x2a8] sm:$0xff] }
 0x2b4   : > { %11767 = vmatprep.subr.bf16.mxu1 %v11766_v55  ;;  %v2591_v55 = vld [vmem:[#allocation11 + $0x2b8] sm:$0xff] }
 0x2b5   : > { %v11806_v57 = vpack.c.bf16 %v2591_v55, %v2589_v54  ;;  %v2708_v55 = vld [vmem:[#allocation11 + $0x3c0] sm:$0xff] }
 0x2b7   : > { %11769 = vmatpush1.bf16.msra.mxu1 %v11768_v63  ;;  %v2593_v63 = vld [vmem:[#allocation11 + $0x2c8] sm:$0xff] }
 0x2b8   : > { %11771 = vmatprep.subr.bf16.mxu1 %v11770_v1  ;;  %v2595_v1 = vld [vmem:[#allocation11 + $0x2d8] sm:$0xff] }
 0x2b9   : > { %v11810_v4 = vpack.c.bf16 %v2595_v1, %v2593_v63  ;;  %v2712_v1 = vld [vmem:[#allocation11 + $0x3e0] sm:$0xff] }
 0x2bb   : > { %11773 = vmatpush1.bf16.msra.mxu1 %v11772_v8  ;;  %v2597_v8 = vld [vmem:[#allocation11 + $0x2e8] sm:$0xff] }
 0x2bc   : > { %11775 = vmatprep.subr.bf16.mxu1 %v11774_v9  ;;  %v2599_v9 = vld [vmem:[#allocation11 + $0x2f8] sm:$0xff] }
 0x2bd   : > { %v11814_v12 = vpack.c.bf16 %v2599_v9, %v2597_v8  ;;  %v2800_v9 = vld [vmem:[#allocation11 + $0x400] sm:$0xff] }
 0x2bf   : > { %11777 = vmatpush1.bf16.msra.mxu1 %v11776_v16  ;;  %v2685_v16 = vld [vmem:[#allocation11 + $0x308] sm:$0xff] }
 0x2c0   : > { %11779 = vmatprep.subr.bf16.mxu1 %v11778_v17  ;;  %v2687_v17 = vld [vmem:[#allocation11 + $0x318] sm:$0xff] }
 0x2c1   : > { %v11818_v20 = vpack.c.bf16 %v2687_v17, %v2685_v16  ;;  %v2804_v17 = vld [vmem:[#allocation11 + $0x420] sm:$0xff] }
 0x2c3   : > { %11781 = vmatpush1.bf16.msra.mxu1 %v11780_v61  ;;  %v2689_v61 = vld [vmem:[#allocation11 + $0x328] sm:$0xff] }
 0x2c4   : > { %11783 = vmatprep.subr.bf16.mxu1 %v11782_v22  ;;  %v2691_v22 = vld [vmem:[#allocation11 + $0x338] sm:$0xff] }
 0x2c5   : > { %v11822_v24 = vpack.c.bf16 %v2691_v22, %v2689_v61  ;;  %v11858_v22 = vpack.c.bf16 %v2811_v21, %v2809_v60  ;;  %v10996_v60 = vld [vmem:[%s14049_s22 + $0x60] sm:$0xff] }
 0x2c7   : > { %11785 = vmatpush1.bf16.msra.mxu1 %v11784_v2  ;;  %v2565_v2 = vld [vmem:[#allocation3 + $0x2] sm:$0xff] }
 0x2c8   : > { %11787 = vmatprep.subr.bf16.mxu1 %v11786_v26  ;;  %v2693_v26 = vld [vmem:[#allocation11 + $0x348] sm:$0xff] }
 0x2c9   : > { %v11826_v7 = vpack.c.bf16 %v2695_v27, %v2693_v26 }
 0x2ca   : > { %2553 = vmatmul.mubr.f32.vlgmr.msra.gmra.mrb[8].mxu1 %v14285_v31  ;;  %v2582_v31 = vld [vmem:[#allocation11 + $0x270] sm:$0xff] }
 0x2cb   : > { %11789 = vmatpush1.bf16.msra.mxu1 %v11788_v30  ;;  %2558 = vmatprep.mubr.f32.mxu1 %v13740_v0  ;;  %v11800_v50 = vpack.c.bf16 %v2582_v31, %v2580_v46  ;;  %v2694_v30 = vld [vmem:[#allocation11 + $0x350] sm:$0xff]  ;;  %v2707_v46 = vld [vmem:[#allocation11 + $0x3b8] sm:$0xff] }
 0x2cc   : > { %11791 = vmatprep.subr.bf16.mxu1 %v11790_v10  ;;  %v2566_v10 = vld [vmem:[#allocation3 + $0xa] sm:$0x3]  ;;  %v11828_v33 = vpack.c.bf16 %v2694_v30, %v2692_v29  ;;  %v2817_v29 = vld [vmem:[#allocation11 + $0x488] sm:$0xff]  ;;  %v2819_v30 = vld [vmem:[#allocation11 + $0x498] sm:$0xff] }
 0x2cd   : > { %v11866_v32 = vpack.c.bf16 %v2819_v30, %v2817_v29  ;;  %v3303_v29 = vld [vmem:[#allocation8 + $0xd0] sm:$0xff]  ;;  %v3306_v30 = vld [vmem:[#allocation8 + $0xe8] sm:$0xff] }
 0x2ce   : > { %2559 = vmatmul.mubr.f32.gmra.mrb[10].mxu1 %v2343_v40 }
 0x2cf   : > { %11793 = vmatpush1.bf16.msra.mxu1 %v11792_v36  ;;  %2664 = vmatprep.mubr.f32.mxu1 %v13740_v0  ;;  %v2696_v36 = vld [vmem:[#allocation11 + $0x360] sm:$0xff] }
 0x2d0   : > { %11795 = vmatprep.subr.bf16.mxu1 %v11794_v18  ;;  %v2698_v18 = vld [vmem:[#allocation11 + $0x370] sm:$0xff] }
 0x2d1   : > { %v11832_v40 = vpack.c.bf16 %v2698_v18, %v2696_v36  ;;  %v2823_v36 = vld [vmem:[#allocation11 + $0x4b8] sm:$0xff] }
 0x2d3   : > { %11797 = vmatpush1.bf16.msra.mxu1 %v11796_v44  ;;  %v2702_v44 = vld [vmem:[#allocation11 + $0x390] sm:$0xff] }
 0x2d4   : > { %11799 = vmatprep.subr.bf16.mxu1 %v11798_v45  ;;  %v2705_v45 = vld [vmem:[#allocation11 + $0x3a8] sm:$0xff]  ;;  %v11836_v31 = vpack.c.bf16 %v2702_v44, %v2700_v42  ;;  %v2827_v42 = vld [vmem:[#allocation11 + $0x4d8] sm:$0xff] }
 0x2d5   : > { %v11838_v47 = vpack.c.bf16 %v2707_v46, %v2705_v45  ;;  %v2824_v46 = vld [vmem:[#allocation11 + $0x4c0] sm:$0xff] }
 0x2d7   : > { %11801 = vmatpush1.bf16.msra.mxu1 %v11800_v50  ;;  %v2706_v50 = vld [vmem:[#allocation11 + $0x3b0] sm:$0xff] }
 0x2d8   : > { %11803 = vmatprep.subr.bf16.mxu1 %v11802_v51  ;;  %v2709_v51 = vld [vmem:[#allocation11 + $0x3c8] sm:$0xff]  ;;  %v11840_v53 = vpack.c.bf16 %v2706_v50, %v2704_v49  ;;  %v2831_v49 = vld [vmem:[#allocation11 + $0x4f8] sm:$0xff] }
 0x2d9   : > { %v11842_v54 = vpack.c.bf16 %v2711_v52, %v2709_v51  ;;  %v2828_v52 = vld [vmem:[#allocation11 + $0x4e0] sm:$0xff] }
 0x2db   : > { %11805 = vmatpush1.bf16.msra.mxu1 %v11804_v56  ;;  %v2710_v56 = vld [vmem:[#allocation11 + $0x3d0] sm:$0xff] }
 0x2dc   : > { %11807 = vmatprep.subr.bf16.mxu1 %v11806_v57  ;;  %v2713_v57 = vld [vmem:[#allocation11 + $0x3e8] sm:$0xff]  ;;  %v11844_v59 = vpack.c.bf16 %v2710_v56, %v2708_v55 }
 0x2dd   : > { %v11846_v63 = vpack.c.bf16 %v2715_v58, %v2713_v57  ;;  %v2797_v55 = vld [vmem:[#allocation3 + $0x4] sm:$0xff]  ;;  %v2955_v56 = vld [vmem:[#allocation8 + $0x8] sm:$0xff]  ;;  %v2957_v57 = vld [vmem:[#allocation8 + $0x18] sm:$0xff] }
 0x2de   : > { %v11890_v58 = vpack.c.bf16 %v2957_v57, %v2955_v56  ;;  %v11021_v56 = vld [vmem:[%s14049_s22 + $0x6b] sm:$0xff] }
 0x2df   : > { %11809 = vmatpush1.bf16.msra.mxu1 %v11808_v3  ;;  %v2714_v3 = vld [vmem:[#allocation11 + $0x3f0] sm:$0xff] }
 0x2e0   : > { %11811 = vmatprep.subr.bf16.mxu1 %v11810_v4  ;;  %v2801_v4 = vld [vmem:[#allocation11 + $0x408] sm:$0xff]  ;;  %v11848_v6 = vpack.c.bf16 %v2714_v3, %v2712_v1  ;;  %v2798_v1 = vld [vmem:[#allocation3 + $0xc] sm:$0x3] }
 0x2e1   : > { %v11850_v8 = vpack.c.bf16 %v2803_v5, %v2801_v4  ;;  %v2959_v3 = vld [vmem:[#allocation8 + $0x28] sm:$0xff]  ;;  %v2961_v4 = vld [vmem:[#allocation8 + $0x38] sm:$0xff] }
 0x2e3   : > { %11813 = vmatpush1.bf16.msra.mxu1 %v11812_v11  ;;  %v2802_v11 = vld [vmem:[#allocation11 + $0x410] sm:$0xff] }
 0x2e4   : > { %11815 = vmatprep.subr.bf16.mxu1 %v11814_v12  ;;  %v2805_v12 = vld [vmem:[#allocation11 + $0x428] sm:$0xff]  ;;  %v11852_v14 = vpack.c.bf16 %v2802_v11, %v2800_v9  ;;  %v3183_v9 = vld [vmem:[#allocation8 + $0x98] sm:$0xff] }
 0x2e5   : > { %v11854_v16 = vpack.c.bf16 %v2807_v13, %v2805_v12  ;;  %v11001_v11 = vld [vmem:[%s14049_s22 + $0x69] sm:$0xff]  ;;  %v11002_v13 = vld [vmem:[%s14049_s22 + $0x71] sm:$0xff] }
 0x2e7   : > { %11817 = vmatpush1.bf16.msra.mxu1 %v11816_v19  ;;  %v2806_v19 = vld [vmem:[#allocation11 + $0x430] sm:$0xff] }
 0x2e8   : > { %11819 = vmatprep.subr.bf16.mxu1 %v11818_v20  ;;  %v2681_v20 = vld [vmem:[#allocation3 + $0x3] sm:$0xff]  ;;  %v11856_v61 = vpack.c.bf16 %v2806_v19, %v2804_v17 }
 0x2e9   : > { %v3182_v17 = vld [vmem:[#allocation8 + $0x90] sm:$0xff]  ;;  %v3185_v19 = vld [vmem:[#allocation8 + $0xa8] sm:$0xff] }
 0x2ea   : > { %2665 = vmatmul.mubr.f32.vlgmr.msra.gmra.mrb[8].mxu1 %v2565_v2  ;;  %v2815_v2 = vld [vmem:[#allocation11 + $0x478] sm:$0xff] }
 0x2eb   : > { %11821 = vmatpush1.bf16.msra.mxu1 %v11820_v23  ;;  %2670 = vmatprep.mubr.f32.mxu1 %v13740_v0  ;;  %v2808_v23 = vld [vmem:[#allocation11 + $0x440] sm:$0xff]  ;;  %v11862_v27 = vpack.c.bf16 %v2815_v2, %v2813_v25 }
 0x2ec   : > { %11823 = vmatprep.subr.bf16.mxu1 %v11822_v24  ;;  %v2810_v24 = vld [vmem:[#allocation11 + $0x450] sm:$0xff]  ;;  %v10997_v25 = vld [vmem:[%s14049_s22 + $0x68] sm:$0xff] }
 0x2ed   : > { %v11860_v26 = vpack.c.bf16 %v2810_v24, %v2808_v23  ;;  %v3186_v23 = vld [vmem:[#allocation8 + $0xb0] sm:$0xff]  ;;  %v3302_v24 = vld [vmem:[#allocation8 + $0xc8] sm:$0xff] }
 0x2ee   : > { %2671 = vmatmul.mubr.f32.gmra.mrb[10].mxu1 %v2566_v10 }
 0x2ef   : > { %11825 = vmatpush1.bf16.msra.mxu1 %v11824_v28  ;;  %2780 = vmatprep.mubr.f32.mxu1 %v13740_v0  ;;  %v2812_v28 = vld [vmem:[#allocation11 + $0x460] sm:$0xff] }
 0x2f0   : > { %11827 = vmatprep.subr.bf16.mxu1 %v11826_v7  ;;  %v2814_v7 = vld [vmem:[#allocation11 + $0x470] sm:$0xff] }
 0x2f1   : > { %v11864_v10 = vpack.c.bf16 %v2814_v7, %v2812_v28  ;;  %v10999_v28 = vld [vmem:[%s14049_s22 + $0x78] sm:$0xf]  ;;  %v3301_v7 = vld [vmem:[#allocation8 + $0xc0] sm:$0xff] }
 0x2f3   : > { %11829 = vmatpush1.bf16.msra.mxu1 %v11828_v33  ;;  %v2818_v33 = vld [vmem:[#allocation11 + $0x490] sm:$0xff] }
 0x2f4   : > { %11831 = vmatprep.subr.bf16.mxu1 %v11830_v35  ;;  %v2821_v35 = vld [vmem:[#allocation11 + $0x4a8] sm:$0xff]  ;;  %v11868_v18 = vpack.c.bf16 %v2818_v33, %v2816_v15  ;;  %v11908_v15 = vpack.c.bf16 %v3303_v29, %v3301_v7  ;;  %v11039_v7 = vld [vmem:[%s14049_s22 + $0x98] sm:$0xf]  ;;  %v3786_v29 = vld [vmem:[#allocation8 + $0x1c0] sm:$0xff] }
 0x2f5   : > { %v11870_v38 = vpack.c.bf16 %v2823_v36, %v2821_v35  ;;  %v3305_v35 = vld [vmem:[#allocation8 + $0xe0] sm:$0xff]  ;;  %v3307_v36 = vld [vmem:[#allocation8 + $0xf0] sm:$0xff] }
 0x2f7   : > { %11833 = vmatpush1.bf16.msra.mxu1 %v11832_v40  ;;  %v2822_v40 = vld [vmem:[#allocation11 + $0x4b0] sm:$0xff] }
 0x2f8   : > { %11835 = vmatprep.subr.bf16.mxu1 %v11834_v41  ;;  %v2825_v41 = vld [vmem:[#allocation11 + $0x4c8] sm:$0xff]  ;;  %v11872_v44 = vpack.c.bf16 %v2822_v40, %v2820_v39  ;;  %v11912_v40 = vpack.c.bf16 %v3307_v36, %v3305_v35  ;;  %v3790_v36 = vld [vmem:[#allocation8 + $0x1e0] sm:$0xff] }
 0x2f9   : > { %v11874_v45 = vpack.c.bf16 %v2827_v42, %v2825_v41  ;;  %v11013_v39 = vld [vmem:[%s14049_s22 + $0x6a] sm:$0xff]  ;;  %v11014_v42 = vld [vmem:[%s14049_s22 + $0x72] sm:$0xff] }
 0x2fb   : > { %11837 = vmatpush1.bf16.msra.mxu1 %v11836_v31  ;;  %v2826_v31 = vld [vmem:[#allocation11 + $0x4d0] sm:$0xff] }
 0x2fc   : > { %11839 = vmatprep.subr.bf16.mxu1 %v11838_v47  ;;  %v2829_v47 = vld [vmem:[#allocation11 + $0x4e8] sm:$0xff]  ;;  %v11876_v50 = vpack.c.bf16 %v2826_v31, %v2824_v46 }
 0x2fd   : > { %v11878_v51 = vpack.c.bf16 %v2831_v49, %v2829_v47  ;;  %v3424_v46 = vld [vmem:[#allocation8 + $0x110] sm:$0xff]  ;;  %v3427_v31 = vld [vmem:[#allocation8 + $0x128] sm:$0xff]  ;;  %v3429_v47 = vld [vmem:[#allocation8 + $0x138] sm:$0xff] }
 0x2fe   : > { %v11020_v49 = vld [vmem:[%s14049_s22 + $0x63] sm:$0xff] }
 0x2ff   : > { %11841 = vmatpush1.bf16.msra.mxu1 %v11840_v53  ;;  %v2830_v53 = vld [vmem:[#allocation11 + $0x4f0] sm:$0xff] }
 0x300   : > { %11843 = vmatprep.subr.bf16.mxu1 %v11842_v54  ;;  %v11880_v54 = vpack.c.bf16 %v2830_v53, %v2828_v52  ;;  %v3426_v52 = vld [vmem:[#allocation8 + $0x120] sm:$0xff]  ;;  %v3428_v53 = vld [vmem:[#allocation8 + $0x130] sm:$0xff] }
 0x301   : > { %v11920_v57 = vpack.c.bf16 %v3428_v53, %v3426_v52  ;;  %v3911_v53 = vld [vmem:[#allocation8 + $0x220] sm:$0xff] }
 0x303   : > { %11845 = vmatpush1.bf16.msra.mxu1 %v11844_v59  ;;  %v2954_v59 = vld [vmem:[#allocation8] sm:$0xff] }
 0x304   : > { %11847 = vmatprep.subr.bf16.mxu1 %v11846_v63  ;;  %v2956_v63 = vld [vmem:[#allocation8 + $0x10] sm:$0xff] }
 0x305   : > { %v11892_v5 = vpack.c.bf16 %v2956_v63, %v2954_v59  ;;  %v11022_v59 = vld [vmem:[%s14049_s22 + $0x73] sm:$0xff]  ;;  %v11023_v63 = vld [vmem:[%s14049_s22 + $0x7b] sm:$0xf] }
 0x307   : > { %11849 = vmatpush1.bf16.msra.mxu1 %v11848_v6  ;;  %v2958_v6 = vld [vmem:[#allocation8 + $0x20] sm:$0xff] }
 0x308   : > { %11851 = vmatprep.subr.bf16.mxu1 %v11850_v8  ;;  %v2960_v8 = vld [vmem:[#allocation8 + $0x30] sm:$0xff] }
 0x309   : > { %v11896_v12 = vpack.c.bf16 %v2960_v8, %v2958_v6  ;;  %v3548_v8 = vld [vmem:[#allocation8 + $0x160] sm:$0xff] }
 0x30a   : > { %2781 = vmatmul.mubr.f32.vlgmr.msra.gmra.mrb[8].mxu1 %v2681_v20  ;;  %v3187_v20 = vld [vmem:[#allocation8 + $0xb8] sm:$0xff] }
 0x30b   : > { %11853 = vmatpush1.bf16.msra.mxu1 %v11852_v14  ;;  %2786 = vmatprep.mubr.f32.mxu1 %v13740_v0  ;;  %v11003_v14 = vld [vmem:[%s14049_s22 + $0x79] sm:$0xf] }
 0x30c   : > { %11855 = vmatprep.subr.bf16.mxu1 %v11854_v16  ;;  %v3180_v16 = vld [vmem:[#allocation8 + $0x80] sm:$0xff] }
 0x30d   : > { %v11900_v21 = vpack.c.bf16 %v3182_v17, %v3180_v16  ;;  %v11031_v16 = vld [vmem:[%s14049_s22 + $0x7c] sm:$0xf]  ;;  %v3665_v17 = vld [vmem:[#allocation8 + $0x180] sm:$0xff] }
 0x30e   : > { %2787 = vmatmul.mubr.f32.gmra.mrb[10].mxu1 %v2682_v62  ;;  %v3304_v62 = vld [vmem:[#allocation8 + $0xd8] sm:$0xff] }
 0x30f   : > { %11857 = vmatpush1.bf16.msra.mxu1 %v11856_v61  ;;  %2896 = vmatprep.mubr.f32.mxu1 %v13740_v0  ;;  %v11902_v61 = vpack.c.bf16 %v3187_v20, %v3185_v19  ;;  %v3667_v19 = vld [vmem:[#allocation8 + $0x190] sm:$0xff]  ;;  %v3670_v20 = vld [vmem:[#allocation8 + $0x1a8] sm:$0xff] }
 0x310   : > { %11859 = vmatprep.subr.bf16.mxu1 %v11858_v22  ;;  %v3184_v22 = vld [vmem:[#allocation8 + $0xa0] sm:$0xff] }
 0x311   : > { %v11904_v2 = vpack.c.bf16 %v3186_v23, %v3184_v22  ;;  %v3669_v23 = vld [vmem:[#allocation8 + $0x1a0] sm:$0xff] }
 0x313   : > { %11861 = vmatpush1.bf16.msra.mxu1 %v11860_v26  ;;  %v11906_v26 = vpack.c.bf16 %v3304_v62, %v3302_v24  ;;  %v3671_v24 = vld [vmem:[#allocation8 + $0x1b0] sm:$0xff]  ;;  %v3787_v62 = vld [vmem:[#allocation8 + $0x1c8] sm:$0xff] }
 0x314   : > { %11863 = vmatprep.subr.bf16.mxu1 %v11862_v27  ;;  %v10998_v27 = vld [vmem:[%s14049_s22 + $0x70] sm:$0xff] }
 0x317   : > { %11865 = vmatpush1.bf16.msra.mxu1 %v11864_v10  ;;  %v3308_v10 = vld [vmem:[#allocation8 + $0xf8] sm:$0xff] }
 0x318   : > { %11867 = vmatprep.subr.bf16.mxu1 %v11866_v32  ;;  %v11012_v32 = vld [vmem:[%s14049_s22 + $0x62] sm:$0xff]  ;;  %v11910_v33 = vpack.c.bf16 %v3308_v10, %v3306_v30  ;;  %v3788_v30 = vld [vmem:[#allocation8 + $0x1d0] sm:$0xff] }
 0x319   : > { %v3791_v10 = vld [vmem:[#allocation8 + $0x1e8] sm:$0xff] }
 0x31b   : > { %11869 = vmatpush1.bf16.msra.mxu1 %v11868_v18  ;;  %v3423_v18 = vld [vmem:[#allocation8 + $0x108] sm:$0xff] }
 0x31c   : > { %11871 = vmatprep.subr.bf16.mxu1 %v11870_v38  ;;  %v3425_v38 = vld [vmem:[#allocation8 + $0x118] sm:$0xff] }
 0x31d   : > { %v11914_v41 = vpack.c.bf16 %v3425_v38, %v3423_v18  ;;  %v3792_v18 = vld [vmem:[#allocation8 + $0x1f0] sm:$0xff]  ;;  %v3908_v38 = vld [vmem:[#allocation8 + $0x208] sm:$0xff] }
 0x31f   : > { %11873 = vmatpush1.bf16.msra.mxu1 %v11872_v44  ;;  %v11015_v44 = vld [vmem:[%s14049_s22 + $0x7a] sm:$0xf] }
 0x320   : > { %11875 = vmatprep.subr.bf16.mxu1 %v11874_v45  ;;  %v3422_v45 = vld [vmem:[#allocation8 + $0x100] sm:$0xff] }
 0x323   : > { %11877 = vmatpush1.bf16.msra.mxu1 %v11876_v50  ;;  %v11916_v50 = vpack.c.bf16 %v3424_v46, %v3422_v45  ;;  %v11047_v45 = vld [vmem:[%s14049_s22 + $0x99] sm:$0xf]  ;;  %v3907_v46 = vld [vmem:[#allocation8 + $0x200] sm:$0xff] }
 0x324   : > { %11879 = vmatprep.subr.bf16.mxu1 %v11878_v51  ;;  %v11918_v51 = vpack.c.bf16 %v3429_v47, %v3427_v31  ;;  %v3909_v31 = vld [vmem:[#allocation8 + $0x210] sm:$0xff]  ;;  %v3912_v47 = vld [vmem:[#allocation8 + $0x228] sm:$0xff] }
 0x327   : > { %11881 = vmatpush1.bf16.msra.mxu1 %v11880_v54  ;;  %v3545_v54 = vld [vmem:[#allocation8 + $0x148] sm:$0xff] }
 0x328   : > { %11883 = vmatprep.subr.bf16.mxu1 %v14124_v34  ;;  %v11000_v34 = vld [vmem:[%s14049_s22 + $0x61] sm:$0xff] }
 0x32a   : > { %2897 = vmatmul.mubr.f32.vlgmr.msra.gmra.mrb[8].mxu1 %v2797_v55  ;;  %v3547_v55 = vld [vmem:[#allocation8 + $0x158] sm:$0xff] }
 0x32b   : > { %11885 = vmatpush1.bf16.msra.mxu1 %v14126_v37  ;;  %2902 = vmatprep.mubr.f32.mxu1 %v13740_v0  ;;  %v11894_v37 = vpack.c.bf16 %v2961_v4, %v2959_v3  ;;  %v3546_v3 = vld [vmem:[#allocation8 + $0x150] sm:$0xff]  ;;  %v3549_v4 = vld [vmem:[#allocation8 + $0x168] sm:$0xff] }
 0x32c   : > { %11887 = vmatprep.subr.bf16.mxu1 %v14133_v43  ;;  %v3181_v43 = vld [vmem:[#allocation8 + $0x88] sm:$0xff] }
 0x32e   : > { %2903 = vmatmul.mubr.f32.gmra.mrb[10].mxu1 %v2798_v1  ;;  %v3544_v1 = vld [vmem:[#allocation8 + $0x140] sm:$0xff] }
 0x32f   : > { %11889 = vmatpush1.bf16.msra.mxu1 %v14135_v48  ;;  %3050 = vmatprep.mubr.f32.mxu1 %v13740_v0  ;;  %v11898_v48 = vpack.c.bf16 %v3183_v9, %v3181_v43  ;;  %v3550_v43 = vld [vmem:[#allocation8 + $0x170] sm:$0xff]  ;;  %v3666_v9 = vld [vmem:[#allocation8 + $0x188] sm:$0xff] }
 0x330   : > { %11891 = vmatprep.subr.bf16.mxu1 %v11890_v58  ;;  %v11922_v58 = vpack.c.bf16 %v3547_v55, %v3545_v54  ;;  %v3913_v54 = vld [vmem:[#allocation8 + $0x230] sm:$0xff]  ;;  %v4029_v55 = vld [vmem:[#allocation8 + $0x248] sm:$0xff] }
 0x332   : > { %11004 = vmatmul.mubr.msk.f32.vlgmr.msra.gmra.mrb[12].mxu1 %vm517_vm0, %v11000_v34  ;;  %v3551_v34 = vld [vmem:[#allocation8 + $0x178] sm:$0xff] }
 0x333   : > { %11893 = vmatpush1.bf16.msra.mxu1 %v11892_v5  ;;  %3056 = vmatprep.mubr.f32.mxu1 %v13740_v0  ;;  %v11028_v5 = vld [vmem:[%s14049_s22 + $0x64] sm:$0xff]  ;;  %v11926_v6 = vpack.c.bf16 %v3551_v34, %v3549_v4  ;;  %v4030_v4 = vld [vmem:[#allocation8 + $0x250] sm:$0xff] }
 0x334   : > { %11895 = vmatprep.subr.bf16.mxu1 %v11894_v37  ;;  %v11924_v37 = vpack.c.bf16 %v3546_v3, %v3544_v1  ;;  %v11055_v1 = vld [vmem:[%s14049_s22 + $0x9a] sm:$0xf]  ;;  %v4028_v3 = vld [vmem:[#allocation8 + $0x240] sm:$0xff]  ;;  %v4033_v34 = vld [vmem:[#allocation8 + $0x268] sm:$0xff] }
 0x336   : > { %11005 = vmatmul.mubr.msk.f32.gmra.mrb[14].mxu1 %vm517_vm0, %v11001_v11  ;;  %v3668_v11 = vld [vmem:[#allocation8 + $0x198] sm:$0xff] }
 0x337   : > { %3062 = vmatprep.mubr.f32.mxu1 %v13740_v0  ;;  %11897 = vmatpush1.bf16.msra.mxu1 %v11896_v12  ;;  %v11029_v12 = vld [vmem:[%s14049_s22 + $0x6c] sm:$0xff] }
 0x338   : > { %11899 = vmatprep.subr.bf16.mxu1 %v11898_v48  ;;  %v11928_v48 = vpack.c.bf16 %v3550_v43, %v3548_v8  ;;  %v4032_v43 = vld [vmem:[#allocation8 + $0x260] sm:$0xff] }
 0x33a   : > { %11006 = vmatmul.mubr.msk.f32.gmra.mrb[16].mxu1 %vm517_vm0, %v11002_v13  ;;  %v11930_v13 = vpack.c.bf16 %v3668_v11, %v3666_v9  ;;  %v4034_v9 = vld [vmem:[#allocation8 + $0x270] sm:$0xff]  ;;  %v4151_v11 = vld [vmem:[#allocation8 + $0x288] sm:$0xff] }
 0x33b   : > { %3068 = vmatprep.mubr.f32.mxu1 %v13740_v0 }
 0x33e   : > { %11007 = vmatmul.mubr.msk.f32.gmra.mrb[18].mxu1 %vm517_vm0, %v11003_v14  ;;  %v11030_v14 = vld [vmem:[%s14049_s22 + $0x74] sm:$0xff] }
 0x33f   : > { %3151 = vmatprep.mubr.f32.mxu1 %v13740_v0 }
 0x342   : > { %11008 = vmatmul.mubr.msk.f32.vlgmr.msra.gmra.mrb[12].mxu1 %vm517_vm0, %v10996_v60  ;;  %v3672_v60 = vld [vmem:[#allocation8 + $0x1b8] sm:$0xff] }
 0x343   : > { %11901 = vmatpush1.bf16.msra.mxu1 %v11900_v21  ;;  %3157 = vmatprep.mubr.f32.mxu1 %v13740_v0  ;;  %v11036_v21 = vld [vmem:[%s14049_s22 + $0x80] sm:$0xff]  ;;  %v11934_v22 = vpack.c.bf16 %v3672_v60, %v3670_v20  ;;  %v4152_v20 = vld [vmem:[#allocation8 + $0x290] sm:$0xff]  ;;  %v4155_v60 = vld [vmem:[#allocation8 + $0x2a8] sm:$0xff] }
 0x344   : > { %11903 = vmatprep.subr.bf16.mxu1 %v11902_v61  ;;  %v11932_v61 = vpack.c.bf16 %v3667_v19, %v3665_v17  ;;  %v11063_v17 = vld [vmem:[%s14049_s22 + $0x9b] sm:$0xf]  ;;  %v4150_v19 = vld [vmem:[#allocation8 + $0x280] sm:$0xff] }
 0x346   : > { %11009 = vmatmul.mubr.msk.f32.gmra.mrb[14].mxu1 %vm517_vm0, %v10997_v25  ;;  %v3789_v25 = vld [vmem:[#allocation8 + $0x1d8] sm:$0xff] }
 0x347   : > { %3163 = vmatprep.mubr.f32.mxu1 %v13740_v0  ;;  %11905 = vmatpush1.bf16.msra.mxu1 %v11904_v2  ;;  %v11037_v2 = vld [vmem:[%s14049_s22 + $0x88] sm:$0xff] }
 0x348   : > { %11907 = vmatprep.subr.bf16.mxu1 %v11906_v26  ;;  %v11936_v26 = vpack.c.bf16 %v3671_v24, %v3669_v23  ;;  %v4154_v24 = vld [vmem:[#allocation8 + $0x2a0] sm:$0xff] }
 0x34a   : > { %11010 = vmatmul.mubr.msk.f32.gmra.mrb[16].mxu1 %vm517_vm0, %v10998_v27  ;;  %v11938_v27 = vpack.c.bf16 %v3789_v25, %v3787_v62  ;;  %v4156_v62 = vld [vmem:[#allocation8 + $0x2b0] sm:$0xff]  ;;  %v4272_v25 = vld [vmem:[#allocation8 + $0x2c8] sm:$0xff] }
 0x34b   : > { %3169 = vmatprep.mubr.f32.mxu1 %v13740_v0 }
 0x34e   : > { %11011 = vmatmul.mubr.msk.f32.gmra.mrb[18].mxu1 %vm517_vm0, %v10999_v28  ;;  %v11038_v28 = vld [vmem:[%s14049_s22 + $0x90] sm:$0xff] }
 0x34f   : > { %3264 = vmatprep.mubr.f32.mxu1 %v13740_v0 }
 0x352   : > { %11016 = vmatmul.mubr.msk.f32.vlgmr.msra.gmra.mrb[12].mxu1 %vm517_vm0, %v11012_v32  ;;  %v3793_v32 = vld [vmem:[#allocation8 + $0x1f8] sm:$0xff] }
 0x353   : > { %11909 = vmatpush1.bf16.msra.mxu1 %v11908_v15  ;;  %3270 = vmatprep.mubr.f32.mxu1 %v13740_v0  ;;  %v11044_v15 = vld [vmem:[%s14049_s22 + $0x81] sm:$0xff]  ;;  %v11942_v35 = vpack.c.bf16 %v3793_v32, %v3791_v10  ;;  %v4273_v10 = vld [vmem:[#allocation8 + $0x2d0] sm:$0xff] }
 0x354   : > { %11911 = vmatprep.subr.bf16.mxu1 %v11910_v33  ;;  %v11940_v33 = vpack.c.bf16 %v3788_v30, %v3786_v29  ;;  %v11071_v29 = vld [vmem:[%s14049_s22 + $0x9c] sm:$0xf]  ;;  %v4271_v30 = vld [vmem:[#allocation8 + $0x2c0] sm:$0xff]  ;;  %v4276_v32 = vld [vmem:[#allocation8 + $0x2e8] sm:$0xff] }
 0x356   : > { %11017 = vmatmul.mubr.msk.f32.gmra.mrb[14].mxu1 %vm517_vm0, %v11013_v39  ;;  %v3910_v39 = vld [vmem:[#allocation8 + $0x218] sm:$0xff] }
 0x357   : > { %3276 = vmatprep.mubr.f32.mxu1 %v13740_v0  ;;  %11913 = vmatpush1.bf16.msra.mxu1 %v11912_v40  ;;  %v11045_v40 = vld [vmem:[%s14049_s22 + $0x89] sm:$0xff] }
 0x358   : > { %11915 = vmatprep.subr.bf16.mxu1 %v11914_v41  ;;  %v11944_v41 = vpack.c.bf16 %v3792_v18, %v3790_v36  ;;  %v4275_v18 = vld [vmem:[#allocation8 + $0x2e0] sm:$0xff] }
 0x35a   : > { %11018 = vmatmul.mubr.msk.f32.gmra.mrb[16].mxu1 %vm517_vm0, %v11014_v42  ;;  %v11946_v42 = vpack.c.bf16 %v3910_v39, %v3908_v38  ;;  %v4277_v38 = vld [vmem:[#allocation8 + $0x2f0] sm:$0xff]  ;;  %v4393_v39 = vld [vmem:[#allocation8 + $0x308] sm:$0xff] }
 0x35b   : > { %3282 = vmatprep.mubr.f32.mxu1 %v13740_v0 }
 0x35e   : > { %11019 = vmatmul.mubr.msk.f32.gmra.mrb[18].mxu1 %vm517_vm0, %v11015_v44  ;;  %v11046_v44 = vld [vmem:[%s14049_s22 + $0x91] sm:$0xff] }
 0x35f   : > { %3385 = vmatprep.mubr.f32.mxu1 %v13740_v0 }
 0x362   : > { %11024 = vmatmul.mubr.msk.f32.vlgmr.msra.gmra.mrb[12].mxu1 %vm517_vm0, %v11020_v49  ;;  %v3914_v49 = vld [vmem:[#allocation8 + $0x238] sm:$0xff] }
 0x363   : > { %11917 = vmatpush1.bf16.msra.mxu1 %v11916_v50  ;;  %3391 = vmatprep.mubr.f32.mxu1 %v13740_v0  ;;  %v11052_v50 = vld [vmem:[%s14049_s22 + $0x82] sm:$0xff]  ;;  %v11950_v52 = vpack.c.bf16 %v3914_v49, %v3912_v47  ;;  %v4394_v47 = vld [vmem:[#allocation8 + $0x310] sm:$0xff] }
 0x364   : > { %11919 = vmatprep.subr.bf16.mxu1 %v11918_v51  ;;  %v11948_v51 = vpack.c.bf16 %v3909_v31, %v3907_v46  ;;  %v11079_v46 = vld [vmem:[%s14049_s22 + $0xb8] sm:$0xf]  ;;  %v4392_v31 = vld [vmem:[#allocation8 + $0x300] sm:$0xff]  ;;  %v4397_v49 = vld [vmem:[#allocation8 + $0x328] sm:$0xff] }
 0x366   : > { %11025 = vmatmul.mubr.msk.f32.gmra.mrb[14].mxu1 %vm517_vm0, %v11021_v56  ;;  %v4031_v56 = vld [vmem:[#allocation8 + $0x258] sm:$0xff] }
 0x367   : > { %3397 = vmatprep.mubr.f32.mxu1 %v13740_v0  ;;  %11921 = vmatpush1.bf16.msra.mxu1 %v11920_v57  ;;  %v11053_v57 = vld [vmem:[%s14049_s22 + $0x8a] sm:$0xff] }
 0x368   : > { %11923 = vmatprep.subr.bf16.mxu1 %v11922_v58  ;;  %v11952_v58 = vpack.c.bf16 %v3913_v54, %v3911_v53  ;;  %v4396_v54 = vld [vmem:[#allocation8 + $0x320] sm:$0xff] }
 0x36a   : > { %11026 = vmatmul.mubr.msk.f32.gmra.mrb[16].mxu1 %vm517_vm0, %v11022_v59  ;;  %v11954_v59 = vpack.c.bf16 %v4031_v56, %v4029_v55  ;;  %v4398_v55 = vld [vmem:[#allocation8 + $0x330] sm:$0xff]  ;;  %v4514_v56 = vld [vmem:[#allocation8 + $0x348] sm:$0xff] }
 0x36b   : > { %3403 = vmatprep.mubr.f32.mxu1 %v13740_v0 }
 0x36e   : > { %11027 = vmatmul.mubr.msk.f32.gmra.mrb[18].mxu1 %vm517_vm0, %v11023_v63  ;;  %v11054_v63 = vld [vmem:[%s14049_s22 + $0x92] sm:$0xff] }
 0x36f   : > { %3506 = vmatprep.mubr.f32.mxu1 %v13740_v0 }
 0x372   : > { %11032 = vmatmul.mubr.msk.f32.vlgmr.msra.gmra.mrb[12].mxu1 %vm517_vm0, %v11028_v5  ;;  %v4035_v5 = vld [vmem:[#allocation8 + $0x278] sm:$0xff] }
 0x373   : > { %11925 = vmatpush1.bf16.msra.mxu1 %v11924_v37  ;;  %3512 = vmatprep.mubr.f32.mxu1 %v13740_v0  ;;  %v11060_v37 = vld [vmem:[%s14049_s22 + $0x83] sm:$0xff]  ;;  %v11958_v8 = vpack.c.bf16 %v4035_v5, %v4033_v34  ;;  %v4515_v34 = vld [vmem:[#allocation8 + $0x350] sm:$0xff] }
 0x374   : > { %11927 = vmatprep.subr.bf16.mxu1 %v11926_v6  ;;  %v11956_v6 = vpack.c.bf16 %v4030_v4, %v4028_v3  ;;  %v11087_v3 = vld [vmem:[%s14049_s22 + $0xb9] sm:$0xf]  ;;  %v4513_v4 = vld [vmem:[#allocation8 + $0x340] sm:$0xff]  ;;  %v4518_v5 = vld [vmem:[#allocation8 + $0x368] sm:$0xff] }
 0x376   : > { %11033 = vmatmul.mubr.msk.f32.gmra.mrb[14].mxu1 %vm517_vm0, %v11029_v12  ;;  %v4153_v12 = vld [vmem:[#allocation8 + $0x298] sm:$0xff] }
 0x377   : > { %3518 = vmatprep.mubr.f32.mxu1 %v13740_v0  ;;  %11929 = vmatpush1.bf16.msra.mxu1 %v11928_v48  ;;  %v11061_v48 = vld [vmem:[%s14049_s22 + $0x8b] sm:$0xff] }
 0x378   : > { %11931 = vmatprep.subr.bf16.mxu1 %v11930_v13  ;;  %v11960_v13 = vpack.c.bf16 %v4034_v9, %v4032_v43  ;;  %v4517_v9 = vld [vmem:[#allocation8 + $0x360] sm:$0xff] }
 0x37a   : > { %11034 = vmatmul.mubr.msk.f32.gmra.mrb[16].mxu1 %vm517_vm0, %v11030_v14  ;;  %v11962_v14 = vpack.c.bf16 %v4153_v12, %v4151_v11  ;;  %v4519_v11 = vld [vmem:[#allocation8 + $0x370] sm:$0xff]  ;;  %v4635_v12 = vld [vmem:[#allocation8 + $0x388] sm:$0xff] }
 0x37b   : > { %3524 = vmatprep.mubr.f32.mxu1 %v13740_v0 }
 0x37e   : > { %11035 = vmatmul.mubr.msk.f32.gmra.mrb[18].mxu1 %vm517_vm0, %v11031_v16  ;;  %v11062_v16 = vld [vmem:[%s14049_s22 + $0x93] sm:$0xff] }
 0x37f   : > { %3628 = vmatprep.mubr.f32.mxu1 %v13740_v0 }
 0x382   : > { %11040 = vmatmul.mubr.msk.f32.vlgmr.msra.gmra.mrb[12].mxu1 %vm517_vm0, %v11036_v21  ;;  %v4157_v21 = vld [vmem:[#allocation8 + $0x2b8] sm:$0xff] }
 0x383   : > { %11933 = vmatpush1.bf16.msra.mxu1 %v11932_v61  ;;  %3634 = vmatprep.mubr.f32.mxu1 %v13740_v0  ;;  %v11068_v61 = vld [vmem:[%s14049_s22 + $0x84] sm:$0xff]  ;;  %v11966_v23 = vpack.c.bf16 %v4157_v21, %v4155_v60  ;;  %v4636_v60 = vld [vmem:[#allocation8 + $0x390] sm:$0xff] }
 0x384   : > { %11935 = vmatprep.subr.bf16.mxu1 %v11934_v22  ;;  %v11964_v22 = vpack.c.bf16 %v4152_v20, %v4150_v19  ;;  %v11095_v19 = vld [vmem:[%s14049_s22 + $0xba] sm:$0xf]  ;;  %v4634_v20 = vld [vmem:[#allocation8 + $0x380] sm:$0xff] }
 0x386   : > { %11041 = vmatmul.mubr.msk.f32.gmra.mrb[14].mxu1 %vm517_vm0, %v11037_v2  ;;  %v4274_v2 = vld [vmem:[#allocation8 + $0x2d8] sm:$0xff] }
 0x387   : > { %3640 = vmatprep.mubr.f32.mxu1 %v13740_v0  ;;  %11937 = vmatpush1.bf16.msra.mxu1 %v11936_v26  ;;  %v11069_v26 = vld [vmem:[%s14049_s22 + $0x8c] sm:$0xff] }
 0x388   : > { %11939 = vmatprep.subr.bf16.mxu1 %v11938_v27  ;;  %v11968_v27 = vpack.c.bf16 %v4156_v62, %v4154_v24  ;;  %v10992_v24 = vld [vmem:[%s14956_s4] ss:$0 sm:$0xff] }
 0x38a   : > { %11042 = vmatmul.mubr.msk.f32.gmra.mrb[16].mxu1 %vm517_vm0, %v11038_v28  ;;  %v11970_v28 = vpack.c.bf16 %v4274_v2, %v4272_v25  ;;  %v11100_v25 = vld [vmem:[%s14049_s22 + $0xa3] sm:$0xff]  ;;  %v11996_v2 = vpack.c.bf16 %v4636_v60, %v4634_v20  ;;  %v4836_v20 = vld [vmem:[#allocation11 + $0x190] sm:$0xff] }
 0x38b   : > { %3646 = vmatprep.mubr.f32.mxu1 %v13740_v0 }
 0x38e   : > { %11043 = vmatmul.mubr.msk.f32.gmra.mrb[18].mxu1 %vm517_vm0, %v11039_v7  ;;  %v11070_v7 = vld [vmem:[%s14049_s22 + $0x94] sm:$0xff] }
 0x38f   : > { %3749 = vmatprep.mubr.f32.mxu1 %v13740_v0 }
 0x392   : > { %11048 = vmatmul.mubr.msk.f32.vlgmr.msra.gmra.mrb[12].mxu1 %vm517_vm0, %v11044_v15  ;;  %v4278_v15 = vld [vmem:[#allocation8 + $0x2f8] sm:$0xff] }
 0x393   : > { %11941 = vmatpush1.bf16.msra.mxu1 %v11940_v33  ;;  %3755 = vmatprep.mubr.f32.mxu1 %v13740_v0  ;;  %v11076_v33 = vld [vmem:[%s14049_s22 + $0xa0] sm:$0xff]  ;;  %v11974_v36 = vpack.c.bf16 %v4278_v15, %v4276_v32  ;;  %v11101_v15 = vld [vmem:[%s14049_s22 + $0xab] sm:$0xff] }
 0x394   : > { %11943 = vmatprep.subr.bf16.mxu1 %v11942_v35  ;;  %v11972_v35 = vpack.c.bf16 %v4273_v10, %v4271_v30 }
 0x396   : > { %11049 = vmatmul.mubr.msk.f32.gmra.mrb[14].mxu1 %vm517_vm0, %v11045_v40  ;;  %v4395_v40 = vld [vmem:[#allocation8 + $0x318] sm:$0xff] }
 0x397   : > { %3761 = vmatprep.mubr.f32.mxu1 %v13740_v0  ;;  %11945 = vmatpush1.bf16.msra.mxu1 %v11944_v41  ;;  %v11077_v41 = vld [vmem:[%s14049_s22 + $0xa8] sm:$0xff] }
 0x398   : > { %11947 = vmatprep.subr.bf16.mxu1 %v11946_v42  ;;  %v11976_v42 = vpack.c.bf16 %v4277_v38, %v4275_v18  ;;  %v11102_v18 = vld [vmem:[%s14049_s22 + $0xb3] sm:$0xff]  ;;  %v11103_v38 = vld [vmem:[%s14049_s22 + $0xbb] sm:$0xf] }
 0x39a   : > { %11050 = vmatmul.mubr.msk.f32.gmra.mrb[16].mxu1 %vm517_vm0, %v11046_v44  ;;  %v11978_v44 = vpack.c.bf16 %v4395_v40, %v4393_v39  ;;  %v11108_v39 = vld [vmem:[%s14049_s22 + $0xa4] sm:$0xff] }
 0x39b   : > { %3767 = vmatprep.mubr.f32.mxu1 %v13740_v0 }
 0x39e   : > { %11051 = vmatmul.mubr.msk.f32.gmra.mrb[18].mxu1 %vm517_vm0, %v11047_v45  ;;  %v11078_v45 = vld [vmem:[%s14049_s22 + $0xb0] sm:$0xff] }
 0x39f   : > { %3870 = vmatprep.mubr.f32.mxu1 %v13740_v0 }
 0x3a2   : > { %11056 = vmatmul.mubr.msk.f32.vlgmr.msra.gmra.mrb[12].mxu1 %vm517_vm0, %v11052_v50  ;;  %v4399_v50 = vld [vmem:[#allocation8 + $0x338] sm:$0xff] }
 0x3a3   : > { %11949 = vmatpush1.bf16.msra.mxu1 %v11948_v51  ;;  %3876 = vmatprep.mubr.f32.mxu1 %v13740_v0  ;;  %v11084_v51 = vld [vmem:[%s14049_s22 + $0xa1] sm:$0xff]  ;;  %v11982_v53 = vpack.c.bf16 %v4399_v50, %v4397_v49  ;;  %v11110_v49 = vld [vmem:[%s14049_s22 + $0xb4] sm:$0xff]  ;;  %v11111_v50 = vld [vmem:[%s14049_s22 + $0xbc] sm:$0xf] }
 0x3a4   : > { %11951 = vmatprep.subr.bf16.mxu1 %v11950_v52  ;;  %v11980_v52 = vpack.c.bf16 %v4394_v47, %v4392_v31 }
 0x3a6   : > { %11057 = vmatmul.mubr.msk.f32.gmra.mrb[14].mxu1 %vm517_vm0, %v11053_v57  ;;  %v4516_v57 = vld [vmem:[#allocation8 + $0x358] sm:$0xff] }
 0x3a7   : > { %3882 = vmatprep.mubr.f32.mxu1 %v13740_v0  ;;  %11953 = vmatpush1.bf16.msra.mxu1 %v11952_v58  ;;  %v11085_v58 = vld [vmem:[%s14049_s22 + $0xa9] sm:$0xff] }
 0x3a8   : > { %11955 = vmatprep.subr.bf16.mxu1 %v11954_v59  ;;  %v11984_v59 = vpack.c.bf16 %v4398_v55, %v4396_v54  ;;  %v4818_v54 = vld [vmem:[#allocation11 + $0x100] sm:$0xff]  ;;  %v4820_v55 = vld [vmem:[#allocation11 + $0x110] sm:$0xff] }
 0x3aa   : > { %11058 = vmatmul.mubr.msk.f32.gmra.mrb[16].mxu1 %vm517_vm0, %v11054_v63  ;;  %v11986_v63 = vpack.c.bf16 %v4516_v57, %v4514_v56  ;;  %v12004_v56 = vpack.c.bf16 %v4820_v55, %v4818_v54  ;;  %v4823_v57 = vld [vmem:[#allocation11 + $0x128] sm:$0xff] }
 0x3ab   : > { %3888 = vmatprep.mubr.f32.mxu1 %v13740_v0 }
 0x3ae   : > { %11059 = vmatmul.mubr.msk.f32.gmra.mrb[18].mxu1 %vm517_vm0, %v11055_v1  ;;  %v11086_v1 = vld [vmem:[%s14049_s22 + $0xb1] sm:$0xff] }
 0x3af   : > { %3991 = vmatprep.mubr.f32.mxu1 %v13740_v0 }
 0x3b2   : > { %11064 = vmatmul.mubr.msk.f32.vlgmr.msra.gmra.mrb[12].mxu1 %vm517_vm0, %v11060_v37  ;;  %v4520_v37 = vld [vmem:[#allocation8 + $0x378] sm:$0xff] }
 0x3b3   : > { %11957 = vmatpush1.bf16.msra.mxu1 %v11956_v6  ;;  %3997 = vmatprep.mubr.f32.mxu1 %v13740_v0  ;;  %v11092_v6 = vld [vmem:[%s14049_s22 + $0xa2] sm:$0xff]  ;;  %v11990_v43 = vpack.c.bf16 %v4520_v37, %v4518_v5 }
 0x3b4   : > { %11959 = vmatprep.subr.bf16.mxu1 %v11958_v8  ;;  %v11988_v8 = vpack.c.bf16 %v4515_v34, %v4513_v4  ;;  %v4827_v4 = vld [vmem:[#allocation11 + $0x148] sm:$0xff]  ;;  %v4829_v34 = vld [vmem:[#allocation11 + $0x158] sm:$0xff]  ;;  %v4826_v37 = vld [vmem:[#allocation11 + $0x140] sm:$0xff] }
 0x3b5   : > { %v12010_v5 = vpack.c.bf16 %v4829_v34, %v4827_v4 }
 0x3b6   : > { %11065 = vmatmul.mubr.msk.f32.gmra.mrb[14].mxu1 %vm517_vm0, %v11061_v48  ;;  %v4637_v48 = vld [vmem:[#allocation8 + $0x398] sm:$0xff] }
 0x3b7   : > { %4003 = vmatprep.mubr.f32.mxu1 %v13740_v0  ;;  %11961 = vmatpush1.bf16.msra.mxu1 %v11960_v13  ;;  %v11093_v13 = vld [vmem:[%s14049_s22 + $0xaa] sm:$0xff] }
 0x3b8   : > { %11963 = vmatprep.subr.bf16.mxu1 %v11962_v14  ;;  %v11992_v14 = vpack.c.bf16 %v4519_v11, %v4517_v9  ;;  %v4833_v9 = vld [vmem:[#allocation11 + $0x178] sm:$0xff] }
 0x3ba   : > { %11066 = vmatmul.mubr.msk.f32.gmra.mrb[16].mxu1 %vm517_vm0, %v11062_v16  ;;  %v11994_v16 = vpack.c.bf16 %v4637_v48, %v4635_v12  ;;  %v4830_v12 = vld [vmem:[#allocation11 + $0x160] sm:$0xff]  ;;  %v4832_v48 = vld [vmem:[#allocation11 + $0x170] sm:$0xff] }
 0x3bb   : > { %4009 = vmatprep.mubr.f32.mxu1 %v13740_v0 }
 0x3be   : > { %11067 = vmatmul.mubr.msk.f32.gmra.mrb[18].mxu1 %vm517_vm0, %v11063_v17  ;;  %v11094_v17 = vld [vmem:[%s14049_s22 + $0xb2] sm:$0xff] }
 0x3bf   : > { %4112 = vmatprep.mubr.f32.mxu1 %v13740_v0 }
 0x3c2   : > { %11072 = vmatmul.mubr.msk.f32.vlgmr.msra.gmra.mrb[12].mxu1 %vm517_vm0, %v11068_v61  ;;  %v4639_v61 = vld [vmem:[#allocation8 + $0x3a8] sm:$0xff] }
 0x3c3   : > { %11965 = vmatpush1.bf16.msra.mxu1 %v11964_v22  ;;  %4118 = vmatprep.mubr.f32.mxu1 %v13740_v0  ;;  %v4641_v22 = vld [vmem:[#allocation8 + $0x3b8] sm:$0xff] }
 0x3c4   : > { %11967 = vmatprep.subr.bf16.mxu1 %v11966_v23 }
 0x3c6   : > { %11073 = vmatmul.mubr.msk.f32.gmra.mrb[14].mxu1 %vm517_vm0, %v11069_v26  ;;  %v11998_v26 = vpack.c.bf16 %v4641_v22, %v4639_v61  ;;  %v4841_v61 = vld [vmem:[#allocation11 + $0x1b8] sm:$0xff] }
 0x3c7   : > { %4124 = vmatprep.mubr.f32.mxu1 %v13740_v0  ;;  %11969 = vmatpush1.bf16.msra.mxu1 %v11968_v27  ;;  %v4638_v27 = vld [vmem:[#allocation8 + $0x3a0] sm:$0xff] }
 0x3c8   : > { %11971 = vmatprep.subr.bf16.mxu1 %v11970_v28  ;;  %v4640_v28 = vld [vmem:[#allocation8 + $0x3b0] sm:$0xff] }
 0x3ca   : > { %11074 = vmatmul.mubr.msk.f32.gmra.mrb[16].mxu1 %vm517_vm0, %v11070_v7 }
 0x3cb   : > { %4130 = vmatprep.mubr.f32.mxu1 %v13740_v0 }
 0x3ce   : > { %11075 = vmatmul.mubr.msk.f32.gmra.mrb[18].mxu1 %vm517_vm0, %v11071_v29 }
 0x3cf   : > { %4234 = vmatprep.mubr.f32.mxu1 %v13740_v0 }
 0x3d2   : > { %11080 = vmatmul.mubr.msk.f32.vlgmr.msra.gmra.mrb[12].mxu1 %vm517_vm0, %v11076_v33  ;;  %v12000_v33 = vpack.c.bf16 %v4640_v28, %v4638_v27  ;;  %v4842_v27 = vld [vmem:[#allocation11 + $0x1c0] sm:$0xff]  ;;  %v4844_v28 = vld [vmem:[#allocation11 + $0x1d0] sm:$0xff] }
 0x3d3   : > { %11973 = vmatpush1.bf16.msra.mxu1 %v11972_v35  ;;  %4240 = vmatprep.mubr.f32.mxu1 %v13740_v0 }
 0x3d4   : > { %11975 = vmatprep.subr.bf16.mxu1 %v11974_v36 }
 0x3d6   : > { %11081 = vmatmul.mubr.msk.f32.gmra.mrb[14].mxu1 %vm517_vm0, %v11077_v41 }
 0x3d7   : > { %4246 = vmatprep.mubr.f32.mxu1 %v13740_v0  ;;  %11977 = vmatpush1.bf16.msra.mxu1 %v11976_v42 }
 0x3d8   : > { %11979 = vmatprep.subr.bf16.mxu1 %v11978_v44  ;;  %v11109_v44 = vld [vmem:[%s14049_s22 + $0xac] sm:$0xff] }
 0x3da   : > { %11082 = vmatmul.mubr.msk.f32.gmra.mrb[16].mxu1 %vm517_vm0, %v11078_v45 }
 0x3db   : > { %4252 = vmatprep.mubr.f32.mxu1 %v13740_v0 }
 0x3de   : > { %11083 = vmatmul.mubr.msk.f32.gmra.mrb[18].mxu1 %vm517_vm0, %v11079_v46 }
 0x3df   : > { %4355 = vmatprep.mubr.f32.mxu1 %v13740_v0 }
 0x3e2   : > { %11088 = vmatmul.mubr.msk.f32.vlgmr.msra.gmra.mrb[12].mxu1 %vm517_vm0, %v11084_v51  ;;  %v4819_v51 = vld [vmem:[#allocation11 + $0x108] sm:$0xff] }
 0x3e3   : > { %11981 = vmatpush1.bf16.msra.mxu1 %v11980_v52  ;;  %4361 = vmatprep.mubr.f32.mxu1 %v13740_v0  ;;  %v4821_v52 = vld [vmem:[#allocation11 + $0x118] sm:$0xff] }
 0x3e4   : > { %11983 = vmatprep.subr.bf16.mxu1 %v11982_v53  ;;  %v12002_v53 = vpack.c.bf16 %v4821_v52, %v4819_v51 }
 0x3e6   : > { %11089 = vmatmul.mubr.msk.f32.gmra.mrb[14].mxu1 %vm517_vm0, %v11085_v58  ;;  %12003 = vmatprep.subr.bf16.mxu0 %v12002_v53  ;;  %v4825_v58 = vld [vmem:[#allocation11 + $0x138] sm:$0xff] }
 0x3e7   : > { %4367 = vmatprep.mubr.f32.mxu1 %v13740_v0  ;;  %11985 = vmatpush1.bf16.msra.mxu1 %v11984_v59  ;;  %v12006_v59 = vpack.c.bf16 %v4825_v58, %v4823_v57 }
 0x3e8   : > { %11987 = vmatprep.subr.bf16.mxu1 %v11986_v63  ;;  %12005 = vmatpush1.bf16.msra.mxu0 %v12004_v56  ;;  %v4822_v63 = vld [vmem:[#allocation11 + $0x120] sm:$0xff] }
 0x3e9   : > { %12007 = vmatprep.subr.bf16.mxu0 %v12006_v59 }
 0x3ea   : > { %11090 = vmatmul.mubr.msk.f32.gmra.mrb[16].mxu1 %vm517_vm0, %v11086_v1  ;;  %v4824_v1 = vld [vmem:[#allocation11 + $0x130] sm:$0xff] }
 0x3eb   : > { %4373 = vmatprep.mubr.f32.mxu1 %v13740_v0 }
 0x3ee   : > { %11091 = vmatmul.mubr.msk.f32.gmra.mrb[18].mxu1 %vm517_vm0, %v11087_v3  ;;  %v12008_v3 = vpack.c.bf16 %v4824_v1, %v4822_v63 }
 0x3ef   : > { %4476 = vmatprep.mubr.f32.mxu1 %v13740_v0 }
 0x3f0   : > { %12009 = vmatpush1.bf16.msra.mxu0 %v12008_v3 }
 0x3f1   : > { %12011 = vmatprep.subr.bf16.mxu0 %v12010_v5 }
 0x3f2   : > { %11096 = vmatmul.mubr.msk.f32.vlgmr.msra.gmra.mrb[12].mxu1 %vm517_vm0, %v11092_v6  ;;  %v4828_v6 = vld [vmem:[#allocation11 + $0x150] sm:$0xff] }
 0x3f3   : > { %11989 = vmatpush1.bf16.msra.mxu1 %v11988_v8  ;;  %4482 = vmatprep.mubr.f32.mxu1 %v13740_v0  ;;  %v12012_v8 = vpack.c.bf16 %v4828_v6, %v4826_v37  ;;  %v4784_v37 = vld [vmem:[#allocation11] sm:$0xff]  ;;  %v4786_v6 = vld [vmem:[#allocation11 + $0x10] sm:$0xff] }
 0x3f4   : > { %11991 = vmatprep.subr.bf16.mxu1 %v11990_v43  ;;  %v4831_v43 = vld [vmem:[#allocation11 + $0x168] sm:$0xff] }
 0x3f5   : > { %12013 = vmatpush1.bf16.msra.mxu0 %v12012_v8  ;;  %v12014_v11 = vpack.c.bf16 %v4833_v9, %v4831_v43  ;;  %v4789_v8 = vld [vmem:[#allocation11 + $0x28] sm:$0xff]  ;;  %v4791_v43 = vld [vmem:[#allocation11 + $0x38] sm:$0xff]  ;;  %v12036_v9 = vpack.c.bf16 %v4786_v6, %v4784_v37  ;;  %v5014_v37 = vld [vmem:[#allocation11 + $0x240] sm:$0xff] }
 0x3f6   : > { %11097 = vmatmul.mubr.msk.f32.gmra.mrb[14].mxu1 %vm517_vm0, %v11093_v13  ;;  %v12016_v13 = vpack.c.bf16 %v4832_v48, %v4830_v12  ;;  %v4788_v12 = vld [vmem:[#allocation11 + $0x20] sm:$0xff]  ;;  %v4790_v48 = vld [vmem:[#allocation11 + $0x30] sm:$0xff] }
 0x3f7   : > { %4488 = vmatprep.mubr.f32.mxu1 %v13740_v0  ;;  %11993 = vmatpush1.bf16.msra.mxu1 %v11992_v14  ;;  %v4835_v14 = vld [vmem:[#allocation11 + $0x188] sm:$0xff]  ;;  %v5016_v6 = vld [vmem:[#allocation11 + $0x250] sm:$0xff] }
 0x3f8   : > { %11995 = vmatprep.subr.bf16.mxu1 %v11994_v16  ;;  %12015 = vmatprep.subr.bf16.mxu0 %v12014_v11  ;;  %v4837_v16 = vld [vmem:[#allocation11 + $0x198] sm:$0xff]  ;;  %v12038_v11 = vpack.c.bf16 %v4791_v43, %v4789_v8  ;;  %v5019_v43 = vld [vmem:[#allocation11 + $0x268] sm:$0xff] }
 0x3f9   : > { %12017 = vmatpush1.bf16.msra.mxu0 %v12016_v13 }
 0x3fa   : > { %11098 = vmatmul.mubr.msk.f32.gmra.mrb[16].mxu1 %vm517_vm0, %v11094_v17  ;;  %v12018_v17 = vpack.c.bf16 %v4837_v16, %v4835_v14  ;;  %v4793_v14 = vld [vmem:[#allocation11 + $0x48] sm:$0xff]  ;;  %v4795_v16 = vld [vmem:[#allocation11 + $0x58] sm:$0xff] }
 0x3fb   : > { %4494 = vmatprep.mubr.f32.mxu1 %v13740_v0 }
 0x3fc   : > { %12019 = vmatprep.subr.bf16.mxu0 %v12018_v17  ;;  %v12040_v17 = vpack.c.bf16 %v4790_v48, %v4788_v12  ;;  %v5018_v48 = vld [vmem:[#allocation11 + $0x260] sm:$0xff] }
 0x3fd   : > { %v2898_v21 = vpop.f32.mrb[8].mxu1 }
 0x3fe   : > { %v2900_v23 = vpop.f32.mrb[9].mxu1  ;;  %11099 = vmatmul.mubr.msk.f32.gmra.mrb[18].mxu1 %vm517_vm0, %v11095_v19  ;;  %v4834_v19 = vld [vmem:[#allocation11 + $0x180] sm:$0xff] }
 0x3ff   : > { %v2913_v62 = vmax.f32 %v2898_v21, %v2900_v23  ;;  %4597 = vmatprep.mubr.f32.mxu1 %v13740_v0  ;;  %v12020_v60 = vpack.c.bf16 %v4836_v20, %v4834_v19  ;;  %v4839_v21 = vld [vmem:[#allocation11 + $0x1a8] sm:$0xff]  ;;  %v4838_v23 = vld [vmem:[#allocation11 + $0x1a0] sm:$0xff]  ;;  %v12042_v19 = vpack.c.bf16 %v4795_v16, %v4793_v14  ;;  %v5025_v14 = vld [vmem:[#allocation11 + $0x298] sm:$0xff] }
 0x400   : > { %v12022_v22 = vpack.c.bf16 %v4841_v61, %v4839_v21  ;;  %v4792_v20 = vld [vmem:[#allocation11 + $0x40] sm:$0xff]  ;;  %v4797_v61 = vld [vmem:[#allocation11 + $0x68] sm:$0xff] }
 0x401   : > { %v2922_v7 = vadd.f32 %v10992_v24, %v2913_v62  ;;  %v2904_v29 = vpop.f32.mrb[10].mxu1  ;;  %12021 = vmatpush1.bf16.msra.mxu0 %v12020_v60  ;;  %v4794_v60 = vld [vmem:[#allocation11 + $0x50] sm:$0xff] }
 0x402   : > { %v2906_v30 = vpop.f32.mrb[11].mxu1  ;;  %11104 = vmatmul.mubr.msk.f32.vlgmr.msra.gmra.mrb[12].mxu1 %vm517_vm0, %v11100_v25  ;;  %12023 = vmatprep.subr.bf16.mxu0 %v12022_v22  ;;  %v4843_v25 = vld [vmem:[#allocation11 + $0x1c8] sm:$0xff]  ;;  %v4799_v22 = vld [vmem:[#allocation11 + $0x78] sm:$0xff] }
 0x403   : > { %v2924_v10 = vmax.f32 %v2922_v7, 0.0  ;;  %v2914_v32 = vmax.f32 %v2904_v29, %v2906_v30  ;;  %11997 = vmatpush1.bf16.msra.mxu1 %v11996_v2  ;;  %4603 = vmatprep.mubr.f32.mxu1 %v13740_v0  ;;  %v4845_v2 = vld [vmem:[#allocation11 + $0x1d8] sm:$0xff]  ;;  %v12028_v7 = vpack.c.bf16 %v4844_v28, %v4842_v27  ;;  %v4847_v29 = vld [vmem:[#allocation11 + $0x1e8] sm:$0xff] }
 0x404   : > { %11999 = vmatprep.subr.bf16.mxu1 %v11998_v26  ;;  %v12026_v26 = vpack.c.bf16 %v4845_v2, %v4843_v25  ;;  %v4849_v30 = vld [vmem:[#allocation11 + $0x1f8] sm:$0xff]  ;;  %v4798_v25 = vld [vmem:[#allocation11 + $0x70] sm:$0xff]  ;;  %v4801_v2 = vld [vmem:[#allocation11 + $0x88] sm:$0xff] }
 0x405   : > { %2926 = vst [vmem:[#allocation4] sm:$0xff] %v2924_v10  ;;  %v2923_v35 = vadd.f32 %v10992_v24, %v2914_v32  ;;  %v4840_v24 = vld [vmem:[#allocation11 + $0x1b0] sm:$0xff]  ;;  %v4846_v10 = vld [vmem:[#allocation11 + $0x1e0] sm:$0xff]  ;;  %v12030_v32 = vpack.c.bf16 %v4849_v30, %v4847_v29  ;;  %v4805_v30 = vld [vmem:[#allocation11 + $0xa8] sm:$0xff] }
 0x406   : > { %11105 = vmatmul.mubr.msk.f32.gmra.mrb[14].mxu1 %vm517_vm0, %v11101_v15  ;;  %v12024_v62 = vpack.c.bf16 %v4840_v24, %v4838_v23  ;;  %v4848_v15 = vld [vmem:[#allocation11 + $0x1f0] sm:$0xff]  ;;  %v12044_v23 = vpack.c.bf16 %v4794_v60, %v4792_v20  ;;  %v12046_v24 = vpack.c.bf16 %v4799_v22, %v4797_v61  ;;  %v5027_v60 = vld [vmem:[#allocation11 + $0x2a8] sm:$0xff] }
 0x407   : > { %v2925_v36 = vmax.f32 %v2923_v35, 0.0  ;;  %4609 = vmatprep.mubr.f32.mxu1 %v13740_v0  ;;  %12001 = vmatpush1.bf16.msra.mxu1 %v12000_v33  ;;  %v4785_v33 = vld [vmem:[#allocation11 + $0x8] sm:$0xff]  ;;  %v4787_v35 = vld [vmem:[#allocation11 + $0x18] sm:$0xff]  ;;  %v4802_v29 = vld [vmem:[#allocation11 + $0x90] sm:$0xff] }
 0x408   : > { %12025 = vmatpush1.bf16.msra.mxu0 %v12024_v62  ;;  %v4796_v62 = vld [vmem:[#allocation11 + $0x60] sm:$0xff]  ;;  %v5024_v20 = vld [vmem:[#allocation11 + $0x290] sm:$0xff] }
 0x409   : > { %2927 = vst [vmem:[#allocation4 + $0x8] sm:$0x3] %v2925_v36  ;;  %12027 = vmatprep.subr.bf16.mxu0 %v12026_v26  ;;  %v12032_v36 = vpack.c.bf16 %v4848_v15, %v4846_v10  ;;  %v4803_v26 = vld [vmem:[#allocation11 + $0x98] sm:$0xff]  ;;  %v12048_v27 = vpack.c.bf16 %v4798_v25, %v4796_v62  ;;  %v5031_v62 = vld [vmem:[#allocation11 + $0x2c8] sm:$0xff] }
 0x40a   : > { %11106 = vmatmul.mubr.msk.f32.gmra.mrb[16].mxu1 %vm517_vm0, %v11102_v18  ;;  %v12034_v18 = vpack.c.bf16 %v4787_v35, %v4785_v33  ;;  %v12050_v28 = vpack.c.bf16 %v4803_v26, %v4801_v2  ;;  %v4807_v10 = vld [vmem:[#allocation11 + $0xb8] sm:$0xff]  ;;  %v4804_v33 = vld [vmem:[#allocation11 + $0xa0] sm:$0xff]  ;;  %v4806_v35 = vld [vmem:[#allocation11 + $0xb0] sm:$0xff] }
 0x40b   : > { %4615 = vmatprep.mubr.f32.mxu1 %v13740_v0  ;;  %v12054_v15 = vpack.c.bf16 %v4807_v10, %v4805_v30  ;;  %v5033_v25 = vld [vmem:[#allocation11 + $0x2d8] sm:$0xff] }
 0x40c   : > { %12029 = vmatpush1.bf16.msra.mxu0 %v12028_v7  ;;  %v4800_v7 = vld [vmem:[#allocation11 + $0x80] sm:$0xff]  ;;  %v12090_v26 = vpack.c.bf16 %v5033_v25, %v5031_v62  ;;  %v5239_v62 = vld [vmem:[#allocation11 + $0x418] sm:$0xff] }
 0x40d   : > { %12031 = vmatprep.subr.bf16.mxu0 %v12030_v32  ;;  %v12052_v32 = vpack.c.bf16 %v4802_v29, %v4800_v7  ;;  %v5035_v7 = vld [vmem:[#allocation11 + $0x2e8] sm:$0xff]  ;;  %v5037_v29 = vld [vmem:[#allocation11 + $0x2f8] sm:$0xff] }
 0x40e   : > { %11107 = vmatmul.mubr.msk.f32.gmra.mrb[18].mxu1 %vm517_vm0, %v11103_v38  ;;  %v12094_v10 = vpack.c.bf16 %v5037_v29, %v5035_v7  ;;  %v5243_v7 = vld [vmem:[#allocation11 + $0x438] sm:$0xff] }
 0x40f   : > { %4718 = vmatprep.mubr.f32.mxu1 %v13740_v0 }
 0x410   : > { %v2928_v40 = vld [vmem:[#allocation4] ss:$2 sm:$0x1f]  ;;  %v2930_v41 = vld [vmem:[#allocation4 + $0x1] ss:$2 sm:$0x1f]  ;;  %12033 = vmatpush1.bf16.msra.mxu0 %v12032_v36 }
 0x411   : > { %v2931_v42 = vmax.f32 %v2928_v40, %v2930_v41  ;;  %12035 = vmatprep.subr.bf16.mxu0 %v12034_v18  ;;  %v11116_v40 = vld [vmem:[#allocation10] ss:$0 sm:$0xff]  ;;  %v4809_v36 = vld [vmem:[#allocation11 + $0xc8] sm:$0xff] }
 0x412   : > { %11112 = vmatmul.mubr.msk.f32.vlgmr.msra.gmra.mrb[12].mxu1 %vm517_vm0, %v11108_v39  ;;  %v4811_v18 = vld [vmem:[#allocation11 + $0xd8] sm:$0xff] }
 0x413   : > { %4724 = vmatprep.mubr.f32.mxu1 %v13740_v0  ;;  %2932 = vst [vmem:[#allocation5] sm:$0x1] %v2931_v42  ;;  %v10993_v45 = vrot.slane %v2931_v42, 9  ;;  %v10994_v46 = vrot.slane %v2931_v42, 10  ;;  %v10995_v31 = vrot.slane %v2931_v42, 11  ;;  %v2946_v47 = vcombine.high %v2931_v42, %v2931_v42 }
 0x415   : > { %2937 = vst [vmem:[#allocation5 + $0x4] sm:$0x1] %v10993_v45  ;;  %2941 = vst [vmem:[#allocation5 + $0x8] sm:$0x1] %v10994_v46 }
 0x416   : > { %2945 = vst [vmem:[#allocation5 + $0xc] sm:$0x1] %v10995_v31  ;;  %2948 = vst [vmem:[#allocation5 + $0x10] sm:$0x1] %v2946_v47  ;;  %11113 = vmatmul.mubr.msk.f32.gmra.mrb[14].mxu1 %vm517_vm0, %v11109_v44 }
 0x417   : > { %4730 = vmatprep.mubr.f32.mxu1 %v13740_v0 }
 0x41a   : > { %11114 = vmatmul.mubr.msk.f32.gmra.mrb[16].mxu1 %vm517_vm0, %v11110_v49 }
 0x41b   : > { %4736 = vmatprep.mubr.f32.mxu1 %v13740_v0 }
 0x41e   : > { %11115 = vmatmul.mubr.msk.f32.gmra.mrb[18].mxu1 %vm517_vm0, %v11111_v50 }
 0x41f   : > { %7349 = vmatprep.mubr.f32.mxu1 %v13740_v0 }
 0x4e5   : > { %v4720_v38 = vpop.f32.mrb[12].mxu1 }
 0x4e6   : > { %v4722_v39 = vpop.f32.mrb[13].mxu1 }
 0x4e7   : > { %v4751_v41 = vmax.f32 %v4720_v38, %v4722_v39  ;;  %v12056_v38 = vpack.c.bf16 %v4806_v35, %v4804_v33  ;;  %v12058_v39 = vpack.c.bf16 %v4811_v18, %v4809_v36  ;;  %v5122_v33 = vld [vmem:[#allocation11 + $0x308] sm:$0xff]  ;;  %v5124_v35 = vld [vmem:[#allocation11 + $0x318] sm:$0xff] }
 0x4e8   : > { %v12098_v18 = vpack.c.bf16 %v5124_v35, %v5122_v33  ;;  %v5245_v33 = vld [vmem:[#allocation11 + $0x448] sm:$0xff]  ;;  %v5247_v35 = vld [vmem:[#allocation11 + $0x458] sm:$0xff] }
 0x4e9   : > { %v4762_v42 = vadd.f32 %v11116_v40, %v4751_v41  ;;  %v4726_v44 = vpop.f32.mrb[14].mxu1  ;;  %v4810_v41 = vld [vmem:[#allocation11 + $0xd0] sm:$0xff] }
 0x4ea   : > { %v4728_v45 = vpop.f32.mrb[15].mxu1 }
 0x4eb   : > { %v4766_v46 = vmax.f32 %v4762_v42, 0.0  ;;  %v4752_v31 = vmax.f32 %v4726_v44, %v4728_v45  ;;  %v4813_v42 = vld [vmem:[#allocation11 + $0xe8] sm:$0xff]  ;;  %v4815_v44 = vld [vmem:[#allocation11 + $0xf8] sm:$0xff] }
 0x4ed   : > { %4770 = vst [vmem:[#allocation2] sm:$0xff] %v4766_v46  ;;  %v4763_v47 = vadd.f32 %v11116_v40, %v4752_v31  ;;  %v4732_v49 = vpop.f32.mrb[16].mxu1  ;;  %v12062_v46 = vpack.c.bf16 %v4815_v44, %v4813_v42  ;;  %v4812_v31 = vld [vmem:[#allocation11 + $0xe0] sm:$0xff] }
 0x4ee   : > { %v4734_v50 = vpop.f32.mrb[17].mxu1 }
 0x4ef   : > { %v4767_v51 = vmax.f32 %v4763_v47, 0.0  ;;  %v4753_v52 = vmax.f32 %v4732_v49, %v4734_v50  ;;  %v4814_v47 = vld [vmem:[#allocation11 + $0xf0] sm:$0xff]  ;;  %v5007_v49 = vld [vmem:[#allocation11 + $0x208] sm:$0xff]  ;;  %v5009_v50 = vld [vmem:[#allocation11 + $0x218] sm:$0xff] }
 0x4f1   : > { %4771 = vst [vmem:[#allocation2 + $0x8] sm:$0xff] %v4767_v51  ;;  %v4764_v53 = vadd.f32 %v11116_v40, %v4753_v52  ;;  %v4738_v54 = vpop.f32.mrb[18].mxu1  ;;  %v12064_v51 = vpack.c.bf16 %v4814_v47, %v4812_v31  ;;  %v12066_v52 = vpack.c.bf16 %v5009_v50, %v5007_v49  ;;  %v5130_v47 = vld [vmem:[#allocation11 + $0x348] sm:$0xff]  ;;  %v5132_v49 = vld [vmem:[#allocation11 + $0x358] sm:$0xff] }
 0x4f2   : > { %v4740_v55 = vpop.f32.mrb[19].mxu1 }
 0x4f3   : > { %v4768_v56 = vmax.f32 %v4764_v53, 0.0  ;;  %v4754_v57 = vmax.f32 %v4738_v54, %v4740_v55  ;;  %v5006_v53 = vld [vmem:[#allocation11 + $0x200] sm:$0xff]  ;;  %v5008_v54 = vld [vmem:[#allocation11 + $0x210] sm:$0xff]  ;;  %v5011_v55 = vld [vmem:[#allocation11 + $0x228] sm:$0xff] }
 0x4f5   : > { %4772 = vst [vmem:[#allocation2 + $0x10] sm:$0xff] %v4768_v56  ;;  %v4765_v58 = vadd.f32 %v11116_v40, %v4754_v57  ;;  %v4808_v40 = vld [vmem:[#allocation11 + $0xc0] sm:$0xff]  ;;  %v5013_v56 = vld [vmem:[#allocation11 + $0x238] sm:$0xff]  ;;  %v12068_v57 = vpack.c.bf16 %v5008_v54, %v5006_v53  ;;  %v5131_v53 = vld [vmem:[#allocation11 + $0x350] sm:$0xff] }
 0x4f6   : > { %v12060_v45 = vpack.c.bf16 %v4810_v41, %v4808_v40  ;;  %v5126_v40 = vld [vmem:[#allocation11 + $0x328] sm:$0xff]  ;;  %v5128_v41 = vld [vmem:[#allocation11 + $0x338] sm:$0xff] }
 0x4f7   : > { %v4769_v59 = vmax.f32 %v4765_v58, 0.0  ;;  %v12070_v58 = vpack.c.bf16 %v5013_v56, %v5011_v55  ;;  %v12102_v44 = vpack.c.bf16 %v5128_v41, %v5126_v40  ;;  %v5134_v55 = vld [vmem:[#allocation11 + $0x368] sm:$0xff]  ;;  %v5136_v56 = vld [vmem:[#allocation11 + $0x378] sm:$0xff] }
 0x4f8   : > { %v4774_v63 = vld [vmem:[#allocation2] ss:$2 sm:$0xff]  ;;  %v4776_v1 = vld [vmem:[#allocation2 + $0x1] ss:$2 sm:$0xff] }
 0x4f9   : > { %v14486_v3 = vmax.f32 %v4774_v63, %v4776_v1  ;;  %4773 = vst [vmem:[#allocation2 + $0x18] sm:$0xf] %v4769_v59  ;;  %v5010_v59 = vld [vmem:[#allocation11 + $0x220] sm:$0xff]  ;;  %v5012_v63 = vld [vmem:[#allocation11 + $0x230] sm:$0xff]  ;;  %v5015_v1 = vld [vmem:[#allocation11 + $0x248] sm:$0xff] }
 0x4fa   : > { %v5249_v41 = vld [vmem:[#allocation11 + $0x468] sm:$0xff] }
 0x4fb   : > { %4780 = vst [vmem:[#allocation3] sm:$0xff] %v14486_v3 }
 0x500   : > { %v4775_v4 = vld [vmem:[#allocation2 + $0x10] ss:$2 sm:$0x3f]  ;;  %v4777_v34 = vld [vmem:[#allocation2 + $0x11] ss:$2 sm:$0x3f] }
 0x501   : > { %v4779_v5 = vmax.f32 %v4775_v4, %v4777_v34  ;;  %v5017_v4 = vld [vmem:[#allocation11 + $0x258] sm:$0xff]  ;;  %v12072_v34 = vpack.c.bf16 %v5012_v63, %v5010_v59  ;;  %v5133_v59 = vld [vmem:[#allocation11 + $0x360] sm:$0xff]  ;;  %v5135_v63 = vld [vmem:[#allocation11 + $0x370] sm:$0xff] }
 0x503   : > { %4781 = vst [vmem:[#allocation3 + $0x8] sm:$0x3f] %v4779_v5  ;;  %v12074_v5 = vpack.c.bf16 %v5017_v4, %v5015_v1  ;;  %v5138_v1 = vld [vmem:[#allocation11 + $0x388] sm:$0xff]  ;;  %v5140_v4 = vld [vmem:[#allocation11 + $0x398] sm:$0xff] }
 0x50a   : > { %v4816_v13 = vld [vmem:[#allocation3 + $0x1] sm:$0xff]  ;;  %v4817_v21 = vld [vmem:[#allocation3 + $0x9] sm:$0x3]  ;;  %v5120_v40 = vld [vmem:[#allocation3 + $0xb] sm:$0x3] }
 0x50b   : > { %4915 = vmatmul.mubr.f32.vlgmr.msra.gmra.mrb[8].mxu0 %v4816_v13  ;;  %v4783_v8 = vld [vmem:[#allocation3 + $0x8] sm:$0x3]  ;;  %v5023_v13 = vld [vmem:[#allocation11 + $0x288] sm:$0xff]  ;;  %v5005_v54 = vld [vmem:[#allocation3 + $0xa] sm:$0x3] }
 0x50c   : > { %12037 = vmatpush1.bf16.msra.mxu0 %v12036_v9  ;;  %4920 = vmatprep.mubr.f32.mxu0 %v13740_v0  ;;  %v5021_v9 = vld [vmem:[#allocation11 + $0x278] sm:$0xff]  ;;  %v5004_v31 = vld [vmem:[#allocation3 + $0x2] sm:$0xff] }
 0x50d   : > { %12039 = vmatprep.subr.bf16.mxu0 %v12038_v11  ;;  %v12076_v11 = vpack.c.bf16 %v5016_v6, %v5014_v37  ;;  %v12078_v12 = vpack.c.bf16 %v5021_v9, %v5019_v43  ;;  %v5137_v37 = vld [vmem:[#allocation11 + $0x380] sm:$0xff]  ;;  %v5139_v6 = vld [vmem:[#allocation11 + $0x390] sm:$0xff]  ;;  %v5144_v43 = vld [vmem:[#allocation11 + $0x3b8] sm:$0xff] }
 0x50e   : > { %v12116_v9 = vpack.c.bf16 %v5139_v6, %v5137_v37  ;;  %v5262_v37 = vld [vmem:[#allocation11 + $0x4d0] sm:$0xff]  ;;  %v5265_v6 = vld [vmem:[#allocation11 + $0x4e8] sm:$0xff] }
 0x50f   : > { %4921 = vmatmul.mubr.f32.gmra.mrb[10].mxu0 %v4817_v21  ;;  %v5029_v21 = vld [vmem:[#allocation11 + $0x2b8] sm:$0xff] }
 0x510   : > { %12041 = vmatpush1.bf16.msra.mxu0 %v12040_v17  ;;  %4991 = vmatprep.mubr.f32.mxu0 %v13740_v0  ;;  %v12082_v17 = vpack.c.bf16 %v5025_v14, %v5023_v13  ;;  %v12086_v22 = vpack.c.bf16 %v5029_v21, %v5027_v60  ;;  %v5148_v13 = vld [vmem:[#allocation11 + $0x3d8] sm:$0xff] }
 0x511   : > { %12043 = vmatprep.subr.bf16.mxu0 %v12042_v19  ;;  %v5022_v19 = vld [vmem:[#allocation11 + $0x280] sm:$0xff]  ;;  %v5152_v60 = vld [vmem:[#allocation11 + $0x3f8] sm:$0xff] }
 0x512   : > { %v12084_v61 = vpack.c.bf16 %v5024_v20, %v5022_v19  ;;  %v5147_v19 = vld [vmem:[#allocation11 + $0x3d0] sm:$0xff]  ;;  %v5150_v20 = vld [vmem:[#allocation11 + $0x3e8] sm:$0xff] }
 0x514   : > { %12045 = vmatpush1.bf16.msra.mxu0 %v12044_v23  ;;  %v5026_v23 = vld [vmem:[#allocation11 + $0x2a0] sm:$0xff] }
 0x515   : > { %12047 = vmatprep.subr.bf16.mxu0 %v12046_v24  ;;  %v5028_v24 = vld [vmem:[#allocation11 + $0x2b0] sm:$0xff] }
 0x516   : > { %v12088_v2 = vpack.c.bf16 %v5028_v24, %v5026_v23  ;;  %v5151_v23 = vld [vmem:[#allocation11 + $0x3f0] sm:$0xff]  ;;  %v5237_v24 = vld [vmem:[#allocation11 + $0x408] sm:$0xff] }
 0x518   : > { %12049 = vmatpush1.bf16.msra.mxu0 %v12048_v27  ;;  %v5030_v27 = vld [vmem:[#allocation11 + $0x2c0] sm:$0xff] }
 0x519   : > { %12051 = vmatprep.subr.bf16.mxu0 %v12050_v28  ;;  %v5032_v28 = vld [vmem:[#allocation11 + $0x2d0] sm:$0xff] }
 0x51a   : > { %v12092_v30 = vpack.c.bf16 %v5032_v28, %v5030_v27  ;;  %v5238_v27 = vld [vmem:[#allocation11 + $0x410] sm:$0xff]  ;;  %v5241_v28 = vld [vmem:[#allocation11 + $0x428] sm:$0xff] }
 0x51c   : > { %12053 = vmatpush1.bf16.msra.mxu0 %v12052_v32  ;;  %v5034_v32 = vld [vmem:[#allocation11 + $0x2e0] sm:$0xff] }
 0x51d   : > { %12055 = vmatprep.subr.bf16.mxu0 %v12054_v15  ;;  %v5036_v15 = vld [vmem:[#allocation11 + $0x2f0] sm:$0xff] }
 0x51e   : > { %v12096_v36 = vpack.c.bf16 %v5036_v15, %v5034_v32  ;;  %v5242_v32 = vld [vmem:[#allocation11 + $0x430] sm:$0xff] }
 0x51f   : > { %v5119_v15 = vld [vmem:[#allocation3 + $0x3] sm:$0xff] }
 0x520   : > { %12057 = vmatpush1.bf16.msra.mxu0 %v12056_v38  ;;  %v5121_v38 = vld [vmem:[#allocation11 + $0x300] sm:$0xff] }
 0x521   : > { %12059 = vmatprep.subr.bf16.mxu0 %v12058_v39  ;;  %v5123_v39 = vld [vmem:[#allocation11 + $0x310] sm:$0xff] }
 0x522   : > { %v12100_v42 = vpack.c.bf16 %v5123_v39, %v5121_v38  ;;  %v5244_v38 = vld [vmem:[#allocation11 + $0x440] sm:$0xff]  ;;  %v5246_v39 = vld [vmem:[#allocation11 + $0x450] sm:$0xff] }
 0x524   : > { %12061 = vmatpush1.bf16.msra.mxu0 %v12060_v45  ;;  %v5125_v45 = vld [vmem:[#allocation11 + $0x320] sm:$0xff] }
 0x525   : > { %12063 = vmatprep.subr.bf16.mxu0 %v12062_v46  ;;  %v5127_v46 = vld [vmem:[#allocation11 + $0x330] sm:$0xff] }
 0x526   : > { %v12104_v50 = vpack.c.bf16 %v5127_v46, %v5125_v45  ;;  %v5248_v46 = vld [vmem:[#allocation11 + $0x460] sm:$0xff] }
 0x528   : > { %12065 = vmatpush1.bf16.msra.mxu0 %v12064_v51  ;;  %v12106_v51 = vpack.c.bf16 %v5132_v49, %v5130_v47  ;;  %v5253_v47 = vld [vmem:[#allocation11 + $0x488] sm:$0xff]  ;;  %v5255_v49 = vld [vmem:[#allocation11 + $0x498] sm:$0xff] }
 0x529   : > { %12067 = vmatprep.subr.bf16.mxu0 %v12066_v52  ;;  %v5129_v52 = vld [vmem:[#allocation11 + $0x340] sm:$0xff] }
 0x52b   : > { %4992 = vmatmul.mubr.f32.vlgmr.msra.gmra.mrb[8].mxu0 %v14486_v3  ;;  %v5020_v3 = vld [vmem:[#allocation11 + $0x270] sm:$0xff] }
 0x52c   : > { %12069 = vmatpush1.bf16.msra.mxu0 %v12068_v57  ;;  %4997 = vmatprep.mubr.f32.mxu0 %v13740_v0  ;;  %v12080_v16 = vpack.c.bf16 %v5020_v3, %v5018_v48  ;;  %v12108_v57 = vpack.c.bf16 %v5131_v53, %v5129_v52  ;;  %v5143_v48 = vld [vmem:[#allocation11 + $0x3b0] sm:$0xff]  ;;  %v5146_v3 = vld [vmem:[#allocation11 + $0x3c8] sm:$0xff]  ;;  %v5252_v52 = vld [vmem:[#allocation11 + $0x480] sm:$0xff] }
 0x52d   : > { %12071 = vmatprep.subr.bf16.mxu0 %v12070_v58  ;;  %v12110_v58 = vpack.c.bf16 %v5136_v56, %v5134_v55  ;;  %v5254_v53 = vld [vmem:[#allocation11 + $0x490] sm:$0xff]  ;;  %v5259_v55 = vld [vmem:[#allocation11 + $0x4b8] sm:$0xff] }
 0x52e   : > { %v12148_v56 = vpack.c.bf16 %v5254_v53, %v5252_v52  ;;  %v5737_v52 = vld [vmem:[#allocation8 + $0xc8] sm:$0xff]  ;;  %v5739_v53 = vld [vmem:[#allocation8 + $0xd8] sm:$0xff] }
 0x52f   : > { %4998 = vmatmul.mubr.f32.gmra.mrb[10].mxu0 %v4783_v8  ;;  %v5142_v8 = vld [vmem:[#allocation11 + $0x3a8] sm:$0xff] }
 0x530   : > { %12073 = vmatpush1.bf16.msra.mxu0 %v12072_v34  ;;  %5102 = vmatprep.mubr.f32.mxu0 %v13740_v0  ;;  %v12112_v34 = vpack.c.bf16 %v5135_v63, %v5133_v59  ;;  %v5258_v59 = vld [vmem:[#allocation11 + $0x4b0] sm:$0xff]  ;;  %v5261_v63 = vld [vmem:[#allocation11 + $0x4c8] sm:$0xff] }
 0x531   : > { %12075 = vmatprep.subr.bf16.mxu0 %v12074_v5  ;;  %v12114_v5 = vpack.c.bf16 %v5140_v4, %v5138_v1  ;;  %v5263_v1 = vld [vmem:[#allocation11 + $0x4d8] sm:$0xff] }
 0x534   : > { %12077 = vmatpush1.bf16.msra.mxu0 %v12076_v11  ;;  %v12118_v11 = vpack.c.bf16 %v5144_v43, %v5142_v8  ;;  %v5267_v8 = vld [vmem:[#allocation11 + $0x4f8] sm:$0xff] }
 0x535   : > { %12079 = vmatprep.subr.bf16.mxu0 %v12078_v12  ;;  %v5141_v12 = vld [vmem:[#allocation11 + $0x3a0] sm:$0xff] }
 0x536   : > { %v12120_v14 = vpack.c.bf16 %v5143_v48, %v5141_v12  ;;  %v5266_v12 = vld [vmem:[#allocation11 + $0x4f0] sm:$0xff]  ;;  %v5402_v48 = vld [vmem:[#allocation8 + $0x48] sm:$0xff] }
 0x538   : > { %12081 = vmatpush1.bf16.msra.mxu0 %v12080_v16  ;;  %v12122_v16 = vpack.c.bf16 %v5148_v13, %v5146_v3  ;;  %v5404_v3 = vld [vmem:[#allocation8 + $0x58] sm:$0xff] }
 0x539   : > { %12083 = vmatprep.subr.bf16.mxu0 %v12082_v17  ;;  %v5145_v17 = vld [vmem:[#allocation11 + $0x3c0] sm:$0xff] }
 0x53a   : > { %v12124_v21 = vpack.c.bf16 %v5147_v19, %v5145_v17  ;;  %v5403_v17 = vld [vmem:[#allocation8 + $0x50] sm:$0xff]  ;;  %v5406_v19 = vld [vmem:[#allocation8 + $0x68] sm:$0xff] }
 0x53c   : > { %12085 = vmatpush1.bf16.msra.mxu0 %v12084_v61  ;;  %v12126_v61 = vpack.c.bf16 %v5152_v60, %v5150_v20  ;;  %v5408_v20 = vld [vmem:[#allocation8 + $0x78] sm:$0xff] }
 0x53d   : > { %12087 = vmatprep.subr.bf16.mxu0 %v12086_v22  ;;  %v5149_v22 = vld [vmem:[#allocation11 + $0x3e0] sm:$0xff] }
 0x53e   : > { %v12128_v25 = vpack.c.bf16 %v5151_v23, %v5149_v22  ;;  %v5407_v22 = vld [vmem:[#allocation8 + $0x70] sm:$0xff] }
 0x53f   : > { %v5234_v23 = vld [vmem:[#allocation3 + $0x4] sm:$0xff] }
 0x540   : > { %12089 = vmatpush1.bf16.msra.mxu0 %v12088_v2  ;;  %v12130_v2 = vpack.c.bf16 %v5239_v62, %v5237_v24  ;;  %v5390_v24 = vld [vmem:[#allocation8 + $0x8] sm:$0xff]  ;;  %v5392_v62 = vld [vmem:[#allocation8 + $0x18] sm:$0xff] }
 0x541   : > { %12091 = vmatprep.subr.bf16.mxu0 %v12090_v26  ;;  %v5236_v26 = vld [vmem:[#allocation11 + $0x400] sm:$0xff] }
 0x542   : > { %v12132_v29 = vpack.c.bf16 %v5238_v27, %v5236_v26  ;;  %v5389_v26 = vld [vmem:[#allocation8] sm:$0xff]  ;;  %v5391_v27 = vld [vmem:[#allocation8 + $0x10] sm:$0xff] }
 0x544   : > { %12093 = vmatpush1.bf16.msra.mxu0 %v12092_v30  ;;  %v12134_v30 = vpack.c.bf16 %v5243_v7, %v5241_v28  ;;  %v5235_v28 = vld [vmem:[#allocation3 + $0xc] sm:$0x3]  ;;  %v5394_v7 = vld [vmem:[#allocation8 + $0x28] sm:$0xff] }
 0x545   : > { %12095 = vmatprep.subr.bf16.mxu0 %v12094_v10  ;;  %v5240_v10 = vld [vmem:[#allocation11 + $0x420] sm:$0xff] }
 0x548   : > { %12097 = vmatpush1.bf16.msra.mxu0 %v12096_v36  ;;  %v12136_v36 = vpack.c.bf16 %v5242_v32, %v5240_v10  ;;  %v12172_v10 = vpack.c.bf16 %v5391_v27, %v5389_v26  ;;  %v11147_v26 = vld [vmem:[%s14049_s22 + $0xd3] sm:$0xff]  ;;  %v11148_v27 = vld [vmem:[%s14049_s22 + $0xdb] sm:$0xf] }
 0x549   : > { %12099 = vmatprep.subr.bf16.mxu0 %v12098_v18  ;;  %v12138_v18 = vpack.c.bf16 %v5247_v35, %v5245_v33  ;;  %v5395_v33 = vld [vmem:[#allocation8 + $0x30] sm:$0xff]  ;;  %v5616_v35 = vld [vmem:[#allocation8 + $0x88] sm:$0xff] }
 0x54b   : > { %5103 = vmatmul.mubr.f32.vlgmr.msra.gmra.mrb[8].mxu0 %v5004_v31  ;;  %v5250_v31 = vld [vmem:[#allocation11 + $0x470] sm:$0xff] }
 0x54c   : > { %12101 = vmatpush1.bf16.msra.mxu0 %v12100_v42  ;;  %5108 = vmatprep.mubr.f32.mxu0 %v13740_v0  ;;  %v5251_v42 = vld [vmem:[#allocation11 + $0x478] sm:$0xff] }
 0x54d   : > { %12103 = vmatprep.subr.bf16.mxu0 %v12102_v44  ;;  %v12140_v44 = vpack.c.bf16 %v5246_v39, %v5244_v38  ;;  %v12142_v45 = vpack.c.bf16 %v5251_v42, %v5249_v41  ;;  %v11128_v41 = vld [vmem:[%s14049_s22 + $0xd9] sm:$0xf]  ;;  %v5615_v42 = vld [vmem:[#allocation8 + $0x80] sm:$0xff] }
 0x54f   : > { %5109 = vmatmul.mubr.f32.gmra.mrb[10].mxu0 %v5005_v54  ;;  %v5257_v54 = vld [vmem:[#allocation11 + $0x4a8] sm:$0xff] }
 0x550   : > { %12105 = vmatpush1.bf16.msra.mxu0 %v12104_v50  ;;  %5217 = vmatprep.mubr.f32.mxu0 %v13740_v0  ;;  %v12144_v50 = vpack.c.bf16 %v5250_v31, %v5248_v46  ;;  %v5622_v46 = vld [vmem:[#allocation8 + $0xb8] sm:$0xff]  ;;  %v11121_v31 = vld [vmem:[%s14049_s22 + $0xc0] sm:$0xff] }
 0x551   : > { %12107 = vmatprep.subr.bf16.mxu0 %v12106_v51  ;;  %v12146_v51 = vpack.c.bf16 %v5255_v49, %v5253_v47 }
 0x554   : > { %12109 = vmatpush1.bf16.msra.mxu0 %v12108_v57  ;;  %v12150_v57 = vpack.c.bf16 %v5259_v55, %v5257_v54  ;;  %v11122_v54 = vld [vmem:[%s14049_s22 + $0xc8] sm:$0xff] }
 0x555   : > { %12111 = vmatprep.subr.bf16.mxu0 %v12110_v58  ;;  %v5256_v58 = vld [vmem:[#allocation11 + $0x4a0] sm:$0xff] }
 0x556   : > { %v12152_v4 = vpack.c.bf16 %v5258_v59, %v5256_v58  ;;  %v11124_v58 = vld [vmem:[%s14049_s22 + $0xd8] sm:$0xf]  ;;  %v5736_v59 = vld [vmem:[#allocation8 + $0xc0] sm:$0xff] }
 0x558   : > { %12113 = vmatpush1.bf16.msra.mxu0 %v12112_v34  ;;  %v12154_v34 = vpack.c.bf16 %v5263_v1, %v5261_v63  ;;  %v5738_v63 = vld [vmem:[#allocation8 + $0xd0] sm:$0xff]  ;;  %v5741_v1 = vld [vmem:[#allocation8 + $0xe8] sm:$0xff] }
 0x559   : > { %12115 = vmatprep.subr.bf16.mxu0 %v12114_v5  ;;  %v5260_v5 = vld [vmem:[#allocation11 + $0x4c0] sm:$0xff] }
 0x55a   : > { %v12156_v43 = vpack.c.bf16 %v5262_v37, %v5260_v5  ;;  %v12188_v5 = vpack.c.bf16 %v5738_v63, %v5736_v59  ;;  %v11164_v59 = vld [vmem:[%s14049_s22 + $0xf8] sm:$0xf]  ;;  %v6221_v63 = vld [vmem:[#allocation8 + $0x1c0] sm:$0xff] }
 0x55c   : > { %12117 = vmatpush1.bf16.msra.mxu0 %v12116_v9  ;;  %v12158_v9 = vpack.c.bf16 %v5267_v8, %v5265_v6  ;;  %v5740_v6 = vld [vmem:[#allocation8 + $0xe0] sm:$0xff]  ;;  %v5742_v8 = vld [vmem:[#allocation8 + $0xf0] sm:$0xff] }
 0x55d   : > { %12119 = vmatprep.subr.bf16.mxu0 %v12118_v11  ;;  %v5264_v11 = vld [vmem:[#allocation11 + $0x4e0] sm:$0xff] }
 0x55e   : > { %v12160_v13 = vpack.c.bf16 %v5266_v12, %v5264_v11  ;;  %v11138_v11 = vld [vmem:[%s14049_s22 + $0xca] sm:$0xff]  ;;  %v12192_v12 = vpack.c.bf16 %v5742_v8, %v5740_v6  ;;  %v6225_v8 = vld [vmem:[#allocation8 + $0x1e0] sm:$0xff] }
 0x560   : > { %12121 = vmatpush1.bf16.msra.mxu0 %v12120_v14  ;;  %v12162_v14 = vpack.c.bf16 %v5404_v3, %v5402_v48  ;;  %v11139_v3 = vld [vmem:[%s14049_s22 + $0xd2] sm:$0xff] }
 0x561   : > { %12123 = vmatprep.subr.bf16.mxu0 %v12122_v16  ;;  %v5401_v16 = vld [vmem:[#allocation8 + $0x40] sm:$0xff] }
 0x562   : > { %v12164_v60 = vpack.c.bf16 %v5403_v17, %v5401_v16  ;;  %v5859_v16 = vld [vmem:[#allocation8 + $0x110] sm:$0xff]  ;;  %v5862_v17 = vld [vmem:[#allocation8 + $0x128] sm:$0xff] }
 0x564   : > { %12125 = vmatpush1.bf16.msra.mxu0 %v12124_v21  ;;  %v12166_v21 = vpack.c.bf16 %v5408_v20, %v5406_v19  ;;  %v5864_v19 = vld [vmem:[#allocation8 + $0x138] sm:$0xff]  ;;  %v11145_v20 = vld [vmem:[%s14049_s22 + $0xc3] sm:$0xff] }
 0x565   : > { %12127 = vmatprep.subr.bf16.mxu0 %v12126_v61  ;;  %v5405_v61 = vld [vmem:[#allocation8 + $0x60] sm:$0xff] }
 0x568   : > { %12129 = vmatpush1.bf16.msra.mxu0 %v12128_v25  ;;  %v12168_v25 = vpack.c.bf16 %v5407_v22, %v5405_v61  ;;  %v5861_v61 = vld [vmem:[#allocation8 + $0x120] sm:$0xff]  ;;  %v5863_v22 = vld [vmem:[#allocation8 + $0x130] sm:$0xff] }
 0x569   : > { %12131 = vmatprep.subr.bf16.mxu0 %v12130_v2  ;;  %v12170_v2 = vpack.c.bf16 %v5392_v62, %v5390_v24  ;;  %v5982_v24 = vld [vmem:[#allocation8 + $0x158] sm:$0xff]  ;;  %v11146_v62 = vld [vmem:[%s14049_s22 + $0xcb] sm:$0xff] }
 0x56b   : > { %5218 = vmatmul.mubr.f32.vlgmr.msra.gmra.mrb[8].mxu0 %v5119_v15  ;;  %v5393_v15 = vld [vmem:[#allocation8 + $0x20] sm:$0xff] }
 0x56c   : > { %12133 = vmatpush1.bf16.msra.mxu0 %v12132_v29  ;;  %5223 = vmatprep.mubr.f32.mxu0 %v13740_v0  ;;  %v5396_v29 = vld [vmem:[#allocation8 + $0x38] sm:$0xff]  ;;  %v12176_v38 = vpack.c.bf16 %v5395_v33, %v5393_v15  ;;  %v5983_v33 = vld [vmem:[#allocation8 + $0x160] sm:$0xff] }
 0x56d   : > { %12135 = vmatprep.subr.bf16.mxu0 %v12134_v30  ;;  %v11125_v30 = vld [vmem:[%s14049_s22 + $0xc1] sm:$0xff]  ;;  %v12174_v32 = vpack.c.bf16 %v5396_v29, %v5394_v7  ;;  %v5981_v7 = vld [vmem:[#allocation8 + $0x150] sm:$0xff] }
 0x56e   : > { %v5984_v29 = vld [vmem:[#allocation8 + $0x168] sm:$0xff] }
 0x56f   : > { %5224 = vmatmul.mubr.f32.gmra.mrb[10].mxu0 %v5120_v40  ;;  %v11127_v40 = vld [vmem:[%s14049_s22 + $0xd1] sm:$0xff] }
 0x570   : > { %12137 = vmatpush1.bf16.msra.mxu0 %v12136_v36  ;;  %5332 = vmatprep.mubr.f32.mxu0 %v13740_v0  ;;  %v5618_v36 = vld [vmem:[#allocation8 + $0x98] sm:$0xff] }
 0x571   : > { %12139 = vmatprep.subr.bf16.mxu0 %v12138_v18  ;;  %v11126_v18 = vld [vmem:[%s14049_s22 + $0xc9] sm:$0xff]  ;;  %v12178_v39 = vpack.c.bf16 %v5618_v36, %v5616_v35 }
 0x572   : > { %v5985_v35 = vld [vmem:[#allocation8 + $0x170] sm:$0xff]  ;;  %v6101_v36 = vld [vmem:[#allocation8 + $0x188] sm:$0xff] }
 0x574   : > { %12141 = vmatpush1.bf16.msra.mxu0 %v12140_v44  ;;  %v5617_v44 = vld [vmem:[#allocation8 + $0x90] sm:$0xff] }
 0x575   : > { %12143 = vmatprep.subr.bf16.mxu0 %v12142_v45  ;;  %v5620_v45 = vld [vmem:[#allocation8 + $0xa8] sm:$0xff]  ;;  %v12180_v47 = vpack.c.bf16 %v5617_v44, %v5615_v42  ;;  %v11156_v42 = vld [vmem:[%s14049_s22 + $0xdc] sm:$0xf]  ;;  %v6100_v44 = vld [vmem:[#allocation8 + $0x180] sm:$0xff] }
 0x576   : > { %v12182_v49 = vpack.c.bf16 %v5622_v46, %v5620_v45  ;;  %v6102_v45 = vld [vmem:[#allocation8 + $0x190] sm:$0xff]  ;;  %v6105_v46 = vld [vmem:[#allocation8 + $0x1a8] sm:$0xff] }
 0x578   : > { %12145 = vmatpush1.bf16.msra.mxu0 %v12144_v50  ;;  %v5619_v50 = vld [vmem:[#allocation8 + $0xa0] sm:$0xff] }
 0x579   : > { %12147 = vmatprep.subr.bf16.mxu0 %v12146_v51  ;;  %v5621_v51 = vld [vmem:[#allocation8 + $0xb0] sm:$0xff] }
 0x57a   : > { %v12184_v55 = vpack.c.bf16 %v5621_v51, %v5619_v50  ;;  %v6104_v51 = vld [vmem:[#allocation8 + $0x1a0] sm:$0xff] }
 0x57c   : > { %12149 = vmatpush1.bf16.msra.mxu0 %v12148_v56  ;;  %v12186_v56 = vpack.c.bf16 %v5739_v53, %v5737_v52  ;;  %v6106_v52 = vld [vmem:[#allocation8 + $0x1b0] sm:$0xff]  ;;  %v6222_v53 = vld [vmem:[#allocation8 + $0x1c8] sm:$0xff] }
 0x57d   : > { %12151 = vmatprep.subr.bf16.mxu0 %v12150_v57  ;;  %v11123_v57 = vld [vmem:[%s14049_s22 + $0xd0] sm:$0xff] }
 0x580   : > { %12153 = vmatpush1.bf16.msra.mxu0 %v12152_v4  ;;  %v5743_v4 = vld [vmem:[#allocation8 + $0xf8] sm:$0xff] }
 0x581   : > { %12155 = vmatprep.subr.bf16.mxu0 %v12154_v34  ;;  %v11137_v34 = vld [vmem:[%s14049_s22 + $0xc2] sm:$0xff]  ;;  %v12190_v37 = vpack.c.bf16 %v5743_v4, %v5741_v1  ;;  %v6223_v1 = vld [vmem:[#allocation8 + $0x1d0] sm:$0xff] }
 0x582   : > { %v6226_v4 = vld [vmem:[#allocation8 + $0x1e8] sm:$0xff] }
 0x584   : > { %12157 = vmatpush1.bf16.msra.mxu0 %v12156_v43  ;;  %v5858_v43 = vld [vmem:[#allocation8 + $0x108] sm:$0xff] }
 0x585   : > { %12159 = vmatprep.subr.bf16.mxu0 %v12158_v9  ;;  %v5860_v9 = vld [vmem:[#allocation8 + $0x118] sm:$0xff] }
 0x586   : > { %v12194_v48 = vpack.c.bf16 %v5860_v9, %v5858_v43  ;;  %v6227_v43 = vld [vmem:[#allocation8 + $0x1f0] sm:$0xff]  ;;  %v6343_v9 = vld [vmem:[#allocation8 + $0x208] sm:$0xff] }
 0x588   : > { %12161 = vmatpush1.bf16.msra.mxu0 %v12160_v13  ;;  %v11140_v13 = vld [vmem:[%s14049_s22 + $0xda] sm:$0xf] }
 0x589   : > { %12163 = vmatprep.subr.bf16.mxu0 %v12162_v14  ;;  %v5857_v14 = vld [vmem:[#allocation8 + $0x100] sm:$0xff] }
 0x58b   : > { %5333 = vmatmul.mubr.f32.vlgmr.msra.gmra.mrb[8].mxu0 %v5234_v23  ;;  %v5980_v23 = vld [vmem:[#allocation8 + $0x148] sm:$0xff] }
 0x58c   : > { %12165 = vmatpush1.bf16.msra.mxu0 %v12164_v60  ;;  %5338 = vmatprep.mubr.f32.mxu0 %v13740_v0  ;;  %v12196_v60 = vpack.c.bf16 %v5859_v16, %v5857_v14  ;;  %v11172_v14 = vld [vmem:[%s14049_s22 + $0xf9] sm:$0xf]  ;;  %v6342_v16 = vld [vmem:[#allocation8 + $0x200] sm:$0xff] }
 0x58d   : > { %12167 = vmatprep.subr.bf16.mxu0 %v12166_v21  ;;  %v12198_v21 = vpack.c.bf16 %v5864_v19, %v5862_v17  ;;  %v6344_v17 = vld [vmem:[#allocation8 + $0x210] sm:$0xff]  ;;  %v6347_v19 = vld [vmem:[#allocation8 + $0x228] sm:$0xff] }
 0x58f   : > { %5339 = vmatmul.mubr.f32.gmra.mrb[10].mxu0 %v5235_v28  ;;  %v5979_v28 = vld [vmem:[#allocation8 + $0x140] sm:$0xff] }
 0x590   : > { %12169 = vmatpush1.bf16.msra.mxu0 %v12168_v25  ;;  %5485 = vmatprep.mubr.f32.mxu0 %v13740_v0  ;;  %v12200_v25 = vpack.c.bf16 %v5863_v22, %v5861_v61  ;;  %v6346_v22 = vld [vmem:[#allocation8 + $0x220] sm:$0xff] }
 0x591   : > { %12171 = vmatprep.subr.bf16.mxu0 %v12170_v2  ;;  %v12202_v2 = vpack.c.bf16 %v5982_v24, %v5980_v23  ;;  %v6348_v23 = vld [vmem:[#allocation8 + $0x230] sm:$0xff]  ;;  %v6464_v24 = vld [vmem:[#allocation8 + $0x248] sm:$0xff] }
 0x593   : > { %11129 = vmatmul.mubr.msk.f32.vlgmr.msra.gmra.mrb[12].mxu0 %vm517_vm0, %v11125_v30  ;;  %v5986_v30 = vld [vmem:[#allocation8 + $0x178] sm:$0xff] }
 0x594   : > { %12173 = vmatpush1.bf16.msra.mxu0 %v12172_v10  ;;  %5491 = vmatprep.mubr.f32.mxu0 %v13740_v0  ;;  %v11153_v10 = vld [vmem:[%s14049_s22 + $0xc4] sm:$0xff]  ;;  %v12206_v15 = vpack.c.bf16 %v5986_v30, %v5984_v29  ;;  %v6465_v29 = vld [vmem:[#allocation8 + $0x250] sm:$0xff] }
 0x595   : > { %12175 = vmatprep.subr.bf16.mxu0 %v12174_v32  ;;  %v12204_v32 = vpack.c.bf16 %v5981_v7, %v5979_v28  ;;  %v11180_v28 = vld [vmem:[%s14049_s22 + $0xfa] sm:$0xf]  ;;  %v6463_v7 = vld [vmem:[#allocation8 + $0x240] sm:$0xff]  ;;  %v6468_v30 = vld [vmem:[#allocation8 + $0x268] sm:$0xff] }
 0x597   : > { %11130 = vmatmul.mubr.msk.f32.gmra.mrb[14].mxu0 %vm517_vm0, %v11126_v18  ;;  %v6103_v18 = vld [vmem:[#allocation8 + $0x198] sm:$0xff] }
 0x598   : > { %5497 = vmatprep.mubr.f32.mxu0 %v13740_v0  ;;  %12177 = vmatpush1.bf16.msra.mxu0 %v12176_v38  ;;  %v11154_v38 = vld [vmem:[%s14049_s22 + $0xcc] sm:$0xff] }
 0x599   : > { %12179 = vmatprep.subr.bf16.mxu0 %v12178_v39  ;;  %v12208_v39 = vpack.c.bf16 %v5985_v35, %v5983_v33  ;;  %v6467_v35 = vld [vmem:[#allocation8 + $0x260] sm:$0xff] }
 0x59b   : > { %11131 = vmatmul.mubr.msk.f32.gmra.mrb[16].mxu0 %vm517_vm0, %v11127_v40  ;;  %v12210_v40 = vpack.c.bf16 %v6103_v18, %v6101_v36  ;;  %v6469_v36 = vld [vmem:[#allocation8 + $0x270] sm:$0xff]  ;;  %v6586_v18 = vld [vmem:[#allocation8 + $0x288] sm:$0xff] }
 0x59c   : > { %5503 = vmatprep.mubr.f32.mxu0 %v13740_v0 }
 0x59f   : > { %11132 = vmatmul.mubr.msk.f32.gmra.mrb[18].mxu0 %vm517_vm0, %v11128_v41  ;;  %v11155_v41 = vld [vmem:[%s14049_s22 + $0xd4] sm:$0xff] }
 0x5a0   : > { %5586 = vmatprep.mubr.f32.mxu0 %v13740_v0 }
 0x5a3   : > { %11133 = vmatmul.mubr.msk.f32.vlgmr.msra.gmra.mrb[12].mxu0 %vm517_vm0, %v11121_v31  ;;  %v6107_v31 = vld [vmem:[#allocation8 + $0x1b8] sm:$0xff] }
 0x5a4   : > { %12181 = vmatpush1.bf16.msra.mxu0 %v12180_v47  ;;  %5592 = vmatprep.mubr.f32.mxu0 %v13740_v0  ;;  %v11161_v47 = vld [vmem:[%s14049_s22 + $0xe0] sm:$0xff]  ;;  %v12214_v50 = vpack.c.bf16 %v6107_v31, %v6105_v46  ;;  %v6587_v46 = vld [vmem:[#allocation8 + $0x290] sm:$0xff]  ;;  %v6590_v31 = vld [vmem:[#allocation8 + $0x2a8] sm:$0xff] }
 0x5a5   : > { %12183 = vmatprep.subr.bf16.mxu0 %v12182_v49  ;;  %v12212_v49 = vpack.c.bf16 %v6102_v45, %v6100_v44  ;;  %v11188_v44 = vld [vmem:[%s14049_s22 + $0xfb] sm:$0xf]  ;;  %v6585_v45 = vld [vmem:[#allocation8 + $0x280] sm:$0xff] }
 0x5a7   : > { %11134 = vmatmul.mubr.msk.f32.gmra.mrb[14].mxu0 %vm517_vm0, %v11122_v54  ;;  %v6224_v54 = vld [vmem:[#allocation8 + $0x1d8] sm:$0xff] }
 0x5a8   : > { %5598 = vmatprep.mubr.f32.mxu0 %v13740_v0  ;;  %12185 = vmatpush1.bf16.msra.mxu0 %v12184_v55  ;;  %v11162_v55 = vld [vmem:[%s14049_s22 + $0xe8] sm:$0xff] }
 0x5a9   : > { %12187 = vmatprep.subr.bf16.mxu0 %v12186_v56  ;;  %v12216_v56 = vpack.c.bf16 %v6106_v52, %v6104_v51  ;;  %v6589_v52 = vld [vmem:[#allocation8 + $0x2a0] sm:$0xff] }
 0x5ab   : > { %11135 = vmatmul.mubr.msk.f32.gmra.mrb[16].mxu0 %vm517_vm0, %v11123_v57  ;;  %v12218_v57 = vpack.c.bf16 %v6224_v54, %v6222_v53  ;;  %v6591_v53 = vld [vmem:[#allocation8 + $0x2b0] sm:$0xff]  ;;  %v6707_v54 = vld [vmem:[#allocation8 + $0x2c8] sm:$0xff] }
 0x5ac   : > { %5604 = vmatprep.mubr.f32.mxu0 %v13740_v0 }
 0x5af   : > { %11136 = vmatmul.mubr.msk.f32.gmra.mrb[18].mxu0 %vm517_vm0, %v11124_v58  ;;  %v11163_v58 = vld [vmem:[%s14049_s22 + $0xf0] sm:$0xff] }
 0x5b0   : > { %5699 = vmatprep.mubr.f32.mxu0 %v13740_v0 }
 0x5b3   : > { %11141 = vmatmul.mubr.msk.f32.vlgmr.msra.gmra.mrb[12].mxu0 %vm517_vm0, %v11137_v34  ;;  %v6228_v34 = vld [vmem:[#allocation8 + $0x1f8] sm:$0xff] }
 0x5b4   : > { %12189 = vmatpush1.bf16.msra.mxu0 %v12188_v5  ;;  %5705 = vmatprep.mubr.f32.mxu0 %v13740_v0  ;;  %v11169_v5 = vld [vmem:[%s14049_s22 + $0xe1] sm:$0xff]  ;;  %v12222_v6 = vpack.c.bf16 %v6228_v34, %v6226_v4  ;;  %v6708_v4 = vld [vmem:[#allocation8 + $0x2d0] sm:$0xff] }
 0x5b5   : > { %12191 = vmatprep.subr.bf16.mxu0 %v12190_v37  ;;  %v12220_v37 = vpack.c.bf16 %v6223_v1, %v6221_v63  ;;  %v11196_v63 = vld [vmem:[%s14049_s22 + $0xfc] sm:$0xf]  ;;  %v6706_v1 = vld [vmem:[#allocation8 + $0x2c0] sm:$0xff]  ;;  %v6711_v34 = vld [vmem:[#allocation8 + $0x2e8] sm:$0xff] }
 0x5b7   : > { %11142 = vmatmul.mubr.msk.f32.gmra.mrb[14].mxu0 %vm517_vm0, %v11138_v11  ;;  %v6345_v11 = vld [vmem:[#allocation8 + $0x218] sm:$0xff] }
 0x5b8   : > { %5711 = vmatprep.mubr.f32.mxu0 %v13740_v0  ;;  %12193 = vmatpush1.bf16.msra.mxu0 %v12192_v12  ;;  %v11170_v12 = vld [vmem:[%s14049_s22 + $0xe9] sm:$0xff] }
 0x5b9   : > { %12195 = vmatprep.subr.bf16.mxu0 %v12194_v48  ;;  %v12224_v48 = vpack.c.bf16 %v6227_v43, %v6225_v8  ;;  %v6710_v43 = vld [vmem:[#allocation8 + $0x2e0] sm:$0xff] }
 0x5bb   : > { %11143 = vmatmul.mubr.msk.f32.gmra.mrb[16].mxu0 %vm517_vm0, %v11139_v3  ;;  %v12226_v3 = vpack.c.bf16 %v6345_v11, %v6343_v9  ;;  %v6712_v9 = vld [vmem:[#allocation8 + $0x2f0] sm:$0xff]  ;;  %v6828_v11 = vld [vmem:[#allocation8 + $0x308] sm:$0xff] }
 0x5bc   : > { %5717 = vmatprep.mubr.f32.mxu0 %v13740_v0 }
 0x5bf   : > { %11144 = vmatmul.mubr.msk.f32.gmra.mrb[18].mxu0 %vm517_vm0, %v11140_v13  ;;  %v11171_v13 = vld [vmem:[%s14049_s22 + $0xf1] sm:$0xff] }
 0x5c0   : > { %5820 = vmatprep.mubr.f32.mxu0 %v13740_v0 }
 0x5c3   : > { %11149 = vmatmul.mubr.msk.f32.vlgmr.msra.gmra.mrb[12].mxu0 %vm517_vm0, %v11145_v20  ;;  %v6349_v20 = vld [vmem:[#allocation8 + $0x238] sm:$0xff] }
 0x5c4   : > { %12197 = vmatpush1.bf16.msra.mxu0 %v12196_v60  ;;  %5826 = vmatprep.mubr.f32.mxu0 %v13740_v0  ;;  %v11177_v60 = vld [vmem:[%s14049_s22 + $0xe2] sm:$0xff]  ;;  %v12230_v61 = vpack.c.bf16 %v6349_v20, %v6347_v19  ;;  %v6829_v19 = vld [vmem:[#allocation8 + $0x310] sm:$0xff] }
 0x5c5   : > { %12199 = vmatprep.subr.bf16.mxu0 %v12198_v21  ;;  %v12228_v21 = vpack.c.bf16 %v6344_v17, %v6342_v16  ;;  %v11204_v16 = vld [vmem:[%s14049_s22 + $0x118] sm:$0xf]  ;;  %v6827_v17 = vld [vmem:[#allocation8 + $0x300] sm:$0xff]  ;;  %v6832_v20 = vld [vmem:[#allocation8 + $0x328] sm:$0xff] }
 0x5c7   : > { %11150 = vmatmul.mubr.msk.f32.gmra.mrb[14].mxu0 %vm517_vm0, %v11146_v62  ;;  %v6466_v62 = vld [vmem:[#allocation8 + $0x258] sm:$0xff] }
 0x5c8   : > { %5832 = vmatprep.mubr.f32.mxu0 %v13740_v0  ;;  %12201 = vmatpush1.bf16.msra.mxu0 %v12200_v25  ;;  %v11178_v25 = vld [vmem:[%s14049_s22 + $0xea] sm:$0xff] }
 0x5c9   : > { %12203 = vmatprep.subr.bf16.mxu0 %v12202_v2  ;;  %v12232_v2 = vpack.c.bf16 %v6348_v23, %v6346_v22  ;;  %v6831_v23 = vld [vmem:[#allocation8 + $0x320] sm:$0xff] }
 0x5cb   : > { %11151 = vmatmul.mubr.msk.f32.gmra.mrb[16].mxu0 %vm517_vm0, %v11147_v26  ;;  %v12234_v26 = vpack.c.bf16 %v6466_v62, %v6464_v24  ;;  %v6833_v24 = vld [vmem:[#allocation8 + $0x330] sm:$0xff]  ;;  %v6949_v62 = vld [vmem:[#allocation8 + $0x348] sm:$0xff] }
 0x5cc   : > { %5838 = vmatprep.mubr.f32.mxu0 %v13740_v0 }
 0x5cf   : > { %11152 = vmatmul.mubr.msk.f32.gmra.mrb[18].mxu0 %vm517_vm0, %v11148_v27  ;;  %v11179_v27 = vld [vmem:[%s14049_s22 + $0xf2] sm:$0xff] }
 0x5d0   : > { %5941 = vmatprep.mubr.f32.mxu0 %v13740_v0 }
 0x5d3   : > { %11157 = vmatmul.mubr.msk.f32.vlgmr.msra.gmra.mrb[12].mxu0 %vm517_vm0, %v11153_v10  ;;  %v6470_v10 = vld [vmem:[#allocation8 + $0x278] sm:$0xff] }
 0x5d4   : > { %12205 = vmatpush1.bf16.msra.mxu0 %v12204_v32  ;;  %5947 = vmatprep.mubr.f32.mxu0 %v13740_v0  ;;  %v11185_v32 = vld [vmem:[%s14049_s22 + $0xe3] sm:$0xff]  ;;  %v12238_v33 = vpack.c.bf16 %v6470_v10, %v6468_v30  ;;  %v6950_v30 = vld [vmem:[#allocation8 + $0x350] sm:$0xff] }
 0x5d5   : > { %12207 = vmatprep.subr.bf16.mxu0 %v12206_v15  ;;  %v12236_v15 = vpack.c.bf16 %v6465_v29, %v6463_v7  ;;  %v11212_v7 = vld [vmem:[%s14049_s22 + $0x119] sm:$0xf]  ;;  %v6948_v29 = vld [vmem:[#allocation8 + $0x340] sm:$0xff]  ;;  %v6953_v10 = vld [vmem:[#allocation8 + $0x368] sm:$0xff] }
 0x5d7   : > { %11158 = vmatmul.mubr.msk.f32.gmra.mrb[14].mxu0 %vm517_vm0, %v11154_v38  ;;  %v6588_v38 = vld [vmem:[#allocation8 + $0x298] sm:$0xff] }
 0x5d8   : > { %5953 = vmatprep.mubr.f32.mxu0 %v13740_v0  ;;  %12209 = vmatpush1.bf16.msra.mxu0 %v12208_v39  ;;  %v11186_v39 = vld [vmem:[%s14049_s22 + $0xeb] sm:$0xff] }
 0x5d9   : > { %12211 = vmatprep.subr.bf16.mxu0 %v12210_v40  ;;  %v12240_v40 = vpack.c.bf16 %v6469_v36, %v6467_v35  ;;  %v6952_v36 = vld [vmem:[#allocation8 + $0x360] sm:$0xff] }
 0x5db   : > { %11159 = vmatmul.mubr.msk.f32.gmra.mrb[16].mxu0 %vm517_vm0, %v11155_v41  ;;  %v12242_v41 = vpack.c.bf16 %v6588_v38, %v6586_v18  ;;  %v6954_v18 = vld [vmem:[#allocation8 + $0x370] sm:$0xff]  ;;  %v7070_v38 = vld [vmem:[#allocation8 + $0x388] sm:$0xff] }
 0x5dc   : > { %5959 = vmatprep.mubr.f32.mxu0 %v13740_v0 }
 0x5df   : > { %11160 = vmatmul.mubr.msk.f32.gmra.mrb[18].mxu0 %vm517_vm0, %v11156_v42  ;;  %v11187_v42 = vld [vmem:[%s14049_s22 + $0xf3] sm:$0xff] }
 0x5e0   : > { %6063 = vmatprep.mubr.f32.mxu0 %v13740_v0 }
 0x5e3   : > { %11165 = vmatmul.mubr.msk.f32.vlgmr.msra.gmra.mrb[12].mxu0 %vm517_vm0, %v11161_v47  ;;  %v6592_v47 = vld [vmem:[#allocation8 + $0x2b8] sm:$0xff] }
 0x5e4   : > { %12213 = vmatpush1.bf16.msra.mxu0 %v12212_v49  ;;  %6069 = vmatprep.mubr.f32.mxu0 %v13740_v0  ;;  %v11193_v49 = vld [vmem:[%s14049_s22 + $0xe4] sm:$0xff]  ;;  %v12246_v51 = vpack.c.bf16 %v6592_v47, %v6590_v31  ;;  %v7071_v31 = vld [vmem:[#allocation8 + $0x390] sm:$0xff] }
 0x5e5   : > { %12215 = vmatprep.subr.bf16.mxu0 %v12214_v50  ;;  %v12244_v50 = vpack.c.bf16 %v6587_v46, %v6585_v45  ;;  %v11220_v45 = vld [vmem:[%s14049_s22 + $0x11a] sm:$0xf]  ;;  %v7069_v46 = vld [vmem:[#allocation8 + $0x380] sm:$0xff] }
 0x5e7   : > { %11166 = vmatmul.mubr.msk.f32.gmra.mrb[14].mxu0 %vm517_vm0, %v11162_v55  ;;  %v6709_v55 = vld [vmem:[#allocation8 + $0x2d8] sm:$0xff] }
 0x5e8   : > { %6075 = vmatprep.mubr.f32.mxu0 %v13740_v0  ;;  %12217 = vmatpush1.bf16.msra.mxu0 %v12216_v56  ;;  %v11194_v56 = vld [vmem:[%s14049_s22 + $0xec] sm:$0xff] }
 0x5e9   : > { %12219 = vmatprep.subr.bf16.mxu0 %v12218_v57  ;;  %v12248_v57 = vpack.c.bf16 %v6591_v53, %v6589_v52  ;;  %v11117_v52 = vld [vmem:[%s14956_s4] ss:$0 sm:$0xff] }
 0x5eb   : > { %11167 = vmatmul.mubr.msk.f32.gmra.mrb[16].mxu0 %vm517_vm0, %v11163_v58  ;;  %v12250_v58 = vpack.c.bf16 %v6709_v55, %v6707_v54  ;;  %v11225_v54 = vld [vmem:[%s14049_s22 + $0x103] sm:$0xff]  ;;  %v12276_v55 = vpack.c.bf16 %v7071_v31, %v7069_v46  ;;  %v7271_v46 = vld [vmem:[#allocation11 + $0x190] sm:$0xff] }
 0x5ec   : > { %6081 = vmatprep.mubr.f32.mxu0 %v13740_v0 }
 0x5ef   : > { %11168 = vmatmul.mubr.msk.f32.gmra.mrb[18].mxu0 %vm517_vm0, %v11164_v59  ;;  %v11195_v59 = vld [vmem:[%s14049_s22 + $0xf4] sm:$0xff] }
 0x5f0   : > { %6184 = vmatprep.mubr.f32.mxu0 %v13740_v0 }
 0x5f3   : > { %11173 = vmatmul.mubr.msk.f32.vlgmr.msra.gmra.mrb[12].mxu0 %vm517_vm0, %v11169_v5  ;;  %v6713_v5 = vld [vmem:[#allocation8 + $0x2f8] sm:$0xff] }
 0x5f4   : > { %12221 = vmatpush1.bf16.msra.mxu0 %v12220_v37  ;;  %6190 = vmatprep.mubr.f32.mxu0 %v13740_v0  ;;  %v11201_v37 = vld [vmem:[%s14049_s22 + $0x100] sm:$0xff]  ;;  %v12254_v8 = vpack.c.bf16 %v6713_v5, %v6711_v34  ;;  %v11226_v5 = vld [vmem:[%s14049_s22 + $0x10b] sm:$0xff] }
 0x5f5   : > { %12223 = vmatprep.subr.bf16.mxu0 %v12222_v6  ;;  %v12252_v6 = vpack.c.bf16 %v6708_v4, %v6706_v1 }
 0x5f7   : > { %11174 = vmatmul.mubr.msk.f32.gmra.mrb[14].mxu0 %vm517_vm0, %v11170_v12  ;;  %v6830_v12 = vld [vmem:[#allocation8 + $0x318] sm:$0xff] }
 0x5f8   : > { %6196 = vmatprep.mubr.f32.mxu0 %v13740_v0  ;;  %12225 = vmatpush1.bf16.msra.mxu0 %v12224_v48  ;;  %v11202_v48 = vld [vmem:[%s14049_s22 + $0x108] sm:$0xff] }
 0x5f9   : > { %12227 = vmatprep.subr.bf16.mxu0 %v12226_v3  ;;  %v12256_v3 = vpack.c.bf16 %v6712_v9, %v6710_v43  ;;  %v11227_v43 = vld [vmem:[%s14049_s22 + $0x113] sm:$0xff]  ;;  %v11228_v9 = vld [vmem:[%s14049_s22 + $0x11b] sm:$0xf] }
 0x5fb   : > { %11175 = vmatmul.mubr.msk.f32.gmra.mrb[16].mxu0 %vm517_vm0, %v11171_v13  ;;  %v12258_v13 = vpack.c.bf16 %v6830_v12, %v6828_v11  ;;  %v11233_v11 = vld [vmem:[%s14049_s22 + $0x104] sm:$0xff] }
 0x5fc   : > { %6202 = vmatprep.mubr.f32.mxu0 %v13740_v0 }
 0x5ff   : > { %11176 = vmatmul.mubr.msk.f32.gmra.mrb[18].mxu0 %vm517_vm0, %v11172_v14  ;;  %v11203_v14 = vld [vmem:[%s14049_s22 + $0x110] sm:$0xff] }
 0x600   : > { %6305 = vmatprep.mubr.f32.mxu0 %v13740_v0 }
 0x603   : > { %11181 = vmatmul.mubr.msk.f32.vlgmr.msra.gmra.mrb[12].mxu0 %vm517_vm0, %v11177_v60  ;;  %v6834_v60 = vld [vmem:[#allocation8 + $0x338] sm:$0xff] }
 0x604   : > { %12229 = vmatpush1.bf16.msra.mxu0 %v12228_v21  ;;  %6311 = vmatprep.mubr.f32.mxu0 %v13740_v0  ;;  %v11209_v21 = vld [vmem:[%s14049_s22 + $0x101] sm:$0xff]  ;;  %v12262_v22 = vpack.c.bf16 %v6834_v60, %v6832_v20  ;;  %v11235_v20 = vld [vmem:[%s14049_s22 + $0x114] sm:$0xff]  ;;  %v11236_v60 = vld [vmem:[%s14049_s22 + $0x11c] sm:$0xf] }
 0x605   : > { %12231 = vmatprep.subr.bf16.mxu0 %v12230_v61  ;;  %v12260_v61 = vpack.c.bf16 %v6829_v19, %v6827_v17 }
 0x607   : > { %11182 = vmatmul.mubr.msk.f32.gmra.mrb[14].mxu0 %vm517_vm0, %v11178_v25  ;;  %v6951_v25 = vld [vmem:[#allocation8 + $0x358] sm:$0xff] }
 0x608   : > { %6317 = vmatprep.mubr.f32.mxu0 %v13740_v0  ;;  %12233 = vmatpush1.bf16.msra.mxu0 %v12232_v2  ;;  %v11210_v2 = vld [vmem:[%s14049_s22 + $0x109] sm:$0xff] }
 0x609   : > { %12235 = vmatprep.subr.bf16.mxu0 %v12234_v26  ;;  %v12264_v26 = vpack.c.bf16 %v6833_v24, %v6831_v23  ;;  %v7253_v23 = vld [vmem:[#allocation11 + $0x100] sm:$0xff]  ;;  %v7255_v24 = vld [vmem:[#allocation11 + $0x110] sm:$0xff] }
 0x60b   : > { %11183 = vmatmul.mubr.msk.f32.gmra.mrb[16].mxu0 %vm517_vm0, %v11179_v27  ;;  %v12266_v27 = vpack.c.bf16 %v6951_v25, %v6949_v62  ;;  %v12284_v62 = vpack.c.bf16 %v7255_v24, %v7253_v23  ;;  %v7258_v25 = vld [vmem:[#allocation11 + $0x128] sm:$0xff] }
 0x60c   : > { %6323 = vmatprep.mubr.f32.mxu0 %v13740_v0 }
 0x60f   : > { %11184 = vmatmul.mubr.msk.f32.gmra.mrb[18].mxu0 %vm517_vm0, %v11180_v28  ;;  %v11211_v28 = vld [vmem:[%s14049_s22 + $0x111] sm:$0xff] }
 0x610   : > { %6426 = vmatprep.mubr.f32.mxu0 %v13740_v0 }
 0x613   : > { %11189 = vmatmul.mubr.msk.f32.vlgmr.msra.gmra.mrb[12].mxu0 %vm517_vm0, %v11185_v32  ;;  %v6955_v32 = vld [vmem:[#allocation8 + $0x378] sm:$0xff] }
 0x614   : > { %12237 = vmatpush1.bf16.msra.mxu0 %v12236_v15  ;;  %6432 = vmatprep.mubr.f32.mxu0 %v13740_v0  ;;  %v11217_v15 = vld [vmem:[%s14049_s22 + $0x102] sm:$0xff]  ;;  %v12270_v35 = vpack.c.bf16 %v6955_v32, %v6953_v10 }
 0x615   : > { %12239 = vmatprep.subr.bf16.mxu0 %v12238_v33  ;;  %v12268_v33 = vpack.c.bf16 %v6950_v30, %v6948_v29  ;;  %v7262_v29 = vld [vmem:[#allocation11 + $0x148] sm:$0xff]  ;;  %v7264_v30 = vld [vmem:[#allocation11 + $0x158] sm:$0xff]  ;;  %v7261_v32 = vld [vmem:[#allocation11 + $0x140] sm:$0xff] }
 0x616   : > { %v12290_v10 = vpack.c.bf16 %v7264_v30, %v7262_v29 }
 0x617   : > { %11190 = vmatmul.mubr.msk.f32.gmra.mrb[14].mxu0 %vm517_vm0, %v11186_v39  ;;  %v7072_v39 = vld [vmem:[#allocation8 + $0x398] sm:$0xff] }
 0x618   : > { %6438 = vmatprep.mubr.f32.mxu0 %v13740_v0  ;;  %12241 = vmatpush1.bf16.msra.mxu0 %v12240_v40  ;;  %v11218_v40 = vld [vmem:[%s14049_s22 + $0x10a] sm:$0xff] }
 0x619   : > { %12243 = vmatprep.subr.bf16.mxu0 %v12242_v41  ;;  %v12272_v41 = vpack.c.bf16 %v6954_v18, %v6952_v36  ;;  %v7268_v36 = vld [vmem:[#allocation11 + $0x178] sm:$0xff] }
 0x61b   : > { %11191 = vmatmul.mubr.msk.f32.gmra.mrb[16].mxu0 %vm517_vm0, %v11187_v42  ;;  %v12274_v42 = vpack.c.bf16 %v7072_v39, %v7070_v38  ;;  %v7265_v38 = vld [vmem:[#allocation11 + $0x160] sm:$0xff]  ;;  %v7267_v39 = vld [vmem:[#allocation11 + $0x170] sm:$0xff] }
 0x61c   : > { %6444 = vmatprep.mubr.f32.mxu0 %v13740_v0 }
 0x61f   : > { %11192 = vmatmul.mubr.msk.f32.gmra.mrb[18].mxu0 %vm517_vm0, %v11188_v44  ;;  %v11219_v44 = vld [vmem:[%s14049_s22 + $0x112] sm:$0xff] }
 0x620   : > { %6547 = vmatprep.mubr.f32.mxu0 %v13740_v0 }
 0x623   : > { %11197 = vmatmul.mubr.msk.f32.vlgmr.msra.gmra.mrb[12].mxu0 %vm517_vm0, %v11193_v49  ;;  %v7074_v49 = vld [vmem:[#allocation8 + $0x3a8] sm:$0xff] }
 0x624   : > { %12245 = vmatpush1.bf16.msra.mxu0 %v12244_v50  ;;  %6553 = vmatprep.mubr.f32.mxu0 %v13740_v0  ;;  %v7076_v50 = vld [vmem:[#allocation8 + $0x3b8] sm:$0xff] }
 0x625   : > { %12247 = vmatprep.subr.bf16.mxu0 %v12246_v51 }
 0x627   : > { %11198 = vmatmul.mubr.msk.f32.gmra.mrb[14].mxu0 %vm517_vm0, %v11194_v56  ;;  %v12278_v56 = vpack.c.bf16 %v7076_v50, %v7074_v49  ;;  %v7276_v49 = vld [vmem:[#allocation11 + $0x1b8] sm:$0xff] }
 0x628   : > { %6559 = vmatprep.mubr.f32.mxu0 %v13740_v0  ;;  %12249 = vmatpush1.bf16.msra.mxu0 %v12248_v57  ;;  %v7073_v57 = vld [vmem:[#allocation8 + $0x3a0] sm:$0xff] }
 0x629   : > { %12251 = vmatprep.subr.bf16.mxu0 %v12250_v58  ;;  %v7075_v58 = vld [vmem:[#allocation8 + $0x3b0] sm:$0xff] }
 0x62b   : > { %11199 = vmatmul.mubr.msk.f32.gmra.mrb[16].mxu0 %vm517_vm0, %v11195_v59 }
 0x62c   : > { %6565 = vmatprep.mubr.f32.mxu0 %v13740_v0 }
 0x62f   : > { %11200 = vmatmul.mubr.msk.f32.gmra.mrb[18].mxu0 %vm517_vm0, %v11196_v63 }
 0x630   : > { %6669 = vmatprep.mubr.f32.mxu0 %v13740_v0 }
 0x633   : > { %11205 = vmatmul.mubr.msk.f32.vlgmr.msra.gmra.mrb[12].mxu0 %vm517_vm0, %v11201_v37  ;;  %v12280_v37 = vpack.c.bf16 %v7075_v58, %v7073_v57  ;;  %v7277_v57 = vld [vmem:[#allocation11 + $0x1c0] sm:$0xff]  ;;  %v7279_v58 = vld [vmem:[#allocation11 + $0x1d0] sm:$0xff] }
 0x634   : > { %12253 = vmatpush1.bf16.msra.mxu0 %v12252_v6  ;;  %6675 = vmatprep.mubr.f32.mxu0 %v13740_v0 }
 0x635   : > { %12255 = vmatprep.subr.bf16.mxu0 %v12254_v8 }
 0x637   : > { %11206 = vmatmul.mubr.msk.f32.gmra.mrb[14].mxu0 %vm517_vm0, %v11202_v48 }
 0x638   : > { %6681 = vmatprep.mubr.f32.mxu0 %v13740_v0  ;;  %12257 = vmatpush1.bf16.msra.mxu0 %v12256_v3 }
 0x639   : > { %12259 = vmatprep.subr.bf16.mxu0 %v12258_v13  ;;  %v11234_v13 = vld [vmem:[%s14049_s22 + $0x10c] sm:$0xff] }
 0x63b   : > { %11207 = vmatmul.mubr.msk.f32.gmra.mrb[16].mxu0 %vm517_vm0, %v11203_v14 }
 0x63c   : > { %6687 = vmatprep.mubr.f32.mxu0 %v13740_v0 }
 0x63f   : > { %11208 = vmatmul.mubr.msk.f32.gmra.mrb[18].mxu0 %vm517_vm0, %v11204_v16 }
 0x640   : > { %6790 = vmatprep.mubr.f32.mxu0 %v13740_v0 }
 0x643   : > { %11213 = vmatmul.mubr.msk.f32.vlgmr.msra.gmra.mrb[12].mxu0 %vm517_vm0, %v11209_v21  ;;  %v7254_v21 = vld [vmem:[#allocation11 + $0x108] sm:$0xff] }
 0x644   : > { %12261 = vmatpush1.bf16.msra.mxu0 %v12260_v61  ;;  %6796 = vmatprep.mubr.f32.mxu0 %v13740_v0  ;;  %v7256_v61 = vld [vmem:[#allocation11 + $0x118] sm:$0xff] }
 0x645   : > { %12263 = vmatprep.subr.bf16.mxu0 %v12262_v22  ;;  %v12282_v22 = vpack.c.bf16 %v7256_v61, %v7254_v21 }
 0x647   : > { %11214 = vmatmul.mubr.msk.f32.gmra.mrb[14].mxu0 %vm517_vm0, %v11210_v2  ;;  %12283 = vmatprep.subr.bf16.mxu1 %v12282_v22  ;;  %v7260_v2 = vld [vmem:[#allocation11 + $0x138] sm:$0xff] }
 0x648   : > { %6802 = vmatprep.mubr.f32.mxu0 %v13740_v0  ;;  %12265 = vmatpush1.bf16.msra.mxu0 %v12264_v26  ;;  %v12286_v26 = vpack.c.bf16 %v7260_v2, %v7258_v25 }
 0x649   : > { %12267 = vmatprep.subr.bf16.mxu0 %v12266_v27  ;;  %12285 = vmatpush1.bf16.msra.mxu1 %v12284_v62  ;;  %v7257_v27 = vld [vmem:[#allocation11 + $0x120] sm:$0xff] }
 0x64a   : > { %12287 = vmatprep.subr.bf16.mxu1 %v12286_v26 }
 0x64b   : > { %11215 = vmatmul.mubr.msk.f32.gmra.mrb[16].mxu0 %vm517_vm0, %v11211_v28  ;;  %v7259_v28 = vld [vmem:[#allocation11 + $0x130] sm:$0xff] }
 0x64c   : > { %6808 = vmatprep.mubr.f32.mxu0 %v13740_v0 }
 0x64f   : > { %11216 = vmatmul.mubr.msk.f32.gmra.mrb[18].mxu0 %vm517_vm0, %v11212_v7  ;;  %v12288_v7 = vpack.c.bf16 %v7259_v28, %v7257_v27 }
 0x650   : > { %6911 = vmatprep.mubr.f32.mxu0 %v13740_v0 }
 0x651   : > { %12289 = vmatpush1.bf16.msra.mxu1 %v12288_v7 }
 0x652   : > { %12291 = vmatprep.subr.bf16.mxu1 %v12290_v10 }
 0x653   : > { %11221 = vmatmul.mubr.msk.f32.vlgmr.msra.gmra.mrb[12].mxu0 %vm517_vm0, %v11217_v15  ;;  %v7263_v15 = vld [vmem:[#allocation11 + $0x150] sm:$0xff] }
 0x654   : > { %12269 = vmatpush1.bf16.msra.mxu0 %v12268_v33  ;;  %6917 = vmatprep.mubr.f32.mxu0 %v13740_v0  ;;  %v12292_v33 = vpack.c.bf16 %v7263_v15, %v7261_v32  ;;  %v7219_v32 = vld [vmem:[#allocation11] sm:$0xff]  ;;  %v7221_v15 = vld [vmem:[#allocation11 + $0x10] sm:$0xff] }
 0x655   : > { %12271 = vmatprep.subr.bf16.mxu0 %v12270_v35  ;;  %v7266_v35 = vld [vmem:[#allocation11 + $0x168] sm:$0xff] }
 0x656   : > { %12293 = vmatpush1.bf16.msra.mxu1 %v12292_v33  ;;  %v12294_v18 = vpack.c.bf16 %v7268_v36, %v7266_v35  ;;  %v7224_v33 = vld [vmem:[#allocation11 + $0x28] sm:$0xff]  ;;  %v7226_v35 = vld [vmem:[#allocation11 + $0x38] sm:$0xff]  ;;  %v12316_v36 = vpack.c.bf16 %v7221_v15, %v7219_v32  ;;  %v7449_v32 = vld [vmem:[#allocation11 + $0x240] sm:$0xff] }
 0x657   : > { %11222 = vmatmul.mubr.msk.f32.gmra.mrb[14].mxu0 %vm517_vm0, %v11218_v40  ;;  %v12296_v40 = vpack.c.bf16 %v7267_v39, %v7265_v38  ;;  %v7223_v38 = vld [vmem:[#allocation11 + $0x20] sm:$0xff]  ;;  %v7225_v39 = vld [vmem:[#allocation11 + $0x30] sm:$0xff] }
 0x658   : > { %6923 = vmatprep.mubr.f32.mxu0 %v13740_v0  ;;  %12273 = vmatpush1.bf16.msra.mxu0 %v12272_v41  ;;  %v7270_v41 = vld [vmem:[#allocation11 + $0x188] sm:$0xff]  ;;  %v7451_v15 = vld [vmem:[#allocation11 + $0x250] sm:$0xff] }
 0x659   : > { %12275 = vmatprep.subr.bf16.mxu0 %v12274_v42  ;;  %12295 = vmatprep.subr.bf16.mxu1 %v12294_v18  ;;  %v7272_v42 = vld [vmem:[#allocation11 + $0x198] sm:$0xff]  ;;  %v12318_v18 = vpack.c.bf16 %v7226_v35, %v7224_v33  ;;  %v7454_v35 = vld [vmem:[#allocation11 + $0x268] sm:$0xff] }
 0x65a   : > { %12297 = vmatpush1.bf16.msra.mxu1 %v12296_v40 }
 0x65b   : > { %11223 = vmatmul.mubr.msk.f32.gmra.mrb[16].mxu0 %vm517_vm0, %v11219_v44  ;;  %v12298_v44 = vpack.c.bf16 %v7272_v42, %v7270_v41  ;;  %v7228_v41 = vld [vmem:[#allocation11 + $0x48] sm:$0xff]  ;;  %v7230_v42 = vld [vmem:[#allocation11 + $0x58] sm:$0xff] }
 0x65c   : > { %6929 = vmatprep.mubr.f32.mxu0 %v13740_v0 }
 0x65d   : > { %12299 = vmatprep.subr.bf16.mxu1 %v12298_v44  ;;  %v12320_v44 = vpack.c.bf16 %v7225_v39, %v7223_v38  ;;  %v7453_v39 = vld [vmem:[#allocation11 + $0x260] sm:$0xff] }
 0x65e   : > { %v5334_v47 = vpop.f32.mrb[8].mxu0 }
 0x65f   : > { %v5336_v51 = vpop.f32.mrb[9].mxu0  ;;  %11224 = vmatmul.mubr.msk.f32.gmra.mrb[18].mxu0 %vm517_vm0, %v11220_v45  ;;  %v7269_v45 = vld [vmem:[#allocation11 + $0x180] sm:$0xff] }
 0x660   : > { %v5349_v53 = vmax.f32 %v5334_v47, %v5336_v51  ;;  %7032 = vmatprep.mubr.f32.mxu0 %v13740_v0  ;;  %v12300_v31 = vpack.c.bf16 %v7271_v46, %v7269_v45  ;;  %v7274_v47 = vld [vmem:[#allocation11 + $0x1a8] sm:$0xff]  ;;  %v7273_v51 = vld [vmem:[#allocation11 + $0x1a0] sm:$0xff]  ;;  %v12322_v45 = vpack.c.bf16 %v7230_v42, %v7228_v41  ;;  %v7460_v41 = vld [vmem:[#allocation11 + $0x298] sm:$0xff] }
 0x661   : > { %v12302_v50 = vpack.c.bf16 %v7276_v49, %v7274_v47  ;;  %v7227_v46 = vld [vmem:[#allocation11 + $0x40] sm:$0xff]  ;;  %v7232_v49 = vld [vmem:[#allocation11 + $0x68] sm:$0xff] }
 0x662   : > { %v5358_v59 = vadd.f32 %v11117_v52, %v5349_v53  ;;  %v5340_v63 = vpop.f32.mrb[10].mxu0  ;;  %12301 = vmatpush1.bf16.msra.mxu1 %v12300_v31  ;;  %v7229_v31 = vld [vmem:[#allocation11 + $0x50] sm:$0xff] }
 0x663   : > { %v5342_v1 = vpop.f32.mrb[11].mxu0  ;;  %11229 = vmatmul.mubr.msk.f32.vlgmr.msra.gmra.mrb[12].mxu0 %vm517_vm0, %v11225_v54  ;;  %12303 = vmatprep.subr.bf16.mxu1 %v12302_v50  ;;  %v7278_v54 = vld [vmem:[#allocation11 + $0x1c8] sm:$0xff]  ;;  %v7234_v50 = vld [vmem:[#allocation11 + $0x78] sm:$0xff] }
 0x664   : > { %v5360_v4 = vmax.f32 %v5358_v59, 0.0  ;;  %v5350_v34 = vmax.f32 %v5340_v63, %v5342_v1  ;;  %12277 = vmatpush1.bf16.msra.mxu0 %v12276_v55  ;;  %7038 = vmatprep.mubr.f32.mxu0 %v13740_v0  ;;  %v7280_v55 = vld [vmem:[#allocation11 + $0x1d8] sm:$0xff]  ;;  %v12308_v59 = vpack.c.bf16 %v7279_v58, %v7277_v57  ;;  %v7282_v63 = vld [vmem:[#allocation11 + $0x1e8] sm:$0xff] }
 0x665   : > { %12279 = vmatprep.subr.bf16.mxu0 %v12278_v56  ;;  %v12306_v56 = vpack.c.bf16 %v7280_v55, %v7278_v54  ;;  %v7284_v1 = vld [vmem:[#allocation11 + $0x1f8] sm:$0xff]  ;;  %v7233_v54 = vld [vmem:[#allocation11 + $0x70] sm:$0xff]  ;;  %v7236_v55 = vld [vmem:[#allocation11 + $0x88] sm:$0xff] }
 0x666   : > { %5362 = vst [vmem:[#allocation4] sm:$0xff] %v5360_v4  ;;  %v5359_v6 = vadd.f32 %v11117_v52, %v5350_v34  ;;  %v7275_v52 = vld [vmem:[#allocation11 + $0x1b0] sm:$0xff]  ;;  %v7281_v4 = vld [vmem:[#allocation11 + $0x1e0] sm:$0xff]  ;;  %v12310_v34 = vpack.c.bf16 %v7284_v1, %v7282_v63  ;;  %v7240_v1 = vld [vmem:[#allocation11 + $0xa8] sm:$0xff] }
 0x667   : > { %11230 = vmatmul.mubr.msk.f32.gmra.mrb[14].mxu0 %vm517_vm0, %v11226_v5  ;;  %v12304_v53 = vpack.c.bf16 %v7275_v52, %v7273_v51  ;;  %v7283_v5 = vld [vmem:[#allocation11 + $0x1f0] sm:$0xff]  ;;  %v12324_v51 = vpack.c.bf16 %v7229_v31, %v7227_v46  ;;  %v12326_v52 = vpack.c.bf16 %v7234_v50, %v7232_v49  ;;  %v7462_v31 = vld [vmem:[#allocation11 + $0x2a8] sm:$0xff] }
 0x668   : > { %v5361_v8 = vmax.f32 %v5359_v6, 0.0  ;;  %7044 = vmatprep.mubr.f32.mxu0 %v13740_v0  ;;  %12281 = vmatpush1.bf16.msra.mxu0 %v12280_v37  ;;  %v7220_v37 = vld [vmem:[#allocation11 + $0x8] sm:$0xff]  ;;  %v7222_v6 = vld [vmem:[#allocation11 + $0x18] sm:$0xff]  ;;  %v7237_v63 = vld [vmem:[#allocation11 + $0x90] sm:$0xff] }
 0x669   : > { %12305 = vmatpush1.bf16.msra.mxu1 %v12304_v53  ;;  %v7231_v53 = vld [vmem:[#allocation11 + $0x60] sm:$0xff]  ;;  %v7459_v46 = vld [vmem:[#allocation11 + $0x290] sm:$0xff] }
 0x66a   : > { %5363 = vst [vmem:[#allocation4 + $0x8] sm:$0x3] %v5361_v8  ;;  %12307 = vmatprep.subr.bf16.mxu1 %v12306_v56  ;;  %v12312_v8 = vpack.c.bf16 %v7283_v5, %v7281_v4  ;;  %v7238_v56 = vld [vmem:[#allocation11 + $0x98] sm:$0xff]  ;;  %v12328_v57 = vpack.c.bf16 %v7233_v54, %v7231_v53  ;;  %v7466_v53 = vld [vmem:[#allocation11 + $0x2c8] sm:$0xff] }
 0x66b   : > { %11231 = vmatmul.mubr.msk.f32.gmra.mrb[16].mxu0 %vm517_vm0, %v11227_v43  ;;  %v12314_v43 = vpack.c.bf16 %v7222_v6, %v7220_v37  ;;  %v12330_v58 = vpack.c.bf16 %v7238_v56, %v7236_v55  ;;  %v7242_v4 = vld [vmem:[#allocation11 + $0xb8] sm:$0xff]  ;;  %v7239_v37 = vld [vmem:[#allocation11 + $0xa0] sm:$0xff]  ;;  %v7241_v6 = vld [vmem:[#allocation11 + $0xb0] sm:$0xff] }
 0x66c   : > { %7050 = vmatprep.mubr.f32.mxu0 %v13740_v0  ;;  %v12334_v5 = vpack.c.bf16 %v7242_v4, %v7240_v1  ;;  %v7468_v54 = vld [vmem:[#allocation11 + $0x2d8] sm:$0xff] }
 0x66d   : > { %12309 = vmatpush1.bf16.msra.mxu1 %v12308_v59  ;;  %v7235_v59 = vld [vmem:[#allocation11 + $0x80] sm:$0xff]  ;;  %v12370_v56 = vpack.c.bf16 %v7468_v54, %v7466_v53  ;;  %v7674_v53 = vld [vmem:[#allocation11 + $0x418] sm:$0xff] }
 0x66e   : > { %12311 = vmatprep.subr.bf16.mxu1 %v12310_v34  ;;  %v12332_v34 = vpack.c.bf16 %v7237_v63, %v7235_v59  ;;  %v7470_v59 = vld [vmem:[#allocation11 + $0x2e8] sm:$0xff]  ;;  %v7472_v63 = vld [vmem:[#allocation11 + $0x2f8] sm:$0xff] }
 0x66f   : > { %11232 = vmatmul.mubr.msk.f32.gmra.mrb[18].mxu0 %vm517_vm0, %v11228_v9  ;;  %v12374_v4 = vpack.c.bf16 %v7472_v63, %v7470_v59  ;;  %v7678_v59 = vld [vmem:[#allocation11 + $0x438] sm:$0xff] }
 0x670   : > { %7153 = vmatprep.mubr.f32.mxu0 %v13740_v0 }
 0x671   : > { %v5364_v12 = vld [vmem:[#allocation4] ss:$2 sm:$0x1f]  ;;  %v5365_v48 = vld [vmem:[#allocation4 + $0x1] ss:$2 sm:$0x1f]  ;;  %12313 = vmatpush1.bf16.msra.mxu1 %v12312_v8 }
 0x672   : > { %v5366_v3 = vmax.f32 %v5364_v12, %v5365_v48  ;;  %12315 = vmatprep.subr.bf16.mxu1 %v12314_v43  ;;  %v11241_v12 = vld [vmem:[#allocation10] ss:$0 sm:$0xff]  ;;  %v7244_v8 = vld [vmem:[#allocation11 + $0xc8] sm:$0xff] }
 0x673   : > { %11237 = vmatmul.mubr.msk.f32.vlgmr.msra.gmra.mrb[12].mxu0 %vm517_vm0, %v11233_v11  ;;  %v7246_v43 = vld [vmem:[#allocation11 + $0xd8] sm:$0xff] }
 0x674   : > { %7159 = vmatprep.mubr.f32.mxu0 %v13740_v0  ;;  %5367 = vst [vmem:[#allocation5 + $0x1] sm:$0x1] %v5366_v3  ;;  %v11118_v14 = vrot.slane %v5366_v3, 9  ;;  %v11119_v16 = vrot.slane %v5366_v3, 10  ;;  %v11120_v17 = vrot.slane %v5366_v3, 11  ;;  %v5381_v19 = vcombine.high %v5366_v3, %v5366_v3 }
 0x676   : > { %5372 = vst [vmem:[#allocation5 + $0x5] sm:$0x1] %v11118_v14  ;;  %5376 = vst [vmem:[#allocation5 + $0x9] sm:$0x1] %v11119_v16 }
 0x677   : > { %5380 = vst [vmem:[#allocation5 + $0xd] sm:$0x1] %v11120_v17  ;;  %5383 = vst [vmem:[#allocation5 + $0x11] sm:$0x1] %v5381_v19  ;;  %11238 = vmatmul.mubr.msk.f32.gmra.mrb[14].mxu0 %vm517_vm0, %v11234_v13 }
 0x678   : > { %7165 = vmatprep.mubr.f32.mxu0 %v13740_v0 }
 0x67b   : > { %11239 = vmatmul.mubr.msk.f32.gmra.mrb[16].mxu0 %vm517_vm0, %v11235_v20 }
 0x67c   : > { %7171 = vmatprep.mubr.f32.mxu0 %v13740_v0 }
 0x67f   : > { %11240 = vmatmul.mubr.msk.f32.gmra.mrb[18].mxu0 %vm517_vm0, %v11236_v60 }
 0x680   : > { %9784 = vmatprep.mubr.f32.mxu0 %v13740_v0 }
 0x746   : > { %v7155_v9 = vpop.f32.mrb[12].mxu0 }
 0x747   : > { %v7157_v11 = vpop.f32.mrb[13].mxu0 }
 0x748   : > { %v7186_v48 = vmax.f32 %v7155_v9, %v7157_v11  ;;  %v12336_v9 = vpack.c.bf16 %v7241_v6, %v7239_v37  ;;  %v12338_v11 = vpack.c.bf16 %v7246_v43, %v7244_v8  ;;  %v7557_v37 = vld [vmem:[#allocation11 + $0x308] sm:$0xff]  ;;  %v7559_v6 = vld [vmem:[#allocation11 + $0x318] sm:$0xff] }
 0x749   : > { %v12378_v43 = vpack.c.bf16 %v7559_v6, %v7557_v37  ;;  %v7680_v37 = vld [vmem:[#allocation11 + $0x448] sm:$0xff]  ;;  %v7682_v6 = vld [vmem:[#allocation11 + $0x458] sm:$0xff] }
 0x74a   : > { %v7197_v3 = vadd.f32 %v11241_v12, %v7186_v48  ;;  %v7161_v13 = vpop.f32.mrb[14].mxu0  ;;  %v7245_v48 = vld [vmem:[#allocation11 + $0xd0] sm:$0xff] }
 0x74b   : > { %v7163_v14 = vpop.f32.mrb[15].mxu0 }
 0x74c   : > { %v7201_v16 = vmax.f32 %v7197_v3, 0.0  ;;  %v7187_v17 = vmax.f32 %v7161_v13, %v7163_v14  ;;  %v7248_v3 = vld [vmem:[#allocation11 + $0xe8] sm:$0xff]  ;;  %v7250_v13 = vld [vmem:[#allocation11 + $0xf8] sm:$0xff] }
 0x74e   : > { %7205 = vst [vmem:[#allocation2] sm:$0xff] %v7201_v16  ;;  %v7198_v19 = vadd.f32 %v11241_v12, %v7187_v17  ;;  %v7167_v20 = vpop.f32.mrb[16].mxu0  ;;  %v12342_v16 = vpack.c.bf16 %v7250_v13, %v7248_v3  ;;  %v7247_v17 = vld [vmem:[#allocation11 + $0xe0] sm:$0xff] }
 0x74f   : > { %v7169_v60 = vpop.f32.mrb[17].mxu0 }
 0x750   : > { %v7202_v21 = vmax.f32 %v7198_v19, 0.0  ;;  %v7188_v61 = vmax.f32 %v7167_v20, %v7169_v60  ;;  %v7249_v19 = vld [vmem:[#allocation11 + $0xf0] sm:$0xff]  ;;  %v7442_v20 = vld [vmem:[#allocation11 + $0x208] sm:$0xff]  ;;  %v7444_v60 = vld [vmem:[#allocation11 + $0x218] sm:$0xff] }
 0x752   : > { %7206 = vst [vmem:[#allocation2 + $0x8] sm:$0xff] %v7202_v21  ;;  %v7199_v22 = vadd.f32 %v11241_v12, %v7188_v61  ;;  %v7173_v23 = vpop.f32.mrb[18].mxu0  ;;  %v12344_v21 = vpack.c.bf16 %v7249_v19, %v7247_v17  ;;  %v12346_v61 = vpack.c.bf16 %v7444_v60, %v7442_v20  ;;  %v7565_v19 = vld [vmem:[#allocation11 + $0x348] sm:$0xff]  ;;  %v7567_v20 = vld [vmem:[#allocation11 + $0x358] sm:$0xff] }
 0x753   : > { %v7175_v24 = vpop.f32.mrb[19].mxu0 }
 0x754   : > { %v7203_v62 = vmax.f32 %v7199_v22, 0.0  ;;  %v7189_v25 = vmax.f32 %v7173_v23, %v7175_v24  ;;  %v7441_v22 = vld [vmem:[#allocation11 + $0x200] sm:$0xff]  ;;  %v7443_v23 = vld [vmem:[#allocation11 + $0x210] sm:$0xff]  ;;  %v7446_v24 = vld [vmem:[#allocation11 + $0x228] sm:$0xff] }
 0x756   : > { %7207 = vst [vmem:[#allocation2 + $0x10] sm:$0xff] %v7203_v62  ;;  %v7200_v2 = vadd.f32 %v11241_v12, %v7189_v25  ;;  %v7243_v12 = vld [vmem:[#allocation11 + $0xc0] sm:$0xff]  ;;  %v7448_v62 = vld [vmem:[#allocation11 + $0x238] sm:$0xff]  ;;  %v12348_v25 = vpack.c.bf16 %v7443_v23, %v7441_v22  ;;  %v7566_v22 = vld [vmem:[#allocation11 + $0x350] sm:$0xff] }
 0x757   : > { %v12340_v14 = vpack.c.bf16 %v7245_v48, %v7243_v12  ;;  %v7561_v12 = vld [vmem:[#allocation11 + $0x328] sm:$0xff]  ;;  %v7563_v48 = vld [vmem:[#allocation11 + $0x338] sm:$0xff] }
 0x758   : > { %v7204_v26 = vmax.f32 %v7200_v2, 0.0  ;;  %v12350_v2 = vpack.c.bf16 %v7448_v62, %v7446_v24  ;;  %v12382_v13 = vpack.c.bf16 %v7563_v48, %v7561_v12  ;;  %v7569_v24 = vld [vmem:[#allocation11 + $0x368] sm:$0xff]  ;;  %v7571_v62 = vld [vmem:[#allocation11 + $0x378] sm:$0xff] }
 0x759   : > { %v7209_v27 = vld [vmem:[#allocation2] ss:$2 sm:$0xff]  ;;  %v7211_v28 = vld [vmem:[#allocation2 + $0x1] ss:$2 sm:$0xff] }
 0x75a   : > { %v14683_v7 = vmax.f32 %v7209_v27, %v7211_v28  ;;  %7208 = vst [vmem:[#allocation2 + $0x18] sm:$0xf] %v7204_v26  ;;  %v7445_v26 = vld [vmem:[#allocation11 + $0x220] sm:$0xff]  ;;  %v7447_v27 = vld [vmem:[#allocation11 + $0x230] sm:$0xff]  ;;  %v7450_v28 = vld [vmem:[#allocation11 + $0x248] sm:$0xff] }
 0x75b   : > { %v7684_v48 = vld [vmem:[#allocation11 + $0x468] sm:$0xff] }
 0x75c   : > { %7215 = vst [vmem:[#allocation3] sm:$0xff] %v14683_v7 }
 0x761   : > { %v7210_v29 = vld [vmem:[#allocation2 + $0x10] ss:$2 sm:$0x3f]  ;;  %v7212_v30 = vld [vmem:[#allocation2 + $0x11] ss:$2 sm:$0x3f] }
 0x762   : > { %v7214_v10 = vmax.f32 %v7210_v29, %v7212_v30  ;;  %v7452_v29 = vld [vmem:[#allocation11 + $0x258] sm:$0xff]  ;;  %v12352_v30 = vpack.c.bf16 %v7447_v27, %v7445_v26  ;;  %v7568_v26 = vld [vmem:[#allocation11 + $0x360] sm:$0xff]  ;;  %v7570_v27 = vld [vmem:[#allocation11 + $0x370] sm:$0xff] }
 0x764   : > { %7216 = vst [vmem:[#allocation3 + $0x8] sm:$0x3f] %v7214_v10  ;;  %v12354_v10 = vpack.c.bf16 %v7452_v29, %v7450_v28  ;;  %v7573_v28 = vld [vmem:[#allocation11 + $0x388] sm:$0xff]  ;;  %v7575_v29 = vld [vmem:[#allocation11 + $0x398] sm:$0xff] }
 0x76b   : > { %v7251_v40 = vld [vmem:[#allocation3 + $0x1] sm:$0xff]  ;;  %v7252_v47 = vld [vmem:[#allocation3 + $0x9] sm:$0x3]  ;;  %v7555_v12 = vld [vmem:[#allocation3 + $0xb] sm:$0x3] }
 0x76c   : > { %7350 = vmatmul.mubr.f32.vlgmr.msra.gmra.mrb[20].mxu1 %v7251_v40  ;;  %v7218_v33 = vld [vmem:[#allocation3 + $0x8] sm:$0x3]  ;;  %v7458_v40 = vld [vmem:[#allocation11 + $0x288] sm:$0xff]  ;;  %v7440_v23 = vld [vmem:[#allocation3 + $0xa] sm:$0x3] }
 0x76d   : > { %12317 = vmatpush1.bf16.msra.mxu1 %v12316_v36  ;;  %7355 = vmatprep.mubr.f32.mxu1 %v13740_v0  ;;  %v7456_v36 = vld [vmem:[#allocation11 + $0x278] sm:$0xff]  ;;  %v7439_v17 = vld [vmem:[#allocation3 + $0x2] sm:$0xff] }
 0x76e   : > { %12319 = vmatprep.subr.bf16.mxu1 %v12318_v18  ;;  %v12356_v18 = vpack.c.bf16 %v7451_v15, %v7449_v32  ;;  %v12358_v38 = vpack.c.bf16 %v7456_v36, %v7454_v35  ;;  %v7572_v32 = vld [vmem:[#allocation11 + $0x380] sm:$0xff]  ;;  %v7574_v15 = vld [vmem:[#allocation11 + $0x390] sm:$0xff]  ;;  %v7579_v35 = vld [vmem:[#allocation11 + $0x3b8] sm:$0xff] }
 0x76f   : > { %v12396_v36 = vpack.c.bf16 %v7574_v15, %v7572_v32  ;;  %v7697_v32 = vld [vmem:[#allocation11 + $0x4d0] sm:$0xff]  ;;  %v7700_v15 = vld [vmem:[#allocation11 + $0x4e8] sm:$0xff] }
 0x770   : > { %7356 = vmatmul.mubr.f32.gmra.mrb[22].mxu1 %v7252_v47  ;;  %v7464_v47 = vld [vmem:[#allocation11 + $0x2b8] sm:$0xff] }
 0x771   : > { %12321 = vmatpush1.bf16.msra.mxu1 %v12320_v44  ;;  %7426 = vmatprep.mubr.f32.mxu1 %v13740_v0  ;;  %v12362_v44 = vpack.c.bf16 %v7460_v41, %v7458_v40  ;;  %v12366_v50 = vpack.c.bf16 %v7464_v47, %v7462_v31  ;;  %v7583_v40 = vld [vmem:[#allocation11 + $0x3d8] sm:$0xff] }
 0x772   : > { %12323 = vmatprep.subr.bf16.mxu1 %v12322_v45  ;;  %v7457_v45 = vld [vmem:[#allocation11 + $0x280] sm:$0xff]  ;;  %v7587_v31 = vld [vmem:[#allocation11 + $0x3f8] sm:$0xff] }
 0x773   : > { %v12364_v49 = vpack.c.bf16 %v7459_v46, %v7457_v45  ;;  %v7582_v45 = vld [vmem:[#allocation11 + $0x3d0] sm:$0xff]  ;;  %v7585_v46 = vld [vmem:[#allocation11 + $0x3e8] sm:$0xff] }
 0x775   : > { %12325 = vmatpush1.bf16.msra.mxu1 %v12324_v51  ;;  %v7461_v51 = vld [vmem:[#allocation11 + $0x2a0] sm:$0xff] }
 0x776   : > { %12327 = vmatprep.subr.bf16.mxu1 %v12326_v52  ;;  %v7463_v52 = vld [vmem:[#allocation11 + $0x2b0] sm:$0xff] }
 0x777   : > { %v12368_v55 = vpack.c.bf16 %v7463_v52, %v7461_v51  ;;  %v7586_v51 = vld [vmem:[#allocation11 + $0x3f0] sm:$0xff]  ;;  %v7672_v52 = vld [vmem:[#allocation11 + $0x408] sm:$0xff] }
 0x779   : > { %12329 = vmatpush1.bf16.msra.mxu1 %v12328_v57  ;;  %v7465_v57 = vld [vmem:[#allocation11 + $0x2c0] sm:$0xff] }
 0x77a   : > { %12331 = vmatprep.subr.bf16.mxu1 %v12330_v58  ;;  %v7467_v58 = vld [vmem:[#allocation11 + $0x2d0] sm:$0xff] }
 0x77b   : > { %v12372_v1 = vpack.c.bf16 %v7467_v58, %v7465_v57  ;;  %v7673_v57 = vld [vmem:[#allocation11 + $0x410] sm:$0xff]  ;;  %v7676_v58 = vld [vmem:[#allocation11 + $0x428] sm:$0xff] }
 0x77d   : > { %12333 = vmatpush1.bf16.msra.mxu1 %v12332_v34  ;;  %v7469_v34 = vld [vmem:[#allocation11 + $0x2e0] sm:$0xff] }
 0x77e   : > { %12335 = vmatprep.subr.bf16.mxu1 %v12334_v5  ;;  %v7471_v5 = vld [vmem:[#allocation11 + $0x2f0] sm:$0xff] }
 0x77f   : > { %v12376_v8 = vpack.c.bf16 %v7471_v5, %v7469_v34  ;;  %v7677_v34 = vld [vmem:[#allocation11 + $0x430] sm:$0xff] }
 0x780   : > { %v7554_v5 = vld [vmem:[#allocation3 + $0x3] sm:$0xff] }
 0x781   : > { %12337 = vmatpush1.bf16.msra.mxu1 %v12336_v9  ;;  %v7556_v9 = vld [vmem:[#allocation11 + $0x300] sm:$0xff] }
 0x782   : > { %12339 = vmatprep.subr.bf16.mxu1 %v12338_v11  ;;  %v7558_v11 = vld [vmem:[#allocation11 + $0x310] sm:$0xff] }
 0x783   : > { %v12380_v3 = vpack.c.bf16 %v7558_v11, %v7556_v9  ;;  %v7679_v9 = vld [vmem:[#allocation11 + $0x440] sm:$0xff]  ;;  %v7681_v11 = vld [vmem:[#allocation11 + $0x450] sm:$0xff] }
 0x785   : > { %12341 = vmatpush1.bf16.msra.mxu1 %v12340_v14  ;;  %v7560_v14 = vld [vmem:[#allocation11 + $0x320] sm:$0xff] }
 0x786   : > { %12343 = vmatprep.subr.bf16.mxu1 %v12342_v16  ;;  %v7562_v16 = vld [vmem:[#allocation11 + $0x330] sm:$0xff] }
 0x787   : > { %v12384_v60 = vpack.c.bf16 %v7562_v16, %v7560_v14  ;;  %v7683_v16 = vld [vmem:[#allocation11 + $0x460] sm:$0xff] }
 0x789   : > { %12345 = vmatpush1.bf16.msra.mxu1 %v12344_v21  ;;  %v12386_v21 = vpack.c.bf16 %v7567_v20, %v7565_v19  ;;  %v7688_v19 = vld [vmem:[#allocation11 + $0x488] sm:$0xff]  ;;  %v7690_v20 = vld [vmem:[#allocation11 + $0x498] sm:$0xff] }
 0x78a   : > { %12347 = vmatprep.subr.bf16.mxu1 %v12346_v61  ;;  %v7564_v61 = vld [vmem:[#allocation11 + $0x340] sm:$0xff] }
 0x78c   : > { %7427 = vmatmul.mubr.f32.vlgmr.msra.gmra.mrb[20].mxu1 %v14683_v7  ;;  %v7455_v7 = vld [vmem:[#allocation11 + $0x270] sm:$0xff] }
 0x78d   : > { %12349 = vmatpush1.bf16.msra.mxu1 %v12348_v25  ;;  %7432 = vmatprep.mubr.f32.mxu1 %v13740_v0  ;;  %v12360_v42 = vpack.c.bf16 %v7455_v7, %v7453_v39  ;;  %v12388_v25 = vpack.c.bf16 %v7566_v22, %v7564_v61  ;;  %v7578_v39 = vld [vmem:[#allocation11 + $0x3b0] sm:$0xff]  ;;  %v7581_v7 = vld [vmem:[#allocation11 + $0x3c8] sm:$0xff]  ;;  %v7687_v61 = vld [vmem:[#allocation11 + $0x480] sm:$0xff] }
 0x78e   : > { %12351 = vmatprep.subr.bf16.mxu1 %v12350_v2  ;;  %v12390_v2 = vpack.c.bf16 %v7571_v62, %v7569_v24  ;;  %v7689_v22 = vld [vmem:[#allocation11 + $0x490] sm:$0xff]  ;;  %v7694_v24 = vld [vmem:[#allocation11 + $0x4b8] sm:$0xff] }
 0x78f   : > { %v12428_v62 = vpack.c.bf16 %v7689_v22, %v7687_v61  ;;  %v8172_v61 = vld [vmem:[#allocation8 + $0xc8] sm:$0xff]  ;;  %v8174_v22 = vld [vmem:[#allocation8 + $0xd8] sm:$0xff] }
 0x790   : > { %7433 = vmatmul.mubr.f32.gmra.mrb[22].mxu1 %v7218_v33  ;;  %v7577_v33 = vld [vmem:[#allocation11 + $0x3a8] sm:$0xff] }
 0x791   : > { %12353 = vmatpush1.bf16.msra.mxu1 %v12352_v30  ;;  %7537 = vmatprep.mubr.f32.mxu1 %v13740_v0  ;;  %v12392_v30 = vpack.c.bf16 %v7570_v27, %v7568_v26  ;;  %v7693_v26 = vld [vmem:[#allocation11 + $0x4b0] sm:$0xff]  ;;  %v7696_v27 = vld [vmem:[#allocation11 + $0x4c8] sm:$0xff] }
 0x792   : > { %12355 = vmatprep.subr.bf16.mxu1 %v12354_v10  ;;  %v12394_v10 = vpack.c.bf16 %v7575_v29, %v7573_v28  ;;  %v7698_v28 = vld [vmem:[#allocation11 + $0x4d8] sm:$0xff] }
 0x795   : > { %12357 = vmatpush1.bf16.msra.mxu1 %v12356_v18  ;;  %v12398_v18 = vpack.c.bf16 %v7579_v35, %v7577_v33  ;;  %v7702_v33 = vld [vmem:[#allocation11 + $0x4f8] sm:$0xff] }
 0x796   : > { %12359 = vmatprep.subr.bf16.mxu1 %v12358_v38  ;;  %v7576_v38 = vld [vmem:[#allocation11 + $0x3a0] sm:$0xff] }
 0x797   : > { %v12400_v41 = vpack.c.bf16 %v7578_v39, %v7576_v38  ;;  %v7701_v38 = vld [vmem:[#allocation11 + $0x4f0] sm:$0xff]  ;;  %v7837_v39 = vld [vmem:[#allocation8 + $0x48] sm:$0xff] }
 0x799   : > { %12361 = vmatpush1.bf16.msra.mxu1 %v12360_v42  ;;  %v12402_v42 = vpack.c.bf16 %v7583_v40, %v7581_v7  ;;  %v7839_v7 = vld [vmem:[#allocation8 + $0x58] sm:$0xff] }
 0x79a   : > { %12363 = vmatprep.subr.bf16.mxu1 %v12362_v44  ;;  %v7580_v44 = vld [vmem:[#allocation11 + $0x3c0] sm:$0xff] }
 0x79b   : > { %v12404_v47 = vpack.c.bf16 %v7582_v45, %v7580_v44  ;;  %v7838_v44 = vld [vmem:[#allocation8 + $0x50] sm:$0xff]  ;;  %v7841_v45 = vld [vmem:[#allocation8 + $0x68] sm:$0xff] }
 0x79d   : > { %12365 = vmatpush1.bf16.msra.mxu1 %v12364_v49  ;;  %v12406_v49 = vpack.c.bf16 %v7587_v31, %v7585_v46  ;;  %v7843_v46 = vld [vmem:[#allocation8 + $0x78] sm:$0xff] }
 0x79e   : > { %12367 = vmatprep.subr.bf16.mxu1 %v12366_v50  ;;  %v7584_v50 = vld [vmem:[#allocation11 + $0x3e0] sm:$0xff] }
 0x79f   : > { %v12408_v54 = vpack.c.bf16 %v7586_v51, %v7584_v50  ;;  %v7842_v50 = vld [vmem:[#allocation8 + $0x70] sm:$0xff] }
 0x7a0   : > { %v7669_v51 = vld [vmem:[#allocation3 + $0x4] sm:$0xff] }
 0x7a1   : > { %12369 = vmatpush1.bf16.msra.mxu1 %v12368_v55  ;;  %v12410_v55 = vpack.c.bf16 %v7674_v53, %v7672_v52  ;;  %v7825_v52 = vld [vmem:[#allocation8 + $0x8] sm:$0xff]  ;;  %v7827_v53 = vld [vmem:[#allocation8 + $0x18] sm:$0xff] }
 0x7a2   : > { %12371 = vmatprep.subr.bf16.mxu1 %v12370_v56  ;;  %v7671_v56 = vld [vmem:[#allocation11 + $0x400] sm:$0xff] }
 0x7a3   : > { %v12412_v63 = vpack.c.bf16 %v7673_v57, %v7671_v56  ;;  %v7824_v56 = vld [vmem:[#allocation8] sm:$0xff]  ;;  %v7826_v57 = vld [vmem:[#allocation8 + $0x10] sm:$0xff] }
 0x7a5   : > { %12373 = vmatpush1.bf16.msra.mxu1 %v12372_v1  ;;  %v12414_v1 = vpack.c.bf16 %v7678_v59, %v7676_v58  ;;  %v7670_v58 = vld [vmem:[#allocation3 + $0xc] sm:$0x3]  ;;  %v7829_v59 = vld [vmem:[#allocation8 + $0x28] sm:$0xff] }
 0x7a6   : > { %12375 = vmatprep.subr.bf16.mxu1 %v12374_v4  ;;  %v7675_v4 = vld [vmem:[#allocation11 + $0x420] sm:$0xff] }
 0x7a9   : > { %12377 = vmatpush1.bf16.msra.mxu1 %v12376_v8  ;;  %v12416_v8 = vpack.c.bf16 %v7677_v34, %v7675_v4  ;;  %v12452_v4 = vpack.c.bf16 %v7826_v57, %v7824_v56  ;;  %v11272_v56 = vld [vmem:[%s14049_s22 + $0x133] sm:$0xff]  ;;  %v11273_v57 = vld [vmem:[%s14049_s22 + $0x13b] sm:$0xf] }
 0x7aa   : > { %12379 = vmatprep.subr.bf16.mxu1 %v12378_v43  ;;  %v12418_v43 = vpack.c.bf16 %v7682_v6, %v7680_v37  ;;  %v7830_v37 = vld [vmem:[#allocation8 + $0x30] sm:$0xff]  ;;  %v8051_v6 = vld [vmem:[#allocation8 + $0x88] sm:$0xff] }
 0x7ac   : > { %7538 = vmatmul.mubr.f32.vlgmr.msra.gmra.mrb[20].mxu1 %v7439_v17  ;;  %v7685_v17 = vld [vmem:[#allocation11 + $0x470] sm:$0xff] }
 0x7ad   : > { %12381 = vmatpush1.bf16.msra.mxu1 %v12380_v3  ;;  %7543 = vmatprep.mubr.f32.mxu1 %v13740_v0  ;;  %v7686_v3 = vld [vmem:[#allocation11 + $0x478] sm:$0xff] }
 0x7ae   : > { %12383 = vmatprep.subr.bf16.mxu1 %v12382_v13  ;;  %v12420_v13 = vpack.c.bf16 %v7681_v11, %v7679_v9  ;;  %v12422_v14 = vpack.c.bf16 %v7686_v3, %v7684_v48  ;;  %v11253_v48 = vld [vmem:[%s14049_s22 + $0x139] sm:$0xf]  ;;  %v8050_v3 = vld [vmem:[#allocation8 + $0x80] sm:$0xff] }
 0x7b0   : > { %7544 = vmatmul.mubr.f32.gmra.mrb[22].mxu1 %v7440_v23  ;;  %v7692_v23 = vld [vmem:[#allocation11 + $0x4a8] sm:$0xff] }
 0x7b1   : > { %12385 = vmatpush1.bf16.msra.mxu1 %v12384_v60  ;;  %7652 = vmatprep.mubr.f32.mxu1 %v13740_v0  ;;  %v12424_v60 = vpack.c.bf16 %v7685_v17, %v7683_v16  ;;  %v8057_v16 = vld [vmem:[#allocation8 + $0xb8] sm:$0xff]  ;;  %v11246_v17 = vld [vmem:[%s14049_s22 + $0x120] sm:$0xff] }
 0x7b2   : > { %12387 = vmatprep.subr.bf16.mxu1 %v12386_v21  ;;  %v12426_v21 = vpack.c.bf16 %v7690_v20, %v7688_v19 }
 0x7b5   : > { %12389 = vmatpush1.bf16.msra.mxu1 %v12388_v25  ;;  %v12430_v25 = vpack.c.bf16 %v7694_v24, %v7692_v23  ;;  %v11247_v23 = vld [vmem:[%s14049_s22 + $0x128] sm:$0xff] }
 0x7b6   : > { %12391 = vmatprep.subr.bf16.mxu1 %v12390_v2  ;;  %v7691_v2 = vld [vmem:[#allocation11 + $0x4a0] sm:$0xff] }
 0x7b7   : > { %v12432_v29 = vpack.c.bf16 %v7693_v26, %v7691_v2  ;;  %v11249_v2 = vld [vmem:[%s14049_s22 + $0x138] sm:$0xf]  ;;  %v8171_v26 = vld [vmem:[#allocation8 + $0xc0] sm:$0xff] }
 0x7b9   : > { %12393 = vmatpush1.bf16.msra.mxu1 %v12392_v30  ;;  %v12434_v30 = vpack.c.bf16 %v7698_v28, %v7696_v27  ;;  %v8173_v27 = vld [vmem:[#allocation8 + $0xd0] sm:$0xff]  ;;  %v8176_v28 = vld [vmem:[#allocation8 + $0xe8] sm:$0xff] }
 0x7ba   : > { %12395 = vmatprep.subr.bf16.mxu1 %v12394_v10  ;;  %v7695_v10 = vld [vmem:[#allocation11 + $0x4c0] sm:$0xff] }
 0x7bb   : > { %v12436_v35 = vpack.c.bf16 %v7697_v32, %v7695_v10  ;;  %v12468_v10 = vpack.c.bf16 %v8173_v27, %v8171_v26  ;;  %v11289_v26 = vld [vmem:[%s14049_s22 + $0x158] sm:$0xf]  ;;  %v8656_v27 = vld [vmem:[#allocation8 + $0x1c0] sm:$0xff] }
 0x7bd   : > { %12397 = vmatpush1.bf16.msra.mxu1 %v12396_v36  ;;  %v12438_v36 = vpack.c.bf16 %v7702_v33, %v7700_v15  ;;  %v8175_v15 = vld [vmem:[#allocation8 + $0xe0] sm:$0xff]  ;;  %v8177_v33 = vld [vmem:[#allocation8 + $0xf0] sm:$0xff] }
 0x7be   : > { %12399 = vmatprep.subr.bf16.mxu1 %v12398_v18  ;;  %v7699_v18 = vld [vmem:[#allocation11 + $0x4e0] sm:$0xff] }
 0x7bf   : > { %v12440_v40 = vpack.c.bf16 %v7701_v38, %v7699_v18  ;;  %v11263_v18 = vld [vmem:[%s14049_s22 + $0x12a] sm:$0xff]  ;;  %v12472_v38 = vpack.c.bf16 %v8177_v33, %v8175_v15  ;;  %v8660_v33 = vld [vmem:[#allocation8 + $0x1e0] sm:$0xff] }
 0x7c1   : > { %12401 = vmatpush1.bf16.msra.mxu1 %v12400_v41  ;;  %v12442_v41 = vpack.c.bf16 %v7839_v7, %v7837_v39  ;;  %v11264_v7 = vld [vmem:[%s14049_s22 + $0x132] sm:$0xff] }
 0x7c2   : > { %12403 = vmatprep.subr.bf16.mxu1 %v12402_v42  ;;  %v7836_v42 = vld [vmem:[#allocation8 + $0x40] sm:$0xff] }
 0x7c3   : > { %v12444_v31 = vpack.c.bf16 %v7838_v44, %v7836_v42  ;;  %v8294_v42 = vld [vmem:[#allocation8 + $0x110] sm:$0xff]  ;;  %v8297_v44 = vld [vmem:[#allocation8 + $0x128] sm:$0xff] }
 0x7c5   : > { %12405 = vmatpush1.bf16.msra.mxu1 %v12404_v47  ;;  %v12446_v47 = vpack.c.bf16 %v7843_v46, %v7841_v45  ;;  %v8299_v45 = vld [vmem:[#allocation8 + $0x138] sm:$0xff]  ;;  %v11270_v46 = vld [vmem:[%s14049_s22 + $0x123] sm:$0xff] }
 0x7c6   : > { %12407 = vmatprep.subr.bf16.mxu1 %v12406_v49  ;;  %v7840_v49 = vld [vmem:[#allocation8 + $0x60] sm:$0xff] }
 0x7c9   : > { %12409 = vmatpush1.bf16.msra.mxu1 %v12408_v54  ;;  %v12448_v54 = vpack.c.bf16 %v7842_v50, %v7840_v49  ;;  %v8296_v49 = vld [vmem:[#allocation8 + $0x120] sm:$0xff]  ;;  %v8298_v50 = vld [vmem:[#allocation8 + $0x130] sm:$0xff] }
 0x7ca   : > { %12411 = vmatprep.subr.bf16.mxu1 %v12410_v55  ;;  %v12450_v55 = vpack.c.bf16 %v7827_v53, %v7825_v52  ;;  %v8417_v52 = vld [vmem:[#allocation8 + $0x158] sm:$0xff]  ;;  %v11271_v53 = vld [vmem:[%s14049_s22 + $0x12b] sm:$0xff] }
 0x7cc   : > { %7653 = vmatmul.mubr.f32.vlgmr.msra.gmra.mrb[20].mxu1 %v7554_v5  ;;  %v7828_v5 = vld [vmem:[#allocation8 + $0x20] sm:$0xff] }
 0x7cd   : > { %12413 = vmatpush1.bf16.msra.mxu1 %v12412_v63  ;;  %7658 = vmatprep.mubr.f32.mxu1 %v13740_v0  ;;  %v7831_v63 = vld [vmem:[#allocation8 + $0x38] sm:$0xff]  ;;  %v12456_v9 = vpack.c.bf16 %v7830_v37, %v7828_v5  ;;  %v8418_v37 = vld [vmem:[#allocation8 + $0x160] sm:$0xff] }
 0x7ce   : > { %12415 = vmatprep.subr.bf16.mxu1 %v12414_v1  ;;  %v11250_v1 = vld [vmem:[%s14049_s22 + $0x121] sm:$0xff]  ;;  %v12454_v34 = vpack.c.bf16 %v7831_v63, %v7829_v59  ;;  %v8416_v59 = vld [vmem:[#allocation8 + $0x150] sm:$0xff] }
 0x7cf   : > { %v8419_v63 = vld [vmem:[#allocation8 + $0x168] sm:$0xff] }
 0x7d0   : > { %7659 = vmatmul.mubr.f32.gmra.mrb[22].mxu1 %v7555_v12  ;;  %v11252_v12 = vld [vmem:[%s14049_s22 + $0x131] sm:$0xff] }
 0x7d1   : > { %12417 = vmatpush1.bf16.msra.mxu1 %v12416_v8  ;;  %7767 = vmatprep.mubr.f32.mxu1 %v13740_v0  ;;  %v8053_v8 = vld [vmem:[#allocation8 + $0x98] sm:$0xff] }
 0x7d2   : > { %12419 = vmatprep.subr.bf16.mxu1 %v12418_v43  ;;  %v11251_v43 = vld [vmem:[%s14049_s22 + $0x129] sm:$0xff]  ;;  %v12458_v11 = vpack.c.bf16 %v8053_v8, %v8051_v6 }
 0x7d3   : > { %v8420_v6 = vld [vmem:[#allocation8 + $0x170] sm:$0xff]  ;;  %v8536_v8 = vld [vmem:[#allocation8 + $0x188] sm:$0xff] }
 0x7d5   : > { %12421 = vmatpush1.bf16.msra.mxu1 %v12420_v13  ;;  %v8052_v13 = vld [vmem:[#allocation8 + $0x90] sm:$0xff] }
 0x7d6   : > { %12423 = vmatprep.subr.bf16.mxu1 %v12422_v14  ;;  %v8055_v14 = vld [vmem:[#allocation8 + $0xa8] sm:$0xff]  ;;  %v12460_v19 = vpack.c.bf16 %v8052_v13, %v8050_v3  ;;  %v11281_v3 = vld [vmem:[%s14049_s22 + $0x13c] sm:$0xf]  ;;  %v8535_v13 = vld [vmem:[#allocation8 + $0x180] sm:$0xff] }
 0x7d7   : > { %v12462_v20 = vpack.c.bf16 %v8057_v16, %v8055_v14  ;;  %v8537_v14 = vld [vmem:[#allocation8 + $0x190] sm:$0xff]  ;;  %v8540_v16 = vld [vmem:[#allocation8 + $0x1a8] sm:$0xff] }
 0x7d9   : > { %12425 = vmatpush1.bf16.msra.mxu1 %v12424_v60  ;;  %v8054_v60 = vld [vmem:[#allocation8 + $0xa0] sm:$0xff] }
 0x7da   : > { %12427 = vmatprep.subr.bf16.mxu1 %v12426_v21  ;;  %v8056_v21 = vld [vmem:[#allocation8 + $0xb0] sm:$0xff] }
 0x7db   : > { %v12464_v24 = vpack.c.bf16 %v8056_v21, %v8054_v60  ;;  %v8539_v21 = vld [vmem:[#allocation8 + $0x1a0] sm:$0xff] }
 0x7dd   : > { %12429 = vmatpush1.bf16.msra.mxu1 %v12428_v62  ;;  %v12466_v62 = vpack.c.bf16 %v8174_v22, %v8172_v61  ;;  %v8541_v61 = vld [vmem:[#allocation8 + $0x1b0] sm:$0xff]  ;;  %v8657_v22 = vld [vmem:[#allocation8 + $0x1c8] sm:$0xff] }
 0x7de   : > { %12431 = vmatprep.subr.bf16.mxu1 %v12430_v25  ;;  %v11248_v25 = vld [vmem:[%s14049_s22 + $0x130] sm:$0xff] }
 0x7e1   : > { %12433 = vmatpush1.bf16.msra.mxu1 %v12432_v29  ;;  %v8178_v29 = vld [vmem:[#allocation8 + $0xf8] sm:$0xff] }
 0x7e2   : > { %12435 = vmatprep.subr.bf16.mxu1 %v12434_v30  ;;  %v11262_v30 = vld [vmem:[%s14049_s22 + $0x122] sm:$0xff]  ;;  %v12470_v32 = vpack.c.bf16 %v8178_v29, %v8176_v28  ;;  %v8658_v28 = vld [vmem:[#allocation8 + $0x1d0] sm:$0xff] }
 0x7e3   : > { %v8661_v29 = vld [vmem:[#allocation8 + $0x1e8] sm:$0xff] }
 0x7e5   : > { %12437 = vmatpush1.bf16.msra.mxu1 %v12436_v35  ;;  %v8293_v35 = vld [vmem:[#allocation8 + $0x108] sm:$0xff] }
 0x7e6   : > { %12439 = vmatprep.subr.bf16.mxu1 %v12438_v36  ;;  %v8295_v36 = vld [vmem:[#allocation8 + $0x118] sm:$0xff] }
 0x7e7   : > { %v12474_v39 = vpack.c.bf16 %v8295_v36, %v8293_v35  ;;  %v8662_v35 = vld [vmem:[#allocation8 + $0x1f0] sm:$0xff]  ;;  %v8778_v36 = vld [vmem:[#allocation8 + $0x208] sm:$0xff] }
 0x7e9   : > { %12441 = vmatpush1.bf16.msra.mxu1 %v12440_v40  ;;  %v11265_v40 = vld [vmem:[%s14049_s22 + $0x13a] sm:$0xf] }
 0x7ea   : > { %12443 = vmatprep.subr.bf16.mxu1 %v12442_v41  ;;  %v8292_v41 = vld [vmem:[#allocation8 + $0x100] sm:$0xff] }
 0x7ec   : > { %7768 = vmatmul.mubr.f32.vlgmr.msra.gmra.mrb[20].mxu1 %v7669_v51  ;;  %v8415_v51 = vld [vmem:[#allocation8 + $0x148] sm:$0xff] }
 0x7ed   : > { %12445 = vmatpush1.bf16.msra.mxu1 %v12444_v31  ;;  %7773 = vmatprep.mubr.f32.mxu1 %v13740_v0  ;;  %v12476_v31 = vpack.c.bf16 %v8294_v42, %v8292_v41  ;;  %v11297_v41 = vld [vmem:[%s14049_s22 + $0x159] sm:$0xf]  ;;  %v8777_v42 = vld [vmem:[#allocation8 + $0x200] sm:$0xff] }
 0x7ee   : > { %12447 = vmatprep.subr.bf16.mxu1 %v12446_v47  ;;  %v12478_v47 = vpack.c.bf16 %v8299_v45, %v8297_v44  ;;  %v8779_v44 = vld [vmem:[#allocation8 + $0x210] sm:$0xff]  ;;  %v8782_v45 = vld [vmem:[#allocation8 + $0x228] sm:$0xff] }
 0x7f0   : > { %7774 = vmatmul.mubr.f32.gmra.mrb[22].mxu1 %v7670_v58  ;;  %v8414_v58 = vld [vmem:[#allocation8 + $0x140] sm:$0xff] }
 0x7f1   : > { %12449 = vmatpush1.bf16.msra.mxu1 %v12448_v54  ;;  %7920 = vmatprep.mubr.f32.mxu1 %v13740_v0  ;;  %v12480_v54 = vpack.c.bf16 %v8298_v50, %v8296_v49  ;;  %v8781_v50 = vld [vmem:[#allocation8 + $0x220] sm:$0xff] }
 0x7f2   : > { %12451 = vmatprep.subr.bf16.mxu1 %v12450_v55  ;;  %v12482_v55 = vpack.c.bf16 %v8417_v52, %v8415_v51  ;;  %v8783_v51 = vld [vmem:[#allocation8 + $0x230] sm:$0xff]  ;;  %v8899_v52 = vld [vmem:[#allocation8 + $0x248] sm:$0xff] }
 0x7f4   : > { %11254 = vmatmul.mubr.msk.f32.vlgmr.msra.gmra.mrb[24].mxu1 %vm517_vm0, %v11250_v1  ;;  %v8421_v1 = vld [vmem:[#allocation8 + $0x178] sm:$0xff] }
 0x7f5   : > { %12453 = vmatpush1.bf16.msra.mxu1 %v12452_v4  ;;  %7926 = vmatprep.mubr.f32.mxu1 %v13740_v0  ;;  %v11278_v4 = vld [vmem:[%s14049_s22 + $0x124] sm:$0xff]  ;;  %v12486_v5 = vpack.c.bf16 %v8421_v1, %v8419_v63  ;;  %v8900_v63 = vld [vmem:[#allocation8 + $0x250] sm:$0xff] }
 0x7f6   : > { %12455 = vmatprep.subr.bf16.mxu1 %v12454_v34  ;;  %v12484_v34 = vpack.c.bf16 %v8416_v59, %v8414_v58  ;;  %v11305_v58 = vld [vmem:[%s14049_s22 + $0x15a] sm:$0xf]  ;;  %v8898_v59 = vld [vmem:[#allocation8 + $0x240] sm:$0xff]  ;;  %v8903_v1 = vld [vmem:[#allocation8 + $0x268] sm:$0xff] }
 0x7f8   : > { %11255 = vmatmul.mubr.msk.f32.gmra.mrb[26].mxu1 %vm517_vm0, %v11251_v43  ;;  %v8538_v43 = vld [vmem:[#allocation8 + $0x198] sm:$0xff] }
 0x7f9   : > { %7932 = vmatprep.mubr.f32.mxu1 %v13740_v0  ;;  %12457 = vmatpush1.bf16.msra.mxu1 %v12456_v9  ;;  %v11279_v9 = vld [vmem:[%s14049_s22 + $0x12c] sm:$0xff] }
 0x7fa   : > { %12459 = vmatprep.subr.bf16.mxu1 %v12458_v11  ;;  %v12488_v11 = vpack.c.bf16 %v8420_v6, %v8418_v37  ;;  %v8902_v6 = vld [vmem:[#allocation8 + $0x260] sm:$0xff] }
 0x7fc   : > { %11256 = vmatmul.mubr.msk.f32.gmra.mrb[28].mxu1 %vm517_vm0, %v11252_v12  ;;  %v12490_v12 = vpack.c.bf16 %v8538_v43, %v8536_v8  ;;  %v8904_v8 = vld [vmem:[#allocation8 + $0x270] sm:$0xff]  ;;  %v9021_v43 = vld [vmem:[#allocation8 + $0x288] sm:$0xff] }
 0x7fd   : > { %7938 = vmatprep.mubr.f32.mxu1 %v13740_v0 }
 0x800   : > { %11257 = vmatmul.mubr.msk.f32.gmra.mrb[30].mxu1 %vm517_vm0, %v11253_v48  ;;  %v11280_v48 = vld [vmem:[%s14049_s22 + $0x134] sm:$0xff] }
 0x801   : > { %8021 = vmatprep.mubr.f32.mxu1 %v13740_v0 }
 0x804   : > { %11258 = vmatmul.mubr.msk.f32.vlgmr.msra.gmra.mrb[24].mxu1 %vm517_vm0, %v11246_v17  ;;  %v8542_v17 = vld [vmem:[#allocation8 + $0x1b8] sm:$0xff] }
 0x805   : > { %12461 = vmatpush1.bf16.msra.mxu1 %v12460_v19  ;;  %8027 = vmatprep.mubr.f32.mxu1 %v13740_v0  ;;  %v11286_v19 = vld [vmem:[%s14049_s22 + $0x140] sm:$0xff]  ;;  %v12494_v60 = vpack.c.bf16 %v8542_v17, %v8540_v16  ;;  %v9022_v16 = vld [vmem:[#allocation8 + $0x290] sm:$0xff]  ;;  %v9025_v17 = vld [vmem:[#allocation8 + $0x2a8] sm:$0xff] }
 0x806   : > { %12463 = vmatprep.subr.bf16.mxu1 %v12462_v20  ;;  %v12492_v20 = vpack.c.bf16 %v8537_v14, %v8535_v13  ;;  %v11313_v13 = vld [vmem:[%s14049_s22 + $0x15b] sm:$0xf]  ;;  %v9020_v14 = vld [vmem:[#allocation8 + $0x280] sm:$0xff] }
 0x808   : > { %11259 = vmatmul.mubr.msk.f32.gmra.mrb[26].mxu1 %vm517_vm0, %v11247_v23  ;;  %v8659_v23 = vld [vmem:[#allocation8 + $0x1d8] sm:$0xff] }
 0x809   : > { %8033 = vmatprep.mubr.f32.mxu1 %v13740_v0  ;;  %12465 = vmatpush1.bf16.msra.mxu1 %v12464_v24  ;;  %v11287_v24 = vld [vmem:[%s14049_s22 + $0x148] sm:$0xff] }
 0x80a   : > { %12467 = vmatprep.subr.bf16.mxu1 %v12466_v62  ;;  %v12496_v62 = vpack.c.bf16 %v8541_v61, %v8539_v21  ;;  %v9024_v61 = vld [vmem:[#allocation8 + $0x2a0] sm:$0xff] }
 0x80c   : > { %11260 = vmatmul.mubr.msk.f32.gmra.mrb[28].mxu1 %vm517_vm0, %v11248_v25  ;;  %v12498_v25 = vpack.c.bf16 %v8659_v23, %v8657_v22  ;;  %v9026_v22 = vld [vmem:[#allocation8 + $0x2b0] sm:$0xff]  ;;  %v9142_v23 = vld [vmem:[#allocation8 + $0x2c8] sm:$0xff] }
 0x80d   : > { %8039 = vmatprep.mubr.f32.mxu1 %v13740_v0 }
 0x810   : > { %11261 = vmatmul.mubr.msk.f32.gmra.mrb[30].mxu1 %vm517_vm0, %v11249_v2  ;;  %v11288_v2 = vld [vmem:[%s14049_s22 + $0x150] sm:$0xff] }
 0x811   : > { %8134 = vmatprep.mubr.f32.mxu1 %v13740_v0 }
 0x814   : > { %11266 = vmatmul.mubr.msk.f32.vlgmr.msra.gmra.mrb[24].mxu1 %vm517_vm0, %v11262_v30  ;;  %v8663_v30 = vld [vmem:[#allocation8 + $0x1f8] sm:$0xff] }
 0x815   : > { %12469 = vmatpush1.bf16.msra.mxu1 %v12468_v10  ;;  %8140 = vmatprep.mubr.f32.mxu1 %v13740_v0  ;;  %v11294_v10 = vld [vmem:[%s14049_s22 + $0x141] sm:$0xff]  ;;  %v12502_v15 = vpack.c.bf16 %v8663_v30, %v8661_v29  ;;  %v9143_v29 = vld [vmem:[#allocation8 + $0x2d0] sm:$0xff] }
 0x816   : > { %12471 = vmatprep.subr.bf16.mxu1 %v12470_v32  ;;  %v12500_v32 = vpack.c.bf16 %v8658_v28, %v8656_v27  ;;  %v11321_v27 = vld [vmem:[%s14049_s22 + $0x15c] sm:$0xf]  ;;  %v9141_v28 = vld [vmem:[#allocation8 + $0x2c0] sm:$0xff]  ;;  %v9146_v30 = vld [vmem:[#allocation8 + $0x2e8] sm:$0xff] }
 0x818   : > { %11267 = vmatmul.mubr.msk.f32.gmra.mrb[26].mxu1 %vm517_vm0, %v11263_v18  ;;  %v8780_v18 = vld [vmem:[#allocation8 + $0x218] sm:$0xff] }
 0x819   : > { %8146 = vmatprep.mubr.f32.mxu1 %v13740_v0  ;;  %12473 = vmatpush1.bf16.msra.mxu1 %v12472_v38  ;;  %v11295_v38 = vld [vmem:[%s14049_s22 + $0x149] sm:$0xff] }
 0x81a   : > { %12475 = vmatprep.subr.bf16.mxu1 %v12474_v39  ;;  %v12504_v39 = vpack.c.bf16 %v8662_v35, %v8660_v33  ;;  %v9145_v35 = vld [vmem:[#allocation8 + $0x2e0] sm:$0xff] }
 0x81c   : > { %11268 = vmatmul.mubr.msk.f32.gmra.mrb[28].mxu1 %vm517_vm0, %v11264_v7  ;;  %v12506_v7 = vpack.c.bf16 %v8780_v18, %v8778_v36  ;;  %v9147_v36 = vld [vmem:[#allocation8 + $0x2f0] sm:$0xff]  ;;  %v9263_v18 = vld [vmem:[#allocation8 + $0x308] sm:$0xff] }
 0x81d   : > { %8152 = vmatprep.mubr.f32.mxu1 %v13740_v0 }
 0x820   : > { %11269 = vmatmul.mubr.msk.f32.gmra.mrb[30].mxu1 %vm517_vm0, %v11265_v40  ;;  %v11296_v40 = vld [vmem:[%s14049_s22 + $0x151] sm:$0xff] }
 0x821   : > { %8255 = vmatprep.mubr.f32.mxu1 %v13740_v0 }
 0x824   : > { %11274 = vmatmul.mubr.msk.f32.vlgmr.msra.gmra.mrb[24].mxu1 %vm517_vm0, %v11270_v46  ;;  %v8784_v46 = vld [vmem:[#allocation8 + $0x238] sm:$0xff] }
 0x825   : > { %12477 = vmatpush1.bf16.msra.mxu1 %v12476_v31  ;;  %8261 = vmatprep.mubr.f32.mxu1 %v13740_v0  ;;  %v11302_v31 = vld [vmem:[%s14049_s22 + $0x142] sm:$0xff]  ;;  %v12510_v49 = vpack.c.bf16 %v8784_v46, %v8782_v45  ;;  %v9264_v45 = vld [vmem:[#allocation8 + $0x310] sm:$0xff] }
 0x826   : > { %12479 = vmatprep.subr.bf16.mxu1 %v12478_v47  ;;  %v12508_v47 = vpack.c.bf16 %v8779_v44, %v8777_v42  ;;  %v11329_v42 = vld [vmem:[%s14049_s22 + $0x178] sm:$0xf]  ;;  %v9262_v44 = vld [vmem:[#allocation8 + $0x300] sm:$0xff]  ;;  %v9267_v46 = vld [vmem:[#allocation8 + $0x328] sm:$0xff] }
 0x828   : > { %11275 = vmatmul.mubr.msk.f32.gmra.mrb[26].mxu1 %vm517_vm0, %v11271_v53  ;;  %v8901_v53 = vld [vmem:[#allocation8 + $0x258] sm:$0xff] }
 0x829   : > { %8267 = vmatprep.mubr.f32.mxu1 %v13740_v0  ;;  %12481 = vmatpush1.bf16.msra.mxu1 %v12480_v54  ;;  %v11303_v54 = vld [vmem:[%s14049_s22 + $0x14a] sm:$0xff] }
 0x82a   : > { %12483 = vmatprep.subr.bf16.mxu1 %v12482_v55  ;;  %v12512_v55 = vpack.c.bf16 %v8783_v51, %v8781_v50  ;;  %v9266_v51 = vld [vmem:[#allocation8 + $0x320] sm:$0xff] }
 0x82c   : > { %11276 = vmatmul.mubr.msk.f32.gmra.mrb[28].mxu1 %vm517_vm0, %v11272_v56  ;;  %v12514_v56 = vpack.c.bf16 %v8901_v53, %v8899_v52  ;;  %v9268_v52 = vld [vmem:[#allocation8 + $0x330] sm:$0xff]  ;;  %v9384_v53 = vld [vmem:[#allocation8 + $0x348] sm:$0xff] }
 0x82d   : > { %8273 = vmatprep.mubr.f32.mxu1 %v13740_v0 }
 0x830   : > { %11277 = vmatmul.mubr.msk.f32.gmra.mrb[30].mxu1 %vm517_vm0, %v11273_v57  ;;  %v11304_v57 = vld [vmem:[%s14049_s22 + $0x152] sm:$0xff] }
 0x831   : > { %8376 = vmatprep.mubr.f32.mxu1 %v13740_v0 }
 0x834   : > { %11282 = vmatmul.mubr.msk.f32.vlgmr.msra.gmra.mrb[24].mxu1 %vm517_vm0, %v11278_v4  ;;  %v8905_v4 = vld [vmem:[#allocation8 + $0x278] sm:$0xff] }
 0x835   : > { %12485 = vmatpush1.bf16.msra.mxu1 %v12484_v34  ;;  %8382 = vmatprep.mubr.f32.mxu1 %v13740_v0  ;;  %v11310_v34 = vld [vmem:[%s14049_s22 + $0x143] sm:$0xff]  ;;  %v12518_v37 = vpack.c.bf16 %v8905_v4, %v8903_v1  ;;  %v9385_v1 = vld [vmem:[#allocation8 + $0x350] sm:$0xff] }
 0x836   : > { %12487 = vmatprep.subr.bf16.mxu1 %v12486_v5  ;;  %v12516_v5 = vpack.c.bf16 %v8900_v63, %v8898_v59  ;;  %v11337_v59 = vld [vmem:[%s14049_s22 + $0x179] sm:$0xf]  ;;  %v9383_v63 = vld [vmem:[#allocation8 + $0x340] sm:$0xff]  ;;  %v9388_v4 = vld [vmem:[#allocation8 + $0x368] sm:$0xff] }
 0x838   : > { %11283 = vmatmul.mubr.msk.f32.gmra.mrb[26].mxu1 %vm517_vm0, %v11279_v9  ;;  %v9023_v9 = vld [vmem:[#allocation8 + $0x298] sm:$0xff] }
 0x839   : > { %8388 = vmatprep.mubr.f32.mxu1 %v13740_v0  ;;  %12489 = vmatpush1.bf16.msra.mxu1 %v12488_v11  ;;  %v11311_v11 = vld [vmem:[%s14049_s22 + $0x14b] sm:$0xff] }
 0x83a   : > { %12491 = vmatprep.subr.bf16.mxu1 %v12490_v12  ;;  %v12520_v12 = vpack.c.bf16 %v8904_v8, %v8902_v6  ;;  %v9387_v8 = vld [vmem:[#allocation8 + $0x360] sm:$0xff] }
 0x83c   : > { %11284 = vmatmul.mubr.msk.f32.gmra.mrb[28].mxu1 %vm517_vm0, %v11280_v48  ;;  %v12522_v48 = vpack.c.bf16 %v9023_v9, %v9021_v43  ;;  %v9389_v43 = vld [vmem:[#allocation8 + $0x370] sm:$0xff]  ;;  %v9505_v9 = vld [vmem:[#allocation8 + $0x388] sm:$0xff] }
 0x83d   : > { %8394 = vmatprep.mubr.f32.mxu1 %v13740_v0 }
 0x840   : > { %11285 = vmatmul.mubr.msk.f32.gmra.mrb[30].mxu1 %vm517_vm0, %v11281_v3  ;;  %v11312_v3 = vld [vmem:[%s14049_s22 + $0x153] sm:$0xff] }
 0x841   : > { %8498 = vmatprep.mubr.f32.mxu1 %v13740_v0 }
 0x844   : > { %11290 = vmatmul.mubr.msk.f32.vlgmr.msra.gmra.mrb[24].mxu1 %vm517_vm0, %v11286_v19  ;;  %v9027_v19 = vld [vmem:[#allocation8 + $0x2b8] sm:$0xff] }
 0x845   : > { %12493 = vmatpush1.bf16.msra.mxu1 %v12492_v20  ;;  %8504 = vmatprep.mubr.f32.mxu1 %v13740_v0  ;;  %v11318_v20 = vld [vmem:[%s14049_s22 + $0x144] sm:$0xff]  ;;  %v12526_v21 = vpack.c.bf16 %v9027_v19, %v9025_v17  ;;  %v9506_v17 = vld [vmem:[#allocation8 + $0x390] sm:$0xff] }
 0x846   : > { %12495 = vmatprep.subr.bf16.mxu1 %v12494_v60  ;;  %v12524_v60 = vpack.c.bf16 %v9022_v16, %v9020_v14  ;;  %v11345_v14 = vld [vmem:[%s14049_s22 + $0x17a] sm:$0xf]  ;;  %v9504_v16 = vld [vmem:[#allocation8 + $0x380] sm:$0xff] }
 0x848   : > { %11291 = vmatmul.mubr.msk.f32.gmra.mrb[26].mxu1 %vm517_vm0, %v11287_v24  ;;  %v9144_v24 = vld [vmem:[#allocation8 + $0x2d8] sm:$0xff] }
 0x849   : > { %8510 = vmatprep.mubr.f32.mxu1 %v13740_v0  ;;  %12497 = vmatpush1.bf16.msra.mxu1 %v12496_v62  ;;  %v11319_v62 = vld [vmem:[%s14049_s22 + $0x14c] sm:$0xff] }
 0x84a   : > { %12499 = vmatprep.subr.bf16.mxu1 %v12498_v25  ;;  %v12528_v25 = vpack.c.bf16 %v9026_v22, %v9024_v61  ;;  %v11242_v61 = vld [vmem:[%s14956_s4] ss:$0 sm:$0xff] }
 0x84c   : > { %11292 = vmatmul.mubr.msk.f32.gmra.mrb[28].mxu1 %vm517_vm0, %v11288_v2  ;;  %v12530_v2 = vpack.c.bf16 %v9144_v24, %v9142_v23  ;;  %v11350_v23 = vld [vmem:[%s14049_s22 + $0x163] sm:$0xff]  ;;  %v12556_v24 = vpack.c.bf16 %v9506_v17, %v9504_v16  ;;  %v9706_v16 = vld [vmem:[#allocation11 + $0x190] sm:$0xff] }
 0x84d   : > { %8516 = vmatprep.mubr.f32.mxu1 %v13740_v0 }
 0x850   : > { %11293 = vmatmul.mubr.msk.f32.gmra.mrb[30].mxu1 %vm517_vm0, %v11289_v26  ;;  %v11320_v26 = vld [vmem:[%s14049_s22 + $0x154] sm:$0xff] }
 0x851   : > { %8619 = vmatprep.mubr.f32.mxu1 %v13740_v0 }
 0x854   : > { %11298 = vmatmul.mubr.msk.f32.vlgmr.msra.gmra.mrb[24].mxu1 %vm517_vm0, %v11294_v10  ;;  %v9148_v10 = vld [vmem:[#allocation8 + $0x2f8] sm:$0xff] }
 0x855   : > { %12501 = vmatpush1.bf16.msra.mxu1 %v12500_v32  ;;  %8625 = vmatprep.mubr.f32.mxu1 %v13740_v0  ;;  %v11326_v32 = vld [vmem:[%s14049_s22 + $0x160] sm:$0xff]  ;;  %v12534_v33 = vpack.c.bf16 %v9148_v10, %v9146_v30  ;;  %v11351_v10 = vld [vmem:[%s14049_s22 + $0x16b] sm:$0xff] }
 0x856   : > { %12503 = vmatprep.subr.bf16.mxu1 %v12502_v15  ;;  %v12532_v15 = vpack.c.bf16 %v9143_v29, %v9141_v28 }
 0x858   : > { %11299 = vmatmul.mubr.msk.f32.gmra.mrb[26].mxu1 %vm517_vm0, %v11295_v38  ;;  %v9265_v38 = vld [vmem:[#allocation8 + $0x318] sm:$0xff] }
 0x859   : > { %8631 = vmatprep.mubr.f32.mxu1 %v13740_v0  ;;  %12505 = vmatpush1.bf16.msra.mxu1 %v12504_v39  ;;  %v11327_v39 = vld [vmem:[%s14049_s22 + $0x168] sm:$0xff] }
 0x85a   : > { %12507 = vmatprep.subr.bf16.mxu1 %v12506_v7  ;;  %v12536_v7 = vpack.c.bf16 %v9147_v36, %v9145_v35  ;;  %v11352_v35 = vld [vmem:[%s14049_s22 + $0x173] sm:$0xff]  ;;  %v11353_v36 = vld [vmem:[%s14049_s22 + $0x17b] sm:$0xf] }
 0x85c   : > { %11300 = vmatmul.mubr.msk.f32.gmra.mrb[28].mxu1 %vm517_vm0, %v11296_v40  ;;  %v12538_v40 = vpack.c.bf16 %v9265_v38, %v9263_v18  ;;  %v11358_v18 = vld [vmem:[%s14049_s22 + $0x164] sm:$0xff] }
 0x85d   : > { %8637 = vmatprep.mubr.f32.mxu1 %v13740_v0 }
 0x860   : > { %11301 = vmatmul.mubr.msk.f32.gmra.mrb[30].mxu1 %vm517_vm0, %v11297_v41  ;;  %v11328_v41 = vld [vmem:[%s14049_s22 + $0x170] sm:$0xff] }
 0x861   : > { %8740 = vmatprep.mubr.f32.mxu1 %v13740_v0 }
 0x864   : > { %11306 = vmatmul.mubr.msk.f32.vlgmr.msra.gmra.mrb[24].mxu1 %vm517_vm0, %v11302_v31  ;;  %v9269_v31 = vld [vmem:[#allocation8 + $0x338] sm:$0xff] }
 0x865   : > { %12509 = vmatpush1.bf16.msra.mxu1 %v12508_v47  ;;  %8746 = vmatprep.mubr.f32.mxu1 %v13740_v0  ;;  %v11334_v47 = vld [vmem:[%s14049_s22 + $0x161] sm:$0xff]  ;;  %v12542_v50 = vpack.c.bf16 %v9269_v31, %v9267_v46  ;;  %v11360_v46 = vld [vmem:[%s14049_s22 + $0x174] sm:$0xff]  ;;  %v11361_v31 = vld [vmem:[%s14049_s22 + $0x17c] sm:$0xf] }
 0x866   : > { %12511 = vmatprep.subr.bf16.mxu1 %v12510_v49  ;;  %v12540_v49 = vpack.c.bf16 %v9264_v45, %v9262_v44 }
 0x868   : > { %11307 = vmatmul.mubr.msk.f32.gmra.mrb[26].mxu1 %vm517_vm0, %v11303_v54  ;;  %v9386_v54 = vld [vmem:[#allocation8 + $0x358] sm:$0xff] }
 0x869   : > { %8752 = vmatprep.mubr.f32.mxu1 %v13740_v0  ;;  %12513 = vmatpush1.bf16.msra.mxu1 %v12512_v55  ;;  %v11335_v55 = vld [vmem:[%s14049_s22 + $0x169] sm:$0xff] }
 0x86a   : > { %12515 = vmatprep.subr.bf16.mxu1 %v12514_v56  ;;  %v12544_v56 = vpack.c.bf16 %v9268_v52, %v9266_v51  ;;  %v9688_v51 = vld [vmem:[#allocation11 + $0x100] sm:$0xff]  ;;  %v9690_v52 = vld [vmem:[#allocation11 + $0x110] sm:$0xff] }
 0x86c   : > { %11308 = vmatmul.mubr.msk.f32.gmra.mrb[28].mxu1 %vm517_vm0, %v11304_v57  ;;  %v12546_v57 = vpack.c.bf16 %v9386_v54, %v9384_v53  ;;  %v12564_v53 = vpack.c.bf16 %v9690_v52, %v9688_v51  ;;  %v9693_v54 = vld [vmem:[#allocation11 + $0x128] sm:$0xff] }
 0x86d   : > { %8758 = vmatprep.mubr.f32.mxu1 %v13740_v0 }
 0x870   : > { %11309 = vmatmul.mubr.msk.f32.gmra.mrb[30].mxu1 %vm517_vm0, %v11305_v58  ;;  %v11336_v58 = vld [vmem:[%s14049_s22 + $0x171] sm:$0xff] }
 0x871   : > { %8861 = vmatprep.mubr.f32.mxu1 %v13740_v0 }
 0x874   : > { %11314 = vmatmul.mubr.msk.f32.vlgmr.msra.gmra.mrb[24].mxu1 %vm517_vm0, %v11310_v34  ;;  %v9390_v34 = vld [vmem:[#allocation8 + $0x378] sm:$0xff] }
 0x875   : > { %12517 = vmatpush1.bf16.msra.mxu1 %v12516_v5  ;;  %8867 = vmatprep.mubr.f32.mxu1 %v13740_v0  ;;  %v11342_v5 = vld [vmem:[%s14049_s22 + $0x162] sm:$0xff]  ;;  %v12550_v6 = vpack.c.bf16 %v9390_v34, %v9388_v4 }
 0x876   : > { %12519 = vmatprep.subr.bf16.mxu1 %v12518_v37  ;;  %v12548_v37 = vpack.c.bf16 %v9385_v1, %v9383_v63  ;;  %v9697_v63 = vld [vmem:[#allocation11 + $0x148] sm:$0xff]  ;;  %v9699_v1 = vld [vmem:[#allocation11 + $0x158] sm:$0xff]  ;;  %v9696_v34 = vld [vmem:[#allocation11 + $0x140] sm:$0xff] }
 0x877   : > { %v12570_v4 = vpack.c.bf16 %v9699_v1, %v9697_v63 }
 0x878   : > { %11315 = vmatmul.mubr.msk.f32.gmra.mrb[26].mxu1 %vm517_vm0, %v11311_v11  ;;  %v9507_v11 = vld [vmem:[#allocation8 + $0x398] sm:$0xff] }
 0x879   : > { %8873 = vmatprep.mubr.f32.mxu1 %v13740_v0  ;;  %12521 = vmatpush1.bf16.msra.mxu1 %v12520_v12  ;;  %v11343_v12 = vld [vmem:[%s14049_s22 + $0x16a] sm:$0xff] }
 0x87a   : > { %12523 = vmatprep.subr.bf16.mxu1 %v12522_v48  ;;  %v12552_v48 = vpack.c.bf16 %v9389_v43, %v9387_v8  ;;  %v9703_v8 = vld [vmem:[#allocation11 + $0x178] sm:$0xff] }
 0x87c   : > { %11316 = vmatmul.mubr.msk.f32.gmra.mrb[28].mxu1 %vm517_vm0, %v11312_v3  ;;  %v12554_v3 = vpack.c.bf16 %v9507_v11, %v9505_v9  ;;  %v9700_v9 = vld [vmem:[#allocation11 + $0x160] sm:$0xff]  ;;  %v9702_v11 = vld [vmem:[#allocation11 + $0x170] sm:$0xff] }
 0x87d   : > { %8879 = vmatprep.mubr.f32.mxu1 %v13740_v0 }
 0x880   : > { %11317 = vmatmul.mubr.msk.f32.gmra.mrb[30].mxu1 %vm517_vm0, %v11313_v13  ;;  %v11344_v13 = vld [vmem:[%s14049_s22 + $0x172] sm:$0xff] }
 0x881   : > { %8982 = vmatprep.mubr.f32.mxu1 %v13740_v0 }
 0x884   : > { %11322 = vmatmul.mubr.msk.f32.vlgmr.msra.gmra.mrb[24].mxu1 %vm517_vm0, %v11318_v20  ;;  %v9509_v20 = vld [vmem:[#allocation8 + $0x3a8] sm:$0xff] }
 0x885   : > { %12525 = vmatpush1.bf16.msra.mxu1 %v12524_v60  ;;  %8988 = vmatprep.mubr.f32.mxu1 %v13740_v0  ;;  %v9511_v60 = vld [vmem:[#allocation8 + $0x3b8] sm:$0xff] }
 0x886   : > { %12527 = vmatprep.subr.bf16.mxu1 %v12526_v21 }
 0x888   : > { %11323 = vmatmul.mubr.msk.f32.gmra.mrb[26].mxu1 %vm517_vm0, %v11319_v62  ;;  %v12558_v62 = vpack.c.bf16 %v9511_v60, %v9509_v20  ;;  %v9711_v20 = vld [vmem:[#allocation11 + $0x1b8] sm:$0xff] }
 0x889   : > { %8994 = vmatprep.mubr.f32.mxu1 %v13740_v0  ;;  %12529 = vmatpush1.bf16.msra.mxu1 %v12528_v25  ;;  %v9508_v25 = vld [vmem:[#allocation8 + $0x3a0] sm:$0xff] }
 0x88a   : > { %12531 = vmatprep.subr.bf16.mxu1 %v12530_v2  ;;  %v9510_v2 = vld [vmem:[#allocation8 + $0x3b0] sm:$0xff] }
 0x88c   : > { %11324 = vmatmul.mubr.msk.f32.gmra.mrb[28].mxu1 %vm517_vm0, %v11320_v26 }
 0x88d   : > { %9000 = vmatprep.mubr.f32.mxu1 %v13740_v0 }
 0x890   : > { %11325 = vmatmul.mubr.msk.f32.gmra.mrb[30].mxu1 %vm517_vm0, %v11321_v27 }
 0x891   : > { %9104 = vmatprep.mubr.f32.mxu1 %v13740_v0 }
 0x894   : > { %11330 = vmatmul.mubr.msk.f32.vlgmr.msra.gmra.mrb[24].mxu1 %vm517_vm0, %v11326_v32  ;;  %v12560_v32 = vpack.c.bf16 %v9510_v2, %v9508_v25  ;;  %v9712_v25 = vld [vmem:[#allocation11 + $0x1c0] sm:$0xff]  ;;  %v9714_v2 = vld [vmem:[#allocation11 + $0x1d0] sm:$0xff] }
 0x895   : > { %12533 = vmatpush1.bf16.msra.mxu1 %v12532_v15  ;;  %9110 = vmatprep.mubr.f32.mxu1 %v13740_v0 }
 0x896   : > { %12535 = vmatprep.subr.bf16.mxu1 %v12534_v33 }
 0x898   : > { %11331 = vmatmul.mubr.msk.f32.gmra.mrb[26].mxu1 %vm517_vm0, %v11327_v39 }
 0x899   : > { %9116 = vmatprep.mubr.f32.mxu1 %v13740_v0  ;;  %12537 = vmatpush1.bf16.msra.mxu1 %v12536_v7 }
 0x89a   : > { %12539 = vmatprep.subr.bf16.mxu1 %v12538_v40  ;;  %v11359_v40 = vld [vmem:[%s14049_s22 + $0x16c] sm:$0xff] }
 0x89c   : > { %11332 = vmatmul.mubr.msk.f32.gmra.mrb[28].mxu1 %vm517_vm0, %v11328_v41 }
 0x89d   : > { %9122 = vmatprep.mubr.f32.mxu1 %v13740_v0 }
 0x8a0   : > { %11333 = vmatmul.mubr.msk.f32.gmra.mrb[30].mxu1 %vm517_vm0, %v11329_v42 }
 0x8a1   : > { %9225 = vmatprep.mubr.f32.mxu1 %v13740_v0 }
 0x8a4   : > { %11338 = vmatmul.mubr.msk.f32.vlgmr.msra.gmra.mrb[24].mxu1 %vm517_vm0, %v11334_v47  ;;  %v9689_v47 = vld [vmem:[#allocation11 + $0x108] sm:$0xff] }
 0x8a5   : > { %12541 = vmatpush1.bf16.msra.mxu1 %v12540_v49  ;;  %9231 = vmatprep.mubr.f32.mxu1 %v13740_v0  ;;  %v9691_v49 = vld [vmem:[#allocation11 + $0x118] sm:$0xff] }
 0x8a6   : > { %12543 = vmatprep.subr.bf16.mxu1 %v12542_v50  ;;  %v12562_v50 = vpack.c.bf16 %v9691_v49, %v9689_v47 }
 0x8a8   : > { %11339 = vmatmul.mubr.msk.f32.gmra.mrb[26].mxu1 %vm517_vm0, %v11335_v55  ;;  %12563 = vmatprep.subr.bf16.mxu0 %v12562_v50  ;;  %v9695_v55 = vld [vmem:[#allocation11 + $0x138] sm:$0xff] }
 0x8a9   : > { %9237 = vmatprep.mubr.f32.mxu1 %v13740_v0  ;;  %12545 = vmatpush1.bf16.msra.mxu1 %v12544_v56  ;;  %v12566_v56 = vpack.c.bf16 %v9695_v55, %v9693_v54 }
 0x8aa   : > { %12547 = vmatprep.subr.bf16.mxu1 %v12546_v57  ;;  %12565 = vmatpush1.bf16.msra.mxu0 %v12564_v53  ;;  %v9692_v57 = vld [vmem:[#allocation11 + $0x120] sm:$0xff] }
 0x8ab   : > { %12567 = vmatprep.subr.bf16.mxu0 %v12566_v56 }
 0x8ac   : > { %11340 = vmatmul.mubr.msk.f32.gmra.mrb[28].mxu1 %vm517_vm0, %v11336_v58  ;;  %v9694_v58 = vld [vmem:[#allocation11 + $0x130] sm:$0xff] }
 0x8ad   : > { %9243 = vmatprep.mubr.f32.mxu1 %v13740_v0 }
 0x8b0   : > { %11341 = vmatmul.mubr.msk.f32.gmra.mrb[30].mxu1 %vm517_vm0, %v11337_v59  ;;  %v12568_v59 = vpack.c.bf16 %v9694_v58, %v9692_v57 }
 0x8b1   : > { %9346 = vmatprep.mubr.f32.mxu1 %v13740_v0 }
 0x8b2   : > { %12569 = vmatpush1.bf16.msra.mxu0 %v12568_v59 }
 0x8b3   : > { %12571 = vmatprep.subr.bf16.mxu0 %v12570_v4 }
 0x8b4   : > { %11346 = vmatmul.mubr.msk.f32.vlgmr.msra.gmra.mrb[24].mxu1 %vm517_vm0, %v11342_v5  ;;  %v9698_v5 = vld [vmem:[#allocation11 + $0x150] sm:$0xff] }
 0x8b5   : > { %12549 = vmatpush1.bf16.msra.mxu1 %v12548_v37  ;;  %9352 = vmatprep.mubr.f32.mxu1 %v13740_v0  ;;  %v12572_v37 = vpack.c.bf16 %v9698_v5, %v9696_v34  ;;  %v9654_v34 = vld [vmem:[#allocation11] sm:$0xff]  ;;  %v9656_v5 = vld [vmem:[#allocation11 + $0x10] sm:$0xff] }
 0x8b6   : > { %12551 = vmatprep.subr.bf16.mxu1 %v12550_v6  ;;  %v9701_v6 = vld [vmem:[#allocation11 + $0x168] sm:$0xff] }
 0x8b7   : > { %12573 = vmatpush1.bf16.msra.mxu0 %v12572_v37  ;;  %v12574_v43 = vpack.c.bf16 %v9703_v8, %v9701_v6  ;;  %v9659_v37 = vld [vmem:[#allocation11 + $0x28] sm:$0xff]  ;;  %v9661_v6 = vld [vmem:[#allocation11 + $0x38] sm:$0xff]  ;;  %v12596_v8 = vpack.c.bf16 %v9656_v5, %v9654_v34  ;;  %v9884_v34 = vld [vmem:[#allocation11 + $0x240] sm:$0xff] }
 0x8b8   : > { %11347 = vmatmul.mubr.msk.f32.gmra.mrb[26].mxu1 %vm517_vm0, %v11343_v12  ;;  %v12576_v12 = vpack.c.bf16 %v9702_v11, %v9700_v9  ;;  %v9658_v9 = vld [vmem:[#allocation11 + $0x20] sm:$0xff]  ;;  %v9660_v11 = vld [vmem:[#allocation11 + $0x30] sm:$0xff] }
 0x8b9   : > { %9358 = vmatprep.mubr.f32.mxu1 %v13740_v0  ;;  %12553 = vmatpush1.bf16.msra.mxu1 %v12552_v48  ;;  %v9705_v48 = vld [vmem:[#allocation11 + $0x188] sm:$0xff]  ;;  %v9886_v5 = vld [vmem:[#allocation11 + $0x250] sm:$0xff] }
 0x8ba   : > { %12555 = vmatprep.subr.bf16.mxu1 %v12554_v3  ;;  %12575 = vmatprep.subr.bf16.mxu0 %v12574_v43  ;;  %v9707_v3 = vld [vmem:[#allocation11 + $0x198] sm:$0xff]  ;;  %v12598_v43 = vpack.c.bf16 %v9661_v6, %v9659_v37  ;;  %v9889_v6 = vld [vmem:[#allocation11 + $0x268] sm:$0xff] }
 0x8bb   : > { %12577 = vmatpush1.bf16.msra.mxu0 %v12576_v12 }
 0x8bc   : > { %11348 = vmatmul.mubr.msk.f32.gmra.mrb[28].mxu1 %vm517_vm0, %v11344_v13  ;;  %v12578_v13 = vpack.c.bf16 %v9707_v3, %v9705_v48  ;;  %v9663_v48 = vld [vmem:[#allocation11 + $0x48] sm:$0xff]  ;;  %v9665_v3 = vld [vmem:[#allocation11 + $0x58] sm:$0xff] }
 0x8bd   : > { %9364 = vmatprep.mubr.f32.mxu1 %v13740_v0 }
 0x8be   : > { %12579 = vmatprep.subr.bf16.mxu0 %v12578_v13  ;;  %v12600_v13 = vpack.c.bf16 %v9660_v11, %v9658_v9  ;;  %v9888_v11 = vld [vmem:[#allocation11 + $0x260] sm:$0xff] }
 0x8bf   : > { %v7769_v19 = vpop.f32.mrb[20].mxu1 }
 0x8c0   : > { %v7771_v21 = vpop.f32.mrb[21].mxu1  ;;  %11349 = vmatmul.mubr.msk.f32.gmra.mrb[30].mxu1 %vm517_vm0, %v11345_v14  ;;  %v9704_v14 = vld [vmem:[#allocation11 + $0x180] sm:$0xff] }
 0x8c1   : > { %v7784_v22 = vmax.f32 %v7769_v19, %v7771_v21  ;;  %9467 = vmatprep.mubr.f32.mxu1 %v13740_v0  ;;  %v12580_v17 = vpack.c.bf16 %v9706_v16, %v9704_v14  ;;  %v9709_v19 = vld [vmem:[#allocation11 + $0x1a8] sm:$0xff]  ;;  %v9708_v21 = vld [vmem:[#allocation11 + $0x1a0] sm:$0xff]  ;;  %v12602_v14 = vpack.c.bf16 %v9665_v3, %v9663_v48  ;;  %v9895_v48 = vld [vmem:[#allocation11 + $0x298] sm:$0xff] }
 0x8c2   : > { %v12582_v60 = vpack.c.bf16 %v9711_v20, %v9709_v19  ;;  %v9662_v16 = vld [vmem:[#allocation11 + $0x40] sm:$0xff]  ;;  %v9667_v20 = vld [vmem:[#allocation11 + $0x68] sm:$0xff] }
 0x8c3   : > { %v7793_v26 = vadd.f32 %v11242_v61, %v7784_v22  ;;  %v7775_v27 = vpop.f32.mrb[22].mxu1  ;;  %12581 = vmatpush1.bf16.msra.mxu0 %v12580_v17  ;;  %v9664_v17 = vld [vmem:[#allocation11 + $0x50] sm:$0xff] }
 0x8c4   : > { %v7777_v28 = vpop.f32.mrb[23].mxu1  ;;  %11354 = vmatmul.mubr.msk.f32.vlgmr.msra.gmra.mrb[24].mxu1 %vm517_vm0, %v11350_v23  ;;  %12583 = vmatprep.subr.bf16.mxu0 %v12582_v60  ;;  %v9713_v23 = vld [vmem:[#allocation11 + $0x1c8] sm:$0xff]  ;;  %v9669_v60 = vld [vmem:[#allocation11 + $0x78] sm:$0xff] }
 0x8c5   : > { %v7795_v29 = vmax.f32 %v7793_v26, 0.0  ;;  %v7785_v30 = vmax.f32 %v7775_v27, %v7777_v28  ;;  %12557 = vmatpush1.bf16.msra.mxu1 %v12556_v24  ;;  %9473 = vmatprep.mubr.f32.mxu1 %v13740_v0  ;;  %v9715_v24 = vld [vmem:[#allocation11 + $0x1d8] sm:$0xff]  ;;  %v12588_v26 = vpack.c.bf16 %v9714_v2, %v9712_v25  ;;  %v9717_v27 = vld [vmem:[#allocation11 + $0x1e8] sm:$0xff] }
 0x8c6   : > { %12559 = vmatprep.subr.bf16.mxu1 %v12558_v62  ;;  %v12586_v62 = vpack.c.bf16 %v9715_v24, %v9713_v23  ;;  %v9719_v28 = vld [vmem:[#allocation11 + $0x1f8] sm:$0xff]  ;;  %v9668_v23 = vld [vmem:[#allocation11 + $0x70] sm:$0xff]  ;;  %v9671_v24 = vld [vmem:[#allocation11 + $0x88] sm:$0xff] }
 0x8c7   : > { %7797 = vst [vmem:[#allocation4] sm:$0xff] %v7795_v29  ;;  %v7794_v15 = vadd.f32 %v11242_v61, %v7785_v30  ;;  %v9710_v61 = vld [vmem:[#allocation11 + $0x1b0] sm:$0xff]  ;;  %v9716_v29 = vld [vmem:[#allocation11 + $0x1e0] sm:$0xff]  ;;  %v12590_v30 = vpack.c.bf16 %v9719_v28, %v9717_v27  ;;  %v9675_v28 = vld [vmem:[#allocation11 + $0xa8] sm:$0xff] }
 0x8c8   : > { %11355 = vmatmul.mubr.msk.f32.gmra.mrb[26].mxu1 %vm517_vm0, %v11351_v10  ;;  %v12584_v22 = vpack.c.bf16 %v9710_v61, %v9708_v21  ;;  %v9718_v10 = vld [vmem:[#allocation11 + $0x1f0] sm:$0xff]  ;;  %v12604_v21 = vpack.c.bf16 %v9664_v17, %v9662_v16  ;;  %v12606_v61 = vpack.c.bf16 %v9669_v60, %v9667_v20  ;;  %v9897_v17 = vld [vmem:[#allocation11 + $0x2a8] sm:$0xff] }
 0x8c9   : > { %v7796_v33 = vmax.f32 %v7794_v15, 0.0  ;;  %9479 = vmatprep.mubr.f32.mxu1 %v13740_v0  ;;  %12561 = vmatpush1.bf16.msra.mxu1 %v12560_v32  ;;  %v9655_v32 = vld [vmem:[#allocation11 + $0x8] sm:$0xff]  ;;  %v9657_v15 = vld [vmem:[#allocation11 + $0x18] sm:$0xff]  ;;  %v9672_v27 = vld [vmem:[#allocation11 + $0x90] sm:$0xff] }
 0x8ca   : > { %12585 = vmatpush1.bf16.msra.mxu0 %v12584_v22  ;;  %v9666_v22 = vld [vmem:[#allocation11 + $0x60] sm:$0xff]  ;;  %v9894_v16 = vld [vmem:[#allocation11 + $0x290] sm:$0xff] }
 0x8cb   : > { %7798 = vst [vmem:[#allocation4 + $0x8] sm:$0x3] %v7796_v33  ;;  %12587 = vmatprep.subr.bf16.mxu0 %v12586_v62  ;;  %v12592_v33 = vpack.c.bf16 %v9718_v10, %v9716_v29  ;;  %v9673_v62 = vld [vmem:[#allocation11 + $0x98] sm:$0xff]  ;;  %v12608_v25 = vpack.c.bf16 %v9668_v23, %v9666_v22  ;;  %v9901_v22 = vld [vmem:[#allocation11 + $0x2c8] sm:$0xff] }
 0x8cc   : > { %11356 = vmatmul.mubr.msk.f32.gmra.mrb[28].mxu1 %vm517_vm0, %v11352_v35  ;;  %v12594_v35 = vpack.c.bf16 %v9657_v15, %v9655_v32  ;;  %v12610_v2 = vpack.c.bf16 %v9673_v62, %v9671_v24  ;;  %v9677_v29 = vld [vmem:[#allocation11 + $0xb8] sm:$0xff]  ;;  %v9674_v32 = vld [vmem:[#allocation11 + $0xa0] sm:$0xff]  ;;  %v9676_v15 = vld [vmem:[#allocation11 + $0xb0] sm:$0xff] }
 0x8cd   : > { %9485 = vmatprep.mubr.f32.mxu1 %v13740_v0  ;;  %v12614_v10 = vpack.c.bf16 %v9677_v29, %v9675_v28  ;;  %v9903_v23 = vld [vmem:[#allocation11 + $0x2d8] sm:$0xff] }
 0x8ce   : > { %12589 = vmatpush1.bf16.msra.mxu0 %v12588_v26  ;;  %v9670_v26 = vld [vmem:[#allocation11 + $0x80] sm:$0xff]  ;;  %v12650_v62 = vpack.c.bf16 %v9903_v23, %v9901_v22  ;;  %v10109_v22 = vld [vmem:[#allocation11 + $0x418] sm:$0xff] }
 0x8cf   : > { %12591 = vmatprep.subr.bf16.mxu0 %v12590_v30  ;;  %v12612_v30 = vpack.c.bf16 %v9672_v27, %v9670_v26  ;;  %v9905_v26 = vld [vmem:[#allocation11 + $0x2e8] sm:$0xff]  ;;  %v9907_v27 = vld [vmem:[#allocation11 + $0x2f8] sm:$0xff] }
 0x8d0   : > { %11357 = vmatmul.mubr.msk.f32.gmra.mrb[30].mxu1 %vm517_vm0, %v11353_v36  ;;  %v12654_v29 = vpack.c.bf16 %v9907_v27, %v9905_v26  ;;  %v10113_v26 = vld [vmem:[#allocation11 + $0x438] sm:$0xff] }
 0x8d1   : > { %9588 = vmatprep.mubr.f32.mxu1 %v13740_v0 }
 0x8d2   : > { %v7799_v38 = vld [vmem:[#allocation4] ss:$2 sm:$0x1f]  ;;  %v7800_v39 = vld [vmem:[#allocation4 + $0x1] ss:$2 sm:$0x1f]  ;;  %12593 = vmatpush1.bf16.msra.mxu0 %v12592_v33 }
 0x8d3   : > { %v7801_v7 = vmax.f32 %v7799_v38, %v7800_v39  ;;  %12595 = vmatprep.subr.bf16.mxu0 %v12594_v35  ;;  %v11366_v38 = vld [vmem:[#allocation10] ss:$0 sm:$0xff]  ;;  %v9679_v33 = vld [vmem:[#allocation11 + $0xc8] sm:$0xff] }
 0x8d4   : > { %11362 = vmatmul.mubr.msk.f32.vlgmr.msra.gmra.mrb[24].mxu1 %vm517_vm0, %v11358_v18  ;;  %v9681_v35 = vld [vmem:[#allocation11 + $0xd8] sm:$0xff] }
 0x8d5   : > { %9594 = vmatprep.mubr.f32.mxu1 %v13740_v0  ;;  %7802 = vst [vmem:[#allocation5 + $0x2] sm:$0x1] %v7801_v7  ;;  %v11243_v41 = vrot.slane %v7801_v7, 9  ;;  %v11244_v42 = vrot.slane %v7801_v7, 10  ;;  %v11245_v44 = vrot.slane %v7801_v7, 11  ;;  %v7816_v45 = vcombine.high %v7801_v7, %v7801_v7 }
 0x8d7   : > { %7807 = vst [vmem:[#allocation5 + $0x6] sm:$0x1] %v11243_v41  ;;  %7811 = vst [vmem:[#allocation5 + $0xa] sm:$0x1] %v11244_v42 }
 0x8d8   : > { %7815 = vst [vmem:[#allocation5 + $0xe] sm:$0x1] %v11245_v44  ;;  %7818 = vst [vmem:[#allocation5 + $0x12] sm:$0x1] %v7816_v45  ;;  %11363 = vmatmul.mubr.msk.f32.gmra.mrb[26].mxu1 %vm517_vm0, %v11359_v40 }
 0x8d9   : > { %9600 = vmatprep.mubr.f32.mxu1 %v13740_v0 }
 0x8dc   : > { %11364 = vmatmul.mubr.msk.f32.gmra.mrb[28].mxu1 %vm517_vm0, %v11360_v46 }
 0x8dd   : > { %9606 = vmatprep.mubr.f32.mxu1 %v13740_v0 }
 0x8e0   : > { %11365 = vmatmul.mubr.msk.f32.gmra.mrb[30].mxu1 %vm517_vm0, %v11361_v31 }
 0x9a7   : > { %v9590_v36 = vpop.f32.mrb[24].mxu1 }
 0x9a8   : > { %v9592_v18 = vpop.f32.mrb[25].mxu1 }
 0x9a9   : > { %v9621_v39 = vmax.f32 %v9590_v36, %v9592_v18  ;;  %v12616_v36 = vpack.c.bf16 %v9676_v15, %v9674_v32  ;;  %v12618_v18 = vpack.c.bf16 %v9681_v35, %v9679_v33  ;;  %v9992_v32 = vld [vmem:[#allocation11 + $0x308] sm:$0xff]  ;;  %v9994_v15 = vld [vmem:[#allocation11 + $0x318] sm:$0xff] }
 0x9aa   : > { %v12658_v35 = vpack.c.bf16 %v9994_v15, %v9992_v32  ;;  %v10115_v32 = vld [vmem:[#allocation11 + $0x448] sm:$0xff]  ;;  %v10117_v15 = vld [vmem:[#allocation11 + $0x458] sm:$0xff] }
 0x9ab   : > { %v9632_v7 = vadd.f32 %v11366_v38, %v9621_v39  ;;  %v9596_v40 = vpop.f32.mrb[26].mxu1  ;;  %v9680_v39 = vld [vmem:[#allocation11 + $0xd0] sm:$0xff] }
 0x9ac   : > { %v9598_v41 = vpop.f32.mrb[27].mxu1 }
 0x9ad   : > { %v9636_v42 = vmax.f32 %v9632_v7, 0.0  ;;  %v9622_v44 = vmax.f32 %v9596_v40, %v9598_v41  ;;  %v9683_v7 = vld [vmem:[#allocation11 + $0xe8] sm:$0xff]  ;;  %v9685_v40 = vld [vmem:[#allocation11 + $0xf8] sm:$0xff] }
 0x9af   : > { %9640 = vst [vmem:[#allocation2] sm:$0xff] %v9636_v42  ;;  %v9633_v45 = vadd.f32 %v11366_v38, %v9622_v44  ;;  %v9602_v46 = vpop.f32.mrb[28].mxu1  ;;  %v12622_v42 = vpack.c.bf16 %v9685_v40, %v9683_v7  ;;  %v9682_v44 = vld [vmem:[#allocation11 + $0xe0] sm:$0xff] }
 0x9b0   : > { %v9604_v31 = vpop.f32.mrb[29].mxu1 }
 0x9b1   : > { %v9637_v47 = vmax.f32 %v9633_v45, 0.0  ;;  %v9623_v49 = vmax.f32 %v9602_v46, %v9604_v31  ;;  %v9684_v45 = vld [vmem:[#allocation11 + $0xf0] sm:$0xff]  ;;  %v9877_v46 = vld [vmem:[#allocation11 + $0x208] sm:$0xff]  ;;  %v9879_v31 = vld [vmem:[#allocation11 + $0x218] sm:$0xff] }
 0x9b3   : > { %9641 = vst [vmem:[#allocation2 + $0x8] sm:$0xff] %v9637_v47  ;;  %v9634_v50 = vadd.f32 %v11366_v38, %v9623_v49  ;;  %v9608_v51 = vpop.f32.mrb[30].mxu1  ;;  %v12624_v47 = vpack.c.bf16 %v9684_v45, %v9682_v44  ;;  %v12626_v49 = vpack.c.bf16 %v9879_v31, %v9877_v46  ;;  %v10000_v45 = vld [vmem:[#allocation11 + $0x348] sm:$0xff]  ;;  %v10002_v46 = vld [vmem:[#allocation11 + $0x358] sm:$0xff] }
 0x9b4   : > { %v9610_v52 = vpop.f32.mrb[31].mxu1 }
 0x9b5   : > { %v9638_v53 = vmax.f32 %v9634_v50, 0.0  ;;  %v9624_v54 = vmax.f32 %v9608_v51, %v9610_v52  ;;  %v9876_v50 = vld [vmem:[#allocation11 + $0x200] sm:$0xff]  ;;  %v9878_v51 = vld [vmem:[#allocation11 + $0x210] sm:$0xff]  ;;  %v9881_v52 = vld [vmem:[#allocation11 + $0x228] sm:$0xff] }
 0x9b7   : > { %9642 = vst [vmem:[#allocation2 + $0x10] sm:$0xff] %v9638_v53  ;;  %v9635_v55 = vadd.f32 %v11366_v38, %v9624_v54  ;;  %v9678_v38 = vld [vmem:[#allocation11 + $0xc0] sm:$0xff]  ;;  %v9883_v53 = vld [vmem:[#allocation11 + $0x238] sm:$0xff]  ;;  %v12628_v54 = vpack.c.bf16 %v9878_v51, %v9876_v50  ;;  %v10001_v50 = vld [vmem:[#allocation11 + $0x350] sm:$0xff] }
 0x9b8   : > { %v12620_v41 = vpack.c.bf16 %v9680_v39, %v9678_v38  ;;  %v9996_v38 = vld [vmem:[#allocation11 + $0x328] sm:$0xff]  ;;  %v9998_v39 = vld [vmem:[#allocation11 + $0x338] sm:$0xff] }
 0x9b9   : > { %v9639_v56 = vmax.f32 %v9635_v55, 0.0  ;;  %v12630_v55 = vpack.c.bf16 %v9883_v53, %v9881_v52  ;;  %v12662_v40 = vpack.c.bf16 %v9998_v39, %v9996_v38  ;;  %v10004_v52 = vld [vmem:[#allocation11 + $0x368] sm:$0xff]  ;;  %v10006_v53 = vld [vmem:[#allocation11 + $0x378] sm:$0xff] }
 0x9ba   : > { %v9644_v57 = vld [vmem:[#allocation2] ss:$2 sm:$0xff]  ;;  %v9646_v58 = vld [vmem:[#allocation2 + $0x1] ss:$2 sm:$0xff] }
 0x9bb   : > { %v14879_v59 = vmax.f32 %v9644_v57, %v9646_v58  ;;  %9643 = vst [vmem:[#allocation2 + $0x18] sm:$0xf] %v9639_v56  ;;  %v9880_v56 = vld [vmem:[#allocation11 + $0x220] sm:$0xff]  ;;  %v9882_v57 = vld [vmem:[#allocation11 + $0x230] sm:$0xff]  ;;  %v9885_v58 = vld [vmem:[#allocation11 + $0x248] sm:$0xff] }
 0x9bc   : > { %v10119_v39 = vld [vmem:[#allocation11 + $0x468] sm:$0xff] }
 0x9bd   : > { %9650 = vst [vmem:[#allocation3] sm:$0xff] %v14879_v59 }
 0x9c2   : > { %v9645_v63 = vld [vmem:[#allocation2 + $0x10] ss:$2 sm:$0x3f]  ;;  %v9647_v1 = vld [vmem:[#allocation2 + $0x11] ss:$2 sm:$0x3f] }
 0x9c3   : > { %v9649_v4 = vmax.f32 %v9645_v63, %v9647_v1  ;;  %v9887_v63 = vld [vmem:[#allocation11 + $0x258] sm:$0xff]  ;;  %v12632_v1 = vpack.c.bf16 %v9882_v57, %v9880_v56  ;;  %v10003_v56 = vld [vmem:[#allocation11 + $0x360] sm:$0xff]  ;;  %v10005_v57 = vld [vmem:[#allocation11 + $0x370] sm:$0xff] }
 0x9c5   : > { %9651 = vst [vmem:[#allocation3 + $0x8] sm:$0x3f] %v9649_v4  ;;  %v12634_v4 = vpack.c.bf16 %v9887_v63, %v9885_v58  ;;  %v10008_v58 = vld [vmem:[#allocation11 + $0x388] sm:$0xff]  ;;  %v10010_v63 = vld [vmem:[#allocation11 + $0x398] sm:$0xff] }
 0x9cc   : > { %v9686_v12 = vld [vmem:[#allocation3 + $0x1] sm:$0xff]  ;;  %v9687_v19 = vld [vmem:[#allocation3 + $0x9] sm:$0x3]  ;;  %v9990_v38 = vld [vmem:[#allocation3 + $0xb] sm:$0x3] }
 0x9cd   : > { %9785 = vmatmul.mubr.f32.vlgmr.msra.gmra.mrb[20].mxu0 %v9686_v12  ;;  %v9653_v37 = vld [vmem:[#allocation3 + $0x8] sm:$0x3]  ;;  %v9893_v12 = vld [vmem:[#allocation11 + $0x288] sm:$0xff]  ;;  %v9875_v51 = vld [vmem:[#allocation3 + $0xa] sm:$0x3] }
 0x9ce   : > { %12597 = vmatpush1.bf16.msra.mxu0 %v12596_v8  ;;  %9790 = vmatprep.mubr.f32.mxu0 %v13740_v0  ;;  %v9891_v8 = vld [vmem:[#allocation11 + $0x278] sm:$0xff]  ;;  %v9874_v44 = vld [vmem:[#allocation3 + $0x2] sm:$0xff] }
 0x9cf   : > { %12599 = vmatprep.subr.bf16.mxu0 %v12598_v43  ;;  %v12636_v43 = vpack.c.bf16 %v9886_v5, %v9884_v34  ;;  %v12638_v9 = vpack.c.bf16 %v9891_v8, %v9889_v6  ;;  %v10007_v34 = vld [vmem:[#allocation11 + $0x380] sm:$0xff]  ;;  %v10009_v5 = vld [vmem:[#allocation11 + $0x390] sm:$0xff]  ;;  %v10014_v6 = vld [vmem:[#allocation11 + $0x3b8] sm:$0xff] }
 0x9d0   : > { %v12676_v8 = vpack.c.bf16 %v10009_v5, %v10007_v34  ;;  %v10132_v34 = vld [vmem:[#allocation11 + $0x4d0] sm:$0xff]  ;;  %v10135_v5 = vld [vmem:[#allocation11 + $0x4e8] sm:$0xff] }
 0x9d1   : > { %9791 = vmatmul.mubr.f32.gmra.mrb[22].mxu0 %v9687_v19  ;;  %v9899_v19 = vld [vmem:[#allocation11 + $0x2b8] sm:$0xff] }
 0x9d2   : > { %12601 = vmatpush1.bf16.msra.mxu0 %v12600_v13  ;;  %9861 = vmatprep.mubr.f32.mxu0 %v13740_v0  ;;  %v12642_v13 = vpack.c.bf16 %v9895_v48, %v9893_v12  ;;  %v12646_v60 = vpack.c.bf16 %v9899_v19, %v9897_v17  ;;  %v10018_v12 = vld [vmem:[#allocation11 + $0x3d8] sm:$0xff] }
 0x9d3   : > { %12603 = vmatprep.subr.bf16.mxu0 %v12602_v14  ;;  %v9892_v14 = vld [vmem:[#allocation11 + $0x280] sm:$0xff]  ;;  %v10022_v17 = vld [vmem:[#allocation11 + $0x3f8] sm:$0xff] }
 0x9d4   : > { %v12644_v20 = vpack.c.bf16 %v9894_v16, %v9892_v14  ;;  %v10017_v14 = vld [vmem:[#allocation11 + $0x3d0] sm:$0xff]  ;;  %v10020_v16 = vld [vmem:[#allocation11 + $0x3e8] sm:$0xff] }
 0x9d6   : > { %12605 = vmatpush1.bf16.msra.mxu0 %v12604_v21  ;;  %v9896_v21 = vld [vmem:[#allocation11 + $0x2a0] sm:$0xff] }
 0x9d7   : > { %12607 = vmatprep.subr.bf16.mxu0 %v12606_v61  ;;  %v9898_v61 = vld [vmem:[#allocation11 + $0x2b0] sm:$0xff] }
 0x9d8   : > { %v12648_v24 = vpack.c.bf16 %v9898_v61, %v9896_v21  ;;  %v10021_v21 = vld [vmem:[#allocation11 + $0x3f0] sm:$0xff]  ;;  %v10107_v61 = vld [vmem:[#allocation11 + $0x408] sm:$0xff] }
 0x9da   : > { %12609 = vmatpush1.bf16.msra.mxu0 %v12608_v25  ;;  %v9900_v25 = vld [vmem:[#allocation11 + $0x2c0] sm:$0xff] }
 0x9db   : > { %12611 = vmatprep.subr.bf16.mxu0 %v12610_v2  ;;  %v9902_v2 = vld [vmem:[#allocation11 + $0x2d0] sm:$0xff] }
 0x9dc   : > { %v12652_v28 = vpack.c.bf16 %v9902_v2, %v9900_v25  ;;  %v10108_v25 = vld [vmem:[#allocation11 + $0x410] sm:$0xff]  ;;  %v10111_v2 = vld [vmem:[#allocation11 + $0x428] sm:$0xff] }
 0x9de   : > { %12613 = vmatpush1.bf16.msra.mxu0 %v12612_v30  ;;  %v9904_v30 = vld [vmem:[#allocation11 + $0x2e0] sm:$0xff] }
 0x9df   : > { %12615 = vmatprep.subr.bf16.mxu0 %v12614_v10  ;;  %v9906_v10 = vld [vmem:[#allocation11 + $0x2f0] sm:$0xff] }
 0x9e0   : > { %v12656_v33 = vpack.c.bf16 %v9906_v10, %v9904_v30  ;;  %v10112_v30 = vld [vmem:[#allocation11 + $0x430] sm:$0xff] }
 0x9e1   : > { %v9989_v10 = vld [vmem:[#allocation3 + $0x3] sm:$0xff] }
 0x9e2   : > { %12617 = vmatpush1.bf16.msra.mxu0 %v12616_v36  ;;  %v9991_v36 = vld [vmem:[#allocation11 + $0x300] sm:$0xff] }
 0x9e3   : > { %12619 = vmatprep.subr.bf16.mxu0 %v12618_v18  ;;  %v9993_v18 = vld [vmem:[#allocation11 + $0x310] sm:$0xff] }
 0x9e4   : > { %v12660_v7 = vpack.c.bf16 %v9993_v18, %v9991_v36  ;;  %v10114_v36 = vld [vmem:[#allocation11 + $0x440] sm:$0xff]  ;;  %v10116_v18 = vld [vmem:[#allocation11 + $0x450] sm:$0xff] }
 0x9e6   : > { %12621 = vmatpush1.bf16.msra.mxu0 %v12620_v41  ;;  %v9995_v41 = vld [vmem:[#allocation11 + $0x320] sm:$0xff] }
 0x9e7   : > { %12623 = vmatprep.subr.bf16.mxu0 %v12622_v42  ;;  %v9997_v42 = vld [vmem:[#allocation11 + $0x330] sm:$0xff] }
 0x9e8   : > { %v12664_v31 = vpack.c.bf16 %v9997_v42, %v9995_v41  ;;  %v10118_v42 = vld [vmem:[#allocation11 + $0x460] sm:$0xff] }
 0x9ea   : > { %12625 = vmatpush1.bf16.msra.mxu0 %v12624_v47  ;;  %v12666_v47 = vpack.c.bf16 %v10002_v46, %v10000_v45  ;;  %v10123_v45 = vld [vmem:[#allocation11 + $0x488] sm:$0xff]  ;;  %v10125_v46 = vld [vmem:[#allocation11 + $0x498] sm:$0xff] }
 0x9eb   : > { %12627 = vmatprep.subr.bf16.mxu0 %v12626_v49  ;;  %v9999_v49 = vld [vmem:[#allocation11 + $0x340] sm:$0xff] }
 0x9ed   : > { %9862 = vmatmul.mubr.f32.vlgmr.msra.gmra.mrb[20].mxu0 %v14879_v59  ;;  %v9890_v59 = vld [vmem:[#allocation11 + $0x270] sm:$0xff] }
 0x9ee   : > { %12629 = vmatpush1.bf16.msra.mxu0 %v12628_v54  ;;  %9867 = vmatprep.mubr.f32.mxu0 %v13740_v0  ;;  %v12640_v3 = vpack.c.bf16 %v9890_v59, %v9888_v11  ;;  %v12668_v54 = vpack.c.bf16 %v10001_v50, %v9999_v49  ;;  %v10013_v11 = vld [vmem:[#allocation11 + $0x3b0] sm:$0xff]  ;;  %v10016_v59 = vld [vmem:[#allocation11 + $0x3c8] sm:$0xff]  ;;  %v10122_v49 = vld [vmem:[#allocation11 + $0x480] sm:$0xff] }
 0x9ef   : > { %12631 = vmatprep.subr.bf16.mxu0 %v12630_v55  ;;  %v12670_v55 = vpack.c.bf16 %v10006_v53, %v10004_v52  ;;  %v10124_v50 = vld [vmem:[#allocation11 + $0x490] sm:$0xff]  ;;  %v10129_v52 = vld [vmem:[#allocation11 + $0x4b8] sm:$0xff] }
 0x9f0   : > { %v12708_v53 = vpack.c.bf16 %v10124_v50, %v10122_v49  ;;  %v10264_v49 = vld [vmem:[#allocation13 + $0x38] sm:$0xff]  ;;  %v10311_v50 = vld [vmem:[#allocation13 + $0x1b0] sm:$0xff] }
 0x9f1   : > { %9868 = vmatmul.mubr.f32.gmra.mrb[22].mxu0 %v9653_v37  ;;  %v10012_v37 = vld [vmem:[#allocation11 + $0x3a8] sm:$0xff] }
 0x9f2   : > { %12633 = vmatpush1.bf16.msra.mxu0 %v12632_v1  ;;  %9972 = vmatprep.mubr.f32.mxu0 %v13740_v0  ;;  %v12672_v1 = vpack.c.bf16 %v10005_v57, %v10003_v56  ;;  %v10128_v56 = vld [vmem:[#allocation11 + $0x4b0] sm:$0xff]  ;;  %v10131_v57 = vld [vmem:[#allocation11 + $0x4c8] sm:$0xff] }
 0x9f3   : > { %12635 = vmatprep.subr.bf16.mxu0 %v12634_v4  ;;  %v12674_v4 = vpack.c.bf16 %v10010_v63, %v10008_v58  ;;  %v10133_v58 = vld [vmem:[#allocation11 + $0x4d8] sm:$0xff] }
 0x9f6   : > { %12637 = vmatpush1.bf16.msra.mxu0 %v12636_v43  ;;  %v12678_v43 = vpack.c.bf16 %v10014_v6, %v10012_v37  ;;  %v10137_v37 = vld [vmem:[#allocation11 + $0x4f8] sm:$0xff] }
 0x9f7   : > { %12639 = vmatprep.subr.bf16.mxu0 %v12638_v9  ;;  %v10011_v9 = vld [vmem:[#allocation11 + $0x3a0] sm:$0xff] }
 0x9f8   : > { %v12680_v48 = vpack.c.bf16 %v10013_v11, %v10011_v9  ;;  %v10136_v9 = vld [vmem:[#allocation11 + $0x4f0] sm:$0xff] }
 0x9fa   : > { %12641 = vmatpush1.bf16.msra.mxu0 %v12640_v3  ;;  %v12682_v3 = vpack.c.bf16 %v10018_v12, %v10016_v59  ;;  %v10104_v59 = vld [vmem:[#allocation3 + $0x4] sm:$0xff]  ;;  %v10105_v12 = vld [vmem:[#allocation3 + $0xc] sm:$0x3] }
 0x9fb   : > { %12643 = vmatprep.subr.bf16.mxu0 %v12642_v13  ;;  %v10015_v13 = vld [vmem:[#allocation11 + $0x3c0] sm:$0xff] }
 0x9fc   : > { %v12684_v19 = vpack.c.bf16 %v10017_v14, %v10015_v13  ;;  %v10257_v14 = vld [vmem:[#allocation13] sm:$0xff] }
 0x9fe   : > { %12645 = vmatpush1.bf16.msra.mxu0 %v12644_v20  ;;  %v12686_v20 = vpack.c.bf16 %v10022_v17, %v10020_v16  ;;  %v10258_v16 = vld [vmem:[#allocation13 + $0x8] sm:$0xff]  ;;  %v10305_v17 = vld [vmem:[#allocation13 + $0x180] sm:$0xff] }
 0x9ff   : > { %12647 = vmatprep.subr.bf16.mxu0 %v12646_v60  ;;  %v10019_v60 = vld [vmem:[#allocation11 + $0x3e0] sm:$0xff] }
 0xa00   : > { %v12688_v23 = vpack.c.bf16 %v10021_v21, %v10019_v60  ;;  %v10289_v60 = vld [vmem:[#allocation13 + $0x100] sm:$0xff]  ;;  %v10290_v21 = vld [vmem:[#allocation13 + $0x108] sm:$0xff] }
 0xa02   : > { %12649 = vmatpush1.bf16.msra.mxu0 %v12648_v24  ;;  %v12690_v24 = vpack.c.bf16 %v10109_v22, %v10107_v61  ;;  %v12756_v22 = vpack.c.bf16 %v10290_v21, %v10289_v60  ;;  %v10285_v60 = vld [vmem:[#allocation13 + $0xe0] sm:$0xff]  ;;  %v10286_v21 = vld [vmem:[#allocation13 + $0xe8] sm:$0xff] }
 0xa03   : > { %12651 = vmatprep.subr.bf16.mxu0 %v12650_v62  ;;  %v10106_v62 = vld [vmem:[#allocation11 + $0x400] sm:$0xff] }
 0xa04   : > { %v12692_v27 = vpack.c.bf16 %v10108_v25, %v10106_v62  ;;  %v10259_v25 = vld [vmem:[#allocation13 + $0x10] sm:$0xff] }
 0xa06   : > { %12653 = vmatpush1.bf16.msra.mxu0 %v12652_v28  ;;  %v12694_v28 = vpack.c.bf16 %v10113_v26, %v10111_v2  ;;  %v10260_v2 = vld [vmem:[#allocation13 + $0x18] sm:$0xff]  ;;  %v10307_v26 = vld [vmem:[#allocation13 + $0x190] sm:$0xff] }
 0xa07   : > { %12655 = vmatprep.subr.bf16.mxu0 %v12654_v29  ;;  %v10110_v29 = vld [vmem:[#allocation11 + $0x420] sm:$0xff] }
 0xa0a   : > { %12657 = vmatpush1.bf16.msra.mxu0 %v12656_v33  ;;  %v12696_v33 = vpack.c.bf16 %v10112_v30, %v10110_v29  ;;  %v10291_v29 = vld [vmem:[#allocation13 + $0x110] sm:$0xff]  ;;  %v10292_v30 = vld [vmem:[#allocation13 + $0x118] sm:$0xff] }
 0xa0b   : > { %12659 = vmatprep.subr.bf16.mxu0 %v12658_v35  ;;  %v12698_v35 = vpack.c.bf16 %v10117_v15, %v10115_v32  ;;  %v12760_v32 = vpack.c.bf16 %v10292_v30, %v10291_v29  ;;  %v10277_v15 = vld [vmem:[#allocation13 + $0xa0] sm:$0xff]  ;;  %v10288_v29 = vld [vmem:[#allocation13 + $0xf8] sm:$0xff] }
 0xa0d   : > { %9973 = vmatmul.mubr.f32.vlgmr.msra.gmra.mrb[20].mxu0 %v9874_v44  ;;  %v10120_v44 = vld [vmem:[#allocation11 + $0x470] sm:$0xff] }
 0xa0e   : > { %12661 = vmatpush1.bf16.msra.mxu0 %v12660_v7  ;;  %9978 = vmatprep.mubr.f32.mxu0 %v13740_v0  ;;  %v10121_v7 = vld [vmem:[#allocation11 + $0x478] sm:$0xff] }
 0xa0f   : > { %12663 = vmatprep.subr.bf16.mxu0 %v12662_v40  ;;  %v12700_v40 = vpack.c.bf16 %v10116_v18, %v10114_v36  ;;  %v12702_v41 = vpack.c.bf16 %v10121_v7, %v10119_v39  ;;  %v10261_v36 = vld [vmem:[#allocation13 + $0x20] sm:$0xff]  ;;  %v10262_v18 = vld [vmem:[#allocation13 + $0x28] sm:$0xff] }
 0xa10   : > { %v12732_v39 = vpack.c.bf16 %v10262_v18, %v10261_v36  ;;  %v10310_v7 = vld [vmem:[#allocation13 + $0x1a8] sm:$0xff] }
 0xa11   : > { %9979 = vmatmul.mubr.f32.gmra.mrb[22].mxu0 %v9875_v51  ;;  %v10127_v51 = vld [vmem:[#allocation11 + $0x4a8] sm:$0xff] }
 0xa12   : > { %12665 = vmatpush1.bf16.msra.mxu0 %v12664_v31  ;;  %10087 = vmatprep.mubr.f32.mxu0 %v13740_v0  ;;  %v12704_v31 = vpack.c.bf16 %v10120_v44, %v10118_v42 }
 0xa13   : > { %12667 = vmatprep.subr.bf16.mxu0 %v12666_v47  ;;  %v12706_v47 = vpack.c.bf16 %v10125_v46, %v10123_v45  ;;  %v10279_v45 = vld [vmem:[#allocation13 + $0xb0] sm:$0xff]  ;;  %v10280_v46 = vld [vmem:[#allocation13 + $0xb8] sm:$0xff] }
 0xa16   : > { %12669 = vmatpush1.bf16.msra.mxu0 %v12668_v54  ;;  %v12710_v54 = vpack.c.bf16 %v10129_v52, %v10127_v51  ;;  %v10312_v51 = vld [vmem:[#allocation13 + $0x1b8] sm:$0xff] }
 0xa17   : > { %12671 = vmatprep.subr.bf16.mxu0 %v12670_v55  ;;  %v10126_v55 = vld [vmem:[#allocation11 + $0x4a0] sm:$0xff] }
 0xa18   : > { %v12712_v63 = vpack.c.bf16 %v10128_v56, %v10126_v55  ;;  %v10296_v55 = vld [vmem:[#allocation13 + $0x138] sm:$0xff]  ;;  %v10281_v56 = vld [vmem:[#allocation13 + $0xc0] sm:$0xff] }
 0xa1a   : > { %12673 = vmatpush1.bf16.msra.mxu0 %v12672_v1  ;;  %v12714_v1 = vpack.c.bf16 %v10133_v58, %v10131_v57  ;;  %v10282_v58 = vld [vmem:[#allocation13 + $0xc8] sm:$0xff] }
 0xa1b   : > { %12675 = vmatprep.subr.bf16.mxu0 %v12674_v4  ;;  %v10130_v4 = vld [vmem:[#allocation11 + $0x4c0] sm:$0xff] }
 0xa1c   : > { %v12716_v6 = vpack.c.bf16 %v10132_v34, %v10130_v4  ;;  %v12738_v4 = vpack.c.bf16 %v10282_v58, %v10281_v56 }
 0xa1e   : > { %12677 = vmatpush1.bf16.msra.mxu0 %v12676_v8  ;;  %v12718_v8 = vpack.c.bf16 %v10137_v37, %v10135_v5  ;;  %v10313_v5 = vld [vmem:[#allocation13 + $0x1c0] sm:$0xff]  ;;  %v10314_v37 = vld [vmem:[#allocation13 + $0x1c8] sm:$0xff] }
 0xa1f   : > { %12679 = vmatprep.subr.bf16.mxu0 %v12678_v43  ;;  %v10134_v43 = vld [vmem:[#allocation11 + $0x4e0] sm:$0xff] }
 0xa20   : > { %v12720_v11 = vpack.c.bf16 %v10136_v9, %v10134_v43  ;;  %v10298_v43 = vld [vmem:[#allocation13 + $0x148] sm:$0xff]  ;;  %v10283_v9 = vld [vmem:[#allocation13 + $0xd0] sm:$0xff] }
 0xa22   : > { %12681 = vmatpush1.bf16.msra.mxu0 %v12680_v48  ;;  %v10273_v48 = vld [vmem:[#allocation13 + $0x80] sm:$0xff] }
 0xa23   : > { %12683 = vmatprep.subr.bf16.mxu0 %v12682_v3  ;;  %v10274_v3 = vld [vmem:[#allocation13 + $0x88] sm:$0xff] }
 0xa24   : > { %v12722_v13 = vpack.c.bf16 %v10274_v3, %v10273_v48  ;;  %v10267_v48 = vld [vmem:[#allocation13 + $0x50] sm:$0xff]  ;;  %v10268_v3 = vld [vmem:[#allocation13 + $0x58] sm:$0xff] }
 0xa26   : > { %12685 = vmatpush1.bf16.msra.mxu0 %v12684_v19  ;;  %v12724_v19 = vpack.c.bf16 %v10258_v16, %v10257_v14  ;;  %v10316_v14 = vld [vmem:[#allocation13 + $0x1d8] sm:$0xff]  ;;  %v10299_v16 = vld [vmem:[#allocation13 + $0x150] sm:$0xff] }
 0xa27   : > { %12687 = vmatprep.subr.bf16.mxu0 %v12686_v20  ;;  %v10306_v20 = vld [vmem:[#allocation13 + $0x188] sm:$0xff] }
 0xa28   : > { %v12754_v61 = vpack.c.bf16 %v10306_v20, %v10305_v17  ;;  %v10300_v17 = vld [vmem:[#allocation13 + $0x158] sm:$0xff] }
 0xa2a   : > { %12689 = vmatpush1.bf16.msra.mxu0 %v12688_v23  ;;  %v10275_v23 = vld [vmem:[#allocation13 + $0x90] sm:$0xff]  ;;  %12755 = vmatprep.subr.bf16.mxu1 %v12754_v61  ;;  %v10269_v61 = vld [vmem:[#allocation13 + $0x60] sm:$0xff] }
 0xa2b   : > { %12691 = vmatprep.subr.bf16.mxu0 %v12690_v24  ;;  %v10276_v24 = vld [vmem:[#allocation13 + $0x98] sm:$0xff]  ;;  %12757 = vmatpush3.bf16.msra.mxu1 %v12756_v22  ;;  %v12746_v22 = vpack.c.bf16 %v10286_v21, %v10285_v60  ;;  %v10331_v60 = vld [vmem:[#allocation13 + $0x250] sm:$0xff] }
 0xa2c   : > { %v12726_v62 = vpack.c.bf16 %v10276_v24, %v10275_v23  ;;  %v10270_v23 = vld [vmem:[#allocation13 + $0x68] sm:$0xff]  ;;  %v10317_v24 = vld [vmem:[#allocation13 + $0x1e0] sm:$0xff]  ;;  %v10332_v21 = vld [vmem:[#allocation13 + $0x258] sm:$0xff] }
 0xa2d   : > { %10088 = vmatmul.mubr.f32.vlgmr.msra.gmra.mrb[20].mxu0 %v9989_v10  ;;  %v12748_v30 = vpack.c.bf16 %v10270_v23, %v10269_v61  ;;  %v12802_v61 = vpack.c.bf16 %v10332_v21, %v10331_v60  ;;  %v10334_v23 = vld [vmem:[#allocation13 + $0x268] sm:$0xff] }
 0xa2e   : > { %12693 = vmatpush1.bf16.msra.mxu0 %v12692_v27  ;;  %10093 = vmatprep.mubr.f32.mxu0 %v13740_v0  ;;  %v12728_v27 = vpack.c.bf16 %v10260_v2, %v10259_v25  ;;  %v12776_v25 = vpack.c.bf16 %v10300_v17, %v10299_v16  ;;  %v10287_v2 = vld [vmem:[#allocation13 + $0xf0] sm:$0xff]  ;;  %v10329_v17 = vld [vmem:[#allocation13 + $0x240] sm:$0xff] }
 0xa2f   : > { %12695 = vmatprep.subr.bf16.mxu0 %v12694_v28  ;;  %v10308_v28 = vld [vmem:[#allocation13 + $0x198] sm:$0xff] }
 0xa30   : > { %v12758_v10 = vpack.c.bf16 %v10308_v28, %v10307_v26  ;;  %v10302_v28 = vld [vmem:[#allocation13 + $0x168] sm:$0xff] }
 0xa31   : > { %10094 = vmatmul.mubr.f32.gmra.mrb[22].mxu0 %v9990_v38  ;;  %v10309_v38 = vld [vmem:[#allocation13 + $0x1a0] sm:$0xff] }
 0xa32   : > { %12697 = vmatpush1.bf16.msra.mxu0 %v12696_v33  ;;  %10202 = vmatprep.mubr.f32.mxu0 %v13740_v0  ;;  %v10278_v33 = vld [vmem:[#allocation13 + $0xa8] sm:$0xff]  ;;  %v12762_v42 = vpack.c.bf16 %v10310_v7, %v10309_v38  ;;  %v10303_v38 = vld [vmem:[#allocation13 + $0x170] sm:$0xff] }
 0xa33   : > { %12699 = vmatprep.subr.bf16.mxu0 %v12698_v35  ;;  %12759 = vmatprep.subr.bf16.mxu1 %v12758_v10  ;;  %v12730_v35 = vpack.c.bf16 %v10278_v33, %v10277_v15  ;;  %v10319_v10 = vld [vmem:[#allocation13 + $0x1f0] sm:$0xff]  ;;  %v12750_v15 = vpack.c.bf16 %v10288_v29, %v10287_v2 }
 0xa34   : > { %12761 = vmatpush3.bf16.msra.mxu1 %v12760_v32  ;;  %v10320_v32 = vld [vmem:[#allocation13 + $0x1f8] sm:$0xff]  ;;  %v10271_v33 = vld [vmem:[#allocation13 + $0x70] sm:$0xff] }
 0xa35   : > { %12763 = vmatprep.subr.bf16.mxu1 %v12762_v42  ;;  %v12782_v18 = vpack.c.bf16 %v10320_v32, %v10319_v10  ;;  %v10564_v10 = vld [vmem:[#allocation14 + $0x18] sm:$0xff] }
 0xa36   : > { %12701 = vmatpush1.bf16.msra.mxu0 %v12700_v40  ;;  %v10293_v40 = vld [vmem:[#allocation13 + $0x120] sm:$0xff] }
 0xa37   : > { %12703 = vmatprep.subr.bf16.mxu0 %v12702_v41  ;;  %v10294_v41 = vld [vmem:[#allocation13 + $0x128] sm:$0xff] }
 0xa38   : > { %v12764_v44 = vpack.c.bf16 %v10294_v41, %v10293_v40  ;;  %v13741_v41 = vmov 0.0|0.0  }
 0xa3a   : > { %12705 = vmatpush1.bf16.msra.mxu0 %v12704_v31  ;;  %v10263_v31 = vld [vmem:[#allocation13 + $0x30] sm:$0xff]  ;;  %12765 = vmatpush3.bf16.msra.mxu1 %v12764_v44 }
 0xa3b   : > { %12707 = vmatprep.subr.bf16.mxu0 %v12706_v47  ;;  %v12734_v47 = vpack.c.bf16 %v10280_v46, %v10279_v45  ;;  %v12736_v52 = vpack.c.bf16 %v10264_v49, %v10263_v31  ;;  %v13482_v46 = vld [vmem:[%s14956_s4] ss:$0 sm:$0xff] }
 0xa3e   : > { %12709 = vmatpush1.bf16.msra.mxu0 %v12708_v53  ;;  %v12766_v53 = vpack.c.bf16 %v10312_v51, %v10311_v50 }
 0xa3f   : > { %12711 = vmatprep.subr.bf16.mxu0 %v12710_v54  ;;  %v10295_v54 = vld [vmem:[#allocation13 + $0x130] sm:$0xff] }
 0xa40   : > { %v12768_v57 = vpack.c.bf16 %v10296_v55, %v10295_v54  ;;  %12767 = vmatprep.subr.bf16.mxu1 %v12766_v53 }
 0xa42   : > { %12713 = vmatpush1.bf16.msra.mxu0 %v12712_v63  ;;  %v10265_v63 = vld [vmem:[#allocation13 + $0x40] sm:$0xff]  ;;  %12769 = vmatpush3.bf16.msra.mxu1 %v12768_v57 }
 0xa43   : > { %12715 = vmatprep.subr.bf16.mxu0 %v12714_v1  ;;  %v10266_v1 = vld [vmem:[#allocation13 + $0x48] sm:$0xff] }
 0xa44   : > { %v12740_v34 = vpack.c.bf16 %v10266_v1, %v10265_v63 }
 0xa46   : > { %12717 = vmatpush1.bf16.msra.mxu0 %v12716_v6  ;;  %v10297_v6 = vld [vmem:[#allocation13 + $0x140] sm:$0xff] }
 0xa47   : > { %12719 = vmatprep.subr.bf16.mxu0 %v12718_v8  ;;  %v12770_v8 = vpack.c.bf16 %v10314_v37, %v10313_v5 }
 0xa49   : > { %12771 = vmatprep.subr.bf16.mxu1 %v12770_v8 }
 0xa4a   : > { %12721 = vmatpush1.bf16.msra.mxu0 %v12720_v11  ;;  %v10284_v11 = vld [vmem:[#allocation13 + $0xd8] sm:$0xff] }
 0xa4b   : > { %12723 = vmatprep.subr.bf16.mxu0 %v12722_v13  ;;  %v10315_v13 = vld [vmem:[#allocation13 + $0x1d0] sm:$0xff] }
 0xa4c   : > { %v12774_v20 = vpack.c.bf16 %v10316_v14, %v10315_v13  ;;  %v10327_v13 = vld [vmem:[#allocation13 + $0x230] sm:$0xff]  ;;  %v10328_v14 = vld [vmem:[#allocation13 + $0x238] sm:$0xff] }
 0xa4d   : > { %10203 = vmatmul.mubr.f32.vlgmr.msra.gmra.mrb[20].mxu0 %v10104_v59  ;;  %v12772_v59 = vpack.c.bf16 %v10298_v43, %v10297_v6  ;;  %v12796_v16 = vpack.c.bf16 %v10328_v14, %v10327_v13  ;;  %v11371_v13 = vld [vmem:[%s14958_s6] ss:$0 sm:$0xff] }
 0xa4e   : > { %10208 = vmatprep.mubr.f32.mxu0 %v13740_v0  ;;  %12725 = vmatpush3.bf16.msra.mxu0 %v12724_v19  ;;  %v12744_v19 = vpack.c.bf16 %v10268_v3, %v10267_v48  ;;  %v10326_v48 = vld [vmem:[#allocation13 + $0x228] sm:$0xff] }
 0xa4f   : > { %12727 = vmatprep.subr.bf16.mxu0 %v12726_v62  ;;  %v10318_v62 = vld [vmem:[#allocation13 + $0x1e8] sm:$0xff]  ;;  %12773 = vmatpush3.bf16.msra.mxu1 %v12772_v59 }
 0xa50   : > { %12775 = vmatprep.subr.bf16.mxu1 %v12774_v20  ;;  %v12778_v26 = vpack.c.bf16 %v10318_v62, %v10317_v24  ;;  %v10335_v62 = vld [vmem:[#allocation13 + $0x270] sm:$0xff] }
 0xa51   : > { %10209 = vmatmul.mubr.f32.gmra.mrb[22].mxu0 %v10105_v12  ;;  %v12742_v12 = vpack.c.bf16 %v10284_v11, %v10283_v9  ;;  %v10323_v9 = vld [vmem:[#allocation13 + $0x210] sm:$0xff]  ;;  %v10324_v11 = vld [vmem:[#allocation13 + $0x218] sm:$0xff] }
 0xa52   : > { %12729 = vmatpush3.bf16.msra.mxu0 %v12728_v27  ;;  %v10301_v27 = vld [vmem:[#allocation13 + $0x160] sm:$0xff]  ;;  %v12790_v59 = vpack.c.bf16 %v10324_v11, %v10323_v9 }
 0xa53   : > { %12731 = vmatprep.subr.bf16.mxu0 %v12730_v35  ;;  %v10272_v35 = vld [vmem:[#allocation13 + $0x78] sm:$0xff]  ;;  %12777 = vmatpush3.bf16.msra.mxu1 %v12776_v25  ;;  %v12780_v36 = vpack.c.bf16 %v10302_v28, %v10301_v27  ;;  %v10561_v27 = vld [vmem:[#allocation14] sm:$0xff]  ;;  %v10562_v28 = vld [vmem:[#allocation14 + $0x8] sm:$0xff] }
 0xa54   : > { %12779 = vmatprep.subr.bf16.mxu1 %v12778_v26  ;;  %v12752_v7 = vpack.c.bf16 %v10272_v35, %v10271_v33  ;;  %v10336_v25 = vld [vmem:[#allocation13 + $0x278] sm:$0xff]  ;;  %v12811_v29 = vpack.c.bf16 %v10562_v28, %v10561_v27  ;;  %v10566_v33 = vld [vmem:[#allocation14 + $0x28] sm:$0xff]  ;;  %v10667_v11 = vld [vmem:[#allocation16 + $0x60] sm:$0xff] }
 0xa55   : > { %v12808_v2 = vpack.c.bf16 %v10336_v25, %v10335_v62  ;;  %v11372_v25 = vld [vmem:[%s14986_s1] ss:$0 sm:$0xff] }
 0xa56   : > { %12733 = vmatpush3.bf16.msra.mxu0 %v12732_v39  ;;  %v10304_v39 = vld [vmem:[#allocation13 + $0x178] sm:$0xff] }
 0xa57   : > { %12735 = vmatprep.subr.bf16.mxu0 %v12734_v47  ;;  %12781 = vmatpush3.bf16.msra.mxu1 %v12780_v36  ;;  %v12784_v40 = vpack.c.bf16 %v10304_v39, %v10303_v38  ;;  %v10567_v36 = vld [vmem:[#allocation14 + $0x30] sm:$0xff]  ;;  %v10570_v39 = vld [vmem:[#allocation14 + $0x48] sm:$0xff] }
 0xa58   : > { %12783 = vmatprep.subr.bf16.mxu1 %v12782_v18  ;;  %v10568_v18 = vld [vmem:[#allocation14 + $0x38] sm:$0xff] }
 0xa59   : > { %v12820_v38 = vpack.c.bf16 %v10568_v18, %v10567_v36 }
 0xa5a   : > { %12737 = vmatpush3.bf16.msra.mxu0 %v12736_v52 }
 0xa5b   : > { %12739 = vmatprep.subr.bf16.mxu0 %v12738_v4  ;;  %12785 = vmatpush3.bf16.msra.mxu1 %v12784_v40  ;;  %v10321_v4 = vld [vmem:[#allocation13 + $0x200] sm:$0xff]  ;;  %v10571_v40 = vld [vmem:[#allocation14 + $0x50] sm:$0xff] }
 0xa5c   : > { %12810 = vmatprep.subr.bf16.mxu1 %v13741_v41 }
 0xa5e   : > { %12741 = vmatpush3.bf16.msra.mxu0 %v12740_v34  ;;  %v10322_v34 = vld [vmem:[#allocation13 + $0x208] sm:$0xff] }
 0xa5f   : > { %12743 = vmatprep.subr.bf16.mxu0 %v12742_v12  ;;  %v12787_v43 = vpack.c.bf16 %v10322_v34, %v10321_v4  ;;  %v10325_v12 = vld [vmem:[#allocation13 + $0x220] sm:$0xff]  ;;  %v10662_v4 = vld [vmem:[#allocation16 + $0x38] sm:$0xff] }
 0xa60   : > { %v12793_v3 = vpack.c.bf16 %v10326_v48, %v10325_v12 }
 0xa62   : > { %12745 = vmatpush3.bf16.msra.mxu0 %v12744_v19  ;;  %v10330_v19 = vld [vmem:[#allocation13 + $0x248] sm:$0xff] }
 0xa63   : > { %12747 = vmatprep.subr.bf16.mxu0 %v12746_v22  ;;  %v12799_v20 = vpack.c.bf16 %v10330_v19, %v10329_v17  ;;  %v10333_v22 = vld [vmem:[#allocation13 + $0x260] sm:$0xff] }
 0xa64   : > { %v12805_v24 = vpack.c.bf16 %v10334_v23, %v10333_v22 }
 0xa66   : > { %12749 = vmatpush3.bf16.msra.mxu0 %v12748_v30  ;;  %v10563_v30 = vld [vmem:[#allocation14 + $0x10] sm:$0xff] }
 0xa67   : > { %12751 = vmatprep.subr.bf16.mxu0 %v12750_v15  ;;  %v12814_v32 = vpack.c.bf16 %v10564_v10, %v10563_v30  ;;  %v10565_v15 = vld [vmem:[#allocation14 + $0x20] sm:$0xff] }
 0xa68   : > { %v12817_v35 = vpack.c.bf16 %v10566_v33, %v10565_v15 }
 0xa6a   : > { %12753 = vmatpush3.bf16.msra.mxu0 %v12752_v7 }
 0xa6b   : > { %12786 = vmatprep.subr.bf16.mxu0 %v13741_v41 }
 0xb20   : > { %v10204_v42 = vpop.f32.mrb[20].mxu0 }
 0xb21   : > { %v10206_v44 = vpop.f32.mrb[21].mxu0 }
 0xb22   : > { %v10219_v45 = vmax.f32 %v10204_v42, %v10206_v44  ;;  %v10572_v42 = vld [vmem:[#allocation14 + $0x58] sm:$0xff] }
 0xb23   : > { %v12826_v44 = vpack.c.bf16 %v10572_v42, %v10571_v40 }
 0xb24   : > { %v10228_v31 = vadd.f32 %v13482_v46, %v10219_v45  ;;  %v10210_v47 = vpop.f32.mrb[22].mxu0  ;;  %v10573_v45 = vld [vmem:[#allocation14 + $0x60] sm:$0xff] }
 0xb25   : > { %v10212_v49 = vpop.f32.mrb[23].mxu0 }
 0xb26   : > { %v10230_v50 = vmax.f32 %v10228_v31, 0.0  ;;  %v10220_v51 = vmax.f32 %v10210_v47, %v10212_v49  ;;  %v10575_v47 = vld [vmem:[#allocation14 + $0x70] sm:$0xff]  ;;  %v10576_v49 = vld [vmem:[#allocation14 + $0x78] sm:$0xff] }
 0xb28   : > { %10232 = vst [vmem:[#allocation4] sm:$0xff] %v10230_v50  ;;  %v10229_v52 = vadd.f32 %v13482_v46, %v10220_v51  ;;  %v10574_v46 = vld [vmem:[#allocation14 + $0x68] sm:$0xff]  ;;  %v12832_v50 = vpack.c.bf16 %v10576_v49, %v10575_v47  ;;  %v10655_v51 = vld [vmem:[#allocation16] sm:$0xff] }
 0xb29   : > { %v12829_v31 = vpack.c.bf16 %v10574_v46, %v10573_v45 }
 0xb2a   : > { %v10231_v53 = vmax.f32 %v10229_v52, 0.0  ;;  %v10656_v52 = vld [vmem:[#allocation16 + $0x8] sm:$0xff] }
 0xb2c   : > { %10233 = vst [vmem:[#allocation4 + $0x8] sm:$0x3] %v10231_v53  ;;  %v10657_v53 = vld [vmem:[#allocation16 + $0x10] sm:$0xff] }
 0xb33   : > { %v10234_v54 = vld [vmem:[#allocation4] ss:$2 sm:$0x1f]  ;;  %v10235_v55 = vld [vmem:[#allocation4 + $0x1] ss:$2 sm:$0x1f] }
 0xb34   : > { %v10236_v56 = vmax.f32 %v10234_v54, %v10235_v55  ;;  %v12835_v54 = vpack.c.bf16 %v10656_v52, %v10655_v51  ;;  %v10658_v55 = vld [vmem:[#allocation16 + $0x18] sm:$0xff] }
 0xb36   : > { %10237 = vst [vmem:[#allocation5 + $0x3] sm:$0x1] %v10236_v56  ;;  %v11368_v57 = vrot.slane %v10236_v56, 9  ;;  %v11369_v58 = vrot.slane %v10236_v56, 10  ;;  %v11370_v63 = vrot.slane %v10236_v56, 11  ;;  %v10251_v1 = vcombine.high %v10236_v56, %v10236_v56 }
 0xb37   : > { %v12838_v56 = vpack.c.bf16 %v10658_v55, %v10657_v53 }
 0xb38   : > { %10242 = vst [vmem:[#allocation5 + $0x7] sm:$0x1] %v11368_v57  ;;  %10246 = vst [vmem:[#allocation5 + $0xb] sm:$0x1] %v11369_v58  ;;  %v10659_v57 = vld [vmem:[#allocation16 + $0x20] sm:$0xff]  ;;  %v10660_v58 = vld [vmem:[#allocation16 + $0x28] sm:$0xff] }
 0xb39   : > { %10250 = vst [vmem:[#allocation5 + $0xf] sm:$0x1] %v11370_v63  ;;  %10253 = vst [vmem:[#allocation5 + $0x13] sm:$0x1] %v10251_v1  ;;  %v12841_v63 = vpack.c.bf16 %v10660_v58, %v10659_v57  ;;  %v10661_v1 = vld [vmem:[#allocation16 + $0x30] sm:$0xff] }
 0xb3a   : > { %v12844_v34 = vpack.c.bf16 %v10662_v4, %v10661_v1 }
 0xb3f   : > { %v10254_v5 = vld [vmem:[#allocation5] sm:$0xff] }
 0xb40   : > { %v10255_v37 = vld [vmem:[#allocation5 + $0x8] sm:$0xff]  ;;  %v10346_v6 = vcombine.high %v10254_v5, %v10254_v5  ;;  %v10256_v26 = vld [vmem:[#allocation5 + $0x10] sm:$0xf] }
 0xb41   : > { %v10347_v8 = vcombine.high %v10255_v37, %v10255_v37 }
 0xb42   : > { %10414 = vmatprep.mubr.f32.mxu0 %v10346_v6 }
 0xb43   : > { %10484 = vmatprep.mubr.f32.mxu1 %v10347_v8  ;;  %10415 = vmatmul.mubr.f32.vlgmr.msra.gmra.mrb[24].mxu0 %v10254_v5  ;;  %v10663_v5 = vld [vmem:[#allocation16 + $0x40] sm:$0xff]  ;;  %v10665_v8 = vld [vmem:[#allocation16 + $0x50] sm:$0xff] }
 0xb44   : > { %10485 = vmatmul.mubr.f32.vlgmr.msra.gmra.mrb[32].mxu1 %v10255_v37  ;;  %12788 = vmatpush3.bf16.msra.mxu0 %v12787_v43  ;;  %v10664_v37 = vld [vmem:[#allocation16 + $0x48] sm:$0xff]  ;;  %v10666_v43 = vld [vmem:[#allocation16 + $0x58] sm:$0xff] }
 0xb45   : > { %11529 = vmatprep.mubr.msk.f32.mxu0 %vm13742_vm1, %v13740_v0  ;;  %12789 = vmatprep.subr.bf16.mxu0 %v13741_v41  ;;  %v12847_v6 = vpack.c.bf16 %v10664_v37, %v10663_v5  ;;  %v12850_v9 = vpack.c.bf16 %v10666_v43, %v10665_v8 }
 0xb46   : > { %11564 = vmatprep.mubr.msk.f32.mxu1 %vm13742_vm1, %v13740_v0  ;;  %12812 = vmatpush3.bf16.msra.mxu1 %v12811_v29  ;;  %v11373_v29 = vld [vmem:[%s14987_s14] ss:$0 sm:$0xff] }
 0xb47   : > { %12813 = vmatprep.subr.bf16.mxu1 %v13741_v41 }
 0xb48   : > { %12791 = vmatpush3.bf16.msra.mxu0 %v12790_v59  ;;  %v10668_v59 = vld [vmem:[#allocation16 + $0x68] sm:$0xff] }
 0xb49   : > { %12792 = vmatprep.subr.bf16.mxu0 %v13741_v41  ;;  %v12853_v12 = vpack.c.bf16 %v10668_v59, %v10667_v11 }
 0xb4a   : > { %12815 = vmatpush3.bf16.msra.mxu1 %v12814_v32 }
 0xb4b   : > { %12816 = vmatprep.subr.bf16.mxu1 %v13741_v41 }
 0xb4c   : > { %12794 = vmatpush3.bf16.msra.mxu0 %v12793_v3 }
 0xb4d   : > { %12795 = vmatprep.subr.bf16.mxu0 %v13741_v41 }
 0xb4e   : > { %12818 = vmatpush3.bf16.msra.mxu1 %v12817_v35 }
 0xb4f   : > { %12819 = vmatprep.subr.bf16.mxu1 %v13741_v41 }
 0xb50   : > { %12797 = vmatpush3.bf16.msra.mxu0 %v12796_v16 }
 0xb51   : > { %12798 = vmatprep.subr.bf16.mxu0 %v13741_v41 }
 0xb52   : > { %12821 = vmatpush3.bf16.msra.mxu1 %v12820_v38 }
 0xb53   : > { %12822 = vmatprep.subr.bf16.mxu1 %v13741_v41 }
 0xb54   : > { %12800 = vmatpush3.bf16.msra.mxu0 %v12799_v20 }
 0xb55   : > { %12801 = vmatprep.subr.bf16.mxu0 %v13741_v41 }
 0xb58   : > { %12803 = vmatpush3.bf16.msra.mxu0 %v12802_v61 }
 0xb59   : > { %12804 = vmatprep.subr.bf16.mxu0 %v13741_v41 }
 0xb5c   : > { %12806 = vmatpush3.bf16.msra.mxu0 %v12805_v24  ;;  %v10670_v24 = vld [vmem:[#allocation16 + $0x78] sm:$0xff] }
 0xb5d   : > { %12807 = vmatprep.subr.bf16.mxu0 %v13741_v41 }
 0xb60   : > { %12809 = vmatpush3.bf16.msra.mxu0 %v12808_v2 }
 0xb61   : > { %12834 = vmatprep.subr.bf16.mxu0 %v13741_v41 }
 0xb63   : > { %11530 = vmatmul.mubr.f32.vlgmr.msra.gmra.mrb[26].mxu0 %v10256_v26 }
 0xb64   : > { %11599 = vmatprep.mubr.msk.f32.mxu0 %vm13742_vm1, %v13740_v0  ;;  %v10569_v0 = vld [vmem:[#allocation14 + $0x40] sm:$0xff]  ;;  %12836 = vmatpush3.bf16.msra.mxu0 %v12835_v54 }
 0xb65   : > { %v12823_v7 = vpack.c.bf16 %v10570_v39, %v10569_v0  ;;  %12837 = vmatprep.subr.bf16.mxu0 %v13741_v41 }
 0xb67   : > { %12824 = vmatpush3.bf16.msra.mxu1 %v12823_v7 }
 0xb68   : > { %12825 = vmatprep.subr.bf16.mxu1 %v13741_v41  ;;  %12839 = vmatpush3.bf16.msra.mxu0 %v12838_v56 }
 0xb69   : > { %12840 = vmatprep.subr.bf16.mxu0 %v13741_v41 }
 0xb6b   : > { %12827 = vmatpush3.bf16.msra.mxu1 %v12826_v44 }
 0xb6c   : > { %12828 = vmatprep.subr.bf16.mxu1 %v13741_v41  ;;  %12842 = vmatpush3.bf16.msra.mxu0 %v12841_v63 }
 0xb6d   : > { %12843 = vmatprep.subr.bf16.mxu0 %v13741_v41 }
 0xb6f   : > { %12830 = vmatpush3.bf16.msra.mxu1 %v12829_v31 }
 0xb70   : > { %12831 = vmatprep.subr.bf16.mxu1 %v13741_v41  ;;  %12845 = vmatpush3.bf16.msra.mxu0 %v12844_v34 }
 0xb71   : > { %12846 = vmatprep.subr.bf16.mxu0 %v13741_v41 }
 0xb73   : > { %12833 = vmatpush3.bf16.msra.mxu1 %v12832_v50 }
 0xb74   : > { %12848 = vmatpush3.bf16.msra.mxu0 %v12847_v6 }
 0xb75   : > { %12849 = vmatprep.subr.bf16.mxu0 %v13741_v41 }
 0xb78   : > { %12851 = vmatpush3.bf16.msra.mxu0 %v12850_v9 }
 0xb79   : > { %12852 = vmatprep.subr.bf16.mxu0 %v13741_v41 }
 0xb7c   : > { %12854 = vmatpush3.bf16.msra.mxu0 %v12853_v12 }
 0xb7d   : > { %12855 = vmatprep.subr.bf16.mxu0 %v13741_v41  ;;  %v10669_v41 = vld [vmem:[#allocation16 + $0x70] sm:$0xff] }
 0xb7e   : > { %v12856_v62 = vpack.c.bf16 %v10670_v24, %v10669_v41 }
 0xb80   : > { %12857 = vmatpush3.bf16.msra.mxu0 %v12856_v62 }
 0xc16   : > { %v11408_v48 = vpop.f32.mrb[24].mxu0 }
 0xc17   : > { %v11443_v3 = vpop.f32.mrb[32].mxu1  ;;  %v11409_v14 = vpop.f32.mrb[25].mxu0 }
 0xc18   : > { %v11444_v16 = vpop.f32.mrb[33].mxu1  ;;  %v11410_v17 = vadd.f32 %v11409_v14, %v11408_v48 }
 0xc19   : > { %v11445_v19 = vadd.f32 %v11444_v16, %v11443_v3 }
 0xc1a   : > { %v10417_v20 = vadd.f32 %v11410_v17, %v11371_v13 }
 0xc1c   : > { %v10487_v60 = vadd.f32 %v11445_v19, %v10417_v20 }
 0xc36   : > { %v10556_v21 = vpop.f32.mrb[26].mxu0 }
 0xc37   : > { %v10557_v61 = vadd.f32 %v10556_v21, %v10487_v60  ;;  %v11531_v22 = vpop.f32.mrb[27].mxu0 }
 0xc39   : > { %v10560_v23 = vmax.f32 %v10557_v61, 0.0 }
 0xc3b   : > { %11565 = vmatmul.mubr.f32.vlgmr.msra.gmra.mrb[34].mxu1 %v10560_v23 }
 0xd0e   : > { %v10650_v2 = vpop.f32.mrb[34].mxu1 }
 0xd0f   : > { %v10651_v26 = vadd.f32 %v11372_v25, %v10650_v2  ;;  %v11566_v27 = vpop.f32.mrb[35].mxu1 }
 0xd11   : > { %v10654_v28 = vmax.f32 %v10651_v26, 0.0 }
 0xd13   : > { %11600 = vmatmul.mubr.f32.vlgmr.msra.gmra.mrb[28].mxu0 %v10654_v28 }
 0xde6   : > { %v10744_v30 = vpop.f32.mrb[28].mxu0 }
 0xde7   : > { %v10745_v10 = vadd.f32 %v11373_v29, %v10744_v30  ;;  %v11601_v32 = vpop.f32.mrb[29].mxu0 }
 0xde9   : > { %10748 = vst [vmem:[%s491_s26] sm:$0xf] %v10745_v10 }
 0xdea PF: > { %p24_p0 = scmp.ge.s32.totalorder %s13982_s27, 4   ;;  %s14989_s17 = smov %s13719_s18 }
 0xdeb   : > { %s14990_s18 = smov %s13723_s19  ;;  %s14991_s19 = smov %s13994_s29 }
 0xdec   : > { %s14992_s20 = smov %s13982_s27  ;;  %26 = sbr.rel (!%p24_p0) target bundleno = 12 (0xc), region = 161 }
 0xdf3   :  { %10768 = vsyncpa [#allocation7], 1 }
 0xdf4   :  { %10770 = vsyncpa [#allocation7 + $0x1], 1 }
 0xdf5   :  { %10771 = vsyncpa [#allocation9], 1 }
 0xdf6   :  { %10772 = vsyncpa [#allocation12], 1 }
 0xdf7   :  { %10773 = vsyncpa [#allocation15], 1 }

</bundles_post_ra>
